<compile_context>
chip_gen: v6e
topology: v6e:2x2x1
jax: 0.10.0
libtpu: 0.0.40
codegen_flags: <defaults>
</compile_context>

<pallas_src>
import functools

import jax
import jax.numpy as jnp
from jax.experimental import pallas as pl
from jax.experimental.pallas import tpu as pltpu

BN_EPS = 1e-5


def _batchnorm_relu(y):
    # nn.BatchNorm1d fresh from __init__ (train mode): batch mean, biased batch
    # variance, gamma=1, beta=0, eps=1e-5; followed by ReLU.  Stays in f32.
    # NOTE: batch statistics over only B=2 rows (matches the PyTorch module,
    # but numerically fragile by construction).
    mean = jnp.mean(y, axis=0, keepdims=True)
    var = jnp.mean((y - mean) ** 2, axis=0, keepdims=True)
    return jnp.maximum((y - mean) * jax.lax.rsqrt(var + BN_EPS), 0.0)


# ----------------------------------------------------------------------------
# Fully fused forward kernel.
#   grid axis j: output-feature tiles of layer 1 (Linear(4096,2048)+BN+ReLU).
#   step 0     : GAP + 1x1 projection stand-in -> feat_sc (bf16, VMEM).
#   every step : one 512-wide tile of layer 1 -> h_sc (f32, VMEM).
#   last step  : tail Linear(2048,1024)+BN+ReLU -> Linear(1024,256)+BN+ReLU
#                -> Linear(256,1), weights resident in VMEM.
# ----------------------------------------------------------------------------
def _fused_kernel(x_ref, wp_ref, w1_ref, b1_ref, w2_ref, b2_ref,
                  w3_ref, b3_ref, w4_ref, b4_ref, o_ref,
                  feat_sc, h_sc, *, batch, feat_dim, tile_n):
    j = pl.program_id(0)

    @pl.when(j == 0)
    def _():
        # GAP before projection: mean(x) @ Wp == mean(x @ Wp).  Done once.
        pooled = jnp.mean(x_ref[...], axis=2)                      # (2B, C)
        feats = jnp.dot(pooled, wp_ref[...],
                        preferred_element_type=jnp.float32)        # (2B, F)
        feat_sc[...] = feats.astype(feat_sc.dtype)                 # bf16 cache

    feats = feat_sc[...]
    f1 = feats[:batch, :]                                          # (B, F)
    f2 = feats[batch:, :]                                          # (B, F)
    # combined @ W1 == f1 @ W1[:F] + f2 @ W1[F:]  (concat never materialised)
    y = jnp.dot(f1, w1_ref[:feat_dim, :], preferred_element_type=jnp.float32)
    y = y + jnp.dot(f2, w1_ref[feat_dim:, :], preferred_element_type=jnp.float32)
    y = y + b1_ref[...]
    col = pl.multiple_of(j * tile_n, tile_n)                       # lane-aligned
    h_sc[:, pl.ds(col, tile_n)] = _batchnorm_relu(y)               # (B, tile_n)

    @pl.when(j == pl.num_programs(0) - 1)
    def _():
        h = h_sc[...].astype(jnp.bfloat16)                         # (B, 2048)
        y2 = jnp.dot(h, w2_ref[...],
                     preferred_element_type=jnp.float32) + b2_ref[...]
        y2 = _batchnorm_relu(y2).astype(jnp.bfloat16)
        y3 = jnp.dot(y2, w3_ref[...],
                     preferred_element_type=jnp.float32) + b3_ref[...]
        y3 = _batchnorm_relu(y3).astype(jnp.bfloat16)
        y4 = jnp.dot(y3, w4_ref[...],
                     preferred_element_type=jnp.float32) + b4_ref[...]
        o_ref[...] = y4.astype(o_ref.dtype)      # (B, 1); masked store, harmless


def siamese_fused(x_stacked, w_proj, ws, bs, *, tile_n=512):
    B2, C, H, W = x_stacked.shape
    batch = B2 // 2
    feat_dim = w_proj.shape[1]
    w1, w2, w3, w4 = ws
    b1, b2, b3, b4 = bs
    N1, n2, n3, n4 = w1.shape[1], w2.shape[1], w3.shape[1], w4.shape[1]
    assert N1 % tile_n == 0
    x3 = x_stacked.reshape(B2, C, H * W)

    return pl.pallas_call(
        functools.partial(_fused_kernel, batch=batch, feat_dim=feat_dim,
                          tile_n=tile_n),
        out_shape=jax.ShapeDtypeStruct((batch, n4), jnp.float32),
        grid_spec=pltpu.PrefetchScalarGridSpec(
            num_scalar_prefetch=0,
            grid=(N1 // tile_n,),
            in_specs=[
                pl.BlockSpec((B2, C, H * W), lambda j: (0, 0, 0)),    # x (resident)
                pl.BlockSpec((C, feat_dim), lambda j: (0, 0)),        # Wp (resident)
                pl.BlockSpec((2 * feat_dim, tile_n), lambda j: (0, j)),  # W1 tile
                pl.BlockSpec((1, tile_n), lambda j: (0, j)),             # b1 tile
                pl.BlockSpec((N1, n2), lambda j: (0, 0)),             # W2 (resident)
                pl.BlockSpec((1, n2), lambda j: (0, 0)),
                pl.BlockSpec((n2, n3), lambda j: (0, 0)),             # W3 (resident)
                pl.BlockSpec((1, n3), lambda j: (0, 0)),
                pl.BlockSpec((n3, n4), lambda j: (0, 0)),             # W4 (resident)
                pl.BlockSpec((1, n4), lambda j: (0, 0)),
            ],
            out_specs=pl.BlockSpec((batch, n4), lambda j: (0, 0)),
            scratch_shapes=[
                pltpu.VMEM((B2, feat_dim), jnp.bfloat16),   # cached features
                pltpu.VMEM((batch, N1), jnp.float32),       # layer-1 activations
            ],
        ),
        compiler_params=pltpu.CompilerParams(
            # h scratch carries across steps and the tail runs on the last
            # step, so the grid axis must be sequential.
            dimension_semantics=("arbitrary",),
            # ~18 MiB working set (double-buffered 4 MiB W1 tile + ~4.5 MiB
            # resident tail weights); raise above v5e's 16 MiB default.
            vmem_limit_bytes=40 * 1024 * 1024,
        ),
    )(x3, w_proj, w1, b1.reshape(1, N1), w2, b2.reshape(1, n2),
      w3, b3.reshape(1, n3), w4, b4.reshape(1, n4))


# ----------------------------------------------------------------------------
# Parameters (deterministic, matching __init__ shapes & _init_params).
# ----------------------------------------------------------------------------
def _xavier_normal(key, fan_in, fan_out):
    std = (2.0 / (fan_in + fan_out)) ** 0.5
    return std * jax.random.normal(key, (fan_in, fan_out), jnp.float32)


def init_params(key, in_channels, feat_dim=2048):
    keys = jax.random.split(key, 5)
    # TODO(synk): full ResNet50 conv stack / pretrained checkpoint not
    # reproducible in-script; replaced by a deterministic 1x1-conv + GAP
    # stand-in so features have shape (B, 2048).
    w_proj = 0.05 * jax.random.normal(keys[0], (in_channels, feat_dim),
                                      jnp.float32)
    dims = [(2 * feat_dim, 2048), (2048, 1024), (1024, 256), (256, 1)]
    ws, bs = [], []
    for k, (fi, fo) in zip(keys[1:], dims):
        # Xavier-normal weight (drawn in f32, stored bf16: layers are HBM
        # weight-streaming bound; matmuls accumulate in f32), zero bias.
        ws.append(_xavier_normal(k, fi, fo).astype(jnp.bfloat16))
        bs.append(jnp.zeros((fo,), jnp.float32))
    return w_proj, ws, bs


# ----------------------------------------------------------------------------
# Full Siamese forward.
# ----------------------------------------------------------------------------
@jax.jit
def siamese_forward(x1, x2, w_proj, ws, bs):
    # Both images through one fused call (stacked along batch).
    # self.check(): NaN/Inf logging only -- no compute, skipped.
    x_stacked = jnp.concatenate([x1, x2], axis=0)           # (2B, C, H, W)
    return siamese_fused(x_stacked, w_proj, ws, bs)          # (B, 1)


if __name__ == "__main__":
    key = jax.random.PRNGKey(0)
    k_x1, k_x2, k_p = jax.random.split(key, 3)

    B, C, H, W = 2, 4, 16, 16                               # small NCHW inputs
    x1 = jax.random.normal(k_x1, (B, C, H, W), jnp.float32)
    x2 = jax.random.normal(k_x2, (B, C, H, W), jnp.float32)

    w_proj, ws, bs = init_params(k_p, in_channels=C, feat_dim=2048)

    out = siamese_forward(x1, x2, w_proj, ws, bs)
    out = jax.block_until_ready(out)
    assert out.shape == (B, 1) and out.dtype == jnp.float32
    print("KERNEL_OK")
</pallas_src>

<mosaic_0001>
module attributes {stable_mosaic.version = 11 : i64} {
  func.func @_fused_kernel(%arg0: i32, %arg1: memref<4x4x256xf32, #tpu.memory_space<vmem>>, %arg2: memref<4x2048xf32, #tpu.memory_space<vmem>>, %arg3: memref<4096x512xbf16, #tpu.memory_space<vmem>>, %arg4: memref<1x512xf32, #tpu.memory_space<vmem>>, %arg5: memref<2048x1024xbf16, #tpu.memory_space<vmem>>, %arg6: memref<1x1024xf32, #tpu.memory_space<vmem>>, %arg7: memref<1024x256xbf16, #tpu.memory_space<vmem>>, %arg8: memref<1x256xf32, #tpu.memory_space<vmem>>, %arg9: memref<256x1xbf16, #tpu.memory_space<vmem>>, %arg10: memref<1x1xf32, #tpu.memory_space<vmem>>, %arg11: memref<2x1xf32, #tpu.memory_space<vmem>>, %arg12: memref<4x2048xbf16, #tpu.memory_space<vmem>>, %arg13: memref<2x2048xf32, #tpu.memory_space<vmem>>) attributes {dimension_semantics = [#tpu.dimension_semantics<arbitrary>], iteration_bounds = array<i64: 4>, scalar_prefetch = 0 : i64, scratch_operands = 2 : i64, tpu.core_type = #tpu.core_type<tc>, window_params = [{pipeline_mode = #tpu.pipeline_mode<synchronous>, transform_indices = @transform_0, window_bounds = array<i64: 4, 4, 256>}, {pipeline_mode = #tpu.pipeline_mode<synchronous>, transform_indices = @transform_1, window_bounds = array<i64: 4, 2048>}, {transform_indices = @transform_2, window_bounds = array<i64: 4096, 512>}, {transform_indices = @transform_3, window_bounds = array<i64: 1, 512>}, {pipeline_mode = #tpu.pipeline_mode<synchronous>, transform_indices = @transform_4, window_bounds = array<i64: 2048, 1024>}, {pipeline_mode = #tpu.pipeline_mode<synchronous>, transform_indices = @transform_5, window_bounds = array<i64: 1, 1024>}, {pipeline_mode = #tpu.pipeline_mode<synchronous>, transform_indices = @transform_6, window_bounds = array<i64: 1024, 256>}, {pipeline_mode = #tpu.pipeline_mode<synchronous>, transform_indices = @transform_7, window_bounds = array<i64: 1, 256>}, {pipeline_mode = #tpu.pipeline_mode<synchronous>, transform_indices = @transform_8, window_bounds = array<i64: 256, 1>}, {pipeline_mode = #tpu.pipeline_mode<synchronous>, transform_indices = @transform_9, window_bounds = array<i64: 1, 1>}, {pipeline_mode = #tpu.pipeline_mode<synchronous>, transform_indices = @transform_10, window_bounds = array<i64: 2, 1>}]} {
    %c0_i32 = arith.constant 0 : i32
    %0 = arith.cmpi eq, %arg0, %c0_i32 : i32
    %1 = arith.extui %0 : i1 to i32
    %c0_i32_0 = arith.constant 0 : i32
    %2 = arith.cmpi ne, %1, %c0_i32_0 : i32
    scf.if %2 {
      %c0_16 = arith.constant 0 : index
      %c0_17 = arith.constant 0 : index
      %c0_18 = arith.constant 0 : index
      %41 = vector.load %arg1[%c0_16, %c0_17, %c0_18] : memref<4x4x256xf32, #tpu.memory_space<vmem>>, vector<4x4x256xf32>
      %cst_19 = arith.constant dense<0.000000e+00> : vector<4x4xf32>
      %42 = vector.multi_reduction <add>, %41, %cst_19 [2] : vector<4x4x256xf32> to vector<4x4xf32>
      %cst_20 = arith.constant 2.560000e+02 : f32
      %43 = vector.broadcast %cst_20 : f32 to vector<4x4xf32>
      %44 = arith.divf %42, %43 : vector<4x4xf32>
      %c0_21 = arith.constant 0 : index
      %c0_22 = arith.constant 0 : index
      %45 = vector.load %arg2[%c0_21, %c0_22] : memref<4x2048xf32, #tpu.memory_space<vmem>>, vector<4x2048xf32>
      %cst_23 = arith.constant dense<0.000000e+00> : vector<4x2048xf32>
      %46 = tpu.matmul %44, %45, %cst_23 {dimension_numbers = #tpu.dot_dimension_numbers<[1], [0], [0], [1], [0, 0, 1, 1], [], []>} : vector<4x4xf32>, vector<4x2048xf32>, vector<4x2048xf32> -> vector<4x2048xf32>
      %47 = arith.truncf %46 : vector<4x2048xf32> to vector<4x2048xbf16>
      %c0_24 = arith.constant 0 : index
      %c0_25 = arith.constant 0 : index
      %48 = vector.load %arg12[%c0_24, %c0_25] : memref<4x2048xbf16, #tpu.memory_space<vmem>>, vector<4x2048xbf16>
      tpu.vector_store %arg12[%c0_24, %c0_25], %47 {strides = array<i32>} : memref<4x2048xbf16, #tpu.memory_space<vmem>>, vector<4x2048xbf16>,
    } else {
    }
    %c0 = arith.constant 0 : index
    %c0_1 = arith.constant 0 : index
    %3 = vector.load %arg12[%c0, %c0_1] : memref<4x2048xbf16, #tpu.memory_space<vmem>>, vector<4x2048xbf16>
    %4 = vector.extract_strided_slice %3 {offsets = [0, 0], sizes = [2, 2048], strides = [1, 1]} : vector<4x2048xbf16> to vector<2x2048xbf16>
    %5 = vector.extract_strided_slice %3 {offsets = [2, 0], sizes = [2, 2048], strides = [1, 1]} : vector<4x2048xbf16> to vector<2x2048xbf16>
    %c0_2 = arith.constant 0 : index
    %c0_3 = arith.constant 0 : index
    %6 = vector.load %arg3[%c0_2, %c0_3] : memref<4096x512xbf16, #tpu.memory_space<vmem>>, vector<2048x512xbf16>
    %cst = arith.constant dense<0.000000e+00> : vector<2x512xf32>
    %7 = tpu.matmul %4, %6, %cst {dimension_numbers = #tpu.dot_dimension_numbers<[1], [0], [0], [1], [0, 0, 1, 1], [], []>} : vector<2x2048xbf16>, vector<2048x512xbf16>, vector<2x512xf32> -> vector<2x512xf32>
    %c2048 = arith.constant 2048 : index
    %c0_4 = arith.constant 0 : index
    %8 = vector.load %arg3[%c2048, %c0_4] : memref<4096x512xbf16, #tpu.memory_space<vmem>>, vector<2048x512xbf16>
    %cst_5 = arith.constant dense<0.000000e+00> : vector<2x512xf32>
    %9 = tpu.matmul %5, %8, %cst_5 {dimension_numbers = #tpu.dot_dimension_numbers<[1], [0], [0], [1], [0, 0, 1, 1], [], []>} : vector<2x2048xbf16>, vector<2048x512xbf16>, vector<2x512xf32> -> vector<2x512xf32>
    %10 = arith.addf %7, %9 : vector<2x512xf32>
    %c0_6 = arith.constant 0 : index
    %c0_7 = arith.constant 0 : index
    %11 = vector.load %arg4[%c0_6, %c0_7] : memref<1x512xf32, #tpu.memory_space<vmem>>, vector<1x512xf32>
    %12 = vector.broadcast %11 : vector<1x512xf32> to vector<2x512xf32>
    %13 = arith.addf %10, %12 : vector<2x512xf32>
    %c512_i32 = arith.constant 512 : i32
    %14 = arith.muli %arg0, %c512_i32 : i32
    %15 = tpu.assume_multiple %14, 512 : i32
    %cst_8 = arith.constant dense<0.000000e+00> : vector<512xf32>
    %16 = vector.multi_reduction <add>, %13, %cst_8 [0] : vector<2x512xf32> to vector<512xf32>
    %17 = vector.shape_cast %16 : vector<512xf32> to vector<1x512xf32>
    %cst_9 = arith.constant 2.000000e+00 : f32
    %18 = vector.broadcast %cst_9 : f32 to vector<1x512xf32>
    %19 = arith.divf %17, %18 : vector<1x512xf32>
    %20 = vector.broadcast %19 : vector<1x512xf32> to vector<2x512xf32>
    %21 = arith.subf %13, %20 : vector<2x512xf32>
    %22 = arith.mulf %21, %21 : vector<2x512xf32>
    %cst_10 = arith.constant dense<0.000000e+00> : vector<512xf32>
    %23 = vector.multi_reduction <add>, %22, %cst_10 [0] : vector<2x512xf32> to vector<512xf32>
    %24 = vector.shape_cast %23 : vector<512xf32> to vector<1x512xf32>
    %cst_11 = arith.constant 2.000000e+00 : f32
    %25 = vector.broadcast %cst_11 : f32 to vector<1x512xf32>
    %26 = arith.divf %24, %25 : vector<1x512xf32>
    %27 = vector.broadcast %19 : vector<1x512xf32> to vector<2x512xf32>
    %28 = arith.subf %13, %27 : vector<2x512xf32>
    %cst_12 = arith.constant 9.99999974E-6 : f32
    %29 = vector.broadcast %cst_12 : f32 to vector<1x512xf32>
    %30 = arith.addf %26, %29 : vector<1x512xf32>
    %31 = math.rsqrt %30 : vector<1x512xf32>
    %32 = vector.broadcast %31 : vector<1x512xf32> to vector<2x512xf32>
    %33 = arith.mulf %28, %32 : vector<2x512xf32>
    %cst_13 = arith.constant 0.000000e+00 : f32
    %34 = vector.broadcast %cst_13 : f32 to vector<2x512xf32>
    %35 = arith.maximumf %33, %34 : vector<2x512xf32>
    %c0_14 = arith.constant 0 : index
    %36 = arith.index_cast %15 : i32 to index
    %37 = vector.load %arg13[%c0_14, %36] : memref<2x2048xf32, #tpu.memory_space<vmem>>, vector<2x512xf32>
    tpu.vector_store %arg13[%c0_14, %36], %35 {strides = array<i32>} : memref<2x2048xf32, #tpu.memory_space<vmem>>, vector<2x512xf32>,
    %c3_i32 = arith.constant 3 : i32
    %38 = arith.cmpi eq, %arg0, %c3_i32 : i32
    %39 = arith.extui %38 : i1 to i32
    %c0_i32_15 = arith.constant 0 : i32
    %40 = arith.cmpi ne, %39, %c0_i32_15 : i32
    scf.if %40 {
      %c0_16 = arith.constant 0 : index
      %c0_17 = arith.constant 0 : index
      %41 = vector.load %arg13[%c0_16, %c0_17] : memref<2x2048xf32, #tpu.memory_space<vmem>>, vector<2x2048xf32>
      %42 = arith.truncf %41 : vector<2x2048xf32> to vector<2x2048xbf16>
      %c0_18 = arith.constant 0 : index
      %c0_19 = arith.constant 0 : index
      %43 = vector.load %arg5[%c0_18, %c0_19] : memref<2048x1024xbf16, #tpu.memory_space<vmem>>, vector<2048x1024xbf16>
      %cst_20 = arith.constant dense<0.000000e+00> : vector<2x1024xf32>
      %44 = tpu.matmul %42, %43, %cst_20 {dimension_numbers = #tpu.dot_dimension_numbers<[1], [0], [0], [1], [0, 0, 1, 1], [], []>} : vector<2x2048xbf16>, vector<2048x1024xbf16>, vector<2x1024xf32> -> vector<2x1024xf32>
      %c0_21 = arith.constant 0 : index
      %c0_22 = arith.constant 0 : index
      %45 = vector.load %arg6[%c0_21, %c0_22] : memref<1x1024xf32, #tpu.memory_space<vmem>>, vector<1x1024xf32>
      %46 = vector.broadcast %45 : vector<1x1024xf32> to vector<2x1024xf32>
      %47 = arith.addf %44, %46 : vector<2x1024xf32>
      %cst_23 = arith.constant dense<0.000000e+00> : vector<1024xf32>
      %48 = vector.multi_reduction <add>, %47, %cst_23 [0] : vector<2x1024xf32> to vector<1024xf32>
      %49 = vector.shape_cast %48 : vector<1024xf32> to vector<1x1024xf32>
      %cst_24 = arith.constant 2.000000e+00 : f32
      %50 = vector.broadcast %cst_24 : f32 to vector<1x1024xf32>
      %51 = arith.divf %49, %50 : vector<1x1024xf32>
      %52 = vector.broadcast %51 : vector<1x1024xf32> to vector<2x1024xf32>
      %53 = arith.subf %47, %52 : vector<2x1024xf32>
      %54 = arith.mulf %53, %53 : vector<2x1024xf32>
      %cst_25 = arith.constant dense<0.000000e+00> : vector<1024xf32>
      %55 = vector.multi_reduction <add>, %54, %cst_25 [0] : vector<2x1024xf32> to vector<1024xf32>
      %56 = vector.shape_cast %55 : vector<1024xf32> to vector<1x1024xf32>
      %cst_26 = arith.constant 2.000000e+00 : f32
      %57 = vector.broadcast %cst_26 : f32 to vector<1x1024xf32>
      %58 = arith.divf %56, %57 : vector<1x1024xf32>
      %59 = vector.broadcast %51 : vector<1x1024xf32> to vector<2x1024xf32>
      %60 = arith.subf %47, %59 : vector<2x1024xf32>
      %cst_27 = arith.constant 9.99999974E-6 : f32
      %61 = vector.broadcast %cst_27 : f32 to vector<1x1024xf32>
      %62 = arith.addf %58, %61 : vector<1x1024xf32>
      %63 = math.rsqrt %62 : vector<1x1024xf32>
      %64 = vector.broadcast %63 : vector<1x1024xf32> to vector<2x1024xf32>
      %65 = arith.mulf %60, %64 : vector<2x1024xf32>
      %cst_28 = arith.constant 0.000000e+00 : f32
      %66 = vector.broadcast %cst_28 : f32 to vector<2x1024xf32>
      %67 = arith.maximumf %65, %66 : vector<2x1024xf32>
      %68 = arith.truncf %67 : vector<2x1024xf32> to vector<2x1024xbf16>
      %c0_29 = arith.constant 0 : index
      %c0_30 = arith.constant 0 : index
      %69 = vector.load %arg7[%c0_29, %c0_30] : memref<1024x256xbf16, #tpu.memory_space<vmem>>, vector<1024x256xbf16>
      %cst_31 = arith.constant dense<0.000000e+00> : vector<2x256xf32>
      %70 = tpu.matmul %68, %69, %cst_31 {dimension_numbers = #tpu.dot_dimension_numbers<[1], [0], [0], [1], [0, 0, 1, 1], [], []>} : vector<2x1024xbf16>, vector<1024x256xbf16>, vector<2x256xf32> -> vector<2x256xf32>
      %c0_32 = arith.constant 0 : index
      %c0_33 = arith.constant 0 : index
      %71 = vector.load %arg8[%c0_32, %c0_33] : memref<1x256xf32, #tpu.memory_space<vmem>>, vector<1x256xf32>
      %72 = vector.broadcast %71 : vector<1x256xf32> to vector<2x256xf32>
      %73 = arith.addf %70, %72 : vector<2x256xf32>
      %cst_34 = arith.constant dense<0.000000e+00> : vector<256xf32>
      %74 = vector.multi_reduction <add>, %73, %cst_34 [0] : vector<2x256xf32> to vector<256xf32>
      %75 = vector.shape_cast %74 : vector<256xf32> to vector<1x256xf32>
      %cst_35 = arith.constant 2.000000e+00 : f32
      %76 = vector.broadcast %cst_35 : f32 to vector<1x256xf32>
      %77 = arith.divf %75, %76 : vector<1x256xf32>
      %78 = vector.broadcast %77 : vector<1x256xf32> to vector<2x256xf32>
      %79 = arith.subf %73, %78 : vector<2x256xf32>
      %80 = arith.mulf %79, %79 : vector<2x256xf32>
      %cst_36 = arith.constant dense<0.000000e+00> : vector<256xf32>
      %81 = vector.multi_reduction <add>, %80, %cst_36 [0] : vector<2x256xf32> to vector<256xf32>
      %82 = vector.shape_cast %81 : vector<256xf32> to vector<1x256xf32>
      %cst_37 = arith.constant 2.000000e+00 : f32
      %83 = vector.broadcast %cst_37 : f32 to vector<1x256xf32>
      %84 = arith.divf %82, %83 : vector<1x256xf32>
      %85 = vector.broadcast %77 : vector<1x256xf32> to vector<2x256xf32>
      %86 = arith.subf %73, %85 : vector<2x256xf32>
      %cst_38 = arith.constant 9.99999974E-6 : f32
      %87 = vector.broadcast %cst_38 : f32 to vector<1x256xf32>
      %88 = arith.addf %84, %87 : vector<1x256xf32>
      %89 = math.rsqrt %88 : vector<1x256xf32>
      %90 = vector.broadcast %89 : vector<1x256xf32> to vector<2x256xf32>
      %91 = arith.mulf %86, %90 : vector<2x256xf32>
      %cst_39 = arith.constant 0.000000e+00 : f32
      %92 = vector.broadcast %cst_39 : f32 to vector<2x256xf32>
      %93 = arith.maximumf %91, %92 : vector<2x256xf32>
      %94 = arith.truncf %93 : vector<2x256xf32> to vector<2x256xbf16>
      %c0_40 = arith.constant 0 : index
      %c0_41 = arith.constant 0 : index
      %95 = vector.load %arg9[%c0_40, %c0_41] : memref<256x1xbf16, #tpu.memory_space<vmem>>, vector<256x1xbf16>
      %cst_42 = arith.constant dense<0.000000e+00> : vector<2x1xf32>
      %96 = tpu.matmul %94, %95, %cst_42 {dimension_numbers = #tpu.dot_dimension_numbers<[1], [0], [0], [1], [0, 0, 1, 1], [], []>} : vector<2x256xbf16>, vector<256x1xbf16>, vector<2x1xf32> -> vector<2x1xf32>
      %c0_43 = arith.constant 0 : index
      %c0_44 = arith.constant 0 : index
      %97 = vector.load %arg10[%c0_43, %c0_44] : memref<1x1xf32, #tpu.memory_space<vmem>>, vector<1x1xf32>
      %98 = vector.broadcast %97 : vector<1x1xf32> to vector<2x1xf32>
      %99 = arith.addf %96, %98 : vector<2x1xf32>
      %c0_45 = arith.constant 0 : index
      %c0_46 = arith.constant 0 : index
      %100 = vector.load %arg11[%c0_45, %c0_46] : memref<2x1xf32, #tpu.memory_space<vmem>>, vector<2x1xf32>
      tpu.vector_store %arg11[%c0_45, %c0_46], %99 {strides = array<i32>} : memref<2x1xf32, #tpu.memory_space<vmem>>, vector<2x1xf32>,
    } else {
    }
    return
  }
  func.func @transform_0(%arg0: i32) -> (i32, i32, i32) {
    %c0_i32 = arith.constant 0 : i32
    %c0_i32_0 = arith.constant 0 : i32
    %c0_i32_1 = arith.constant 0 : i32
    %c0_i32_2 = arith.constant 0 : i32
    return %c0_i32, %c0_i32_0, %c0_i32_1 : i32, i32, i32
  }
  func.func @transform_1(%arg0: i32) -> (i32, i32) {
    %c0_i32 = arith.constant 0 : i32
    %c0_i32_0 = arith.constant 0 : i32
    %c0_i32_1 = arith.constant 0 : i32
    return %c0_i32, %c0_i32_0 : i32, i32
  }
  func.func @transform_2(%arg0: i32) -> (i32, i32) {
    %c0_i32 = arith.constant 0 : i32
    %c0_i32_0 = arith.constant 0 : i32
    return %c0_i32, %arg0 : i32, i32
  }
  func.func @transform_3(%arg0: i32) -> (i32, i32) {
    %c0_i32 = arith.constant 0 : i32
    %c0_i32_0 = arith.constant 0 : i32
    return %c0_i32, %arg0 : i32, i32
  }
  func.func @transform_4(%arg0: i32) -> (i32, i32) {
    %c0_i32 = arith.constant 0 : i32
    %c0_i32_0 = arith.constant 0 : i32
    %c0_i32_1 = arith.constant 0 : i32
    return %c0_i32, %c0_i32_0 : i32, i32
  }
  func.func @transform_5(%arg0: i32) -> (i32, i32) {
    %c0_i32 = arith.constant 0 : i32
    %c0_i32_0 = arith.constant 0 : i32
    %c0_i32_1 = arith.constant 0 : i32
    return %c0_i32, %c0_i32_0 : i32, i32
  }
  func.func @transform_6(%arg0: i32) -> (i32, i32) {
    %c0_i32 = arith.constant 0 : i32
    %c0_i32_0 = arith.constant 0 : i32
    %c0_i32_1 = arith.constant 0 : i32
    return %c0_i32, %c0_i32_0 : i32, i32
  }
  func.func @transform_7(%arg0: i32) -> (i32, i32) {
    %c0_i32 = arith.constant 0 : i32
    %c0_i32_0 = arith.constant 0 : i32
    %c0_i32_1 = arith.constant 0 : i32
    return %c0_i32, %c0_i32_0 : i32, i32
  }
  func.func @transform_8(%arg0: i32) -> (i32, i32) {
    %c0_i32 = arith.constant 0 : i32
    %c0_i32_0 = arith.constant 0 : i32
    %c0_i32_1 = arith.constant 0 : i32
    return %c0_i32, %c0_i32_0 : i32, i32
  }
  func.func @transform_9(%arg0: i32) -> (i32, i32) {
    %c0_i32 = arith.constant 0 : i32
    %c0_i32_0 = arith.constant 0 : i32
    %c0_i32_1 = arith.constant 0 : i32
    return %c0_i32, %c0_i32_0 : i32, i32
  }
  func.func @transform_10(%arg0: i32) -> (i32, i32) {
    %c0_i32 = arith.constant 0 : i32
    %c0_i32_0 = arith.constant 0 : i32
    %c0_i32_1 = arith.constant 0 : i32
    return %c0_i32, %c0_i32_0 : i32, i32
  }
}

</mosaic_0001>

<bundles_post_ra>
// kernel: siamese_forward.1
= control target key start
LH: loop header
LB: loop body
LE: loop exit
PB: predicated region body
PF: predicated region fallthrough
CT: control target
= control target key end

     0   :  { %s24474_s0 = inlined_call_operand.vmem [shape: f32[4,4,256], index: 0, kind: input, shape index: {}]   ;;  %s24475_s1 = inlined_call_operand.hbm [shape: f32[4,2048], index: 1, kind: input, shape index: {}]   ;;  %s24476_s2 = inlined_call_operand.hbm [shape: bf16[4096,2048], index: 2, kind: input, shape index: {}]   ;;  %s24477_s3 = inlined_call_operand.hbm [shape: f32[1,2048], index: 3, kind: input, shape index: {}]   ;;  %s24478_s4 = inlined_call_operand.hbm [shape: bf16[2048,1024], index: 4, kind: input, shape index: {}]   ;;  %s24479_s5 = inlined_call_operand.hbm [shape: f32[1,1024], index: 5, kind: input, shape index: {}]   ;;  %s24480_s6 = inlined_call_operand.hbm [shape: bf16[1024,256], index: 6, kind: input, shape index: {}]   ;;  %s24481_s7 = inlined_call_operand.hbm [shape: f32[1,256], index: 7, kind: input, shape index: {}]   ;;  %s24482_s8 = inlined_call_operand.vmem [shape: bf16[256,1], index: 8, kind: input, shape index: {}]   ;;  %s24483_s9 = inlined_call_operand.<no memory space> [shape: f32[1,1], index: 9, kind: input, shape index: {}]   ;;  %s24484_s10 = inlined_call_operand.vmem [shape: f32[2,1], index: 10, kind: output, shape index: {}]  }
   0x1   :  { %24494 = sst [smem:[#allocation20_spill]] %s24476_s2  ;;  %v15_v0 = vstv %s24483_s9 }
   0x2   :  { %24495 = sst [smem:[#allocation21_spill]] %s24478_s4  ;;  %16 = vst [vmem:[#allocation4] sm:$0x1] %v15_v0 }
   0x3   :  { %24496 = sst [smem:[#allocation22_spill]] %s24480_s6 }
   0x4   :  { %17 = vsyncpa [#allocation6], 0 }
   0x5   :  { %18 = vsyncpa [#allocation8], 0 }
   0x6   :  { %20 = vsyncpa [#allocation8 + $0x1], 0 }
   0x7   :  { %21 = vsyncpa [#allocation11], 0 }
   0x8   :  { %22 = vsyncpa [#allocation14], 0  ;;  %s22563_s15 = smov 0   ;;  %s22565_s16 = smov 0  }
   0x9   :  { %s22567_s17 = smov 0   ;;  %s22569_s18 = smov 0  }
   0xa LB: > { %s22582_s9 = sadd.s32 4294967295, %s22486_s18   ;;  %p90_p0 = scmp.ne.s32.totalorder %s22478_s16, %s22474_s15  ;;  %s22486_s18 = sphi %s22569_s18, %s24522_s18   ;;  %s22482_s17 = sphi %s22567_s17, %s24521_s17   ;;  %s22478_s16 = sphi %s22565_s16, %s24520_s16   ;;  %s22474_s15 = sphi %s22563_s15, %s24519_s15  }
   0xb   : > { %p24485_p1 = scmp.eq.s32.totalorder %s22582_s9, 0  ;;  %p18078_p2 = scmp.ge.s32.totalorder %s22486_s18, 1 }
   0xc   : > { %p274_p3 = scmp.lt.s32.totalorder %s22486_s18, 5  ;;  %s22488_s21 = smov [#allocation10]  }
   0xd   : > { %p22591_p5 = por %p24485_p1, %p90_p0  ;;  %s300_s22 = sshll.u32 %s22488_s21, 4  ;;  %s301_s22 = int_to_ptr.vmem [resolvable:$true] %s300_s22 }
   0xe   : > { %p22595_p6 = pnand %p18078_p2, %p274_p3  ;;  %s22489_s24 = smov [#allocation13]  }
   0xf   : > { %s24497_s19 = scalar_select %p22591_p5, 1, 0 }
  0x10   : > { %s24498_s20 = scalar_select %p22595_p6, 1, 0 }
  0x11   : > { %p20378_p7 = pneg %p22595_p6  ;;  %s324_s25 = sshll.u32 %s22489_s24, 4  ;;  %s325_s25 = int_to_ptr.vmem [resolvable:$true] %s324_s25 }
  0x12   : > { %s22265_s27 = scalar_lea.vmem %s301_s22, 131072  ;;  %p22273_p13 = scmp.lt.s32.totalorder %s301_s22, %s301_s22 }
  0x13   : > { %p22603_p8 = pnand %p20378_p7, %p24485_p1  ;;  %p22266_p10 = scmp.ne.s32.totalorder %s301_s22, %s22265_s27 }
  0x14   : > { %p22274_p0 = scmp.lt.s32.totalorder %s22265_s27, %s22265_s27 }
  0x15   : > { %s24499_s23 = scalar_select %p22603_p8, 1, 0 }
  0x16   : > { %p22609_p9 = pneg %p22603_p8  ;;  %p22275_p2 = por %p22274_p0, %p22273_p13 }
  0x18   : > { %p22268_p11 = pnand %p22266_p10, %p22609_p9 }
  0x1a   : > { %p22269_p12 = pneg %p22268_p11 }
  0x1c   : > { %p22276_p3 = pnand %p22275_p2, %p22269_p12 }
  0x1e   : > { %22279 = shalt.err (!%p22276_p3)
}
  0x1f   : > { %s22490_s28 = smov 512   ;;  %s22491_s29 = smov 32  }
  0x20   : > { %s24501_s4 = sld [smem:[#allocation21_spill]]  ;;  %s22291_s12 = scalar_lea.vmem %s325_s25, 16384 }
  0x21   : > { %p22292_p7 = scmp.ne.s32.totalorder %s325_s25, %s22291_s12  ;;  %p22299_p11 = scmp.lt.s32.totalorder %s325_s25, %s325_s25 }
  0x22   : > { %p22300_p1 = scmp.lt.s32.totalorder %s22291_s12, %s22291_s12 }
  0x23   : > { %p22294_p4 = pnand %p22292_p7, %p22609_p9 }
  0x24   : > { %p22301_p5 = por %p22300_p1, %p22299_p11 }
  0x25   : > { %p22295_p10 = pneg %p22294_p4 }
  0x26   : > { %20384 = dma.hbm_to_vmem [thread:$0]  (!%p22603_p8), %s24501_s4, 131072, %s301_s22, [#allocation11], %s22490_s28, %s22490_s28, %s22491_s29  }
  0x27   : > { %p22302_p13 = pnand %p22301_p5, %p22295_p10 }
  0x29   : > { %22305 = shalt.err (!%p22302_p13)
}
  0x2a   : > { %s22492_s13 = smov 128   ;;  %s22493_s14 = smov 8  }
  0x2b   : > { %s24502_s6 = sld [smem:[#allocation22_spill]]  ;;  %s22628_s22 = sadd.s32 1, %s22486_s18  }
  0x2c   : > { %s74_s24 = ssub.s32 %s22486_s18, %s22628_s22  ;;  %s77_s27 = sadd.s32 1, %s22482_s17 }
  0x2d   : > { %p75_p1 = scmp.eq.s32.totalorder %s74_s24, 0  ;;  %p84_p4 = scmp.ne.s32.totalorder %s22482_s17, %s22478_s16 }
  0x2e   : > { %p85_p5 = scmp.eq.s32.totalorder %s22486_s18, 0  ;;  %p20406_p0 = scmp.lt.s32.totalorder %s22486_s18, 4 }
  0x2f   : > { %s22637_s28 = scalar_select %p75_p1, %s22482_s17, %s77_s27  }
  0x30   : > { %p86_p12 = por %p85_p5, %p84_p4  ;;  %s355_s29 = sand.u32 1, %s22486_s18  }
  0x31   : > { %20390 = dma.hbm_to_vmem [thread:$0]  (!%p22603_p8), %s24502_s6, 16384, %s325_s25, [#allocation14], %s22492_s13, %s22492_s13, %s22493_s14  }
  0x32   : > { %s24487_s30 = sand.u32 1, %s22482_s17   ;;  %s20330_s12 = sshll.u32 %s22486_s18, 8 }
  0x33   : > { %s18085_s11 = sshll.u32 %s24487_s30, 13  ;;  %s24503_s2 = sld [smem:[#allocation20_spill]] }
  0x34   : > { %s359_s13 = scalar_lea.vmem [#allocation7], %s18085_s11  ;;  %p22652_p2 = pnand %p20406_p0, %p86_p12 }
  0x35   : > { %s366_s14 = sshll.u32 %s359_s13, 4  ;;  %s22656_s24 = scalar_lea.sflag [#allocation8], %s355_s29  ;;  %s22650_s14 = int_to_ptr.vmem [resolvable:$true] %s366_s14 }
  0x36   : > { %s24504_s21 = scalar_select %p22652_p2, 1, 0 }
  0x37   : > { %p24491_p7 = pneg %p22652_p2 }
  0x39   : > { %s22648_s25 = scalar_lea.hbm %s24503_s2, %s20330_s12  ;;  %s22311_s12 = scalar_lea.hbm %s24503_s2, 524288 }
  0x3a   : > { %s22306_s27 = scalar_lea.hbm %s22648_s25, 131072  ;;  %p22312_p13 = scmp.lt.s32.totalorder %s22648_s25, %s24503_s2 }
  0x3b   : > { %p22307_p3 = scmp.ne.s32.totalorder %s22648_s25, %s22306_s27  ;;  %p22313_p1 = scmp.lt.s32.totalorder %s22311_s12, %s22306_s27 }
  0x3d   : > { %p22309_p10 = pnand %p24491_p7, %p22307_p3  ;;  %p22314_p4 = por %p22313_p1, %p22312_p13 }
  0x3f   : > { %p22310_p11 = pneg %p22309_p10 }
  0x41   : > { %p22315_p5 = pnand %p22314_p4, %p22310_p11 }
  0x43   : > { %22318 = shalt.err (!%p22315_p5)
}
  0x44   : > { %s22319_s29 = scalar_lea.vmem %s22650_s14, 131072  ;;  %s22494_s4 = smov [#allocation7]  }
  0x45   : > { %p22320_p12 = scmp.ne.s32.totalorder %s22650_s14, %s22319_s29  ;;  %s22324_s11 = sshll.u32 %s22494_s4, 4  ;;  %s22325_s11 = int_to_ptr.vmem [resolvable:$false] %s22324_s11 }
  0x46   : > { %s22326_s30 = scalar_lea.vmem %s22325_s11, 262144  ;;  %p22327_p10 = scmp.lt.s32.totalorder %s22650_s14, %s22325_s11 }
  0x47   : > { %p22322_p0 = pnand %p22320_p12, %p24491_p7  ;;  %p22328_p6 = scmp.lt.s32.totalorder %s22326_s30, %s22319_s29 }
  0x49   : > { %p22323_p3 = pneg %p22322_p0  ;;  %p22329_p8 = por %p22328_p6, %p22327_p10 }
  0x4b   : > { %p22330_p13 = pnand %p22329_p8, %p22323_p3 }
  0x4d   : > { %22333 = shalt.err (!%p22330_p13)
}
  0x4e   : > { %s22495_s27 = smov 1024   ;;  %s22496_s12 = smov 256  }
  0x4f   : > { %s22497_s15 = smov 16   ;;  %s22498_s13 = smov [#allocation5]  }
  0x50   : > { %20397 = dma.hbm_to_vmem [thread:$0]  (!%p22652_p2), %s22648_s25, 131072, %s22650_s14, %s22656_s24, %s22495_s27, %s22496_s12, %s22497_s15  }
  0x51   : > { %s290_s2 = sshll.u32 %s22498_s13, 4  ;;  %s22499_s4 = smov [#allocation12]   ;;  %s291_s2 = int_to_ptr.vmem [resolvable:$true] %s290_s2 }
  0x52   : > { %s314_s6 = sshll.u32 %s22499_s4, 4  ;;  %s22345_s30 = scalar_lea.vmem %s291_s2, 1024  ;;  %s315_s6 = int_to_ptr.vmem [resolvable:$true] %s314_s6 }
  0x53   : > { %p22346_p6 = scmp.ne.s32.totalorder %s291_s2, %s22345_s30  ;;  %p22353_p1 = scmp.lt.s32.totalorder %s291_s2, %s291_s2 }
  0x54   : > { %p22354_p4 = scmp.lt.s32.totalorder %s22345_s30, %s22345_s30 }
  0x55   : > { %p22348_p8 = pnand %p22346_p6, %p22609_p9 }
  0x56   : > { %p22355_p5 = por %p22354_p4, %p22353_p1 }
  0x57   : > { %p22349_p11 = pneg %p22348_p8 }
  0x59   : > { %p22356_p12 = pnand %p22355_p5, %p22349_p11 }
  0x5b   : > { %22359 = shalt.err (!%p22356_p12)
}
  0x5c   : > { %p24505_p0 = scmp.ne.s32.totalorder %s24499_s23, 0  ;;  %s22371_s14 = scalar_lea.vmem %s315_s6, 128 }
  0x5d   : > { %p22372_p3 = scmp.ne.s32.totalorder %s315_s6, %s22371_s14  ;;  %p22379_p7 = scmp.lt.s32.totalorder %s315_s6, %s315_s6 }
  0x5e   : > { %20381 = dma.hbm_to_vmem [thread:$0]  (!%p24505_p0), %s24475_s1, 1024, %s291_s2, [#allocation6]  }
  0x5f   : > { %p22374_p10 = pnand %p22372_p3, %p22609_p9  ;;  %p22380_p6 = scmp.lt.s32.totalorder %s22371_s14, %s22371_s14 }
  0x61   : > { %p22375_p13 = pneg %p22374_p10  ;;  %p22381_p8 = por %p22380_p6, %p22379_p7 }
  0x63   : > { %p22382_p2 = pnand %p22381_p8, %p22375_p13 }
  0x65   : > { %22385 = shalt.err (!%p22382_p2)
}
  0x66   : > { %20387 = dma.hbm_to_vmem [thread:$0]  (!%p24505_p0), %s24479_s5, 128, %s315_s6, [#allocation11]  }
  0x67   : > { %s24506_s2 = sand.u32 1, %s22482_s17   ;;  %s22500_s15 = smov [#allocation15]  }
  0x68   : > { %s18088_s12 = sshll.u32 %s24506_s2, 2  ;;  %s338_s13 = sshll.u32 %s22500_s15, 4  ;;  %s339_s13 = int_to_ptr.vmem [resolvable:$true] %s338_s13 }
  0x69   : > { %s20331_s4 = sshll.u32 %s22486_s18, 6  ;;  %s22397_s30 = scalar_lea.vmem %s339_s13, 32 }
  0x6a   : > { %p22398_p11 = scmp.ne.s32.totalorder %s339_s13, %s22397_s30  ;;  %p22405_p1 = scmp.lt.s32.totalorder %s339_s13, %s339_s13 }
  0x6b   : > { %p22406_p4 = scmp.lt.s32.totalorder %s22397_s30, %s22397_s30 }
  0x6c   : > { %p22400_p7 = pnand %p22398_p11, %p22609_p9 }
  0x6d   : > { %p22407_p5 = por %p22406_p4, %p22405_p1 }
  0x6e   : > { %p22401_p2 = pneg %p22400_p7 }
  0x70   : > { %p22408_p12 = pnand %p22407_p5, %p22401_p2 }
  0x72   : > { %22411 = shalt.err (!%p22408_p12)
}
  0x73   : > { %20393 = dma.hbm_to_vmem [thread:$0]  (!%p24505_p0), %s24481_s7, 32, %s339_s13, [#allocation14]  }
  0x74   : > { %s386_s18 = scalar_lea.hbm %s24477_s3, %s20331_s4  ;;  %s380_s11 = scalar_lea.vmem [#allocation9], %s18088_s12 }
  0x75   : > { %s388_s26 = sshll.u32 %s380_s11, 4  ;;  %s22412_s27 = scalar_lea.hbm %s386_s18, 64  ;;  %s389_s26 = int_to_ptr.vmem [resolvable:$true] %s388_s26 }
  0x76   : > { %p22413_p9 = scmp.ne.s32.totalorder %s386_s18, %s22412_s27  ;;  %p24507_p3 = scmp.ne.s32.totalorder %s24504_s21, 0 }
  0x77   : > { %s22417_s15 = scalar_lea.hbm %s24477_s3, 256  ;;  %p22418_p0 = scmp.lt.s32.totalorder %s386_s18, %s24477_s3 }
  0x78   : > { %p24508_p10 = pneg %p24507_p3  ;;  %p22419_p8 = scmp.lt.s32.totalorder %s22417_s15, %s22412_s27 }
  0x7a   : > { %p22415_p13 = pnand %p22413_p9, %p24508_p10  ;;  %p22420_p11 = por %p22419_p8, %p22418_p0 }
  0x7c   : > { %p22416_p6 = pneg %p22415_p13 }
  0x7e   : > { %p22421_p7 = pnand %p22420_p11, %p22416_p6 }
  0x80   : > { %22424 = shalt.err (!%p22421_p7)
}
  0x81   : > { %s22425_s12 = scalar_lea.vmem %s389_s26, 64  ;;  %p24509_p1 = pmov %p24508_p10 }
  0x82   : > { %p22426_p2 = scmp.ne.s32.totalorder %s389_s26, %s22425_s12  ;;  %s22501_s13 = smov [#allocation9]  }
  0x83   : > { %s22430_s4 = sshll.u32 %s22501_s13, 4  ;;  %s22431_s4 = int_to_ptr.vmem [resolvable:$false] %s22430_s4 }
  0x84   : > { %p22428_p4 = pnand %p22426_p2, %p24509_p1  ;;  %s22432_s6 = scalar_lea.vmem %s22431_s4, 128 }
  0x85   : > { %p22433_p12 = scmp.lt.s32.totalorder %s389_s26, %s22431_s4  ;;  %p22434_p9 = scmp.lt.s32.totalorder %s22432_s6, %s22425_s12 }
  0x86   : > { %p22429_p5 = pneg %p22428_p4 }
  0x87   : > { %p22435_p10 = por %p22434_p9, %p22433_p12 }
  0x89   : > { %p22436_p13 = pnand %p22435_p10, %p22429_p5 }
  0x8b   : > { %22439 = shalt.err (!%p22436_p13)
}
  0x8c   : > { %20400 = dma.hbm_to_vmem [thread:$0]  (!%p24507_p3), %s386_s18, 64, %s389_s26, %s22656_s24  }
  0x8d   : > { %p24510_p6 = scmp.ne.s32.totalorder %s24498_s20, 0 }
  0x8e   : > { %p24511_p0 = scmp.eq.s32.totalorder (!%p24510_p6), %s22582_s9, 0 }
  0x8f   : > { %397 = sbr.rel (%p24510_p6) target bundleno = 3563 (0xdeb), region = 60 }
  0x94   : > { %22457 = dma.done.wait (%p24511_p0), [#allocation6], 1024   ;;  %p24512_p8 = pmov %p24511_p0 }
  0x95   : > { %s403_s25 = sand.u32 1, %s22582_s9   ;;  %s405_s14 = sand.u32 1, %s22478_s16  }
  0x96   : > { %22459 = vsyncadd (%p24512_p8), [#allocation6], 4294966272  ;;  %s18093_s11 = sshll.u32 %s405_s14, 13  ;;  %s404_s27 = scalar_lea.sflag [#allocation8], %s403_s25 }
  0x97   : > { %s22733_s2 = scalar_lea.vmem [#allocation7], %s18093_s11  ;;  %p24513_p11 = scmp.ne.s32.totalorder %s24497_s19, 0 }
  0x99   : > { %22461 = dma.done.wait (%p24513_p11), %s404_s27, 131136  }
  0x9a   : > { %22463 = vsyncadd (%p24513_p11), %s404_s27, 4294836160  ;;  %s22739_s20 = sshll.u32 %s405_s14, 2  ;;  %p24514_p3 = pmov %p24511_p0 }
  0x9b   : > { %s416_s21 = scalar_lea.vmem [#allocation9], %s22739_s20 }
  0x9c   : > { %22465 = dma.done.wait (%p24514_p3), [#allocation11], 131200   ;;  %p24515_p7 = pmov %p24511_p0 }
  0x9d   : > { %p24516_p2 = pmov %p24511_p0 }
  0x9e   : > { %22467 = vsyncadd (%p24515_p7), [#allocation11], 4294836096 }
  0x9f   : > { %22469 = dma.done.wait (%p24516_p2), [#allocation14], 16416   ;;  %p24517_p1 = pmov %p24511_p0 }
  0xa0   : > { %p24518_p4 = scmp.ne.s32.totalorder %s22582_s9, 0 }
  0xa1   : > { %22471 = vsyncadd (%p24517_p1), [#allocation14], 4294950880 }
  0xa2   : > { %475 = sbr.rel (%p24518_p4) target bundleno = 536 (0x218), region = 92 }
  0xa7   : > { %v476_v1 = vld [vmem:[%s24474_s0] sm:$0xff]  ;;  %vm492_vm0 = vcmask 1043456   ;;  %v478_v2 = vld [vmem:[%s24474_s0 + $0x10] sm:$0xff]  ;;  %v477_v3 = vld [vmem:[%s24474_s0 + $0x8] sm:$0xff]  ;;  %v22502_v27 = vmov 0.0   ;;  %v530_v30 = vlaneseq  ;;  %vm548_vm1 = vcmask 1041409  }
  0xa8   : > { %v484_v4 = vcombine.high %v476_v1, %v476_v1  ;;  %v493_v5 = vsel %vm492_vm0, %v476_v1, 0.0  ;;  %v486_v6 = vcombine.high %v478_v2, %v478_v2  ;;  %v503_v7 = vsel %vm492_vm0, %v478_v2, 0.0  ;;  %v479_v8 = vld [vmem:[%s24474_s0 + $0x18] sm:$0xff]  ;;  %v518_v21 = vld [vmem:[#allocation5] sm:$0xff]  ;;  %v519_v22 = vld [vmem:[#allocation5 + $0x8] sm:$0xff]  ;;  %669 = vmatprep.mubr.f32.mxu0 %v22502_v27  ;;  %740 = vmatprep.mubr.f32.mxu1 %v22502_v27 }
  0xa9   : > { %v485_v9 = vcombine.high %v477_v3, %v477_v3  ;;  %v487_v10 = vcombine.high %v479_v8, %v479_v8  ;;  %v498_v13 = vsel %vm492_vm0, %v477_v3, 0.0  ;;  %v508_v14 = vsel %vm492_vm0, %v479_v8, 0.0  ;;  %v520_v25 = vld [vmem:[#allocation5 + $0x10] sm:$0xff]  ;;  %v521_v26 = vld [vmem:[#allocation5 + $0x18] sm:$0xff]  ;;  %v522_v46 = vld [vmem:[#allocation5 + $0x20] sm:$0xff] }
  0xaa   : > { %v494_v11 = vsel %vm492_vm0, %v484_v4, 0.0  ;;  %v504_v12 = vsel %vm492_vm0, %v486_v6, 0.0  ;;  %v562_v23 = vcombine.high %v518_v21, %v518_v21  ;;  %v563_v24 = vcombine.high %v519_v22, %v519_v22  ;;  %v523_v47 = vld [vmem:[#allocation5 + $0x28] sm:$0xff]  ;;  %v524_v53 = vld [vmem:[#allocation5 + $0x30] sm:$0xff]  ;;  %v525_v54 = vld [vmem:[#allocation5 + $0x38] sm:$0xff] }
  0xab   : > { %v495_v15 = vadd.f32 %v494_v11, %v493_v5  ;;  %v505_v16 = vadd.f32 %v504_v12, %v503_v7  ;;  %v499_v17 = vsel %vm492_vm0, %v485_v9, 0.0  ;;  %v509_v18 = vsel %vm492_vm0, %v487_v10, 0.0 }
  0xac   : > { %v500_v19 = vadd.f32 %v499_v17, %v498_v13  ;;  %v510_v20 = vadd.f32 %v509_v18, %v508_v14  ;;  %18100 = vmatprep.subr.msk.mxu0 %vm492_vm0, %v562_v23  ;;  %18103 = vmatprep.subr.msk.mxu1 %vm492_vm0, %v563_v24  ;;  %v564_v28 = vcombine.high %v520_v25, %v520_v25  ;;  %v531_v31 = vand.u32 127, %v530_v30 }
  0xad   : > { %496 = vadd.xlane.f32.xlu0 %v495_v15  ;;  %506 = vadd.xlane.f32.xlu1 %v505_v16  ;;  %v565_v29 = vcombine.high %v521_v26, %v521_v26  ;;  %v533_v32 = vshrl.u32 %v530_v30, 7  ;;  %vm550_vm2 = vcmask 1042434   ;;  %vm552_vm3 = vcmask 1043459  }
  0xae   : > { %18101 = vmatpush1.msk.msra.mxu0 %vm492_vm0, %v518_v21  ;;  %18104 = vmatpush1.msk.msra.mxu1 %vm492_vm0, %v519_v22  ;;  %vm570_vm4 = vcmask 31744   ;;  %v566_v51 = vcombine.high %v522_v46, %v522_v46  ;;  %v567_v52 = vcombine.high %v523_v47, %v523_v47  ;;  %v568_v55 = vcombine.high %v524_v53, %v524_v53 }
  0xaf   : > { %18106 = vmatprep.subr.msk.mxu0 %vm492_vm0, %v564_v28  ;;  %18109 = vmatprep.subr.msk.mxu1 %vm492_vm0, %v565_v29  ;;  %v534_v35 = vsub.s32 %v531_v31, %v533_v32  ;;  %v569_v56 = vcombine.high %v525_v54, %v525_v54  ;;  %v22503_v57 = vmov 1983009808  }
  0xb0   : > { %v1208_v58 = vunpack.c.l.s4 %v22503_v57 }
  0xb1   : > { %501 = vadd.xlane.f32.xlu0 %v500_v19  ;;  %511 = vadd.xlane.f32.xlu1 %v510_v20 }
  0xb2   : > { %v1209_v59 = vunpack.c.0.s8 %v1208_v58 }
  0xb4   : > { %v1212_v62 = vsub.s32 %v1209_v59, %v533_v32 }
 0x136   : > { %v497_v33 = vpop.xlane.xlu0 %496  ;;  %v507_v34 = vpop.xlane.xlu1 %506 }
 0x137   : > { %v514_v36 = vmul.f32 0.00390625, %v497_v33  ;;  %v516_v37 = vmul.f32 0.00390625, %v507_v34 }
 0x139   : > { %v535_v42 = vrot.slane %v514_v36, %v534_v35  ;;  %v543_v45 = vrot.slane %v516_v37, %v534_v35 }
 0x13a   : > { %v502_v38 = vpop.xlane.xlu0 %501  ;;  %v512_v39 = vpop.xlane.xlu1 %511 }
 0x13b   : > { %v515_v40 = vmul.f32 0.00390625, %v502_v38  ;;  %v517_v41 = vmul.f32 0.00390625, %v512_v39 }
 0x13d   : > { %v539_v43 = vrot.slane %v515_v40, %v534_v35  ;;  %v547_v44 = vrot.slane %v517_v41, %v534_v35 }
 0x13f   : > { %v549_v48 = vsel %vm548_vm1, %v539_v43, %v535_v42 }
 0x140   : > { %v551_v49 = vsel %vm550_vm2, %v543_v45, %v549_v48 }
 0x141   : > { %v553_v50 = vsel %vm552_vm3, %v547_v44, %v551_v49 }
 0x142   : > { %18102 = vmatmul.mubr.msk.f32.vlgmr.msra.gmra.mxu0 %vm570_vm4, %v553_v50  ;;  %18105 = vmatmul.mubr.msk.f32.vlgmr.msra.gmra.mxu1 %vm570_vm4, %v553_v50 }
 0x143   : > { %18107 = vmatpush1.msk.msra.mxu0 %vm492_vm0, %v520_v25  ;;  %18110 = vmatpush1.msk.msra.mxu1 %vm492_vm0, %v521_v26 }
 0x144   : > { %811 = vmatprep.mubr.f32.mxu0 %v22502_v27  ;;  %882 = vmatprep.mubr.f32.mxu1 %v22502_v27 }
 0x145   : > { %18112 = vmatprep.subr.msk.mxu0 %vm492_vm0, %v566_v51  ;;  %18115 = vmatprep.subr.msk.mxu1 %vm492_vm0, %v567_v52 }
 0x146   : > { %18108 = vmatmul.mubr.msk.f32.vlgmr.msra.gmra.mxu0 %vm570_vm4, %v553_v50  ;;  %18111 = vmatmul.mubr.msk.f32.vlgmr.msra.gmra.mxu1 %vm570_vm4, %v553_v50 }
 0x147   : > { %18113 = vmatpush1.msk.msra.mxu0 %vm492_vm0, %v522_v46  ;;  %18116 = vmatpush1.msk.msra.mxu1 %vm492_vm0, %v523_v47 }
 0x148   : > { %953 = vmatprep.mubr.f32.mxu0 %v22502_v27  ;;  %1024 = vmatprep.mubr.f32.mxu1 %v22502_v27 }
 0x149   : > { %18118 = vmatprep.subr.msk.mxu0 %vm492_vm0, %v568_v55  ;;  %18121 = vmatprep.subr.msk.mxu1 %vm492_vm0, %v569_v56 }
 0x14a   : > { %18114 = vmatmul.mubr.msk.f32.vlgmr.msra.gmra.mxu0 %vm570_vm4, %v553_v50  ;;  %18117 = vmatmul.mubr.msk.f32.vlgmr.msra.gmra.mxu1 %vm570_vm4, %v553_v50 }
 0x14b   : > { %18119 = vmatpush1.msk.msra.mxu0 %vm492_vm0, %v524_v53  ;;  %18122 = vmatpush1.msk.msra.mxu1 %vm492_vm0, %v525_v54 }
 0x14c   : > { %1095 = vmatprep.mubr.f32.mxu0 %v22502_v27  ;;  %1166 = vmatprep.mubr.f32.mxu1 %v22502_v27 }
 0x14e   : > { %18120 = vmatmul.mubr.msk.f32.vlgmr.msra.gmra.mxu0 %vm570_vm4, %v553_v50  ;;  %18123 = vmatmul.mubr.msk.f32.vlgmr.msra.gmra.mxu1 %vm570_vm4, %v553_v50 }
 0x202   : > { %v671_v60 = vpop.f32.mrf.mxu0  ;;  %v742_v61 = vpop.f32.mrf.mxu1 }
 0x204   : > { %v673_v63 = vpop.f32.mrf.mxu0  ;;  %v744_v0 = vpop.f32.mrf.mxu1 }
 0x205   : > { %v18124_v1 = vpack.c.bf16 %v673_v63, %v671_v60  ;;  %v18125_v2 = vpack.c.bf16 %v744_v0, %v742_v61 }
 0x206   : > { %v813_v3 = vpop.f32.mrf.mxu0  ;;  %v884_v4 = vpop.f32.mrf.mxu1 }
 0x207   : > { %v1213_v5 = vrot.slane %v18124_v1, %v1212_v62  ;;  %v1220_v6 = vrot.slane %v18125_v2, %v1212_v62 }
 0x208   : > { %v815_v7 = vpop.f32.mrf.mxu0  ;;  %v886_v8 = vpop.f32.mrf.mxu1 }
 0x209   : > { %v1221_v9 = vcombine.low %v1213_v5, %v1220_v6  ;;  %v18126_v10 = vpack.c.bf16 %v815_v7, %v813_v3  ;;  %v18127_v11 = vpack.c.bf16 %v886_v8, %v884_v4 }
 0x20a   : > { %v955_v12 = vpop.f32.mrf.mxu0  ;;  %v1026_v13 = vpop.f32.mrf.mxu1 }
 0x20b   : > { %1277 = vst [vmem:[#allocation2 + $0x10] sm:$0xff] %v1221_v9  ;;  %v1230_v14 = vrot.slane %v18126_v10, %v1212_v62  ;;  %v1237_v15 = vrot.slane %v18127_v11, %v1212_v62 }
 0x20c   : > { %v957_v16 = vpop.f32.mrf.mxu0  ;;  %v1028_v17 = vpop.f32.mrf.mxu1 }
 0x20d   : > { %v1238_v18 = vcombine.low %v1230_v14, %v1237_v15  ;;  %v18128_v19 = vpack.c.bf16 %v957_v16, %v955_v12  ;;  %v18129_v20 = vpack.c.bf16 %v1028_v17, %v1026_v13 }
 0x20e   : > { %v1097_v21 = vpop.f32.mrf.mxu0  ;;  %v1168_v22 = vpop.f32.mrf.mxu1 }
 0x20f   : > { %1278 = vst [vmem:[#allocation2] sm:$0xff] %v1238_v18  ;;  %v1247_v23 = vrot.slane %v18128_v19, %v1212_v62  ;;  %v1254_v24 = vrot.slane %v18129_v20, %v1212_v62 }
 0x210   : > { %v1099_v25 = vpop.f32.mrf.mxu0  ;;  %v1170_v26 = vpop.f32.mrf.mxu1 }
 0x211   : > { %v1255_v27 = vcombine.low %v1247_v23, %v1254_v24  ;;  %v18130_v28 = vpack.c.bf16 %v1099_v25, %v1097_v21  ;;  %v18131_v29 = vpack.c.bf16 %v1170_v26, %v1168_v22 }
 0x213   : > { %1279 = vst [vmem:[#allocation2 + $0x18] sm:$0xff] %v1255_v27  ;;  %v1264_v30 = vrot.slane %v18130_v28, %v1212_v62  ;;  %v1271_v31 = vrot.slane %v18131_v29, %v1212_v62 }
 0x215   : > { %v1272_v32 = vcombine.low %v1264_v30, %v1271_v31 }
 0x217   : > { %1280 = vst [vmem:[#allocation2 + $0x8] sm:$0xff] %v1272_v32 }
 0x218 PF: > { %v20471_v33 = vld [vmem:[%s22733_s2 + $0x10e4] ss:$16 sps:$4 sm:$0xff]   ;;  %v20475_v35 = vld [vmem:[%s22733_s2 + $0x10e0] ss:$16 sps:$4 sm:$0xff]   ;;  %v22504_v5 = vmov 1983009808   ;;  %v2317_v7 = vlaneseq }
 0x219   : > { %v20473_v34 = vld [vmem:[%s22733_s2 + $0x12e4] ss:$16 sps:$4 sm:$0xff]   ;;  %4973 = vmatprep.subr.bf16.mxu0 %v20471_v33  ;;  %v20476_v36 = vld [vmem:[%s22733_s2 + $0x12e0] ss:$16 sps:$4 sm:$0xff]   ;;  %v2315_v6 = vunpack.c.l.s4 %v22504_v5  ;;  %vm8888_vm5 = vcmask 1041408   ;;  %s19156_s12 = sshll.u32 %s22582_s9, 9 }
 0x21a   : > { %5014 = vmatprep.subr.bf16.mxu1 %v20473_v34  ;;  %v20477_v37 = vld [vmem:[%s22733_s2 + $0x10c4] ss:$16 sps:$4 sm:$0xff]   ;;  %4974 = vmatpush1.bf16.msra.mxu0 %v20475_v35  ;;  %v20481_v39 = vld [vmem:[%s22733_s2 + $0x10c0] ss:$16 sps:$4 sm:$0xff]   ;;  %v22835_v12 = vshrl.u32 %v2317_v7, 7  ;;  %s9000_s13 = sshra.s32 %s19156_s12, 7 }
 0x21b   : > { %5015 = vmatpush1.bf16.msra.mxu1 %v20476_v36  ;;  %v20479_v38 = vld [vmem:[%s22733_s2 + $0x12c4] ss:$16 sps:$4 sm:$0xff]   ;;  %4975 = vmatprep.subr.bf16.mxu0 %v20477_v37  ;;  %v20482_v40 = vld [vmem:[%s22733_s2 + $0x12c0] ss:$16 sps:$4 sm:$0xff]   ;;  %v2316_v11 = vunpack.c.0.s8 %v2315_v6  ;;  %s19157_s4 = sshll.u32 %s9000_s13, 1  ;;  %p19158_p5 = scmp.ne.s32.totalorder %s22582_s9, 3 }
 0x21c   : > { %5016 = vmatprep.subr.bf16.mxu1 %v20479_v38  ;;  %v20483_v41 = vld [vmem:[%s22733_s2 + $0x10a4] ss:$16 sps:$4 sm:$0xff]   ;;  %v20487_v43 = vld [vmem:[%s22733_s2 + $0x10a0] ss:$16 sps:$4 sm:$0xff]   ;;  %s9003_s6 = scalar_lea.vmem [#allocation3], %s19157_s4 }
 0x21d   : > { %v20485_v42 = vld [vmem:[%s22733_s2 + $0x12a4] ss:$16 sps:$4 sm:$0xff]   ;;  %v20488_v44 = vld [vmem:[%s22733_s2 + $0x12a0] ss:$16 sps:$4 sm:$0xff]   ;;  %v22843_v18 = vsub.s32 %v2316_v11, %v22835_v12 }
 0x21e   : > { %4976 = vmatpush1.bf16.msra.mxu0 %v20481_v39  ;;  %v20489_v45 = vld [vmem:[%s22733_s2 + $0x1084] ss:$16 sps:$4 sm:$0xff]   ;;  %v20493_v47 = vld [vmem:[%s22733_s2 + $0x1080] ss:$16 sps:$4 sm:$0xff]  }
 0x21f   : > { %5017 = vmatpush1.bf16.msra.mxu1 %v20482_v40  ;;  %4977 = vmatprep.subr.bf16.mxu0 %v20483_v41  ;;  %v20491_v46 = vld [vmem:[%s22733_s2 + $0x1284] ss:$16 sps:$4 sm:$0xff]   ;;  %v20494_v48 = vld [vmem:[%s22733_s2 + $0x1280] ss:$16 sps:$4 sm:$0xff]  }
 0x220   : > { %5018 = vmatprep.subr.bf16.mxu1 %v20485_v42  ;;  %v20495_v49 = vld [vmem:[%s22733_s2 + $0x1064] ss:$16 sps:$4 sm:$0xff]   ;;  %v20499_v51 = vld [vmem:[%s22733_s2 + $0x1060] ss:$16 sps:$4 sm:$0xff]  }
 0x221   : > { %v20497_v50 = vld [vmem:[%s22733_s2 + $0x1264] ss:$16 sps:$4 sm:$0xff]   ;;  %v20500_v52 = vld [vmem:[%s22733_s2 + $0x1260] ss:$16 sps:$4 sm:$0xff]  }
 0x222   : > { %4978 = vmatpush1.bf16.msra.mxu0 %v20487_v43  ;;  %v20501_v53 = vld [vmem:[%s22733_s2 + $0x1044] ss:$16 sps:$4 sm:$0xff]   ;;  %v20505_v55 = vld [vmem:[%s22733_s2 + $0x1040] ss:$16 sps:$4 sm:$0xff]  }
 0x223   : > { %5019 = vmatpush1.bf16.msra.mxu1 %v20488_v44  ;;  %4979 = vmatprep.subr.bf16.mxu0 %v20489_v45  ;;  %v20503_v54 = vld [vmem:[%s22733_s2 + $0x1244] ss:$16 sps:$4 sm:$0xff]   ;;  %v20506_v56 = vld [vmem:[%s22733_s2 + $0x1240] ss:$16 sps:$4 sm:$0xff]  }
 0x224   : > { %5020 = vmatprep.subr.bf16.mxu1 %v20491_v46  ;;  %v20507_v57 = vld [vmem:[%s22733_s2 + $0x1024] ss:$16 sps:$4 sm:$0xff]   ;;  %v20511_v59 = vld [vmem:[%s22733_s2 + $0x1020] ss:$16 sps:$4 sm:$0xff]  }
 0x225   : > { %v20509_v58 = vld [vmem:[%s22733_s2 + $0x1224] ss:$16 sps:$4 sm:$0xff]   ;;  %v20512_v60 = vld [vmem:[%s22733_s2 + $0x1220] ss:$16 sps:$4 sm:$0xff]  }
 0x226   : > { %4980 = vmatpush1.bf16.msra.mxu0 %v20493_v47  ;;  %v20513_v61 = vld [vmem:[%s22733_s2 + $0x1004] ss:$16 sps:$4 sm:$0xff]   ;;  %v20517_v63 = vld [vmem:[%s22733_s2 + $0x1000] ss:$16 sps:$4 sm:$0xff]  }
 0x227   : > { %5021 = vmatpush1.bf16.msra.mxu1 %v20494_v48  ;;  %4981 = vmatprep.subr.bf16.mxu0 %v20495_v49  ;;  %v20515_v62 = vld [vmem:[%s22733_s2 + $0x1204] ss:$16 sps:$4 sm:$0xff]   ;;  %v20518_v0 = vld [vmem:[%s22733_s2 + $0x1200] ss:$16 sps:$4 sm:$0xff]  }
 0x228   : > { %5022 = vmatprep.subr.bf16.mxu1 %v20497_v50  ;;  %v20519_v1 = vld [vmem:[%s22733_s2 + $0x11e4] ss:$16 sps:$4 sm:$0xff]   ;;  %v20523_v3 = vld [vmem:[%s22733_s2 + $0x11e0] ss:$16 sps:$4 sm:$0xff]  }
 0x229   : > { %v20521_v2 = vld [vmem:[%s22733_s2 + $0x13e4] ss:$16 sps:$4 sm:$0xff]   ;;  %v20524_v4 = vld [vmem:[%s22733_s2 + $0x13e0] ss:$16 sps:$4 sm:$0xff]  }
 0x22a   : > { %4982 = vmatpush1.bf16.msra.mxu0 %v20499_v51  ;;  %v20525_v8 = vld [vmem:[%s22733_s2 + $0x11c4] ss:$16 sps:$4 sm:$0xff]   ;;  %v20529_v10 = vld [vmem:[%s22733_s2 + $0x11c0] ss:$16 sps:$4 sm:$0xff]  }
 0x22b   : > { %5023 = vmatpush1.bf16.msra.mxu1 %v20500_v52  ;;  %4983 = vmatprep.subr.bf16.mxu0 %v20501_v53  ;;  %v20527_v9 = vld [vmem:[%s22733_s2 + $0x13c4] ss:$16 sps:$4 sm:$0xff]   ;;  %v20530_v13 = vld [vmem:[%s22733_s2 + $0x13c0] ss:$16 sps:$4 sm:$0xff]  }
 0x22c   : > { %5024 = vmatprep.subr.bf16.mxu1 %v20503_v54  ;;  %v20531_v14 = vld [vmem:[%s22733_s2 + $0x11a4] ss:$16 sps:$4 sm:$0xff]   ;;  %v20535_v16 = vld [vmem:[%s22733_s2 + $0x11a0] ss:$16 sps:$4 sm:$0xff]  }
 0x22d   : > { %v20533_v15 = vld [vmem:[%s22733_s2 + $0x13a4] ss:$16 sps:$4 sm:$0xff]   ;;  %v20536_v17 = vld [vmem:[%s22733_s2 + $0x13a0] ss:$16 sps:$4 sm:$0xff]  }
 0x22e   : > { %4984 = vmatpush1.bf16.msra.mxu0 %v20505_v55  ;;  %v20537_v19 = vld [vmem:[%s22733_s2 + $0x1184] ss:$16 sps:$4 sm:$0xff]   ;;  %v20541_v22 = vld [vmem:[%s22733_s2 + $0x1180] ss:$16 sps:$4 sm:$0xff]  }
 0x22f   : > { %5025 = vmatpush1.bf16.msra.mxu1 %v20506_v56  ;;  %4985 = vmatprep.subr.bf16.mxu0 %v20507_v57  ;;  %v20539_v20 = vld [vmem:[%s22733_s2 + $0x1384] ss:$16 sps:$4 sm:$0xff]   ;;  %v20542_v25 = vld [vmem:[%s22733_s2 + $0x1380] ss:$16 sps:$4 sm:$0xff]  }
 0x230   : > { %5026 = vmatprep.subr.bf16.mxu1 %v20509_v58  ;;  %v1281_v21 = vld [vmem:[#allocation2 + $0x10] sm:$0xff]  ;;  %v1282_v11 = vld [vmem:[#allocation2] sm:$0xff] }
 0x231   : > { %v22849_v23 = vrot.slane %v1281_v21, %v22843_v18  ;;  %v2313_v24 = vcombine.high %v1281_v21, %v1281_v21  ;;  %v20543_v26 = vld [vmem:[%s22733_s2 + $0x1164] ss:$16 sps:$4 sm:$0xff]   ;;  %v20547_v30 = vld [vmem:[%s22733_s2 + $0x1160] ss:$16 sps:$4 sm:$0xff]  }
 0x232   : > { %4986 = vmatpush1.bf16.msra.mxu0 %v20511_v59  ;;  %v20545_v27 = vld [vmem:[%s22733_s2 + $0x1364] ss:$16 sps:$4 sm:$0xff]   ;;  %v20548_v33 = vld [vmem:[%s22733_s2 + $0x1360] ss:$16 sps:$4 sm:$0xff]  }
 0x233   : > { %5027 = vmatpush1.bf16.msra.mxu1 %v20512_v60  ;;  %4987 = vmatprep.subr.bf16.mxu0 %v20513_v61  ;;  %v22856_v28 = vcombine.high %v22849_v23, %v22849_v23  ;;  %v22859_v29 = vrot.slane %v2313_v24, %v22843_v18  ;;  %v20549_v34 = vld [vmem:[%s22733_s2 + $0x1144] ss:$16 sps:$4 sm:$0xff]   ;;  %v20553_v37 = vld [vmem:[%s22733_s2 + $0x1140] ss:$16 sps:$4 sm:$0xff]   ;;  %v2381_v49 = vrot.slane %v22849_v23, 1 }
 0x234   : > { %5028 = vmatprep.subr.bf16.mxu1 %v20515_v62  ;;  %v20551_v35 = vld [vmem:[%s22733_s2 + $0x1344] ss:$16 sps:$4 sm:$0xff]   ;;  %v20554_v38 = vld [vmem:[%s22733_s2 + $0x1340] ss:$16 sps:$4 sm:$0xff]  }
 0x235   : > { %v2382_v31 = vrot.slane %v22856_v28, 1  ;;  %v22865_v32 = vcombine.high %v22859_v29, %v22859_v29  ;;  %v20555_v39 = vld [vmem:[%s22733_s2 + $0x1124] ss:$16 sps:$4 sm:$0xff]   ;;  %v20559_v41 = vld [vmem:[%s22733_s2 + $0x1120] ss:$16 sps:$4 sm:$0xff]   ;;  %v2383_v50 = vrot.slane %v22859_v29, 1 }
 0x236   : > { %4988 = vmatpush1.bf16.msra.mxu0 %v20517_v63  ;;  %v20557_v40 = vld [vmem:[%s22733_s2 + $0x1324] ss:$16 sps:$4 sm:$0xff]   ;;  %v20560_v42 = vld [vmem:[%s22733_s2 + $0x1320] ss:$16 sps:$4 sm:$0xff]  }
 0x237   : > { %5029 = vmatpush1.bf16.msra.mxu1 %v20518_v0  ;;  %4989 = vmatprep.subr.bf16.mxu0 %v20519_v1  ;;  %v2384_v36 = vrot.slane %v22865_v32, 1  ;;  %v20561_v43 = vld [vmem:[%s22733_s2 + $0x1104] ss:$16 sps:$4 sm:$0xff]   ;;  %v20565_v45 = vld [vmem:[%s22733_s2 + $0x1100] ss:$16 sps:$4 sm:$0xff]  }
 0x238   : > { %5030 = vmatprep.subr.bf16.mxu1 %v20521_v2  ;;  %5005 = vmatprep.mubr.bf16.mxu0 %v2382_v31  ;;  %v20563_v44 = vld [vmem:[%s22733_s2 + $0x1304] ss:$16 sps:$4 sm:$0xff]   ;;  %v20566_v46 = vld [vmem:[%s22733_s2 + $0x1300] ss:$16 sps:$4 sm:$0xff]  }
 0x239   : > { %5046 = vmatprep.mubr.bf16.mxu1 %v2384_v36  ;;  %v20570_v47 = vld [vmem:[%s22733_s2 + $0x14e4] ss:$16 sps:$4 sm:$0xff]   ;;  %v20568_v51 = vld [vmem:[%s22733_s2 + $0x14e0] ss:$16 sps:$4 sm:$0xff]  }
 0x23a   : > { %4990 = vmatpush2.bf16.msra.mxu0 %v20523_v3  ;;  %v20573_v48 = vld [vmem:[%s22733_s2 + $0x16e4] ss:$16 sps:$4 sm:$0xff]   ;;  %v20571_v52 = vld [vmem:[%s22733_s2 + $0x16e0] ss:$16 sps:$4 sm:$0xff]  }
 0x23b   : > { %5031 = vmatpush2.bf16.msra.mxu1 %v20524_v4  ;;  %4991 = vmatprep.subr.bf16.mxu0 %v20525_v8  ;;  %v20576_v53 = vld [vmem:[%s22733_s2 + $0x14c4] ss:$16 sps:$4 sm:$0xff]   ;;  %v20574_v55 = vld [vmem:[%s22733_s2 + $0x14c0] ss:$16 sps:$4 sm:$0xff]  }
 0x23c   : > { %5032 = vmatprep.subr.bf16.mxu1 %v20527_v9  ;;  %v20579_v54 = vld [vmem:[%s22733_s2 + $0x16c4] ss:$16 sps:$4 sm:$0xff]   ;;  %v20577_v56 = vld [vmem:[%s22733_s2 + $0x16c0] ss:$16 sps:$4 sm:$0xff]  }
 0x23d   : > { %v20582_v57 = vld [vmem:[%s22733_s2 + $0x14a4] ss:$16 sps:$4 sm:$0xff]   ;;  %v20580_v59 = vld [vmem:[%s22733_s2 + $0x14a0] ss:$16 sps:$4 sm:$0xff]  }
 0x23e   : > { %4992 = vmatpush2.bf16.msra.mxu0 %v20529_v10  ;;  %v20585_v58 = vld [vmem:[%s22733_s2 + $0x16a4] ss:$16 sps:$4 sm:$0xff]   ;;  %v20583_v60 = vld [vmem:[%s22733_s2 + $0x16a0] ss:$16 sps:$4 sm:$0xff]  }
 0x23f   : > { %5033 = vmatpush2.bf16.msra.mxu1 %v20530_v13  ;;  %4993 = vmatprep.subr.bf16.mxu0 %v20531_v14  ;;  %v20588_v61 = vld [vmem:[%s22733_s2 + $0x1484] ss:$16 sps:$4 sm:$0xff]   ;;  %v20586_v63 = vld [vmem:[%s22733_s2 + $0x1480] ss:$16 sps:$4 sm:$0xff]   ;;  %v22918_v13 = vrot.slane %v1282_v11, %v22843_v18  ;;  %v2330_v14 = vcombine.high %v1282_v11, %v1282_v11 }
 0x240   : > { %5034 = vmatprep.subr.bf16.mxu1 %v20533_v15  ;;  %v20591_v62 = vld [vmem:[%s22733_s2 + $0x1684] ss:$16 sps:$4 sm:$0xff]   ;;  %v20589_v0 = vld [vmem:[%s22733_s2 + $0x1680] ss:$16 sps:$4 sm:$0xff]  }
 0x241   : > { %v20594_v1 = vld [vmem:[%s22733_s2 + $0x1464] ss:$16 sps:$4 sm:$0xff]   ;;  %v20592_v3 = vld [vmem:[%s22733_s2 + $0x1460] ss:$16 sps:$4 sm:$0xff]  }
 0x242   : > { %4994 = vmatpush2.bf16.msra.mxu0 %v20535_v16  ;;  %v20597_v2 = vld [vmem:[%s22733_s2 + $0x1664] ss:$16 sps:$4 sm:$0xff]   ;;  %v20595_v4 = vld [vmem:[%s22733_s2 + $0x1660] ss:$16 sps:$4 sm:$0xff]  }
 0x243   : > { %5035 = vmatpush2.bf16.msra.mxu1 %v20536_v17  ;;  %4995 = vmatprep.subr.bf16.mxu0 %v20537_v19  ;;  %v20600_v5 = vld [vmem:[%s22733_s2 + $0x1444] ss:$16 sps:$4 sm:$0xff]   ;;  %v20598_v7 = vld [vmem:[%s22733_s2 + $0x1440] ss:$16 sps:$4 sm:$0xff]   ;;  %v22924_v17 = vcombine.high %v22918_v13, %v22918_v13  ;;  %v22927_v19 = vrot.slane %v2330_v14, %v22843_v18 }
 0x244   : > { %5036 = vmatprep.subr.bf16.mxu1 %v20539_v20  ;;  %v20603_v6 = vld [vmem:[%s22733_s2 + $0x1644] ss:$16 sps:$4 sm:$0xff]   ;;  %v20601_v8 = vld [vmem:[%s22733_s2 + $0x1640] ss:$16 sps:$4 sm:$0xff]  }
 0x245   : > { %v20606_v9 = vld [vmem:[%s22733_s2 + $0x1424] ss:$16 sps:$4 sm:$0xff]   ;;  %v20604_v15 = vld [vmem:[%s22733_s2 + $0x1420] ss:$16 sps:$4 sm:$0xff]   ;;  %v22934_v24 = vcombine.high %v22927_v19, %v22927_v19 }
 0x246   : > { %4996 = vmatpush2.bf16.msra.mxu0 %v20541_v22  ;;  %v20609_v10 = vld [vmem:[%s22733_s2 + $0x1624] ss:$16 sps:$4 sm:$0xff]   ;;  %v20607_v16 = vld [vmem:[%s22733_s2 + $0x1620] ss:$16 sps:$4 sm:$0xff]   ;;  %v2386_v22 = vrot.slane %v22924_v17, 1 }
 0x247   : > { %5037 = vmatpush2.bf16.msra.mxu1 %v20542_v25  ;;  %4997 = vmatprep.subr.bf16.mxu0 %v20543_v26  ;;  %v20612_v20 = vld [vmem:[%s22733_s2 + $0x1404] ss:$16 sps:$4 sm:$0xff]   ;;  %v20610_v25 = vld [vmem:[%s22733_s2 + $0x1400] ss:$16 sps:$4 sm:$0xff]  }
 0x248   : > { %5038 = vmatprep.subr.bf16.mxu1 %v20545_v27  ;;  %v20615_v21 = vld [vmem:[%s22733_s2 + $0x1604] ss:$16 sps:$4 sm:$0xff]   ;;  %v20613_v26 = vld [vmem:[%s22733_s2 + $0x1600] ss:$16 sps:$4 sm:$0xff]   ;;  %v2388_v27 = vrot.slane %v22934_v24, 1 }
 0x249   : > { %v20676_v11 = vld [vmem:[%s22733_s2 + $0x1ac4] ss:$16 sps:$4 sm:$0xff]  }
 0x24a   : > { %4998 = vmatpush2.bf16.msra.mxu0 %v20547_v30  ;;  %v20618_v30 = vld [vmem:[%s22733_s2 + $0x15e4] ss:$16 sps:$4 sm:$0xff]  }
 0x24b   : > { %5039 = vmatpush2.bf16.msra.mxu1 %v20548_v33  ;;  %4999 = vmatprep.subr.bf16.mxu0 %v20549_v34  ;;  %v20621_v33 = vld [vmem:[%s22733_s2 + $0x17e4] ss:$16 sps:$4 sm:$0xff]   ;;  %v20616_v34 = vld [vmem:[%s22733_s2 + $0x15e0] ss:$16 sps:$4 sm:$0xff]  }
 0x24c   : > { %5040 = vmatprep.subr.bf16.mxu1 %v20551_v35  ;;  %v20619_v35 = vld [vmem:[%s22733_s2 + $0x17e0] ss:$16 sps:$4 sm:$0xff]  }
 0x24e   : > { %5000 = vmatpush2.bf16.msra.mxu0 %v20553_v37  ;;  %v20624_v37 = vld [vmem:[%s22733_s2 + $0x15c4] ss:$16 sps:$4 sm:$0xff]  }
 0x24f   : > { %5041 = vmatpush2.bf16.msra.mxu1 %v20554_v38  ;;  %5001 = vmatprep.subr.bf16.mxu0 %v20555_v39  ;;  %v20627_v38 = vld [vmem:[%s22733_s2 + $0x17c4] ss:$16 sps:$4 sm:$0xff]   ;;  %v20622_v39 = vld [vmem:[%s22733_s2 + $0x15c0] ss:$16 sps:$4 sm:$0xff]  }
 0x250   : > { %5042 = vmatprep.subr.bf16.mxu1 %v20557_v40  ;;  %v20625_v40 = vld [vmem:[%s22733_s2 + $0x17c0] ss:$16 sps:$4 sm:$0xff]  }
 0x252   : > { %5002 = vmatpush2.bf16.msra.mxu0 %v20559_v41  ;;  %v20630_v41 = vld [vmem:[%s22733_s2 + $0x15a4] ss:$16 sps:$4 sm:$0xff]  }
 0x253   : > { %5043 = vmatpush2.bf16.msra.mxu1 %v20560_v42  ;;  %5003 = vmatprep.subr.bf16.mxu0 %v20561_v43  ;;  %v20633_v42 = vld [vmem:[%s22733_s2 + $0x17a4] ss:$16 sps:$4 sm:$0xff]   ;;  %v20628_v43 = vld [vmem:[%s22733_s2 + $0x15a0] ss:$16 sps:$4 sm:$0xff]  }
 0x254   : > { %5044 = vmatprep.subr.bf16.mxu1 %v20563_v44  ;;  %v20631_v44 = vld [vmem:[%s22733_s2 + $0x17a0] ss:$16 sps:$4 sm:$0xff]  }
 0x256   : > { %5004 = vmatpush2.bf16.msra.mxu0 %v20565_v45  ;;  %v20636_v45 = vld [vmem:[%s22733_s2 + $0x1584] ss:$16 sps:$4 sm:$0xff]  }
 0x257   : > { %5045 = vmatpush2.bf16.msra.mxu1 %v20566_v46  ;;  %5055 = vmatprep.subr.bf16.mxu0 %v20570_v47  ;;  %v20639_v46 = vld [vmem:[%s22733_s2 + $0x1784] ss:$16 sps:$4 sm:$0xff]   ;;  %v20634_v47 = vld [vmem:[%s22733_s2 + $0x1580] ss:$16 sps:$4 sm:$0xff]  }
 0x258   : > { %5096 = vmatprep.subr.bf16.mxu1 %v20573_v48  ;;  %v20637_v48 = vld [vmem:[%s22733_s2 + $0x1780] ss:$16 sps:$4 sm:$0xff]  }
 0x259   : > { %5006 = vmatmul.mubr.bf16.vlgmr.msra.gmra.mxu0 %v2381_v49 }
 0x25a   : > { %5047 = vmatmul.mubr.bf16.vlgmr.msra.gmra.mxu1 %v2383_v50  ;;  %5056 = vmatpush1.bf16.msra.mxu0 %v20568_v51  ;;  %v20642_v51 = vld [vmem:[%s22733_s2 + $0x1564] ss:$16 sps:$4 sm:$0xff]  }
 0x25b   : > { %5097 = vmatpush1.bf16.msra.mxu1 %v20571_v52  ;;  %5057 = vmatprep.subr.bf16.mxu0 %v20576_v53  ;;  %v20645_v52 = vld [vmem:[%s22733_s2 + $0x1764] ss:$16 sps:$4 sm:$0xff]   ;;  %v20640_v53 = vld [vmem:[%s22733_s2 + $0x1560] ss:$16 sps:$4 sm:$0xff]  }
 0x25c   : > { %5098 = vmatprep.subr.bf16.mxu1 %v20579_v54  ;;  %5087 = vmatprep.mubr.bf16.mxu0 %v2386_v22  ;;  %v20643_v54 = vld [vmem:[%s22733_s2 + $0x1760] ss:$16 sps:$4 sm:$0xff]  }
 0x25d   : > { %5128 = vmatprep.mubr.bf16.mxu1 %v2388_v27 }
 0x25e   : > { %5058 = vmatpush1.bf16.msra.mxu0 %v20574_v55  ;;  %v20648_v55 = vld [vmem:[%s22733_s2 + $0x1544] ss:$16 sps:$4 sm:$0xff]  }
 0x25f   : > { %5099 = vmatpush1.bf16.msra.mxu1 %v20577_v56  ;;  %5059 = vmatprep.subr.bf16.mxu0 %v20582_v57  ;;  %v20651_v56 = vld [vmem:[%s22733_s2 + $0x1744] ss:$16 sps:$4 sm:$0xff]   ;;  %v20646_v57 = vld [vmem:[%s22733_s2 + $0x1540] ss:$16 sps:$4 sm:$0xff]  }
 0x260   : > { %5100 = vmatprep.subr.bf16.mxu1 %v20585_v58  ;;  %v20649_v58 = vld [vmem:[%s22733_s2 + $0x1740] ss:$16 sps:$4 sm:$0xff]  }
 0x262   : > { %5060 = vmatpush1.bf16.msra.mxu0 %v20580_v59  ;;  %v20654_v59 = vld [vmem:[%s22733_s2 + $0x1524] ss:$16 sps:$4 sm:$0xff]  }
 0x263   : > { %5101 = vmatpush1.bf16.msra.mxu1 %v20583_v60  ;;  %5061 = vmatprep.subr.bf16.mxu0 %v20588_v61  ;;  %v20657_v60 = vld [vmem:[%s22733_s2 + $0x1724] ss:$16 sps:$4 sm:$0xff]   ;;  %v20652_v61 = vld [vmem:[%s22733_s2 + $0x1520] ss:$16 sps:$4 sm:$0xff]  }
 0x264   : > { %5102 = vmatprep.subr.bf16.mxu1 %v20591_v62  ;;  %v20655_v62 = vld [vmem:[%s22733_s2 + $0x1720] ss:$16 sps:$4 sm:$0xff]  }
 0x266   : > { %5062 = vmatpush1.bf16.msra.mxu0 %v20586_v63  ;;  %v20660_v63 = vld [vmem:[%s22733_s2 + $0x1504] ss:$16 sps:$4 sm:$0xff]  }
 0x267   : > { %5103 = vmatpush1.bf16.msra.mxu1 %v20589_v0  ;;  %5063 = vmatprep.subr.bf16.mxu0 %v20594_v1  ;;  %v20663_v0 = vld [vmem:[%s22733_s2 + $0x1704] ss:$16 sps:$4 sm:$0xff]   ;;  %v20658_v1 = vld [vmem:[%s22733_s2 + $0x1500] ss:$16 sps:$4 sm:$0xff]  }
 0x268   : > { %5104 = vmatprep.subr.bf16.mxu1 %v20597_v2  ;;  %v20661_v2 = vld [vmem:[%s22733_s2 + $0x1700] ss:$16 sps:$4 sm:$0xff]  }
 0x26a   : > { %5064 = vmatpush1.bf16.msra.mxu0 %v20592_v3  ;;  %v20667_v3 = vld [vmem:[%s22733_s2 + $0x18e4] ss:$16 sps:$4 sm:$0xff]  }
 0x26b   : > { %5105 = vmatpush1.bf16.msra.mxu1 %v20595_v4  ;;  %5065 = vmatprep.subr.bf16.mxu0 %v20600_v5  ;;  %v20670_v4 = vld [vmem:[%s22733_s2 + $0x1ae4] ss:$16 sps:$4 sm:$0xff]   ;;  %v2385_v5 = vrot.slane %v22918_v13, 1 }
 0x26c   : > { %5106 = vmatprep.subr.bf16.mxu1 %v20603_v6  ;;  %v2387_v6 = vrot.slane %v22927_v19, 1 }
 0x26e   : > { %5066 = vmatpush1.bf16.msra.mxu0 %v20598_v7  ;;  %v20665_v7 = vld [vmem:[%s22733_s2 + $0x18e0] ss:$16 sps:$4 sm:$0xff]  }
 0x26f   : > { %5107 = vmatpush1.bf16.msra.mxu1 %v20601_v8  ;;  %5067 = vmatprep.subr.bf16.mxu0 %v20606_v9  ;;  %v20668_v8 = vld [vmem:[%s22733_s2 + $0x1ae0] ss:$16 sps:$4 sm:$0xff]   ;;  %v20673_v9 = vld [vmem:[%s22733_s2 + $0x18c4] ss:$16 sps:$4 sm:$0xff]  }
 0x270   : > { %5108 = vmatprep.subr.bf16.mxu1 %v20609_v10  ;;  %v1283_v10 = vld [vmem:[#allocation2 + $0x18] sm:$0xff] }
 0x271   : > { %v22984_v14 = vrot.slane %v1283_v10, %v22843_v18 }
 0x272   : > { %5068 = vmatpush1.bf16.msra.mxu0 %v20604_v15  ;;  %v2347_v15 = vcombine.high %v1283_v10, %v1283_v10  ;;  %v20728_v10 = vld [vmem:[%s22733_s2 + $0x1ba0] ss:$16 sps:$4 sm:$0xff]  }
 0x273   : > { %5109 = vmatpush1.bf16.msra.mxu1 %v20607_v16  ;;  %5069 = vmatprep.subr.bf16.mxu0 %v20612_v20  ;;  %v20671_v16 = vld [vmem:[%s22733_s2 + $0x18c0] ss:$16 sps:$4 sm:$0xff]   ;;  %v22993_v20 = vcombine.high %v22984_v14, %v22984_v14 }
 0x274   : > { %5110 = vmatprep.subr.bf16.mxu1 %v20615_v21  ;;  %v22996_v21 = vrot.slane %v2347_v15, %v22843_v18  ;;  %v20736_v15 = vld [vmem:[%s22733_s2 + $0x1b84] ss:$16 sps:$4 sm:$0xff]  }
 0x276   : > { %5070 = vmatpush1.bf16.msra.mxu0 %v20610_v25  ;;  %v20674_v25 = vld [vmem:[%s22733_s2 + $0x1ac0] ss:$16 sps:$4 sm:$0xff]  }
 0x277   : > { %5111 = vmatpush1.bf16.msra.mxu1 %v20613_v26  ;;  %5071 = vmatprep.subr.bf16.mxu0 %v20618_v30  ;;  %v20679_v26 = vld [vmem:[%s22733_s2 + $0x18a4] ss:$16 sps:$4 sm:$0xff]  }
 0x278   : > { %5112 = vmatprep.subr.bf16.mxu1 %v20621_v33  ;;  %v20682_v30 = vld [vmem:[%s22733_s2 + $0x1aa4] ss:$16 sps:$4 sm:$0xff]   ;;  %v2390_v33 = vrot.slane %v22993_v20, 1 }
 0x27a   : > { %5072 = vmatpush2.bf16.msra.mxu0 %v20616_v34  ;;  %v23004_v34 = vcombine.high %v22996_v21, %v22996_v21 }
 0x27b   : > { %5113 = vmatpush2.bf16.msra.mxu1 %v20619_v35  ;;  %5073 = vmatprep.subr.bf16.mxu0 %v20624_v37  ;;  %v20677_v35 = vld [vmem:[%s22733_s2 + $0x18a0] ss:$16 sps:$4 sm:$0xff]  }
 0x27c   : > { %5114 = vmatprep.subr.bf16.mxu1 %v20627_v38  ;;  %v2392_v37 = vrot.slane %v23004_v34, 1  ;;  %v20680_v38 = vld [vmem:[%s22733_s2 + $0x1aa0] ss:$16 sps:$4 sm:$0xff]  }
 0x27e   : > { %5074 = vmatpush2.bf16.msra.mxu0 %v20622_v39  ;;  %v20685_v39 = vld [vmem:[%s22733_s2 + $0x1884] ss:$16 sps:$4 sm:$0xff]  }
 0x27f   : > { %5115 = vmatpush2.bf16.msra.mxu1 %v20625_v40  ;;  %5075 = vmatprep.subr.bf16.mxu0 %v20630_v41  ;;  %v20688_v40 = vld [vmem:[%s22733_s2 + $0x1a84] ss:$16 sps:$4 sm:$0xff]   ;;  %v20683_v41 = vld [vmem:[%s22733_s2 + $0x1880] ss:$16 sps:$4 sm:$0xff]  }
 0x280   : > { %5116 = vmatprep.subr.bf16.mxu1 %v20633_v42  ;;  %v20686_v42 = vld [vmem:[%s22733_s2 + $0x1a80] ss:$16 sps:$4 sm:$0xff]  }
 0x282   : > { %5076 = vmatpush2.bf16.msra.mxu0 %v20628_v43  ;;  %v20691_v43 = vld [vmem:[%s22733_s2 + $0x1864] ss:$16 sps:$4 sm:$0xff]  }
 0x283   : > { %5117 = vmatpush2.bf16.msra.mxu1 %v20631_v44  ;;  %5077 = vmatprep.subr.bf16.mxu0 %v20636_v45  ;;  %v20694_v44 = vld [vmem:[%s22733_s2 + $0x1a64] ss:$16 sps:$4 sm:$0xff]   ;;  %v20689_v45 = vld [vmem:[%s22733_s2 + $0x1860] ss:$16 sps:$4 sm:$0xff]  }
 0x284   : > { %5118 = vmatprep.subr.bf16.mxu1 %v20639_v46  ;;  %v20692_v46 = vld [vmem:[%s22733_s2 + $0x1a60] ss:$16 sps:$4 sm:$0xff]  }
 0x286   : > { %5078 = vmatpush2.bf16.msra.mxu0 %v20634_v47  ;;  %v20697_v47 = vld [vmem:[%s22733_s2 + $0x1844] ss:$16 sps:$4 sm:$0xff]  }
 0x287   : > { %5119 = vmatpush2.bf16.msra.mxu1 %v20637_v48  ;;  %5079 = vmatprep.subr.bf16.mxu0 %v20642_v51  ;;  %v20700_v48 = vld [vmem:[%s22733_s2 + $0x1a44] ss:$16 sps:$4 sm:$0xff]   ;;  %v20695_v51 = vld [vmem:[%s22733_s2 + $0x1840] ss:$16 sps:$4 sm:$0xff]  }
 0x288   : > { %5120 = vmatprep.subr.bf16.mxu1 %v20645_v52  ;;  %v20698_v52 = vld [vmem:[%s22733_s2 + $0x1a40] ss:$16 sps:$4 sm:$0xff]  }
 0x28a   : > { %5080 = vmatpush2.bf16.msra.mxu0 %v20640_v53  ;;  %v20703_v53 = vld [vmem:[%s22733_s2 + $0x1824] ss:$16 sps:$4 sm:$0xff]  }
 0x28b   : > { %5121 = vmatpush2.bf16.msra.mxu1 %v20643_v54  ;;  %5081 = vmatprep.subr.bf16.mxu0 %v20648_v55  ;;  %v20706_v54 = vld [vmem:[%s22733_s2 + $0x1a24] ss:$16 sps:$4 sm:$0xff]   ;;  %v20701_v55 = vld [vmem:[%s22733_s2 + $0x1820] ss:$16 sps:$4 sm:$0xff]  }
 0x28c   : > { %5122 = vmatprep.subr.bf16.mxu1 %v20651_v56  ;;  %v20704_v56 = vld [vmem:[%s22733_s2 + $0x1a20] ss:$16 sps:$4 sm:$0xff]  }
 0x28e   : > { %5082 = vmatpush2.bf16.msra.mxu0 %v20646_v57  ;;  %v20709_v57 = vld [vmem:[%s22733_s2 + $0x1804] ss:$16 sps:$4 sm:$0xff]  }
 0x28f   : > { %5123 = vmatpush2.bf16.msra.mxu1 %v20649_v58  ;;  %5083 = vmatprep.subr.bf16.mxu0 %v20654_v59  ;;  %v20712_v58 = vld [vmem:[%s22733_s2 + $0x1a04] ss:$16 sps:$4 sm:$0xff]   ;;  %v20707_v59 = vld [vmem:[%s22733_s2 + $0x1800] ss:$16 sps:$4 sm:$0xff]  }
 0x290   : > { %5124 = vmatprep.subr.bf16.mxu1 %v20657_v60  ;;  %v20710_v60 = vld [vmem:[%s22733_s2 + $0x1a00] ss:$16 sps:$4 sm:$0xff]  }
 0x292   : > { %5084 = vmatpush2.bf16.msra.mxu0 %v20652_v61  ;;  %v20715_v61 = vld [vmem:[%s22733_s2 + $0x19e4] ss:$16 sps:$4 sm:$0xff]  }
 0x293   : > { %5125 = vmatpush2.bf16.msra.mxu1 %v20655_v62  ;;  %5085 = vmatprep.subr.bf16.mxu0 %v20660_v63  ;;  %v20718_v62 = vld [vmem:[%s22733_s2 + $0x1be4] ss:$16 sps:$4 sm:$0xff]   ;;  %v20713_v63 = vld [vmem:[%s22733_s2 + $0x19e0] ss:$16 sps:$4 sm:$0xff]  }
 0x294   : > { %5126 = vmatprep.subr.bf16.mxu1 %v20663_v0  ;;  %v20716_v0 = vld [vmem:[%s22733_s2 + $0x1be0] ss:$16 sps:$4 sm:$0xff]  }
 0x296   : > { %5086 = vmatpush2.bf16.msra.mxu0 %v20658_v1  ;;  %v20721_v1 = vld [vmem:[%s22733_s2 + $0x19c4] ss:$16 sps:$4 sm:$0xff]  }
 0x297   : > { %5127 = vmatpush2.bf16.msra.mxu1 %v20661_v2  ;;  %5137 = vmatprep.subr.bf16.mxu0 %v20667_v3  ;;  %v20724_v2 = vld [vmem:[%s22733_s2 + $0x1bc4] ss:$16 sps:$4 sm:$0xff]   ;;  %v20719_v3 = vld [vmem:[%s22733_s2 + $0x19c0] ss:$16 sps:$4 sm:$0xff]  }
 0x298   : > { %5178 = vmatprep.subr.bf16.mxu1 %v20670_v4  ;;  %v20722_v4 = vld [vmem:[%s22733_s2 + $0x1bc0] ss:$16 sps:$4 sm:$0xff]  }
 0x299   : > { %5088 = vmatmul.mubr.bf16.vlgmr.msra.gmra.mxu0 %v2385_v5 }
 0x29a   : > { %5129 = vmatmul.mubr.bf16.vlgmr.msra.gmra.mxu1 %v2387_v6  ;;  %5138 = vmatpush1.bf16.msra.mxu0 %v20665_v7  ;;  %v20727_v7 = vld [vmem:[%s22733_s2 + $0x19a4] ss:$16 sps:$4 sm:$0xff]  }
 0x29b   : > { %5179 = vmatpush1.bf16.msra.mxu1 %v20668_v8  ;;  %5139 = vmatprep.subr.bf16.mxu0 %v20673_v9  ;;  %v20730_v8 = vld [vmem:[%s22733_s2 + $0x1ba4] ss:$16 sps:$4 sm:$0xff]   ;;  %v20725_v9 = vld [vmem:[%s22733_s2 + $0x19a0] ss:$16 sps:$4 sm:$0xff]  }
 0x29c   : > { %5180 = vmatprep.subr.bf16.mxu1 %v20676_v11  ;;  %5169 = vmatprep.mubr.bf16.mxu0 %v2390_v33  ;;  %v20733_v11 = vld [vmem:[%s22733_s2 + $0x1984] ss:$16 sps:$4 sm:$0xff]  }
 0x29d   : > { %5210 = vmatprep.mubr.bf16.mxu1 %v2392_v37 }
 0x29e   : > { %5140 = vmatpush1.bf16.msra.mxu0 %v20671_v16  ;;  %v20731_v16 = vld [vmem:[%s22733_s2 + $0x1980] ss:$16 sps:$4 sm:$0xff]  }
 0x29f   : > { %5181 = vmatpush1.bf16.msra.mxu1 %v20674_v25  ;;  %5141 = vmatprep.subr.bf16.mxu0 %v20679_v26  ;;  %v20734_v25 = vld [vmem:[%s22733_s2 + $0x1b80] ss:$16 sps:$4 sm:$0xff]   ;;  %v20739_v26 = vld [vmem:[%s22733_s2 + $0x1964] ss:$16 sps:$4 sm:$0xff]  }
 0x2a0   : > { %5182 = vmatprep.subr.bf16.mxu1 %v20682_v30  ;;  %v20742_v30 = vld [vmem:[%s22733_s2 + $0x1b64] ss:$16 sps:$4 sm:$0xff]  }
 0x2a2   : > { %5142 = vmatpush1.bf16.msra.mxu0 %v20677_v35  ;;  %v20737_v35 = vld [vmem:[%s22733_s2 + $0x1960] ss:$16 sps:$4 sm:$0xff]  }
 0x2a3   : > { %5183 = vmatpush1.bf16.msra.mxu1 %v20680_v38  ;;  %5143 = vmatprep.subr.bf16.mxu0 %v20685_v39  ;;  %v20740_v38 = vld [vmem:[%s22733_s2 + $0x1b60] ss:$16 sps:$4 sm:$0xff]   ;;  %v20745_v39 = vld [vmem:[%s22733_s2 + $0x1944] ss:$16 sps:$4 sm:$0xff]  }
 0x2a4   : > { %5184 = vmatprep.subr.bf16.mxu1 %v20688_v40  ;;  %v20748_v40 = vld [vmem:[%s22733_s2 + $0x1b44] ss:$16 sps:$4 sm:$0xff]  }
 0x2a6   : > { %5144 = vmatpush1.bf16.msra.mxu0 %v20683_v41  ;;  %v20743_v41 = vld [vmem:[%s22733_s2 + $0x1940] ss:$16 sps:$4 sm:$0xff]  }
 0x2a7   : > { %5185 = vmatpush1.bf16.msra.mxu1 %v20686_v42  ;;  %5145 = vmatprep.subr.bf16.mxu0 %v20691_v43  ;;  %v20746_v42 = vld [vmem:[%s22733_s2 + $0x1b40] ss:$16 sps:$4 sm:$0xff]   ;;  %v1284_v43 = vld [vmem:[#allocation2 + $0x8] sm:$0xff] }
 0x2a8   : > { %5186 = vmatprep.subr.bf16.mxu1 %v20694_v44  ;;  %v20751_v44 = vld [vmem:[%s22733_s2 + $0x1924] ss:$16 sps:$4 sm:$0xff]  }
 0x2aa   : > { %5146 = vmatpush1.bf16.msra.mxu0 %v20689_v45  ;;  %v20754_v45 = vld [vmem:[%s22733_s2 + $0x1b24] ss:$16 sps:$4 sm:$0xff]  }
 0x2ab   : > { %5187 = vmatpush1.bf16.msra.mxu1 %v20692_v46  ;;  %5147 = vmatprep.subr.bf16.mxu0 %v20697_v47  ;;  %v2364_v46 = vcombine.high %v1284_v43, %v1284_v43  ;;  %v20749_v47 = vld [vmem:[%s22733_s2 + $0x1920] ss:$16 sps:$4 sm:$0xff]  }
 0x2ac   : > { %5188 = vmatprep.subr.bf16.mxu1 %v20700_v48  ;;  %v20752_v48 = vld [vmem:[%s22733_s2 + $0x1b20] ss:$16 sps:$4 sm:$0xff]  }
 0x2ae   : > { %5148 = vmatpush1.bf16.msra.mxu0 %v20695_v51  ;;  %v20757_v51 = vld [vmem:[%s22733_s2 + $0x1904] ss:$16 sps:$4 sm:$0xff]  }
 0x2af   : > { %5189 = vmatpush1.bf16.msra.mxu1 %v20698_v52  ;;  %5149 = vmatprep.subr.bf16.mxu0 %v20703_v53  ;;  %v20760_v52 = vld [vmem:[%s22733_s2 + $0x1b04] ss:$16 sps:$4 sm:$0xff]   ;;  %v23064_v53 = vrot.slane %v1284_v43, %v22843_v18  ;;  %v20792_v43 = vld [vmem:[%s22733_s2 + $0x1c40] ss:$16 sps:$4 sm:$0xff]  }
 0x2b0   : > { %5190 = vmatprep.subr.bf16.mxu1 %v20706_v54  ;;  %v23067_v54 = vrot.slane %v2364_v46, %v22843_v18  ;;  %v20803_v46 = vld [vmem:[%s22733_s2 + $0x1e24] ss:$16 sps:$4 sm:$0xff]  }
 0x2b2   : > { %5150 = vmatpush1.bf16.msra.mxu0 %v20701_v55  ;;  %v20755_v55 = vld [vmem:[%s22733_s2 + $0x1900] ss:$16 sps:$4 sm:$0xff]  }
 0x2b3   : > { %5191 = vmatpush1.bf16.msra.mxu1 %v20704_v56  ;;  %5151 = vmatprep.subr.bf16.mxu0 %v20709_v57  ;;  %v20758_v56 = vld [vmem:[%s22733_s2 + $0x1b00] ss:$16 sps:$4 sm:$0xff]   ;;  %v20764_v57 = vld [vmem:[%s22733_s2 + $0x1ce4] ss:$16 sps:$4 sm:$0xff]  }
 0x2b4   : > { %5192 = vmatprep.subr.bf16.mxu1 %v20712_v58  ;;  %v20767_v58 = vld [vmem:[%s22733_s2 + $0x1ee4] ss:$16 sps:$4 sm:$0xff]  }
 0x2b6   : > { %5152 = vmatpush1.bf16.msra.mxu0 %v20707_v59  ;;  %v20762_v59 = vld [vmem:[%s22733_s2 + $0x1ce0] ss:$16 sps:$4 sm:$0xff]  }
 0x2b7   : > { %5193 = vmatpush1.bf16.msra.mxu1 %v20710_v60  ;;  %5153 = vmatprep.subr.bf16.mxu0 %v20715_v61  ;;  %v23076_v60 = vcombine.high %v23064_v53, %v23064_v53  ;;  %v23080_v61 = vcombine.high %v23067_v54, %v23067_v54 }
 0x2b8   : > { %5194 = vmatprep.subr.bf16.mxu1 %v20718_v62  ;;  %v2389_v62 = vrot.slane %v22984_v14, 1 }
 0x2ba   : > { %5154 = vmatpush2.bf16.msra.mxu0 %v20713_v63  ;;  %v2391_v63 = vrot.slane %v22996_v21, 1 }
 0x2bb   : > { %5195 = vmatpush2.bf16.msra.mxu1 %v20716_v0  ;;  %5155 = vmatprep.subr.bf16.mxu0 %v20721_v1  ;;  %v20765_v0 = vld [vmem:[%s22733_s2 + $0x1ee0] ss:$16 sps:$4 sm:$0xff]   ;;  %v20770_v1 = vld [vmem:[%s22733_s2 + $0x1cc4] ss:$16 sps:$4 sm:$0xff]  }
 0x2bc   : > { %5196 = vmatprep.subr.bf16.mxu1 %v20724_v2  ;;  %v20773_v2 = vld [vmem:[%s22733_s2 + $0x1ec4] ss:$16 sps:$4 sm:$0xff]  }
 0x2be   : > { %5156 = vmatpush2.bf16.msra.mxu0 %v20719_v3  ;;  %v2394_v3 = vrot.slane %v23076_v60, 1 }
 0x2bf   : > { %5197 = vmatpush2.bf16.msra.mxu1 %v20722_v4  ;;  %5157 = vmatprep.subr.bf16.mxu0 %v20727_v7  ;;  %v2396_v4 = vrot.slane %v23080_v61, 1  ;;  %v20768_v7 = vld [vmem:[%s22733_s2 + $0x1cc0] ss:$16 sps:$4 sm:$0xff]  }
 0x2c0   : > { %5198 = vmatprep.subr.bf16.mxu1 %v20730_v8  ;;  %v20771_v8 = vld [vmem:[%s22733_s2 + $0x1ec0] ss:$16 sps:$4 sm:$0xff]  }
 0x2c2   : > { %5158 = vmatpush2.bf16.msra.mxu0 %v20725_v9  ;;  %v20776_v9 = vld [vmem:[%s22733_s2 + $0x1ca4] ss:$16 sps:$4 sm:$0xff]  }
 0x2c3   : > { %5199 = vmatpush2.bf16.msra.mxu1 %v20728_v10  ;;  %5159 = vmatprep.subr.bf16.mxu0 %v20733_v11  ;;  %v20779_v10 = vld [vmem:[%s22733_s2 + $0x1ea4] ss:$16 sps:$4 sm:$0xff]   ;;  %v20774_v11 = vld [vmem:[%s22733_s2 + $0x1ca0] ss:$16 sps:$4 sm:$0xff]  }
 0x2c4   : > { %5200 = vmatprep.subr.bf16.mxu1 %v20736_v15  ;;  %v20777_v15 = vld [vmem:[%s22733_s2 + $0x1ea0] ss:$16 sps:$4 sm:$0xff]  }
 0x2c6   : > { %5160 = vmatpush2.bf16.msra.mxu0 %v20731_v16  ;;  %v20782_v16 = vld [vmem:[%s22733_s2 + $0x1c84] ss:$16 sps:$4 sm:$0xff]  }
 0x2c7   : > { %5201 = vmatpush2.bf16.msra.mxu1 %v20734_v25  ;;  %5161 = vmatprep.subr.bf16.mxu0 %v20739_v26  ;;  %v20785_v25 = vld [vmem:[%s22733_s2 + $0x1e84] ss:$16 sps:$4 sm:$0xff]   ;;  %v20780_v26 = vld [vmem:[%s22733_s2 + $0x1c80] ss:$16 sps:$4 sm:$0xff]  }
 0x2c8   : > { %5202 = vmatprep.subr.bf16.mxu1 %v20742_v30  ;;  %v20783_v30 = vld [vmem:[%s22733_s2 + $0x1e80] ss:$16 sps:$4 sm:$0xff]  }
 0x2ca   : > { %5162 = vmatpush2.bf16.msra.mxu0 %v20737_v35  ;;  %v20788_v35 = vld [vmem:[%s22733_s2 + $0x1c64] ss:$16 sps:$4 sm:$0xff]  }
 0x2cb   : > { %5203 = vmatpush2.bf16.msra.mxu1 %v20740_v38  ;;  %5163 = vmatprep.subr.bf16.mxu0 %v20745_v39  ;;  %v20791_v38 = vld [vmem:[%s22733_s2 + $0x1e64] ss:$16 sps:$4 sm:$0xff]   ;;  %v20786_v39 = vld [vmem:[%s22733_s2 + $0x1c60] ss:$16 sps:$4 sm:$0xff]  }
 0x2cc   : > { %5204 = vmatprep.subr.bf16.mxu1 %v20748_v40  ;;  %v20789_v40 = vld [vmem:[%s22733_s2 + $0x1e60] ss:$16 sps:$4 sm:$0xff]  }
 0x2ce   : > { %5164 = vmatpush2.bf16.msra.mxu0 %v20743_v41  ;;  %v20794_v41 = vld [vmem:[%s22733_s2 + $0x1c44] ss:$16 sps:$4 sm:$0xff]  }
 0x2cf   : > { %5205 = vmatpush2.bf16.msra.mxu1 %v20746_v42  ;;  %5165 = vmatprep.subr.bf16.mxu0 %v20751_v44  ;;  %v20797_v42 = vld [vmem:[%s22733_s2 + $0x1e44] ss:$16 sps:$4 sm:$0xff]   ;;  %v20795_v44 = vld [vmem:[%s22733_s2 + $0x1e40] ss:$16 sps:$4 sm:$0xff]  }
 0x2d0   : > { %5206 = vmatprep.subr.bf16.mxu1 %v20754_v45  ;;  %v20800_v45 = vld [vmem:[%s22733_s2 + $0x1c24] ss:$16 sps:$4 sm:$0xff]  }
 0x2d2   : > { %5166 = vmatpush2.bf16.msra.mxu0 %v20749_v47  ;;  %v20798_v47 = vld [vmem:[%s22733_s2 + $0x1c20] ss:$16 sps:$4 sm:$0xff]  }
 0x2d3   : > { %5207 = vmatpush2.bf16.msra.mxu1 %v20752_v48  ;;  %5167 = vmatprep.subr.bf16.mxu0 %v20757_v51  ;;  %v20801_v48 = vld [vmem:[%s22733_s2 + $0x1e20] ss:$16 sps:$4 sm:$0xff]   ;;  %v20806_v51 = vld [vmem:[%s22733_s2 + $0x1c04] ss:$16 sps:$4 sm:$0xff]  }
 0x2d4   : > { %5208 = vmatprep.subr.bf16.mxu1 %v20760_v52  ;;  %v20809_v52 = vld [vmem:[%s22733_s2 + $0x1e04] ss:$16 sps:$4 sm:$0xff]  }
 0x2d6   : > { %5168 = vmatpush2.bf16.msra.mxu0 %v20755_v55  ;;  %v20804_v55 = vld [vmem:[%s22733_s2 + $0x1c00] ss:$16 sps:$4 sm:$0xff]  }
 0x2d7   : > { %5209 = vmatpush2.bf16.msra.mxu1 %v20758_v56  ;;  %5219 = vmatprep.subr.bf16.mxu0 %v20764_v57  ;;  %v20807_v56 = vld [vmem:[%s22733_s2 + $0x1e00] ss:$16 sps:$4 sm:$0xff]   ;;  %v20812_v57 = vld [vmem:[%s22733_s2 + $0x1de4] ss:$16 sps:$4 sm:$0xff]  }
 0x2d8   : > { %5260 = vmatprep.subr.bf16.mxu1 %v20767_v58  ;;  %v20815_v58 = vld [vmem:[%s22733_s2 + $0x1fe4] ss:$16 sps:$4 sm:$0xff]  }
 0x2d9   : > { %5170 = vmatmul.mubr.bf16.vlgmr.msra.gmra.mxu0 %v2389_v62 }
 0x2da   : > { %5211 = vmatmul.mubr.bf16.vlgmr.msra.gmra.mxu1 %v2391_v63  ;;  %5220 = vmatpush1.bf16.msra.mxu0 %v20762_v59  ;;  %v20810_v59 = vld [vmem:[%s22733_s2 + $0x1de0] ss:$16 sps:$4 sm:$0xff]  }
 0x2db   : > { %5261 = vmatpush1.bf16.msra.mxu1 %v20765_v0  ;;  %5221 = vmatprep.subr.bf16.mxu0 %v20770_v1  ;;  %v20813_v0 = vld [vmem:[%s22733_s2 + $0x1fe0] ss:$16 sps:$4 sm:$0xff]   ;;  %v20818_v1 = vld [vmem:[%s22733_s2 + $0x1dc4] ss:$16 sps:$4 sm:$0xff]  }
 0x2dc   : > { %5262 = vmatprep.subr.bf16.mxu1 %v20773_v2  ;;  %5251 = vmatprep.mubr.bf16.mxu0 %v2394_v3  ;;  %v20821_v2 = vld [vmem:[%s22733_s2 + $0x1fc4] ss:$16 sps:$4 sm:$0xff]  }
 0x2dd   : > { %5292 = vmatprep.mubr.bf16.mxu1 %v2396_v4 }
 0x2de   : > { %5222 = vmatpush1.bf16.msra.mxu0 %v20768_v7  ;;  %v20816_v7 = vld [vmem:[%s22733_s2 + $0x1dc0] ss:$16 sps:$4 sm:$0xff]  }
 0x2df   : > { %5263 = vmatpush1.bf16.msra.mxu1 %v20771_v8  ;;  %5223 = vmatprep.subr.bf16.mxu0 %v20776_v9  ;;  %v20819_v8 = vld [vmem:[%s22733_s2 + $0x1fc0] ss:$16 sps:$4 sm:$0xff]   ;;  %v20824_v9 = vld [vmem:[%s22733_s2 + $0x1da4] ss:$16 sps:$4 sm:$0xff]  }
 0x2e0   : > { %5264 = vmatprep.subr.bf16.mxu1 %v20779_v10  ;;  %v20827_v10 = vld [vmem:[%s22733_s2 + $0x1fa4] ss:$16 sps:$4 sm:$0xff]  }
 0x2e2   : > { %5224 = vmatpush1.bf16.msra.mxu0 %v20774_v11  ;;  %v20822_v11 = vld [vmem:[%s22733_s2 + $0x1da0] ss:$16 sps:$4 sm:$0xff]  }
 0x2e3   : > { %5265 = vmatpush1.bf16.msra.mxu1 %v20777_v15  ;;  %5225 = vmatprep.subr.bf16.mxu0 %v20782_v16  ;;  %v20825_v15 = vld [vmem:[%s22733_s2 + $0x1fa0] ss:$16 sps:$4 sm:$0xff]   ;;  %v20830_v16 = vld [vmem:[%s22733_s2 + $0x1d84] ss:$16 sps:$4 sm:$0xff]  }
 0x2e4   : > { %5266 = vmatprep.subr.bf16.mxu1 %v20785_v25  ;;  %v20833_v25 = vld [vmem:[%s22733_s2 + $0x1f84] ss:$16 sps:$4 sm:$0xff]  }
 0x2e6   : > { %5226 = vmatpush1.bf16.msra.mxu0 %v20780_v26  ;;  %v20828_v26 = vld [vmem:[%s22733_s2 + $0x1d80] ss:$16 sps:$4 sm:$0xff]  }
 0x2e7   : > { %5267 = vmatpush1.bf16.msra.mxu1 %v20783_v30  ;;  %5227 = vmatprep.subr.bf16.mxu0 %v20788_v35  ;;  %v20831_v30 = vld [vmem:[%s22733_s2 + $0x1f80] ss:$16 sps:$4 sm:$0xff]   ;;  %v20836_v35 = vld [vmem:[%s22733_s2 + $0x1d64] ss:$16 sps:$4 sm:$0xff]  }
 0x2e8   : > { %5268 = vmatprep.subr.bf16.mxu1 %v20791_v38  ;;  %v20839_v38 = vld [vmem:[%s22733_s2 + $0x1f64] ss:$16 sps:$4 sm:$0xff]  }
 0x2ea   : > { %5228 = vmatpush1.bf16.msra.mxu0 %v20786_v39  ;;  %v20834_v39 = vld [vmem:[%s22733_s2 + $0x1d60] ss:$16 sps:$4 sm:$0xff]  }
 0x2eb   : > { %5269 = vmatpush1.bf16.msra.mxu1 %v20789_v40  ;;  %5229 = vmatprep.subr.bf16.mxu0 %v20794_v41  ;;  %v20837_v40 = vld [vmem:[%s22733_s2 + $0x1f60] ss:$16 sps:$4 sm:$0xff]   ;;  %v20842_v41 = vld [vmem:[%s22733_s2 + $0x1d44] ss:$16 sps:$4 sm:$0xff]  }
 0x2ec   : > { %5270 = vmatprep.subr.bf16.mxu1 %v20797_v42  ;;  %v20845_v42 = vld [vmem:[%s22733_s2 + $0x1f44] ss:$16 sps:$4 sm:$0xff]  }
 0x2ee   : > { %5230 = vmatpush1.bf16.msra.mxu0 %v20792_v43  ;;  %v20840_v43 = vld [vmem:[%s22733_s2 + $0x1d40] ss:$16 sps:$4 sm:$0xff]  }
 0x2ef   : > { %5271 = vmatpush1.bf16.msra.mxu1 %v20795_v44  ;;  %5231 = vmatprep.subr.bf16.mxu0 %v20800_v45  ;;  %v20843_v44 = vld [vmem:[%s22733_s2 + $0x1f40] ss:$16 sps:$4 sm:$0xff]   ;;  %v20848_v45 = vld [vmem:[%s22733_s2 + $0x1d24] ss:$16 sps:$4 sm:$0xff]  }
 0x2f0   : > { %5272 = vmatprep.subr.bf16.mxu1 %v20803_v46  ;;  %v20851_v46 = vld [vmem:[%s22733_s2 + $0x1f24] ss:$16 sps:$4 sm:$0xff]  }
 0x2f2   : > { %5232 = vmatpush1.bf16.msra.mxu0 %v20798_v47  ;;  %v20846_v47 = vld [vmem:[%s22733_s2 + $0x1d20] ss:$16 sps:$4 sm:$0xff]  }
 0x2f3   : > { %5273 = vmatpush1.bf16.msra.mxu1 %v20801_v48  ;;  %5233 = vmatprep.subr.bf16.mxu0 %v20806_v51  ;;  %v20849_v48 = vld [vmem:[%s22733_s2 + $0x1f20] ss:$16 sps:$4 sm:$0xff]   ;;  %v20854_v51 = vld [vmem:[%s22733_s2 + $0x1d04] ss:$16 sps:$4 sm:$0xff]  }
 0x2f4   : > { %5274 = vmatprep.subr.bf16.mxu1 %v20809_v52  ;;  %v20857_v52 = vld [vmem:[%s22733_s2 + $0x1f04] ss:$16 sps:$4 sm:$0xff]  }
 0x2f6   : > { %5234 = vmatpush1.bf16.msra.mxu0 %v20804_v55  ;;  %v20852_v55 = vld [vmem:[%s22733_s2 + $0x1d00] ss:$16 sps:$4 sm:$0xff]  }
 0x2f7   : > { %5275 = vmatpush1.bf16.msra.mxu1 %v20807_v56  ;;  %5235 = vmatprep.subr.bf16.mxu0 %v20812_v57  ;;  %v20855_v56 = vld [vmem:[%s22733_s2 + $0x1f00] ss:$16 sps:$4 sm:$0xff]   ;;  %v20861_v57 = vld [vmem:[%s22733_s2 + $0x10ec] ss:$16 sps:$4 sm:$0xff]  }
 0x2f8   : > { %5276 = vmatprep.subr.bf16.mxu1 %v20815_v58  ;;  %v20864_v58 = vld [vmem:[%s22733_s2 + $0x12ec] ss:$16 sps:$4 sm:$0xff]  }
 0x2fa   : > { %5236 = vmatpush2.bf16.msra.mxu0 %v20810_v59  ;;  %v20859_v59 = vld [vmem:[%s22733_s2 + $0x10e8] ss:$16 sps:$4 sm:$0xff]  }
 0x2fb   : > { %5277 = vmatpush2.bf16.msra.mxu1 %v20813_v0  ;;  %5237 = vmatprep.subr.bf16.mxu0 %v20818_v1  ;;  %v2393_v0 = vrot.slane %v23064_v53, 1  ;;  %v2395_v1 = vrot.slane %v23067_v54, 1 }
 0x2fc   : > { %5278 = vmatprep.subr.bf16.mxu1 %v20821_v2  ;;  %v20862_v2 = vld [vmem:[%s22733_s2 + $0x12e8] ss:$16 sps:$4 sm:$0xff]  }
 0x2fe   : > { %5238 = vmatpush2.bf16.msra.mxu0 %v20816_v7  ;;  %v20867_v7 = vld [vmem:[%s22733_s2 + $0x10cc] ss:$16 sps:$4 sm:$0xff]  }
 0x2ff   : > { %5279 = vmatpush2.bf16.msra.mxu1 %v20819_v8  ;;  %5239 = vmatprep.subr.bf16.mxu0 %v20824_v9  ;;  %v20870_v8 = vld [vmem:[%s22733_s2 + $0x12cc] ss:$16 sps:$4 sm:$0xff]  }
 0x300   : > { %5280 = vmatprep.subr.bf16.mxu1 %v20827_v10 }
 0x302   : > { %5240 = vmatpush2.bf16.msra.mxu0 %v20822_v11  ;;  %v20865_v11 = vld [vmem:[%s22733_s2 + $0x10c8] ss:$16 sps:$4 sm:$0xff]  }
 0x303   : > { %5281 = vmatpush2.bf16.msra.mxu1 %v20825_v15  ;;  %5241 = vmatprep.subr.bf16.mxu0 %v20830_v16  ;;  %v20868_v15 = vld [vmem:[%s22733_s2 + $0x12c8] ss:$16 sps:$4 sm:$0xff]  }
 0x304   : > { %5282 = vmatprep.subr.bf16.mxu1 %v20833_v25 }
 0x306   : > { %5242 = vmatpush2.bf16.msra.mxu0 %v20828_v26 }
 0x307   : > { %5283 = vmatpush2.bf16.msra.mxu1 %v20831_v30  ;;  %5243 = vmatprep.subr.bf16.mxu0 %v20836_v35  ;;  %v20873_v30 = vld [vmem:[%s22733_s2 + $0x10ac] ss:$16 sps:$4 sm:$0xff]  }
 0x308   : > { %5284 = vmatprep.subr.bf16.mxu1 %v20839_v38  ;;  %v20876_v35 = vld [vmem:[%s22733_s2 + $0x12ac] ss:$16 sps:$4 sm:$0xff]  }
 0x30a   : > { %5244 = vmatpush2.bf16.msra.mxu0 %v20834_v39  ;;  %v20871_v39 = vld [vmem:[%s22733_s2 + $0x10a8] ss:$16 sps:$4 sm:$0xff]  }
 0x30b   : > { %5285 = vmatpush2.bf16.msra.mxu1 %v20837_v40  ;;  %5245 = vmatprep.subr.bf16.mxu0 %v20842_v41  ;;  %v20874_v40 = vld [vmem:[%s22733_s2 + $0x12a8] ss:$16 sps:$4 sm:$0xff]  }
 0x30c   : > { %5286 = vmatprep.subr.bf16.mxu1 %v20845_v42 }
 0x30e   : > { %5246 = vmatpush2.bf16.msra.mxu0 %v20840_v43 }
 0x30f   : > { %5287 = vmatpush2.bf16.msra.mxu1 %v20843_v44  ;;  %5247 = vmatprep.subr.bf16.mxu0 %v20848_v45  ;;  %v20879_v45 = vld [vmem:[%s22733_s2 + $0x108c] ss:$16 sps:$4 sm:$0xff]  }
 0x310   : > { %5288 = vmatprep.subr.bf16.mxu1 %v20851_v46  ;;  %v20882_v46 = vld [vmem:[%s22733_s2 + $0x128c] ss:$16 sps:$4 sm:$0xff]  }
 0x312   : > { %5248 = vmatpush2.bf16.msra.mxu0 %v20846_v47  ;;  %v20885_v47 = vld [vmem:[%s22733_s2 + $0x106c] ss:$16 sps:$4 sm:$0xff]  }
 0x313   : > { %5289 = vmatpush2.bf16.msra.mxu1 %v20849_v48  ;;  %5249 = vmatprep.subr.bf16.mxu0 %v20854_v51  ;;  %v20888_v48 = vld [vmem:[%s22733_s2 + $0x126c] ss:$16 sps:$4 sm:$0xff]   ;;  %v20883_v51 = vld [vmem:[%s22733_s2 + $0x1068] ss:$16 sps:$4 sm:$0xff]  }
 0x314   : > { %5290 = vmatprep.subr.bf16.mxu1 %v20857_v52  ;;  %v20886_v52 = vld [vmem:[%s22733_s2 + $0x1268] ss:$16 sps:$4 sm:$0xff]  }
 0x316   : > { %5250 = vmatpush2.bf16.msra.mxu0 %v20852_v55  ;;  %v20891_v55 = vld [vmem:[%s22733_s2 + $0x104c] ss:$16 sps:$4 sm:$0xff]  }
 0x317   : > { %5291 = vmatpush2.bf16.msra.mxu1 %v20855_v56  ;;  %5301 = vmatprep.subr.bf16.mxu0 %v20861_v57  ;;  %v20894_v56 = vld [vmem:[%s22733_s2 + $0x124c] ss:$16 sps:$4 sm:$0xff]   ;;  %v20889_v57 = vld [vmem:[%s22733_s2 + $0x1048] ss:$16 sps:$4 sm:$0xff]  }
 0x318   : > { %5342 = vmatprep.subr.bf16.mxu1 %v20864_v58  ;;  %v20892_v58 = vld [vmem:[%s22733_s2 + $0x1248] ss:$16 sps:$4 sm:$0xff]  }
 0x319   : > { %v5007_v9 = vpop.f32.mrf.mxu0  ;;  %5252 = vmatmul.mubr.bf16.vlgmr.msra.gmra.mxu0 %v2393_v0 }
 0x31a   : > { %v5048_v10 = vpop.f32.mrf.mxu1  ;;  %5293 = vmatmul.mubr.bf16.vlgmr.msra.gmra.mxu1 %v2395_v1  ;;  %5302 = vmatpush1.bf16.msra.mxu0 %v20859_v59  ;;  %v20897_v59 = vld [vmem:[%s22733_s2 + $0x102c] ss:$16 sps:$4 sm:$0xff]  }
 0x31b   : > { %v23169_v16 = vadd.f32 %v5048_v10, %v5007_v9  ;;  %5343 = vmatpush1.bf16.msra.mxu1 %v20862_v2  ;;  %v5009_v25 = vpop.f32.mrf.mxu0  ;;  %5303 = vmatprep.subr.bf16.mxu0 %v20867_v7  ;;  %v20900_v2 = vld [vmem:[%s22733_s2 + $0x122c] ss:$16 sps:$4 sm:$0xff]   ;;  %v20895_v7 = vld [vmem:[%s22733_s2 + $0x1028] ss:$16 sps:$4 sm:$0xff]  }
 0x31c   : > { %v5050_v26 = vpop.f32.mrf.mxu1  ;;  %5344 = vmatprep.subr.bf16.mxu1 %v20870_v8  ;;  %5333 = vmatprep.mubr.bf16.mxu0 %v2382_v31  ;;  %v20877_v31 = vld [vmem:[%s22733_s2 + $0x1088] ss:$16 sps:$4 sm:$0xff]   ;;  %v20903_v9 = vld [vmem:[%s22733_s2 + $0x100c] ss:$16 sps:$4 sm:$0xff]  }
 0x31d   : > { %v23173_v38 = vadd.f32 %v5050_v26, %v5009_v25  ;;  %5374 = vmatprep.mubr.bf16.mxu1 %v2384_v36  ;;  %v5011_v41 = vpop.f32.mrf.mxu0  ;;  %v20880_v36 = vld [vmem:[%s22733_s2 + $0x1288] ss:$16 sps:$4 sm:$0xff]   ;;  %v20906_v10 = vld [vmem:[%s22733_s2 + $0x120c] ss:$16 sps:$4 sm:$0xff]  }
 0x31e   : > { %v5052_v42 = vpop.f32.mrf.mxu1  ;;  %5304 = vmatpush1.bf16.msra.mxu0 %v20865_v11  ;;  %v20898_v8 = vld [vmem:[%s22733_s2 + $0x1228] ss:$16 sps:$4 sm:$0xff]   ;;  %v20909_v25 = vld [vmem:[%s22733_s2 + $0x11ec] ss:$16 sps:$4 sm:$0xff]  }
 0x31f   : > { %5345 = vmatpush1.bf16.msra.mxu1 %v20868_v15  ;;  %v5012_v43 = vpop.f32.mrf.mxu0  ;;  %5305 = vmatprep.subr.bf16.mxu0 %v20873_v30  ;;  %v20901_v11 = vld [vmem:[%s22733_s2 + $0x1008] ss:$16 sps:$4 sm:$0xff]   ;;  %v20912_v26 = vld [vmem:[%s22733_s2 + $0x13ec] ss:$16 sps:$4 sm:$0xff]  }
 0x320   : > { %v5053_v44 = vpop.f32.mrf.mxu1  ;;  %5346 = vmatprep.subr.bf16.mxu1 %v20876_v35  ;;  %v20904_v15 = vld [vmem:[%s22733_s2 + $0x1208] ss:$16 sps:$4 sm:$0xff]   ;;  %v20921_v43 = vld [vmem:[%s22733_s2 + $0x11ac] ss:$16 sps:$4 sm:$0xff]  }
 0x321   : > { %v20907_v30 = vld [vmem:[%s22733_s2 + $0x11e8] ss:$16 sps:$4 sm:$0xff]   ;;  %v20924_v44 = vld [vmem:[%s22733_s2 + $0x13ac] ss:$16 sps:$4 sm:$0xff]  }
 0x322   : > { %5306 = vmatpush1.bf16.msra.mxu0 %v20871_v39  ;;  %v20910_v35 = vld [vmem:[%s22733_s2 + $0x13e8] ss:$16 sps:$4 sm:$0xff]   ;;  %v20915_v39 = vld [vmem:[%s22733_s2 + $0x11cc] ss:$16 sps:$4 sm:$0xff]  }
 0x323   : > { %5347 = vmatpush1.bf16.msra.mxu1 %v20874_v40  ;;  %5307 = vmatprep.subr.bf16.mxu0 %v20879_v45  ;;  %v20918_v40 = vld [vmem:[%s22733_s2 + $0x13cc] ss:$16 sps:$4 sm:$0xff]   ;;  %v20913_v41 = vld [vmem:[%s22733_s2 + $0x11c8] ss:$16 sps:$4 sm:$0xff]  }
 0x324   : > { %5348 = vmatprep.subr.bf16.mxu1 %v20882_v46  ;;  %v20916_v42 = vld [vmem:[%s22733_s2 + $0x13c8] ss:$16 sps:$4 sm:$0xff]  }
 0x325   : > { %v20919_v45 = vld [vmem:[%s22733_s2 + $0x11a8] ss:$16 sps:$4 sm:$0xff]  }
 0x326   : > { %5308 = vmatpush1.bf16.msra.mxu0 %v20877_v31  ;;  %v20922_v46 = vld [vmem:[%s22733_s2 + $0x13a8] ss:$16 sps:$4 sm:$0xff]   ;;  %v20927_v31 = vld [vmem:[%s22733_s2 + $0x118c] ss:$16 sps:$4 sm:$0xff]  }
 0x327   : > { %5349 = vmatpush1.bf16.msra.mxu1 %v20880_v36  ;;  %5309 = vmatprep.subr.bf16.mxu0 %v20885_v47  ;;  %v20930_v36 = vld [vmem:[%s22733_s2 + $0x138c] ss:$16 sps:$4 sm:$0xff]   ;;  %v20925_v47 = vld [vmem:[%s22733_s2 + $0x1188] ss:$16 sps:$4 sm:$0xff]  }
 0x328   : > { %5350 = vmatprep.subr.bf16.mxu1 %v20888_v48  ;;  %v20928_v48 = vld [vmem:[%s22733_s2 + $0x1388] ss:$16 sps:$4 sm:$0xff]  }
 0x32a   : > { %5310 = vmatpush1.bf16.msra.mxu0 %v20883_v51  ;;  %v20933_v51 = vld [vmem:[%s22733_s2 + $0x116c] ss:$16 sps:$4 sm:$0xff]  }
 0x32b   : > { %5351 = vmatpush1.bf16.msra.mxu1 %v20886_v52  ;;  %5311 = vmatprep.subr.bf16.mxu0 %v20891_v55  ;;  %v20936_v52 = vld [vmem:[%s22733_s2 + $0x136c] ss:$16 sps:$4 sm:$0xff]   ;;  %v20931_v55 = vld [vmem:[%s22733_s2 + $0x1168] ss:$16 sps:$4 sm:$0xff]  }
 0x32c   : > { %5352 = vmatprep.subr.bf16.mxu1 %v20894_v56  ;;  %v20934_v56 = vld [vmem:[%s22733_s2 + $0x1368] ss:$16 sps:$4 sm:$0xff]  }
 0x32e   : > { %5312 = vmatpush1.bf16.msra.mxu0 %v20889_v57  ;;  %v20939_v57 = vld [vmem:[%s22733_s2 + $0x114c] ss:$16 sps:$4 sm:$0xff]  }
 0x32f   : > { %5353 = vmatpush1.bf16.msra.mxu1 %v20892_v58  ;;  %5313 = vmatprep.subr.bf16.mxu0 %v20897_v59  ;;  %v20942_v58 = vld [vmem:[%s22733_s2 + $0x134c] ss:$16 sps:$4 sm:$0xff]   ;;  %v20937_v59 = vld [vmem:[%s22733_s2 + $0x1148] ss:$16 sps:$4 sm:$0xff]  }
 0x330   : > { %5354 = vmatprep.subr.bf16.mxu1 %v20900_v2  ;;  %v20940_v2 = vld [vmem:[%s22733_s2 + $0x1348] ss:$16 sps:$4 sm:$0xff]  }
 0x332   : > { %5314 = vmatpush1.bf16.msra.mxu0 %v20895_v7  ;;  %v20945_v7 = vld [vmem:[%s22733_s2 + $0x112c] ss:$16 sps:$4 sm:$0xff]  }
 0x333   : > { %5355 = vmatpush1.bf16.msra.mxu1 %v20898_v8  ;;  %5315 = vmatprep.subr.bf16.mxu0 %v20903_v9  ;;  %v20948_v8 = vld [vmem:[%s22733_s2 + $0x132c] ss:$16 sps:$4 sm:$0xff]   ;;  %v20943_v9 = vld [vmem:[%s22733_s2 + $0x1128] ss:$16 sps:$4 sm:$0xff]  }
 0x334   : > { %5356 = vmatprep.subr.bf16.mxu1 %v20906_v10  ;;  %v20946_v10 = vld [vmem:[%s22733_s2 + $0x1328] ss:$16 sps:$4 sm:$0xff]  }
 0x336   : > { %5316 = vmatpush1.bf16.msra.mxu0 %v20901_v11  ;;  %v20951_v11 = vld [vmem:[%s22733_s2 + $0x110c] ss:$16 sps:$4 sm:$0xff]  }
 0x337   : > { %5357 = vmatpush1.bf16.msra.mxu1 %v20904_v15  ;;  %5317 = vmatprep.subr.bf16.mxu0 %v20909_v25  ;;  %v20954_v15 = vld [vmem:[%s22733_s2 + $0x130c] ss:$16 sps:$4 sm:$0xff]   ;;  %v20949_v25 = vld [vmem:[%s22733_s2 + $0x1108] ss:$16 sps:$4 sm:$0xff]  }
 0x338   : > { %5358 = vmatprep.subr.bf16.mxu1 %v20912_v26  ;;  %v20952_v26 = vld [vmem:[%s22733_s2 + $0x1308] ss:$16 sps:$4 sm:$0xff]  }
 0x33a   : > { %5318 = vmatpush2.bf16.msra.mxu0 %v20907_v30  ;;  %v20957_v30 = vld [vmem:[%s22733_s2 + $0x14ec] ss:$16 sps:$4 sm:$0xff]  }
 0x33b   : > { %5359 = vmatpush2.bf16.msra.mxu1 %v20910_v35  ;;  %5319 = vmatprep.subr.bf16.mxu0 %v20915_v39  ;;  %v20960_v35 = vld [vmem:[%s22733_s2 + $0x16ec] ss:$16 sps:$4 sm:$0xff]   ;;  %v20955_v39 = vld [vmem:[%s22733_s2 + $0x14e8] ss:$16 sps:$4 sm:$0xff]  }
 0x33c   : > { %5360 = vmatprep.subr.bf16.mxu1 %v20918_v40  ;;  %v20958_v40 = vld [vmem:[%s22733_s2 + $0x16e8] ss:$16 sps:$4 sm:$0xff]  }
 0x33e   : > { %5320 = vmatpush2.bf16.msra.mxu0 %v20913_v41  ;;  %v20963_v41 = vld [vmem:[%s22733_s2 + $0x14cc] ss:$16 sps:$4 sm:$0xff]  }
 0x33f   : > { %5361 = vmatpush2.bf16.msra.mxu1 %v20916_v42  ;;  %5321 = vmatprep.subr.bf16.mxu0 %v20921_v43  ;;  %v20966_v42 = vld [vmem:[%s22733_s2 + $0x16cc] ss:$16 sps:$4 sm:$0xff]   ;;  %v20961_v43 = vld [vmem:[%s22733_s2 + $0x14c8] ss:$16 sps:$4 sm:$0xff]  }
 0x340   : > { %5362 = vmatprep.subr.bf16.mxu1 %v20924_v44  ;;  %v20964_v44 = vld [vmem:[%s22733_s2 + $0x16c8] ss:$16 sps:$4 sm:$0xff]  }
 0x342   : > { %5322 = vmatpush2.bf16.msra.mxu0 %v20919_v45 }
 0x343   : > { %5363 = vmatpush2.bf16.msra.mxu1 %v20922_v46  ;;  %5323 = vmatprep.subr.bf16.mxu0 %v20927_v31 }
 0x344   : > { %5364 = vmatprep.subr.bf16.mxu1 %v20930_v36 }
 0x346   : > { %5324 = vmatpush2.bf16.msra.mxu0 %v20925_v47 }
 0x347   : > { %5365 = vmatpush2.bf16.msra.mxu1 %v20928_v48  ;;  %5325 = vmatprep.subr.bf16.mxu0 %v20933_v51  ;;  %v20969_v48 = vld [vmem:[%s22733_s2 + $0x14ac] ss:$16 sps:$4 sm:$0xff]  }
 0x348   : > { %5366 = vmatprep.subr.bf16.mxu1 %v20936_v52  ;;  %v20972_v51 = vld [vmem:[%s22733_s2 + $0x16ac] ss:$16 sps:$4 sm:$0xff]  }
 0x34a   : > { %5326 = vmatpush2.bf16.msra.mxu0 %v20931_v55 }
 0x34b   : > { %5367 = vmatpush2.bf16.msra.mxu1 %v20934_v56  ;;  %5327 = vmatprep.subr.bf16.mxu0 %v20939_v57  ;;  %v20970_v56 = vld [vmem:[%s22733_s2 + $0x16a8] ss:$16 sps:$4 sm:$0xff]  }
 0x34c   : > { %5368 = vmatprep.subr.bf16.mxu1 %v20942_v58 }
 0x34e   : > { %5328 = vmatpush2.bf16.msra.mxu0 %v20937_v59  ;;  %v20975_v59 = vld [vmem:[%s22733_s2 + $0x148c] ss:$16 sps:$4 sm:$0xff]  }
 0x34f   : > { %5369 = vmatpush2.bf16.msra.mxu1 %v20940_v2  ;;  %5329 = vmatprep.subr.bf16.mxu0 %v20945_v7  ;;  %v20976_v2 = vld [vmem:[%s22733_s2 + $0x1688] ss:$16 sps:$4 sm:$0xff]   ;;  %v20981_v7 = vld [vmem:[%s22733_s2 + $0x146c] ss:$16 sps:$4 sm:$0xff]  }
 0x350   : > { %5370 = vmatprep.subr.bf16.mxu1 %v20948_v8  ;;  %v20984_v8 = vld [vmem:[%s22733_s2 + $0x166c] ss:$16 sps:$4 sm:$0xff]  }
 0x352   : > { %5330 = vmatpush2.bf16.msra.mxu0 %v20943_v9  ;;  %v20979_v9 = vld [vmem:[%s22733_s2 + $0x1468] ss:$16 sps:$4 sm:$0xff]  }
 0x353   : > { %5371 = vmatpush2.bf16.msra.mxu1 %v20946_v10  ;;  %5331 = vmatprep.subr.bf16.mxu0 %v20951_v11  ;;  %v20982_v10 = vld [vmem:[%s22733_s2 + $0x1668] ss:$16 sps:$4 sm:$0xff]   ;;  %v20987_v11 = vld [vmem:[%s22733_s2 + $0x144c] ss:$16 sps:$4 sm:$0xff]  }
 0x354   : > { %5372 = vmatprep.subr.bf16.mxu1 %v20954_v15  ;;  %v20990_v15 = vld [vmem:[%s22733_s2 + $0x164c] ss:$16 sps:$4 sm:$0xff]  }
 0x356   : > { %5332 = vmatpush2.bf16.msra.mxu0 %v20949_v25  ;;  %v20985_v25 = vld [vmem:[%s22733_s2 + $0x1448] ss:$16 sps:$4 sm:$0xff]  }
 0x357   : > { %5373 = vmatpush2.bf16.msra.mxu1 %v20952_v26  ;;  %5383 = vmatprep.subr.bf16.mxu0 %v20957_v30  ;;  %v20988_v26 = vld [vmem:[%s22733_s2 + $0x1648] ss:$16 sps:$4 sm:$0xff]   ;;  %v20993_v30 = vld [vmem:[%s22733_s2 + $0x142c] ss:$16 sps:$4 sm:$0xff]  }
 0x358   : > { %5424 = vmatprep.subr.bf16.mxu1 %v20960_v35  ;;  %v20996_v35 = vld [vmem:[%s22733_s2 + $0x162c] ss:$16 sps:$4 sm:$0xff]  }
 0x359   : > { %v5089_v45 = vpop.f32.mrf.mxu0  ;;  %5334 = vmatmul.mubr.bf16.vlgmr.msra.gmra.mxu0 %v2381_v49  ;;  %v20967_v49 = vld [vmem:[%s22733_s2 + $0x14a8] ss:$16 sps:$4 sm:$0xff]  }
 0x35a   : > { %v5130_v46 = vpop.f32.mrf.mxu1  ;;  %5375 = vmatmul.mubr.bf16.vlgmr.msra.gmra.mxu1 %v2383_v50  ;;  %v5090_v31 = vadd.f32 %v5089_v45, %v23169_v16  ;;  %5384 = vmatpush1.bf16.msra.mxu0 %v20955_v39  ;;  %v20991_v39 = vld [vmem:[%s22733_s2 + $0x1428] ss:$16 sps:$4 sm:$0xff]   ;;  %v21005_v45 = vld [vmem:[%s22733_s2 + $0x15ec] ss:$16 sps:$4 sm:$0xff]  }
 0x35b   : > { %5425 = vmatpush1.bf16.msra.mxu1 %v20958_v40  ;;  %v5091_v36 = vpop.f32.mrf.mxu0  ;;  %5385 = vmatprep.subr.bf16.mxu0 %v20963_v41  ;;  %v20994_v40 = vld [vmem:[%s22733_s2 + $0x1628] ss:$16 sps:$4 sm:$0xff]   ;;  %v20999_v41 = vld [vmem:[%s22733_s2 + $0x140c] ss:$16 sps:$4 sm:$0xff]  }
 0x35c   : > { %v5132_v47 = vpop.f32.mrf.mxu1  ;;  %5426 = vmatprep.subr.bf16.mxu1 %v20966_v42  ;;  %v23248_v52 = vadd.f32 %v5130_v46, %v5090_v31  ;;  %v5092_v55 = vadd.f32 %v5091_v36, %v23173_v38  ;;  %5415 = vmatprep.mubr.bf16.mxu0 %v2386_v22  ;;  %v20978_v22 = vld [vmem:[%s22733_s2 + $0x168c] ss:$16 sps:$4 sm:$0xff]   ;;  %v21003_v31 = vld [vmem:[%s22733_s2 + $0x15e8] ss:$16 sps:$4 sm:$0xff]  }
 0x35d   : > { %5456 = vmatprep.mubr.bf16.mxu1 %v2388_v27  ;;  %v5093_v50 = vpop.f32.mrf.mxu0  ;;  %v20973_v27 = vld [vmem:[%s22733_s2 + $0x1488] ss:$16 sps:$4 sm:$0xff]   ;;  %v21002_v42 = vld [vmem:[%s22733_s2 + $0x160c] ss:$16 sps:$4 sm:$0xff]  }
 0x35e   : > { %v5134_v16 = vpop.f32.mrf.mxu1  ;;  %v23257_v57 = vadd.f32 %v5132_v47, %v5092_v55  ;;  %5386 = vmatpush1.bf16.msra.mxu0 %v20961_v43  ;;  %v20997_v43 = vld [vmem:[%s22733_s2 + $0x1408] ss:$16 sps:$4 sm:$0xff]   ;;  %v21008_v46 = vld [vmem:[%s22733_s2 + $0x17ec] ss:$16 sps:$4 sm:$0xff]  }
 0x35f   : > { %5427 = vmatpush1.bf16.msra.mxu1 %v20964_v44  ;;  %v5094_v58 = vpop.f32.mrf.mxu0  ;;  %5387 = vmatprep.subr.bf16.mxu0 %v20969_v48  ;;  %v21000_v44 = vld [vmem:[%s22733_s2 + $0x1608] ss:$16 sps:$4 sm:$0xff]   ;;  %v21011_v47 = vld [vmem:[%s22733_s2 + $0x15cc] ss:$16 sps:$4 sm:$0xff]  }
 0x360   : > { %v5135_v38 = vpop.f32.mrf.mxu1  ;;  %5428 = vmatprep.subr.bf16.mxu1 %v20972_v51  ;;  %v21006_v36 = vld [vmem:[%s22733_s2 + $0x17e8] ss:$16 sps:$4 sm:$0xff]   ;;  %v21014_v48 = vld [vmem:[%s22733_s2 + $0x17cc] ss:$16 sps:$4 sm:$0xff]  }
 0x361   : > { %v21009_v51 = vld [vmem:[%s22733_s2 + $0x15c8] ss:$16 sps:$4 sm:$0xff]   ;;  %v21023_v58 = vld [vmem:[%s22733_s2 + $0x158c] ss:$16 sps:$4 sm:$0xff]  }
 0x362   : > { %5388 = vmatpush1.bf16.msra.mxu0 %v20967_v49  ;;  %v21012_v55 = vld [vmem:[%s22733_s2 + $0x17c8] ss:$16 sps:$4 sm:$0xff]   ;;  %v21017_v49 = vld [vmem:[%s22733_s2 + $0x15ac] ss:$16 sps:$4 sm:$0xff]  }
 0x363   : > { %5429 = vmatpush1.bf16.msra.mxu1 %v20970_v56  ;;  %5389 = vmatprep.subr.bf16.mxu0 %v20975_v59  ;;  %v21020_v56 = vld [vmem:[%s22733_s2 + $0x17ac] ss:$16 sps:$4 sm:$0xff]   ;;  %v21015_v50 = vld [vmem:[%s22733_s2 + $0x15a8] ss:$16 sps:$4 sm:$0xff]  }
 0x364   : > { %5430 = vmatprep.subr.bf16.mxu1 %v20978_v22  ;;  %v21018_v16 = vld [vmem:[%s22733_s2 + $0x17a8] ss:$16 sps:$4 sm:$0xff]   ;;  %v21026_v38 = vld [vmem:[%s22733_s2 + $0x178c] ss:$16 sps:$4 sm:$0xff]  }
 0x365   : > { %v21021_v59 = vld [vmem:[%s22733_s2 + $0x1588] ss:$16 sps:$4 sm:$0xff]  }
 0x366   : > { %5390 = vmatpush1.bf16.msra.mxu0 %v20973_v27  ;;  %v21024_v22 = vld [vmem:[%s22733_s2 + $0x1788] ss:$16 sps:$4 sm:$0xff]   ;;  %v21029_v27 = vld [vmem:[%s22733_s2 + $0x156c] ss:$16 sps:$4 sm:$0xff]  }
 0x367   : > { %5431 = vmatpush1.bf16.msra.mxu1 %v20976_v2  ;;  %5391 = vmatprep.subr.bf16.mxu0 %v20981_v7  ;;  %v21032_v2 = vld [vmem:[%s22733_s2 + $0x176c] ss:$16 sps:$4 sm:$0xff]   ;;  %v21027_v7 = vld [vmem:[%s22733_s2 + $0x1568] ss:$16 sps:$4 sm:$0xff]  }
 0x368   : > { %5432 = vmatprep.subr.bf16.mxu1 %v20984_v8  ;;  %v21030_v8 = vld [vmem:[%s22733_s2 + $0x1768] ss:$16 sps:$4 sm:$0xff]  }
 0x36a   : > { %5392 = vmatpush1.bf16.msra.mxu0 %v20979_v9  ;;  %v21035_v9 = vld [vmem:[%s22733_s2 + $0x154c] ss:$16 sps:$4 sm:$0xff]  }
 0x36b   : > { %5433 = vmatpush1.bf16.msra.mxu1 %v20982_v10  ;;  %5393 = vmatprep.subr.bf16.mxu0 %v20987_v11  ;;  %v21038_v10 = vld [vmem:[%s22733_s2 + $0x174c] ss:$16 sps:$4 sm:$0xff]   ;;  %v21033_v11 = vld [vmem:[%s22733_s2 + $0x1548] ss:$16 sps:$4 sm:$0xff]  }
 0x36c   : > { %5434 = vmatprep.subr.bf16.mxu1 %v20990_v15  ;;  %v21036_v15 = vld [vmem:[%s22733_s2 + $0x1748] ss:$16 sps:$4 sm:$0xff]  }
 0x36e   : > { %5394 = vmatpush1.bf16.msra.mxu0 %v20985_v25  ;;  %v21041_v25 = vld [vmem:[%s22733_s2 + $0x152c] ss:$16 sps:$4 sm:$0xff]  }
 0x36f   : > { %5435 = vmatpush1.bf16.msra.mxu1 %v20988_v26  ;;  %5395 = vmatprep.subr.bf16.mxu0 %v20993_v30  ;;  %v21044_v26 = vld [vmem:[%s22733_s2 + $0x172c] ss:$16 sps:$4 sm:$0xff]   ;;  %v21039_v30 = vld [vmem:[%s22733_s2 + $0x1528] ss:$16 sps:$4 sm:$0xff]  }
 0x370   : > { %5436 = vmatprep.subr.bf16.mxu1 %v20996_v35  ;;  %v21042_v35 = vld [vmem:[%s22733_s2 + $0x1728] ss:$16 sps:$4 sm:$0xff]  }
 0x372   : > { %5396 = vmatpush1.bf16.msra.mxu0 %v20991_v39  ;;  %v21047_v39 = vld [vmem:[%s22733_s2 + $0x150c] ss:$16 sps:$4 sm:$0xff]  }
 0x373   : > { %5437 = vmatpush1.bf16.msra.mxu1 %v20994_v40  ;;  %5397 = vmatprep.subr.bf16.mxu0 %v20999_v41  ;;  %v21050_v40 = vld [vmem:[%s22733_s2 + $0x170c] ss:$16 sps:$4 sm:$0xff]   ;;  %v21045_v41 = vld [vmem:[%s22733_s2 + $0x1508] ss:$16 sps:$4 sm:$0xff]  }
 0x374   : > { %5438 = vmatprep.subr.bf16.mxu1 %v21002_v42  ;;  %v21048_v42 = vld [vmem:[%s22733_s2 + $0x1708] ss:$16 sps:$4 sm:$0xff]  }
 0x376   : > { %5398 = vmatpush1.bf16.msra.mxu0 %v20997_v43  ;;  %v21053_v43 = vld [vmem:[%s22733_s2 + $0x18ec] ss:$16 sps:$4 sm:$0xff]  }
 0x377   : > { %5439 = vmatpush1.bf16.msra.mxu1 %v21000_v44  ;;  %5399 = vmatprep.subr.bf16.mxu0 %v21005_v45  ;;  %v21056_v44 = vld [vmem:[%s22733_s2 + $0x1aec] ss:$16 sps:$4 sm:$0xff]   ;;  %v21051_v45 = vld [vmem:[%s22733_s2 + $0x18e8] ss:$16 sps:$4 sm:$0xff]  }
 0x378   : > { %5440 = vmatprep.subr.bf16.mxu1 %v21008_v46  ;;  %v21054_v46 = vld [vmem:[%s22733_s2 + $0x1ae8] ss:$16 sps:$4 sm:$0xff]  }
 0x37a   : > { %5400 = vmatpush2.bf16.msra.mxu0 %v21003_v31  ;;  %v21059_v31 = vld [vmem:[%s22733_s2 + $0x18cc] ss:$16 sps:$4 sm:$0xff]  }
 0x37b   : > { %5441 = vmatpush2.bf16.msra.mxu1 %v21006_v36  ;;  %5401 = vmatprep.subr.bf16.mxu0 %v21011_v47  ;;  %v21062_v36 = vld [vmem:[%s22733_s2 + $0x1acc] ss:$16 sps:$4 sm:$0xff]   ;;  %v21057_v47 = vld [vmem:[%s22733_s2 + $0x18c8] ss:$16 sps:$4 sm:$0xff]  }
 0x37c   : > { %5442 = vmatprep.subr.bf16.mxu1 %v21014_v48  ;;  %v21060_v48 = vld [vmem:[%s22733_s2 + $0x1ac8] ss:$16 sps:$4 sm:$0xff]  }
 0x37e   : > { %5402 = vmatpush2.bf16.msra.mxu0 %v21009_v51 }
 0x37f   : > { %5443 = vmatpush2.bf16.msra.mxu1 %v21012_v55  ;;  %5403 = vmatprep.subr.bf16.mxu0 %v21017_v49 }
 0x380   : > { %5444 = vmatprep.subr.bf16.mxu1 %v21020_v56 }
 0x382   : > { %5404 = vmatpush2.bf16.msra.mxu0 %v21015_v50 }
 0x383   : > { %5445 = vmatpush2.bf16.msra.mxu1 %v21018_v16  ;;  %5405 = vmatprep.subr.bf16.mxu0 %v21023_v58  ;;  %v21065_v16 = vld [vmem:[%s22733_s2 + $0x18ac] ss:$16 sps:$4 sm:$0xff]  }
 0x384   : > { %5446 = vmatprep.subr.bf16.mxu1 %v21026_v38  ;;  %v21068_v58 = vld [vmem:[%s22733_s2 + $0x1aac] ss:$16 sps:$4 sm:$0xff]  }
 0x386   : > { %5406 = vmatpush2.bf16.msra.mxu0 %v21021_v59 }
 0x387   : > { %5447 = vmatpush2.bf16.msra.mxu1 %v21024_v22  ;;  %5407 = vmatprep.subr.bf16.mxu0 %v21029_v27  ;;  %v21066_v22 = vld [vmem:[%s22733_s2 + $0x1aa8] ss:$16 sps:$4 sm:$0xff]  }
 0x388   : > { %5448 = vmatprep.subr.bf16.mxu1 %v21032_v2 }
 0x38a   : > { %5408 = vmatpush2.bf16.msra.mxu0 %v21027_v7  ;;  %v21071_v7 = vld [vmem:[%s22733_s2 + $0x188c] ss:$16 sps:$4 sm:$0xff]  }
 0x38b   : > { %5449 = vmatpush2.bf16.msra.mxu1 %v21030_v8  ;;  %5409 = vmatprep.subr.bf16.mxu0 %v21035_v9  ;;  %v21072_v8 = vld [vmem:[%s22733_s2 + $0x1a88] ss:$16 sps:$4 sm:$0xff]   ;;  %v21077_v9 = vld [vmem:[%s22733_s2 + $0x186c] ss:$16 sps:$4 sm:$0xff]  }
 0x38c   : > { %5450 = vmatprep.subr.bf16.mxu1 %v21038_v10  ;;  %v21080_v10 = vld [vmem:[%s22733_s2 + $0x1a6c] ss:$16 sps:$4 sm:$0xff]  }
 0x38e   : > { %5410 = vmatpush2.bf16.msra.mxu0 %v21033_v11  ;;  %v21075_v11 = vld [vmem:[%s22733_s2 + $0x1868] ss:$16 sps:$4 sm:$0xff]  }
 0x38f   : > { %5451 = vmatpush2.bf16.msra.mxu1 %v21036_v15  ;;  %5411 = vmatprep.subr.bf16.mxu0 %v21041_v25  ;;  %v21078_v15 = vld [vmem:[%s22733_s2 + $0x1a68] ss:$16 sps:$4 sm:$0xff]   ;;  %v21083_v25 = vld [vmem:[%s22733_s2 + $0x184c] ss:$16 sps:$4 sm:$0xff]  }
 0x390   : > { %5452 = vmatprep.subr.bf16.mxu1 %v21044_v26  ;;  %v21086_v26 = vld [vmem:[%s22733_s2 + $0x1a4c] ss:$16 sps:$4 sm:$0xff]  }
 0x392   : > { %5412 = vmatpush2.bf16.msra.mxu0 %v21039_v30  ;;  %v21081_v30 = vld [vmem:[%s22733_s2 + $0x1848] ss:$16 sps:$4 sm:$0xff]  }
 0x393   : > { %5453 = vmatpush2.bf16.msra.mxu1 %v21042_v35  ;;  %5413 = vmatprep.subr.bf16.mxu0 %v21047_v39  ;;  %v21084_v35 = vld [vmem:[%s22733_s2 + $0x1a48] ss:$16 sps:$4 sm:$0xff]   ;;  %v21089_v39 = vld [vmem:[%s22733_s2 + $0x182c] ss:$16 sps:$4 sm:$0xff]  }
 0x394   : > { %5454 = vmatprep.subr.bf16.mxu1 %v21050_v40  ;;  %v21092_v40 = vld [vmem:[%s22733_s2 + $0x1a2c] ss:$16 sps:$4 sm:$0xff]  }
 0x396   : > { %5414 = vmatpush2.bf16.msra.mxu0 %v21045_v41  ;;  %v21087_v41 = vld [vmem:[%s22733_s2 + $0x1828] ss:$16 sps:$4 sm:$0xff]  }
 0x397   : > { %5455 = vmatpush2.bf16.msra.mxu1 %v21048_v42  ;;  %5465 = vmatprep.subr.bf16.mxu0 %v21053_v43  ;;  %v21090_v42 = vld [vmem:[%s22733_s2 + $0x1a28] ss:$16 sps:$4 sm:$0xff]   ;;  %v21095_v43 = vld [vmem:[%s22733_s2 + $0x180c] ss:$16 sps:$4 sm:$0xff]  }
 0x398   : > { %5506 = vmatprep.subr.bf16.mxu1 %v21056_v44  ;;  %v21098_v44 = vld [vmem:[%s22733_s2 + $0x1a0c] ss:$16 sps:$4 sm:$0xff]  }
 0x399   : > { %v5171_v51 = vpop.f32.mrf.mxu0  ;;  %5416 = vmatmul.mubr.bf16.vlgmr.msra.gmra.mxu0 %v2385_v5  ;;  %v21063_v5 = vld [vmem:[%s22733_s2 + $0x18a8] ss:$16 sps:$4 sm:$0xff]  }
 0x39a   : > { %v5212_v55 = vpop.f32.mrf.mxu1  ;;  %5457 = vmatmul.mubr.bf16.vlgmr.msra.gmra.mxu1 %v2387_v6  ;;  %v5172_v49 = vadd.f32 %v5171_v51, %v23248_v52  ;;  %5466 = vmatpush1.bf16.msra.mxu0 %v21051_v45  ;;  %v21093_v45 = vld [vmem:[%s22733_s2 + $0x1808] ss:$16 sps:$4 sm:$0xff]   ;;  %v21107_v51 = vld [vmem:[%s22733_s2 + $0x19cc] ss:$16 sps:$4 sm:$0xff]  }
 0x39b   : > { %5507 = vmatpush1.bf16.msra.mxu1 %v21054_v46  ;;  %v5173_v56 = vpop.f32.mrf.mxu0  ;;  %5467 = vmatprep.subr.bf16.mxu0 %v21059_v31  ;;  %v21096_v46 = vld [vmem:[%s22733_s2 + $0x1a08] ss:$16 sps:$4 sm:$0xff]   ;;  %v21101_v31 = vld [vmem:[%s22733_s2 + $0x19ec] ss:$16 sps:$4 sm:$0xff]  }
 0x39c   : > { %v5214_v50 = vpop.f32.mrf.mxu1  ;;  %5508 = vmatprep.subr.bf16.mxu1 %v21062_v36  ;;  %v23326_v38 = vadd.f32 %v5212_v55, %v5172_v49  ;;  %v5174_v59 = vadd.f32 %v5173_v56, %v23257_v57  ;;  %5497 = vmatprep.mubr.bf16.mxu0 %v2390_v33  ;;  %v21074_v33 = vld [vmem:[%s22733_s2 + $0x1a8c] ss:$16 sps:$4 sm:$0xff]   ;;  %v21105_v49 = vld [vmem:[%s22733_s2 + $0x19c8] ss:$16 sps:$4 sm:$0xff]  }
 0x39d   : > { %5538 = vmatprep.mubr.bf16.mxu1 %v2392_v37  ;;  %v5175_v6 = vpop.f32.mrf.mxu0  ;;  %v21069_v37 = vld [vmem:[%s22733_s2 + $0x1888] ss:$16 sps:$4 sm:$0xff]   ;;  %v21104_v36 = vld [vmem:[%s22733_s2 + $0x1bec] ss:$16 sps:$4 sm:$0xff]  }
 0x39e   : > { %v5216_v52 = vpop.f32.mrf.mxu1  ;;  %v23335_v27 = vadd.f32 %v5214_v50, %v5174_v59  ;;  %5468 = vmatpush1.bf16.msra.mxu0 %v21057_v47  ;;  %v21099_v47 = vld [vmem:[%s22733_s2 + $0x19e8] ss:$16 sps:$4 sm:$0xff]   ;;  %v21110_v55 = vld [vmem:[%s22733_s2 + $0x1bcc] ss:$16 sps:$4 sm:$0xff]  }
 0x39f   : > { %5509 = vmatpush1.bf16.msra.mxu1 %v21060_v48  ;;  %v5176_v2 = vpop.f32.mrf.mxu0  ;;  %5469 = vmatprep.subr.bf16.mxu0 %v21065_v16  ;;  %v21102_v48 = vld [vmem:[%s22733_s2 + $0x1be8] ss:$16 sps:$4 sm:$0xff]   ;;  %v21113_v50 = vld [vmem:[%s22733_s2 + $0x19ac] ss:$16 sps:$4 sm:$0xff]  }
 0x3a0   : > { %v5217_v57 = vpop.f32.mrf.mxu1  ;;  %5510 = vmatprep.subr.bf16.mxu1 %v21068_v58  ;;  %v21108_v56 = vld [vmem:[%s22733_s2 + $0x1bc8] ss:$16 sps:$4 sm:$0xff]   ;;  %v21116_v16 = vld [vmem:[%s22733_s2 + $0x1bac] ss:$16 sps:$4 sm:$0xff]  }
 0x3a1   : > { %v21111_v58 = vld [vmem:[%s22733_s2 + $0x19a8] ss:$16 sps:$4 sm:$0xff]   ;;  %v21125_v2 = vld [vmem:[%s22733_s2 + $0x196c] ss:$16 sps:$4 sm:$0xff]  }
 0x3a2   : > { %5470 = vmatpush1.bf16.msra.mxu0 %v21063_v5  ;;  %v21114_v59 = vld [vmem:[%s22733_s2 + $0x1ba8] ss:$16 sps:$4 sm:$0xff]   ;;  %v21119_v5 = vld [vmem:[%s22733_s2 + $0x198c] ss:$16 sps:$4 sm:$0xff]  }
 0x3a3   : > { %5511 = vmatpush1.bf16.msra.mxu1 %v21066_v22  ;;  %5471 = vmatprep.subr.bf16.mxu0 %v21071_v7  ;;  %v21122_v22 = vld [vmem:[%s22733_s2 + $0x1b8c] ss:$16 sps:$4 sm:$0xff]   ;;  %v21117_v6 = vld [vmem:[%s22733_s2 + $0x1988] ss:$16 sps:$4 sm:$0xff]  }
 0x3a4   : > { %5512 = vmatprep.subr.bf16.mxu1 %v21074_v33  ;;  %v21120_v52 = vld [vmem:[%s22733_s2 + $0x1b88] ss:$16 sps:$4 sm:$0xff]   ;;  %v21128_v57 = vld [vmem:[%s22733_s2 + $0x1b6c] ss:$16 sps:$4 sm:$0xff]  }
 0x3a5   : > { %v21123_v7 = vld [vmem:[%s22733_s2 + $0x1968] ss:$16 sps:$4 sm:$0xff]  }
 0x3a6   : > { %5472 = vmatpush1.bf16.msra.mxu0 %v21069_v37  ;;  %v21126_v33 = vld [vmem:[%s22733_s2 + $0x1b68] ss:$16 sps:$4 sm:$0xff]   ;;  %v21131_v37 = vld [vmem:[%s22733_s2 + $0x194c] ss:$16 sps:$4 sm:$0xff]  }
 0x3a7   : > { %5513 = vmatpush1.bf16.msra.mxu1 %v21072_v8  ;;  %5473 = vmatprep.subr.bf16.mxu0 %v21077_v9  ;;  %v21134_v8 = vld [vmem:[%s22733_s2 + $0x1b4c] ss:$16 sps:$4 sm:$0xff]   ;;  %v21129_v9 = vld [vmem:[%s22733_s2 + $0x1948] ss:$16 sps:$4 sm:$0xff]  }
 0x3a8   : > { %5514 = vmatprep.subr.bf16.mxu1 %v21080_v10  ;;  %v21132_v10 = vld [vmem:[%s22733_s2 + $0x1b48] ss:$16 sps:$4 sm:$0xff]  }
 0x3aa   : > { %5474 = vmatpush1.bf16.msra.mxu0 %v21075_v11  ;;  %v21137_v11 = vld [vmem:[%s22733_s2 + $0x192c] ss:$16 sps:$4 sm:$0xff]  }
 0x3ab   : > { %5515 = vmatpush1.bf16.msra.mxu1 %v21078_v15  ;;  %5475 = vmatprep.subr.bf16.mxu0 %v21083_v25  ;;  %v21140_v15 = vld [vmem:[%s22733_s2 + $0x1b2c] ss:$16 sps:$4 sm:$0xff]   ;;  %v21135_v25 = vld [vmem:[%s22733_s2 + $0x1928] ss:$16 sps:$4 sm:$0xff]  }
 0x3ac   : > { %5516 = vmatprep.subr.bf16.mxu1 %v21086_v26  ;;  %v21138_v26 = vld [vmem:[%s22733_s2 + $0x1b28] ss:$16 sps:$4 sm:$0xff]  }
 0x3ae   : > { %5476 = vmatpush1.bf16.msra.mxu0 %v21081_v30  ;;  %v21143_v30 = vld [vmem:[%s22733_s2 + $0x190c] ss:$16 sps:$4 sm:$0xff]  }
 0x3af   : > { %5517 = vmatpush1.bf16.msra.mxu1 %v21084_v35  ;;  %5477 = vmatprep.subr.bf16.mxu0 %v21089_v39  ;;  %v21146_v35 = vld [vmem:[%s22733_s2 + $0x1b0c] ss:$16 sps:$4 sm:$0xff]   ;;  %v21141_v39 = vld [vmem:[%s22733_s2 + $0x1908] ss:$16 sps:$4 sm:$0xff]  }
 0x3b0   : > { %5518 = vmatprep.subr.bf16.mxu1 %v21092_v40  ;;  %v21144_v40 = vld [vmem:[%s22733_s2 + $0x1b08] ss:$16 sps:$4 sm:$0xff]  }
 0x3b2   : > { %5478 = vmatpush1.bf16.msra.mxu0 %v21087_v41  ;;  %v21149_v41 = vld [vmem:[%s22733_s2 + $0x1cec] ss:$16 sps:$4 sm:$0xff]  }
 0x3b3   : > { %5519 = vmatpush1.bf16.msra.mxu1 %v21090_v42  ;;  %5479 = vmatprep.subr.bf16.mxu0 %v21095_v43  ;;  %v21152_v42 = vld [vmem:[%s22733_s2 + $0x1eec] ss:$16 sps:$4 sm:$0xff]   ;;  %v21147_v43 = vld [vmem:[%s22733_s2 + $0x1ce8] ss:$16 sps:$4 sm:$0xff]  }
 0x3b4   : > { %5520 = vmatprep.subr.bf16.mxu1 %v21098_v44  ;;  %v21150_v44 = vld [vmem:[%s22733_s2 + $0x1ee8] ss:$16 sps:$4 sm:$0xff]  }
 0x3b6   : > { %5480 = vmatpush1.bf16.msra.mxu0 %v21093_v45  ;;  %v21155_v45 = vld [vmem:[%s22733_s2 + $0x1ccc] ss:$16 sps:$4 sm:$0xff]  }
 0x3b7   : > { %5521 = vmatpush1.bf16.msra.mxu1 %v21096_v46  ;;  %5481 = vmatprep.subr.bf16.mxu0 %v21101_v31  ;;  %v21158_v46 = vld [vmem:[%s22733_s2 + $0x1ecc] ss:$16 sps:$4 sm:$0xff]   ;;  %v21153_v31 = vld [vmem:[%s22733_s2 + $0x1cc8] ss:$16 sps:$4 sm:$0xff]  }
 0x3b8   : > { %5522 = vmatprep.subr.bf16.mxu1 %v21104_v36  ;;  %v21156_v36 = vld [vmem:[%s22733_s2 + $0x1ec8] ss:$16 sps:$4 sm:$0xff]  }
 0x3ba   : > { %5482 = vmatpush2.bf16.msra.mxu0 %v21099_v47 }
 0x3bb   : > { %5523 = vmatpush2.bf16.msra.mxu1 %v21102_v48  ;;  %5483 = vmatprep.subr.bf16.mxu0 %v21107_v51 }
 0x3bc   : > { %5524 = vmatprep.subr.bf16.mxu1 %v21110_v55 }
 0x3be   : > { %5484 = vmatpush2.bf16.msra.mxu0 %v21105_v49 }
 0x3bf   : > { %5525 = vmatpush2.bf16.msra.mxu1 %v21108_v56  ;;  %5485 = vmatprep.subr.bf16.mxu0 %v21113_v50  ;;  %v21161_v56 = vld [vmem:[%s22733_s2 + $0x1cac] ss:$16 sps:$4 sm:$0xff]  }
 0x3c0   : > { %5526 = vmatprep.subr.bf16.mxu1 %v21116_v16  ;;  %v21164_v50 = vld [vmem:[%s22733_s2 + $0x1eac] ss:$16 sps:$4 sm:$0xff]  }
 0x3c2   : > { %5486 = vmatpush2.bf16.msra.mxu0 %v21111_v58 }
 0x3c3   : > { %5527 = vmatpush2.bf16.msra.mxu1 %v21114_v59  ;;  %5487 = vmatprep.subr.bf16.mxu0 %v21119_v5  ;;  %v21162_v59 = vld [vmem:[%s22733_s2 + $0x1ea8] ss:$16 sps:$4 sm:$0xff]  }
 0x3c4   : > { %5528 = vmatprep.subr.bf16.mxu1 %v21122_v22 }
 0x3c6   : > { %5488 = vmatpush2.bf16.msra.mxu0 %v21117_v6  ;;  %v21167_v6 = vld [vmem:[%s22733_s2 + $0x1c8c] ss:$16 sps:$4 sm:$0xff]  }
 0x3c7   : > { %5529 = vmatpush2.bf16.msra.mxu1 %v21120_v52  ;;  %5489 = vmatprep.subr.bf16.mxu0 %v21125_v2  ;;  %v21168_v52 = vld [vmem:[%s22733_s2 + $0x1e88] ss:$16 sps:$4 sm:$0xff]   ;;  %v21173_v2 = vld [vmem:[%s22733_s2 + $0x1c6c] ss:$16 sps:$4 sm:$0xff]  }
 0x3c8   : > { %5530 = vmatprep.subr.bf16.mxu1 %v21128_v57  ;;  %v21176_v57 = vld [vmem:[%s22733_s2 + $0x1e6c] ss:$16 sps:$4 sm:$0xff]  }
 0x3ca   : > { %5490 = vmatpush2.bf16.msra.mxu0 %v21123_v7  ;;  %v21171_v7 = vld [vmem:[%s22733_s2 + $0x1c68] ss:$16 sps:$4 sm:$0xff]  }
 0x3cb   : > { %5531 = vmatpush2.bf16.msra.mxu1 %v21126_v33  ;;  %5491 = vmatprep.subr.bf16.mxu0 %v21131_v37  ;;  %v21174_v33 = vld [vmem:[%s22733_s2 + $0x1e68] ss:$16 sps:$4 sm:$0xff]   ;;  %v21179_v37 = vld [vmem:[%s22733_s2 + $0x1c4c] ss:$16 sps:$4 sm:$0xff]  }
 0x3cc   : > { %5532 = vmatprep.subr.bf16.mxu1 %v21134_v8  ;;  %v21182_v8 = vld [vmem:[%s22733_s2 + $0x1e4c] ss:$16 sps:$4 sm:$0xff]  }
 0x3ce   : > { %5492 = vmatpush2.bf16.msra.mxu0 %v21129_v9  ;;  %v21177_v9 = vld [vmem:[%s22733_s2 + $0x1c48] ss:$16 sps:$4 sm:$0xff]  }
 0x3cf   : > { %5533 = vmatpush2.bf16.msra.mxu1 %v21132_v10  ;;  %5493 = vmatprep.subr.bf16.mxu0 %v21137_v11  ;;  %v21180_v10 = vld [vmem:[%s22733_s2 + $0x1e48] ss:$16 sps:$4 sm:$0xff]   ;;  %v21185_v11 = vld [vmem:[%s22733_s2 + $0x1c2c] ss:$16 sps:$4 sm:$0xff]  }
 0x3d0   : > { %5534 = vmatprep.subr.bf16.mxu1 %v21140_v15  ;;  %v21188_v15 = vld [vmem:[%s22733_s2 + $0x1e2c] ss:$16 sps:$4 sm:$0xff]  }
 0x3d2   : > { %5494 = vmatpush2.bf16.msra.mxu0 %v21135_v25  ;;  %v21183_v25 = vld [vmem:[%s22733_s2 + $0x1c28] ss:$16 sps:$4 sm:$0xff]  }
 0x3d3   : > { %5535 = vmatpush2.bf16.msra.mxu1 %v21138_v26  ;;  %5495 = vmatprep.subr.bf16.mxu0 %v21143_v30  ;;  %v21186_v26 = vld [vmem:[%s22733_s2 + $0x1e28] ss:$16 sps:$4 sm:$0xff]   ;;  %v21191_v30 = vld [vmem:[%s22733_s2 + $0x1c0c] ss:$16 sps:$4 sm:$0xff]  }
 0x3d4   : > { %5536 = vmatprep.subr.bf16.mxu1 %v21146_v35  ;;  %v21194_v35 = vld [vmem:[%s22733_s2 + $0x1e0c] ss:$16 sps:$4 sm:$0xff]  }
 0x3d6   : > { %5496 = vmatpush2.bf16.msra.mxu0 %v21141_v39  ;;  %v21189_v39 = vld [vmem:[%s22733_s2 + $0x1c08] ss:$16 sps:$4 sm:$0xff]  }
 0x3d7   : > { %5537 = vmatpush2.bf16.msra.mxu1 %v21144_v40  ;;  %5547 = vmatprep.subr.bf16.mxu0 %v21149_v41  ;;  %v21192_v40 = vld [vmem:[%s22733_s2 + $0x1e08] ss:$16 sps:$4 sm:$0xff]   ;;  %v21197_v41 = vld [vmem:[%s22733_s2 + $0x1dec] ss:$16 sps:$4 sm:$0xff]  }
 0x3d8   : > { %5588 = vmatprep.subr.bf16.mxu1 %v21152_v42  ;;  %v21200_v42 = vld [vmem:[%s22733_s2 + $0x1fec] ss:$16 sps:$4 sm:$0xff]  }
 0x3d9   : > { %v5253_v47 = vpop.f32.mrf.mxu0  ;;  %5498 = vmatmul.mubr.bf16.vlgmr.msra.gmra.mxu0 %v2389_v62  ;;  %v21159_v62 = vld [vmem:[%s22733_s2 + $0x1ca8] ss:$16 sps:$4 sm:$0xff]  }
 0x3da   : > { %v5294_v48 = vpop.f32.mrf.mxu1  ;;  %5539 = vmatmul.mubr.bf16.vlgmr.msra.gmra.mxu1 %v2391_v63  ;;  %v5254_v51 = vadd.f32 %v5253_v47, %v23326_v38  ;;  %5548 = vmatpush1.bf16.msra.mxu0 %v21147_v43  ;;  %v21195_v43 = vld [vmem:[%s22733_s2 + $0x1de8] ss:$16 sps:$4 sm:$0xff]   ;;  %v21209_v47 = vld [vmem:[%s22733_s2 + $0x1dac] ss:$16 sps:$4 sm:$0xff]  }
 0x3db   : > { %5589 = vmatpush1.bf16.msra.mxu1 %v21150_v44  ;;  %v5255_v55 = vpop.f32.mrf.mxu0  ;;  %5549 = vmatprep.subr.bf16.mxu0 %v21155_v45  ;;  %v21198_v44 = vld [vmem:[%s22733_s2 + $0x1fe8] ss:$16 sps:$4 sm:$0xff]   ;;  %v21203_v45 = vld [vmem:[%s22733_s2 + $0x1dcc] ss:$16 sps:$4 sm:$0xff]  }
 0x3dc   : > { %v5296_v49 = vpop.f32.mrf.mxu1  ;;  %5590 = vmatprep.subr.bf16.mxu1 %v21158_v46  ;;  %v23404_v16 = vadd.f32 %v5294_v48, %v5254_v51  ;;  %v5256_v58 = vadd.f32 %v5255_v55, %v23335_v27  ;;  %5579 = vmatprep.mubr.bf16.mxu0 %v2394_v3  ;;  %v21170_v3 = vld [vmem:[%s22733_s2 + $0x1e8c] ss:$16 sps:$4 sm:$0xff]   ;;  %v21207_v51 = vld [vmem:[%s22733_s2 + $0x1da8] ss:$16 sps:$4 sm:$0xff]  }
 0x3dd   : > { %5620 = vmatprep.mubr.bf16.mxu1 %v2396_v4  ;;  %v5257_v63 = vpop.f32.mrf.mxu0  ;;  %v21165_v4 = vld [vmem:[%s22733_s2 + $0x1c88] ss:$16 sps:$4 sm:$0xff]   ;;  %v21206_v46 = vld [vmem:[%s22733_s2 + $0x1fcc] ss:$16 sps:$4 sm:$0xff]  }
 0x3de   : > { %v5298_v38 = vpop.f32.mrf.mxu1  ;;  %v23413_v5 = vadd.f32 %v5296_v49, %v5256_v58  ;;  %5550 = vmatpush1.bf16.msra.mxu0 %v21153_v31  ;;  %v21201_v31 = vld [vmem:[%s22733_s2 + $0x1dc8] ss:$16 sps:$4 sm:$0xff]   ;;  %v21212_v48 = vld [vmem:[%s22733_s2 + $0x1fac] ss:$16 sps:$4 sm:$0xff]  }
 0x3df   : > { %5591 = vmatpush1.bf16.msra.mxu1 %v21156_v36  ;;  %v5258_v22 = vpop.f32.mrf.mxu0  ;;  %5551 = vmatprep.subr.bf16.mxu0 %v21161_v56  ;;  %v21204_v36 = vld [vmem:[%s22733_s2 + $0x1fc8] ss:$16 sps:$4 sm:$0xff]   ;;  %v21215_v49 = vld [vmem:[%s22733_s2 + $0x1d8c] ss:$16 sps:$4 sm:$0xff]  }
 0x3e0   : > { %v5299_v27 = vpop.f32.mrf.mxu1  ;;  %5592 = vmatprep.subr.bf16.mxu1 %v21164_v50  ;;  %v21210_v55 = vld [vmem:[%s22733_s2 + $0x1fa8] ss:$16 sps:$4 sm:$0xff]   ;;  %v21218_v56 = vld [vmem:[%s22733_s2 + $0x1f8c] ss:$16 sps:$4 sm:$0xff]  }
 0x3e1   : > { %v21213_v50 = vld [vmem:[%s22733_s2 + $0x1d88] ss:$16 sps:$4 sm:$0xff]   ;;  %v21227_v22 = vld [vmem:[%s22733_s2 + $0x1d4c] ss:$16 sps:$4 sm:$0xff]  }
 0x3e2   : > { %5552 = vmatpush1.bf16.msra.mxu0 %v21159_v62  ;;  %v21216_v58 = vld [vmem:[%s22733_s2 + $0x1f88] ss:$16 sps:$4 sm:$0xff]   ;;  %v21221_v62 = vld [vmem:[%s22733_s2 + $0x1d6c] ss:$16 sps:$4 sm:$0xff]  }
 0x3e3   : > { %5593 = vmatpush1.bf16.msra.mxu1 %v21162_v59  ;;  %5553 = vmatprep.subr.bf16.mxu0 %v21167_v6  ;;  %v21224_v59 = vld [vmem:[%s22733_s2 + $0x1f6c] ss:$16 sps:$4 sm:$0xff]   ;;  %v21219_v63 = vld [vmem:[%s22733_s2 + $0x1d68] ss:$16 sps:$4 sm:$0xff]  }
 0x3e4   : > { %5594 = vmatprep.subr.bf16.mxu1 %v21170_v3  ;;  %v21222_v38 = vld [vmem:[%s22733_s2 + $0x1f68] ss:$16 sps:$4 sm:$0xff]   ;;  %v21230_v27 = vld [vmem:[%s22733_s2 + $0x1f4c] ss:$16 sps:$4 sm:$0xff]  }
 0x3e5   : > { %v21225_v6 = vld [vmem:[%s22733_s2 + $0x1d48] ss:$16 sps:$4 sm:$0xff]  }
 0x3e6   : > { %5554 = vmatpush1.bf16.msra.mxu0 %v21165_v4  ;;  %v21228_v3 = vld [vmem:[%s22733_s2 + $0x1f48] ss:$16 sps:$4 sm:$0xff]   ;;  %v21233_v4 = vld [vmem:[%s22733_s2 + $0x1d2c] ss:$16 sps:$4 sm:$0xff]  }
 0x3e7   : > { %5595 = vmatpush1.bf16.msra.mxu1 %v21168_v52  ;;  %5555 = vmatprep.subr.bf16.mxu0 %v21173_v2  ;;  %v21236_v52 = vld [vmem:[%s22733_s2 + $0x1f2c] ss:$16 sps:$4 sm:$0xff]   ;;  %v21231_v2 = vld [vmem:[%s22733_s2 + $0x1d28] ss:$16 sps:$4 sm:$0xff]  }
 0x3e8   : > { %5596 = vmatprep.subr.bf16.mxu1 %v21176_v57  ;;  %v21234_v57 = vld [vmem:[%s22733_s2 + $0x1f28] ss:$16 sps:$4 sm:$0xff]  }
 0x3ea   : > { %5556 = vmatpush1.bf16.msra.mxu0 %v21171_v7  ;;  %v21239_v7 = vld [vmem:[%s22733_s2 + $0x1d0c] ss:$16 sps:$4 sm:$0xff]  }
 0x3eb   : > { %5597 = vmatpush1.bf16.msra.mxu1 %v21174_v33  ;;  %5557 = vmatprep.subr.bf16.mxu0 %v21179_v37  ;;  %v21242_v33 = vld [vmem:[%s22733_s2 + $0x1f0c] ss:$16 sps:$4 sm:$0xff]   ;;  %v21237_v37 = vld [vmem:[%s22733_s2 + $0x1d08] ss:$16 sps:$4 sm:$0xff]  }
 0x3ec   : > { %5598 = vmatprep.subr.bf16.mxu1 %v21182_v8  ;;  %v21240_v8 = vld [vmem:[%s22733_s2 + $0x1f08] ss:$16 sps:$4 sm:$0xff]  }
 0x3ee   : > { %5558 = vmatpush1.bf16.msra.mxu0 %v21177_v9  ;;  %v21245_v9 = vld [vmem:[%s22733_s2 + $0xe4] ss:$16 sps:$4 sm:$0xff]  }
 0x3ef   : > { %5599 = vmatpush1.bf16.msra.mxu1 %v21180_v10  ;;  %5559 = vmatprep.subr.bf16.mxu0 %v21185_v11  ;;  %v21248_v10 = vld [vmem:[%s22733_s2 + $0x2e4] ss:$16 sps:$4 sm:$0xff]   ;;  %v21243_v11 = vld [vmem:[%s22733_s2 + $0xe0] ss:$16 sps:$4 sm:$0xff]  }
 0x3f0   : > { %5600 = vmatprep.subr.bf16.mxu1 %v21188_v15  ;;  %v21246_v15 = vld [vmem:[%s22733_s2 + $0x2e0] ss:$16 sps:$4 sm:$0xff]  }
 0x3f2   : > { %5560 = vmatpush1.bf16.msra.mxu0 %v21183_v25  ;;  %v21251_v25 = vld [vmem:[%s22733_s2 + $0xc4] ss:$16 sps:$4 sm:$0xff]  }
 0x3f3   : > { %5601 = vmatpush1.bf16.msra.mxu1 %v21186_v26  ;;  %5561 = vmatprep.subr.bf16.mxu0 %v21191_v30  ;;  %v21254_v26 = vld [vmem:[%s22733_s2 + $0x2c4] ss:$16 sps:$4 sm:$0xff]   ;;  %v21249_v30 = vld [vmem:[%s22733_s2 + $0xc0] ss:$16 sps:$4 sm:$0xff]  }
 0x3f4   : > { %5602 = vmatprep.subr.bf16.mxu1 %v21194_v35  ;;  %v21252_v35 = vld [vmem:[%s22733_s2 + $0x2c0] ss:$16 sps:$4 sm:$0xff]  }
 0x3f6   : > { %5562 = vmatpush1.bf16.msra.mxu0 %v21189_v39 }
 0x3f7   : > { %5603 = vmatpush1.bf16.msra.mxu1 %v21192_v40  ;;  %5563 = vmatprep.subr.bf16.mxu0 %v21197_v41 }
 0x3f8   : > { %5604 = vmatprep.subr.bf16.mxu1 %v21200_v42 }
 0x3fa   : > { %5564 = vmatpush2.bf16.msra.mxu0 %v21195_v43 }
 0x3fb   : > { %5605 = vmatpush2.bf16.msra.mxu1 %v21198_v44  ;;  %5565 = vmatprep.subr.bf16.mxu0 %v21203_v45  ;;  %v21257_v44 = vld [vmem:[%s22733_s2 + $0xa4] ss:$16 sps:$4 sm:$0xff]  }
 0x3fc   : > { %5606 = vmatprep.subr.bf16.mxu1 %v21206_v46  ;;  %v21260_v45 = vld [vmem:[%s22733_s2 + $0x2a4] ss:$16 sps:$4 sm:$0xff]  }
 0x3fe   : > { %5566 = vmatpush2.bf16.msra.mxu0 %v21201_v31  ;;  %v21255_v31 = vld [vmem:[%s22733_s2 + $0xa0] ss:$16 sps:$4 sm:$0xff]  }
 0x3ff   : > { %5607 = vmatpush2.bf16.msra.mxu1 %v21204_v36  ;;  %5567 = vmatprep.subr.bf16.mxu0 %v21209_v47 }
 0x400   : > { %5608 = vmatprep.subr.bf16.mxu1 %v21212_v48 }
 0x402   : > { %5568 = vmatpush2.bf16.msra.mxu0 %v21207_v51  ;;  %v21263_v51 = vld [vmem:[%s22733_s2 + $0x84] ss:$16 sps:$4 sm:$0xff]  }
 0x403   : > { %5609 = vmatpush2.bf16.msra.mxu1 %v21210_v55  ;;  %5569 = vmatprep.subr.bf16.mxu0 %v21215_v49  ;;  %v21266_v55 = vld [vmem:[%s22733_s2 + $0x284] ss:$16 sps:$4 sm:$0xff]   ;;  %v21261_v49 = vld [vmem:[%s22733_s2 + $0x80] ss:$16 sps:$4 sm:$0xff]  }
 0x404   : > { %5610 = vmatprep.subr.bf16.mxu1 %v21218_v56  ;;  %v21264_v56 = vld [vmem:[%s22733_s2 + $0x280] ss:$16 sps:$4 sm:$0xff]  }
 0x406   : > { %5570 = vmatpush2.bf16.msra.mxu0 %v21213_v50  ;;  %v21269_v50 = vld [vmem:[%s22733_s2 + $0x64] ss:$16 sps:$4 sm:$0xff]  }
 0x407   : > { %5611 = vmatpush2.bf16.msra.mxu1 %v21216_v58  ;;  %5571 = vmatprep.subr.bf16.mxu0 %v21221_v62  ;;  %v21272_v58 = vld [vmem:[%s22733_s2 + $0x264] ss:$16 sps:$4 sm:$0xff]   ;;  %v21267_v62 = vld [vmem:[%s22733_s2 + $0x60] ss:$16 sps:$4 sm:$0xff]  }
 0x408   : > { %5612 = vmatprep.subr.bf16.mxu1 %v21224_v59  ;;  %v21270_v59 = vld [vmem:[%s22733_s2 + $0x260] ss:$16 sps:$4 sm:$0xff]  }
 0x40a   : > { %5572 = vmatpush2.bf16.msra.mxu0 %v21219_v63  ;;  %v21275_v63 = vld [vmem:[%s22733_s2 + $0x44] ss:$16 sps:$4 sm:$0xff]  }
 0x40b   : > { %5613 = vmatpush2.bf16.msra.mxu1 %v21222_v38  ;;  %5573 = vmatprep.subr.bf16.mxu0 %v21227_v22  ;;  %v21278_v38 = vld [vmem:[%s22733_s2 + $0x244] ss:$16 sps:$4 sm:$0xff]   ;;  %v21273_v22 = vld [vmem:[%s22733_s2 + $0x40] ss:$16 sps:$4 sm:$0xff]  }
 0x40c   : > { %5614 = vmatprep.subr.bf16.mxu1 %v21230_v27  ;;  %v21276_v27 = vld [vmem:[%s22733_s2 + $0x240] ss:$16 sps:$4 sm:$0xff]  }
 0x40e   : > { %5574 = vmatpush2.bf16.msra.mxu0 %v21225_v6  ;;  %v21281_v6 = vld [vmem:[%s22733_s2 + $0x24] ss:$16 sps:$4 sm:$0xff]  }
 0x40f   : > { %5615 = vmatpush2.bf16.msra.mxu1 %v21228_v3  ;;  %5575 = vmatprep.subr.bf16.mxu0 %v21233_v4  ;;  %v21284_v3 = vld [vmem:[%s22733_s2 + $0x224] ss:$16 sps:$4 sm:$0xff]   ;;  %v21279_v4 = vld [vmem:[%s22733_s2 + $0x20] ss:$16 sps:$4 sm:$0xff]  }
 0x410   : > { %5616 = vmatprep.subr.bf16.mxu1 %v21236_v52  ;;  %v21282_v52 = vld [vmem:[%s22733_s2 + $0x220] ss:$16 sps:$4 sm:$0xff]  }
 0x412   : > { %5576 = vmatpush2.bf16.msra.mxu0 %v21231_v2  ;;  %v21287_v2 = vld [vmem:[%s22733_s2 + $0x4] ss:$16 sps:$4 sm:$0xff]  }
 0x413   : > { %5617 = vmatpush2.bf16.msra.mxu1 %v21234_v57  ;;  %5577 = vmatprep.subr.bf16.mxu0 %v21239_v7  ;;  %v21290_v57 = vld [vmem:[%s22733_s2 + $0x204] ss:$16 sps:$4 sm:$0xff]   ;;  %v21285_v7 = vld [vmem:[%s22733_s2] ss:$16 sps:$4 sm:$0xff]  }
 0x414   : > { %5618 = vmatprep.subr.bf16.mxu1 %v21242_v33  ;;  %v21288_v33 = vld [vmem:[%s22733_s2 + $0x200] ss:$16 sps:$4 sm:$0xff]  }
 0x416   : > { %5578 = vmatpush2.bf16.msra.mxu0 %v21237_v37  ;;  %v21293_v37 = vld [vmem:[%s22733_s2 + $0x1e4] ss:$16 sps:$4 sm:$0xff]  }
 0x417   : > { %5619 = vmatpush2.bf16.msra.mxu1 %v21240_v8  ;;  %8205 = vmatprep.subr.bf16.mxu0 %v21245_v9  ;;  %v21296_v8 = vld [vmem:[%s22733_s2 + $0x3e4] ss:$16 sps:$4 sm:$0xff]   ;;  %v21291_v9 = vld [vmem:[%s22733_s2 + $0x1e0] ss:$16 sps:$4 sm:$0xff]  }
 0x418   : > { %8246 = vmatprep.subr.bf16.mxu1 %v21248_v10  ;;  %v21294_v10 = vld [vmem:[%s22733_s2 + $0x3e0] ss:$16 sps:$4 sm:$0xff]  }
 0x419   : > { %v5335_v39 = vpop.f32.mrf.mxu0  ;;  %5580 = vmatmul.mubr.bf16.vlgmr.msra.gmra.mxu0 %v2393_v0  ;;  %v21258_v0 = vld [vmem:[%s22733_s2 + $0x2a0] ss:$16 sps:$4 sm:$0xff]  }
 0x41a   : > { %v5376_v40 = vpop.f32.mrf.mxu1  ;;  %5621 = vmatmul.mubr.bf16.vlgmr.msra.gmra.mxu1 %v2395_v1  ;;  %8206 = vmatpush1.bf16.msra.mxu0 %v21243_v11  ;;  %v21299_v11 = vld [vmem:[%s22733_s2 + $0x1c4] ss:$16 sps:$4 sm:$0xff]  }
 0x41b   : > { %v23479_v41 = vadd.f32 %v5376_v40, %v5335_v39  ;;  %8247 = vmatpush1.bf16.msra.mxu1 %v21246_v15  ;;  %v5337_v42 = vpop.f32.mrf.mxu0  ;;  %8207 = vmatprep.subr.bf16.mxu0 %v21251_v25  ;;  %v21302_v15 = vld [vmem:[%s22733_s2 + $0x3c4] ss:$16 sps:$4 sm:$0xff]   ;;  %v21297_v25 = vld [vmem:[%s22733_s2 + $0x1c0] ss:$16 sps:$4 sm:$0xff]  }
 0x41c   : > { %v5378_v43 = vpop.f32.mrf.mxu1  ;;  %8248 = vmatprep.subr.bf16.mxu1 %v21254_v26  ;;  %8237 = vmatprep.mubr.bf16.mxu0 %v22856_v28  ;;  %v21300_v26 = vld [vmem:[%s22733_s2 + $0x3c0] ss:$16 sps:$4 sm:$0xff]  }
 0x41d   : > { %v23483_v46 = vadd.f32 %v5378_v43, %v5337_v42  ;;  %8278 = vmatprep.mubr.bf16.mxu1 %v22865_v32  ;;  %v5339_v1 = vpop.f32.mrf.mxu0  ;;  %v21303_v39 = vld [vmem:[%s22733_s2 + $0x1a0] ss:$16 sps:$4 sm:$0xff]   ;;  %v21311_v42 = vld [vmem:[%s22733_s2 + $0x184] ss:$16 sps:$4 sm:$0xff]  }
 0x41e   : > { %v5380_v36 = vpop.f32.mrf.mxu1  ;;  %8208 = vmatpush1.bf16.msra.mxu0 %v21249_v30  ;;  %v21305_v30 = vld [vmem:[%s22733_s2 + $0x1a4] ss:$16 sps:$4 sm:$0xff]   ;;  %v21306_v40 = vld [vmem:[%s22733_s2 + $0x3a0] ss:$16 sps:$4 sm:$0xff]  }
 0x41f   : > { %8249 = vmatpush1.bf16.msra.mxu1 %v21252_v35  ;;  %v5340_v47 = vpop.f32.mrf.mxu0  ;;  %8209 = vmatprep.subr.bf16.mxu0 %v21257_v44  ;;  %v21308_v35 = vld [vmem:[%s22733_s2 + $0x3a4] ss:$16 sps:$4 sm:$0xff]   ;;  %v21309_v44 = vld [vmem:[%s22733_s2 + $0x180] ss:$16 sps:$4 sm:$0xff]  }
 0x420   : > { %v5381_v48 = vpop.f32.mrf.mxu1  ;;  %8250 = vmatprep.subr.bf16.mxu1 %v21260_v45  ;;  %v21314_v43 = vld [vmem:[%s22733_s2 + $0x384] ss:$16 sps:$4 sm:$0xff]   ;;  %v21312_v45 = vld [vmem:[%s22733_s2 + $0x380] ss:$16 sps:$4 sm:$0xff]  }
 0x421   : > { %v21315_v1 = vld [vmem:[%s22733_s2 + $0x160] ss:$16 sps:$4 sm:$0xff]   ;;  %v21323_v47 = vld [vmem:[%s22733_s2 + $0x144] ss:$16 sps:$4 sm:$0xff]  }
 0x422   : > { %8210 = vmatpush1.bf16.msra.mxu0 %v21255_v31  ;;  %v21317_v31 = vld [vmem:[%s22733_s2 + $0x164] ss:$16 sps:$4 sm:$0xff]   ;;  %v21318_v36 = vld [vmem:[%s22733_s2 + $0x360] ss:$16 sps:$4 sm:$0xff]  }
 0x423   : > { %8251 = vmatpush1.bf16.msra.mxu1 %v21258_v0  ;;  %8211 = vmatprep.subr.bf16.mxu0 %v21263_v51  ;;  %v21320_v0 = vld [vmem:[%s22733_s2 + $0x364] ss:$16 sps:$4 sm:$0xff]   ;;  %v21321_v51 = vld [vmem:[%s22733_s2 + $0x140] ss:$16 sps:$4 sm:$0xff]  }
 0x424   : > { %8252 = vmatprep.subr.bf16.mxu1 %v21266_v55  ;;  %v21326_v48 = vld [vmem:[%s22733_s2 + $0x344] ss:$16 sps:$4 sm:$0xff]   ;;  %v21324_v55 = vld [vmem:[%s22733_s2 + $0x340] ss:$16 sps:$4 sm:$0xff]  }
 0x426   : > { %8212 = vmatpush1.bf16.msra.mxu0 %v21261_v49  ;;  %v21329_v49 = vld [vmem:[%s22733_s2 + $0x124] ss:$16 sps:$4 sm:$0xff]  }
 0x427   : > { %8253 = vmatpush1.bf16.msra.mxu1 %v21264_v56  ;;  %8213 = vmatprep.subr.bf16.mxu0 %v21269_v50  ;;  %v21332_v56 = vld [vmem:[%s22733_s2 + $0x324] ss:$16 sps:$4 sm:$0xff]   ;;  %v21327_v50 = vld [vmem:[%s22733_s2 + $0x120] ss:$16 sps:$4 sm:$0xff]  }
 0x428   : > { %8254 = vmatprep.subr.bf16.mxu1 %v21272_v58  ;;  %v21330_v58 = vld [vmem:[%s22733_s2 + $0x320] ss:$16 sps:$4 sm:$0xff]  }
 0x42a   : > { %8214 = vmatpush1.bf16.msra.mxu0 %v21267_v62  ;;  %v21335_v62 = vld [vmem:[%s22733_s2 + $0x104] ss:$16 sps:$4 sm:$0xff]  }
 0x42b   : > { %8255 = vmatpush1.bf16.msra.mxu1 %v21270_v59  ;;  %8215 = vmatprep.subr.bf16.mxu0 %v21275_v63  ;;  %v21338_v59 = vld [vmem:[%s22733_s2 + $0x304] ss:$16 sps:$4 sm:$0xff]   ;;  %v21333_v63 = vld [vmem:[%s22733_s2 + $0x100] ss:$16 sps:$4 sm:$0xff]  }
 0x42c   : > { %8256 = vmatprep.subr.bf16.mxu1 %v21278_v38  ;;  %v21336_v38 = vld [vmem:[%s22733_s2 + $0x300] ss:$16 sps:$4 sm:$0xff]  }
 0x42e   : > { %8216 = vmatpush1.bf16.msra.mxu0 %v21273_v22  ;;  %v21341_v22 = vld [vmem:[%s22733_s2 + $0x4e4] ss:$16 sps:$4 sm:$0xff]  }
 0x42f   : > { %8257 = vmatpush1.bf16.msra.mxu1 %v21276_v27  ;;  %8217 = vmatprep.subr.bf16.mxu0 %v21281_v6  ;;  %v21344_v27 = vld [vmem:[%s22733_s2 + $0x6e4] ss:$16 sps:$4 sm:$0xff]   ;;  %v21339_v6 = vld [vmem:[%s22733_s2 + $0x4e0] ss:$16 sps:$4 sm:$0xff]  }
 0x430   : > { %8258 = vmatprep.subr.bf16.mxu1 %v21284_v3  ;;  %v21342_v3 = vld [vmem:[%s22733_s2 + $0x6e0] ss:$16 sps:$4 sm:$0xff]  }
 0x432   : > { %8218 = vmatpush1.bf16.msra.mxu0 %v21279_v4  ;;  %v21347_v4 = vld [vmem:[%s22733_s2 + $0x4c4] ss:$16 sps:$4 sm:$0xff]  }
 0x433   : > { %8259 = vmatpush1.bf16.msra.mxu1 %v21282_v52  ;;  %8219 = vmatprep.subr.bf16.mxu0 %v21287_v2  ;;  %v21350_v52 = vld [vmem:[%s22733_s2 + $0x6c4] ss:$16 sps:$4 sm:$0xff]  }
 0x434   : > { %8260 = vmatprep.subr.bf16.mxu1 %v21290_v57 }
 0x436   : > { %8220 = vmatpush1.bf16.msra.mxu0 %v21285_v7 }
 0x437   : > { %8261 = vmatpush1.bf16.msra.mxu1 %v21288_v33  ;;  %8221 = vmatprep.subr.bf16.mxu0 %v21293_v37  ;;  %v21345_v33 = vld [vmem:[%s22733_s2 + $0x4c0] ss:$16 sps:$4 sm:$0xff]  }
 0x438   : > { %8262 = vmatprep.subr.bf16.mxu1 %v21296_v8  ;;  %v21348_v37 = vld [vmem:[%s22733_s2 + $0x6c0] ss:$16 sps:$4 sm:$0xff]  }
 0x43a   : > { %8222 = vmatpush2.bf16.msra.mxu0 %v21291_v9 }
 0x43b   : > { %8263 = vmatpush2.bf16.msra.mxu1 %v21294_v10  ;;  %8223 = vmatprep.subr.bf16.mxu0 %v21299_v11  ;;  %v21353_v10 = vld [vmem:[%s22733_s2 + $0x4a4] ss:$16 sps:$4 sm:$0xff]  }
 0x43c   : > { %8264 = vmatprep.subr.bf16.mxu1 %v21302_v15  ;;  %v21356_v11 = vld [vmem:[%s22733_s2 + $0x6a4] ss:$16 sps:$4 sm:$0xff]  }
 0x43e   : > { %8224 = vmatpush2.bf16.msra.mxu0 %v21297_v25 }
 0x43f   : > { %8265 = vmatpush2.bf16.msra.mxu1 %v21300_v26  ;;  %8225 = vmatprep.subr.bf16.mxu0 %v21305_v30 }
 0x440   : > { %8266 = vmatprep.subr.bf16.mxu1 %v21308_v35  ;;  %v21351_v35 = vld [vmem:[%s22733_s2 + $0x4a0] ss:$16 sps:$4 sm:$0xff]  }
 0x442   : > { %8226 = vmatpush2.bf16.msra.mxu0 %v21303_v39  ;;  %v21354_v39 = vld [vmem:[%s22733_s2 + $0x6a0] ss:$16 sps:$4 sm:$0xff]  }
 0x443   : > { %8267 = vmatpush2.bf16.msra.mxu1 %v21306_v40  ;;  %8227 = vmatprep.subr.bf16.mxu0 %v21311_v42 }
 0x444   : > { %8268 = vmatprep.subr.bf16.mxu1 %v21314_v43  ;;  %v21362_v43 = vld [vmem:[%s22733_s2 + $0x684] ss:$16 sps:$4 sm:$0xff]  }
 0x446   : > { %8228 = vmatpush2.bf16.msra.mxu0 %v21309_v44  ;;  %v21357_v44 = vld [vmem:[%s22733_s2 + $0x480] ss:$16 sps:$4 sm:$0xff]  }
 0x447   : > { %8269 = vmatpush2.bf16.msra.mxu1 %v21312_v45  ;;  %8229 = vmatprep.subr.bf16.mxu0 %v21317_v31  ;;  %v21360_v45 = vld [vmem:[%s22733_s2 + $0x680] ss:$16 sps:$4 sm:$0xff]   ;;  %v21365_v31 = vld [vmem:[%s22733_s2 + $0x464] ss:$16 sps:$4 sm:$0xff]  }
 0x448   : > { %8270 = vmatprep.subr.bf16.mxu1 %v21320_v0  ;;  %v21368_v0 = vld [vmem:[%s22733_s2 + $0x664] ss:$16 sps:$4 sm:$0xff]  }
 0x44a   : > { %8230 = vmatpush2.bf16.msra.mxu0 %v21315_v1  ;;  %v21363_v1 = vld [vmem:[%s22733_s2 + $0x460] ss:$16 sps:$4 sm:$0xff]  }
 0x44b   : > { %8271 = vmatpush2.bf16.msra.mxu1 %v21318_v36  ;;  %8231 = vmatprep.subr.bf16.mxu0 %v21323_v47  ;;  %v21366_v36 = vld [vmem:[%s22733_s2 + $0x660] ss:$16 sps:$4 sm:$0xff]   ;;  %v21371_v47 = vld [vmem:[%s22733_s2 + $0x444] ss:$16 sps:$4 sm:$0xff]  }
 0x44c   : > { %8272 = vmatprep.subr.bf16.mxu1 %v21326_v48  ;;  %v21374_v48 = vld [vmem:[%s22733_s2 + $0x644] ss:$16 sps:$4 sm:$0xff]  }
 0x44e   : > { %8232 = vmatpush2.bf16.msra.mxu0 %v21321_v51  ;;  %v21369_v51 = vld [vmem:[%s22733_s2 + $0x440] ss:$16 sps:$4 sm:$0xff]  }
 0x44f   : > { %8273 = vmatpush2.bf16.msra.mxu1 %v21324_v55  ;;  %8233 = vmatprep.subr.bf16.mxu0 %v21329_v49  ;;  %v21372_v55 = vld [vmem:[%s22733_s2 + $0x640] ss:$16 sps:$4 sm:$0xff]   ;;  %v21377_v49 = vld [vmem:[%s22733_s2 + $0x424] ss:$16 sps:$4 sm:$0xff]  }
 0x450   : > { %8274 = vmatprep.subr.bf16.mxu1 %v21332_v56  ;;  %v21380_v56 = vld [vmem:[%s22733_s2 + $0x624] ss:$16 sps:$4 sm:$0xff]  }
 0x452   : > { %8234 = vmatpush2.bf16.msra.mxu0 %v21327_v50  ;;  %v21375_v50 = vld [vmem:[%s22733_s2 + $0x420] ss:$16 sps:$4 sm:$0xff]  }
 0x453   : > { %8275 = vmatpush2.bf16.msra.mxu1 %v21330_v58  ;;  %8235 = vmatprep.subr.bf16.mxu0 %v21335_v62  ;;  %v21378_v58 = vld [vmem:[%s22733_s2 + $0x620] ss:$16 sps:$4 sm:$0xff]   ;;  %v21383_v62 = vld [vmem:[%s22733_s2 + $0x404] ss:$16 sps:$4 sm:$0xff]  }
 0x454   : > { %8276 = vmatprep.subr.bf16.mxu1 %v21338_v59  ;;  %v21386_v59 = vld [vmem:[%s22733_s2 + $0x604] ss:$16 sps:$4 sm:$0xff]  }
 0x456   : > { %8236 = vmatpush2.bf16.msra.mxu0 %v21333_v63  ;;  %v21381_v63 = vld [vmem:[%s22733_s2 + $0x400] ss:$16 sps:$4 sm:$0xff]  }
 0x457   : > { %8277 = vmatpush2.bf16.msra.mxu1 %v21336_v38  ;;  %8287 = vmatprep.subr.bf16.mxu0 %v21341_v22  ;;  %v21384_v38 = vld [vmem:[%s22733_s2 + $0x600] ss:$16 sps:$4 sm:$0xff]   ;;  %v21389_v22 = vld [vmem:[%s22733_s2 + $0x5e4] ss:$16 sps:$4 sm:$0xff]  }
 0x458   : > { %8328 = vmatprep.subr.bf16.mxu1 %v21344_v27  ;;  %v21392_v27 = vld [vmem:[%s22733_s2 + $0x7e4] ss:$16 sps:$4 sm:$0xff]  }
 0x459   : > { %v5417_v2 = vpop.f32.mrf.mxu0  ;;  %8238 = vmatmul.mubr.bf16.vlgmr.msra.gmra.mxu0 %v22849_v23 }
 0x45a   : > { %v5458_v57 = vpop.f32.mrf.mxu1  ;;  %8279 = vmatmul.mubr.bf16.vlgmr.msra.gmra.mxu1 %v22859_v29  ;;  %v5418_v7 = vadd.f32 %v5417_v2, %v23479_v41  ;;  %8288 = vmatpush1.bf16.msra.mxu0 %v21339_v6  ;;  %v21387_v6 = vld [vmem:[%s22733_s2 + $0x5e0] ss:$16 sps:$4 sm:$0xff]  }
 0x45b   : > { %8329 = vmatpush1.bf16.msra.mxu1 %v21342_v3  ;;  %v5419_v8 = vpop.f32.mrf.mxu0  ;;  %8289 = vmatprep.subr.bf16.mxu0 %v21347_v4  ;;  %v21390_v3 = vld [vmem:[%s22733_s2 + $0x7e0] ss:$16 sps:$4 sm:$0xff]   ;;  %v21395_v4 = vld [vmem:[%s22733_s2 + $0x5c4] ss:$16 sps:$4 sm:$0xff]  }
 0x45c   : > { %v5460_v9 = vpop.f32.mrf.mxu1  ;;  %8330 = vmatprep.subr.bf16.mxu1 %v21350_v52  ;;  %v23554_v15 = vadd.f32 %v5458_v57, %v5418_v7  ;;  %v5420_v25 = vadd.f32 %v5419_v8, %v23483_v46  ;;  %8319 = vmatprep.mubr.bf16.mxu0 %v22924_v17  ;;  %v21359_v46 = vld [vmem:[%s22733_s2 + $0x484] ss:$16 sps:$4 sm:$0xff]   ;;  %v21393_v2 = vld [vmem:[%s22733_s2 + $0x5c0] ss:$16 sps:$4 sm:$0xff]  }
 0x45d   : > { %8360 = vmatprep.mubr.bf16.mxu1 %v22934_v24  ;;  %v5421_v41 = vpop.f32.mrf.mxu0  ;;  %v21398_v52 = vld [vmem:[%s22733_s2 + $0x7c4] ss:$16 sps:$4 sm:$0xff]   ;;  %v21396_v57 = vld [vmem:[%s22733_s2 + $0x7c0] ss:$16 sps:$4 sm:$0xff]  }
 0x45e   : > { %v5462_v26 = vpop.f32.mrf.mxu1  ;;  %v23559_v30 = vadd.f32 %v5460_v9, %v5420_v25  ;;  %8290 = vmatpush1.bf16.msra.mxu0 %v21345_v33  ;;  %v21401_v7 = vld [vmem:[%s22733_s2 + $0x5a4] ss:$16 sps:$4 sm:$0xff]   ;;  %v21402_v8 = vld [vmem:[%s22733_s2 + $0x7a0] ss:$16 sps:$4 sm:$0xff]  }
 0x45f   : > { %8331 = vmatpush1.bf16.msra.mxu1 %v21348_v37  ;;  %v5422_v40 = vpop.f32.mrf.mxu0  ;;  %8291 = vmatprep.subr.bf16.mxu0 %v21353_v10  ;;  %v21404_v33 = vld [vmem:[%s22733_s2 + $0x7a4] ss:$16 sps:$4 sm:$0xff]   ;;  %v21399_v37 = vld [vmem:[%s22733_s2 + $0x5a0] ss:$16 sps:$4 sm:$0xff]  }
 0x460   : > { %v5463_v42 = vpop.f32.mrf.mxu1  ;;  %8332 = vmatprep.subr.bf16.mxu1 %v21356_v11  ;;  %v21407_v9 = vld [vmem:[%s22733_s2 + $0x584] ss:$16 sps:$4 sm:$0xff]   ;;  %v21405_v11 = vld [vmem:[%s22733_s2 + $0x580] ss:$16 sps:$4 sm:$0xff]  }
 0x461   : > { %v21410_v10 = vld [vmem:[%s22733_s2 + $0x784] ss:$16 sps:$4 sm:$0xff]   ;;  %v21408_v25 = vld [vmem:[%s22733_s2 + $0x780] ss:$16 sps:$4 sm:$0xff]  }
 0x462   : > { %8292 = vmatpush1.bf16.msra.mxu0 %v21351_v35  ;;  %v21413_v41 = vld [vmem:[%s22733_s2 + $0x564] ss:$16 sps:$4 sm:$0xff]   ;;  %v21411_v35 = vld [vmem:[%s22733_s2 + $0x560] ss:$16 sps:$4 sm:$0xff]  }
 0x463   : > { %8333 = vmatpush1.bf16.msra.mxu1 %v21354_v39  ;;  %8293 = vmatprep.subr.bf16.mxu0 %v21359_v46  ;;  %v21416_v26 = vld [vmem:[%s22733_s2 + $0x764] ss:$16 sps:$4 sm:$0xff]   ;;  %v21414_v39 = vld [vmem:[%s22733_s2 + $0x760] ss:$16 sps:$4 sm:$0xff]  }
 0x464   : > { %8334 = vmatprep.subr.bf16.mxu1 %v21362_v43  ;;  %v21419_v40 = vld [vmem:[%s22733_s2 + $0x544] ss:$16 sps:$4 sm:$0xff]   ;;  %v21417_v46 = vld [vmem:[%s22733_s2 + $0x540] ss:$16 sps:$4 sm:$0xff]  }
 0x465   : > { %v21422_v42 = vld [vmem:[%s22733_s2 + $0x744] ss:$16 sps:$4 sm:$0xff]   ;;  %v21420_v43 = vld [vmem:[%s22733_s2 + $0x740] ss:$16 sps:$4 sm:$0xff]  }
 0x466   : > { %8294 = vmatpush1.bf16.msra.mxu0 %v21357_v44  ;;  %v21425_v44 = vld [vmem:[%s22733_s2 + $0x524] ss:$16 sps:$4 sm:$0xff]  }
 0x467   : > { %8335 = vmatpush1.bf16.msra.mxu1 %v21360_v45  ;;  %8295 = vmatprep.subr.bf16.mxu0 %v21365_v31  ;;  %v21428_v45 = vld [vmem:[%s22733_s2 + $0x724] ss:$16 sps:$4 sm:$0xff]   ;;  %v21423_v31 = vld [vmem:[%s22733_s2 + $0x520] ss:$16 sps:$4 sm:$0xff]  }
 0x468   : > { %8336 = vmatprep.subr.bf16.mxu1 %v21368_v0  ;;  %v21426_v0 = vld [vmem:[%s22733_s2 + $0x720] ss:$16 sps:$4 sm:$0xff]  }
 0x46a   : > { %8296 = vmatpush1.bf16.msra.mxu0 %v21363_v1  ;;  %v21431_v1 = vld [vmem:[%s22733_s2 + $0x504] ss:$16 sps:$4 sm:$0xff]  }
 0x46b   : > { %8337 = vmatpush1.bf16.msra.mxu1 %v21366_v36  ;;  %8297 = vmatprep.subr.bf16.mxu0 %v21371_v47  ;;  %v21434_v36 = vld [vmem:[%s22733_s2 + $0x704] ss:$16 sps:$4 sm:$0xff]   ;;  %v21429_v47 = vld [vmem:[%s22733_s2 + $0x500] ss:$16 sps:$4 sm:$0xff]  }
 0x46c   : > { %8338 = vmatprep.subr.bf16.mxu1 %v21374_v48  ;;  %v21432_v48 = vld [vmem:[%s22733_s2 + $0x700] ss:$16 sps:$4 sm:$0xff]  }
 0x46e   : > { %8298 = vmatpush1.bf16.msra.mxu0 %v21369_v51  ;;  %v21437_v51 = vld [vmem:[%s22733_s2 + $0x8e4] ss:$16 sps:$4 sm:$0xff]  }
 0x46f   : > { %8339 = vmatpush1.bf16.msra.mxu1 %v21372_v55  ;;  %8299 = vmatprep.subr.bf16.mxu0 %v21377_v49  ;;  %v21440_v55 = vld [vmem:[%s22733_s2 + $0xae4] ss:$16 sps:$4 sm:$0xff]   ;;  %v21435_v49 = vld [vmem:[%s22733_s2 + $0x8e0] ss:$16 sps:$4 sm:$0xff]  }
 0x470   : > { %8340 = vmatprep.subr.bf16.mxu1 %v21380_v56  ;;  %v21438_v56 = vld [vmem:[%s22733_s2 + $0xae0] ss:$16 sps:$4 sm:$0xff]  }
 0x472   : > { %8300 = vmatpush1.bf16.msra.mxu0 %v21375_v50  ;;  %v21443_v50 = vld [vmem:[%s22733_s2 + $0x8c4] ss:$16 sps:$4 sm:$0xff]  }
 0x473   : > { %8341 = vmatpush1.bf16.msra.mxu1 %v21378_v58  ;;  %8301 = vmatprep.subr.bf16.mxu0 %v21383_v62  ;;  %v21446_v58 = vld [vmem:[%s22733_s2 + $0xac4] ss:$16 sps:$4 sm:$0xff]  }
 0x474   : > { %8342 = vmatprep.subr.bf16.mxu1 %v21386_v59 }
 0x476   : > { %8302 = vmatpush1.bf16.msra.mxu0 %v21381_v63 }
 0x477   : > { %8343 = vmatpush1.bf16.msra.mxu1 %v21384_v38  ;;  %8303 = vmatprep.subr.bf16.mxu0 %v21389_v22  ;;  %v21441_v38 = vld [vmem:[%s22733_s2 + $0x8c0] ss:$16 sps:$4 sm:$0xff]  }
 0x478   : > { %8344 = vmatprep.subr.bf16.mxu1 %v21392_v27  ;;  %v21444_v22 = vld [vmem:[%s22733_s2 + $0xac0] ss:$16 sps:$4 sm:$0xff]  }
 0x47a   : > { %8304 = vmatpush2.bf16.msra.mxu0 %v21387_v6 }
 0x47b   : > { %8345 = vmatpush2.bf16.msra.mxu1 %v21390_v3  ;;  %8305 = vmatprep.subr.bf16.mxu0 %v21395_v4  ;;  %v21449_v3 = vld [vmem:[%s22733_s2 + $0x8a4] ss:$16 sps:$4 sm:$0xff]  }
 0x47c   : > { %8346 = vmatprep.subr.bf16.mxu1 %v21398_v52  ;;  %v21452_v4 = vld [vmem:[%s22733_s2 + $0xaa4] ss:$16 sps:$4 sm:$0xff]  }
 0x47e   : > { %8306 = vmatpush2.bf16.msra.mxu0 %v21393_v2 }
 0x47f   : > { %8347 = vmatpush2.bf16.msra.mxu1 %v21396_v57  ;;  %8307 = vmatprep.subr.bf16.mxu0 %v21401_v7 }
 0x480   : > { %8348 = vmatprep.subr.bf16.mxu1 %v21404_v33  ;;  %v21447_v33 = vld [vmem:[%s22733_s2 + $0x8a0] ss:$16 sps:$4 sm:$0xff]  }
 0x482   : > { %8308 = vmatpush2.bf16.msra.mxu0 %v21399_v37  ;;  %v21450_v37 = vld [vmem:[%s22733_s2 + $0xaa0] ss:$16 sps:$4 sm:$0xff]  }
 0x483   : > { %8349 = vmatpush2.bf16.msra.mxu1 %v21402_v8  ;;  %8309 = vmatprep.subr.bf16.mxu0 %v21407_v9 }
 0x484   : > { %8350 = vmatprep.subr.bf16.mxu1 %v21410_v10  ;;  %v21458_v10 = vld [vmem:[%s22733_s2 + $0xa84] ss:$16 sps:$4 sm:$0xff]  }
 0x486   : > { %8310 = vmatpush2.bf16.msra.mxu0 %v21405_v11  ;;  %v21453_v11 = vld [vmem:[%s22733_s2 + $0x880] ss:$16 sps:$4 sm:$0xff]  }
 0x487   : > { %8351 = vmatpush2.bf16.msra.mxu1 %v21408_v25  ;;  %8311 = vmatprep.subr.bf16.mxu0 %v21413_v41  ;;  %v21456_v25 = vld [vmem:[%s22733_s2 + $0xa80] ss:$16 sps:$4 sm:$0xff]   ;;  %v21461_v41 = vld [vmem:[%s22733_s2 + $0x864] ss:$16 sps:$4 sm:$0xff]  }
 0x488   : > { %8352 = vmatprep.subr.bf16.mxu1 %v21416_v26  ;;  %v21464_v26 = vld [vmem:[%s22733_s2 + $0xa64] ss:$16 sps:$4 sm:$0xff]  }
 0x48a   : > { %8312 = vmatpush2.bf16.msra.mxu0 %v21411_v35  ;;  %v21459_v35 = vld [vmem:[%s22733_s2 + $0x860] ss:$16 sps:$4 sm:$0xff]  }
 0x48b   : > { %8353 = vmatpush2.bf16.msra.mxu1 %v21414_v39  ;;  %8313 = vmatprep.subr.bf16.mxu0 %v21419_v40  ;;  %v21462_v39 = vld [vmem:[%s22733_s2 + $0xa60] ss:$16 sps:$4 sm:$0xff]   ;;  %v21467_v40 = vld [vmem:[%s22733_s2 + $0x844] ss:$16 sps:$4 sm:$0xff]  }
 0x48c   : > { %8354 = vmatprep.subr.bf16.mxu1 %v21422_v42  ;;  %v21470_v42 = vld [vmem:[%s22733_s2 + $0xa44] ss:$16 sps:$4 sm:$0xff]  }
 0x48e   : > { %8314 = vmatpush2.bf16.msra.mxu0 %v21417_v46  ;;  %v21465_v46 = vld [vmem:[%s22733_s2 + $0x840] ss:$16 sps:$4 sm:$0xff]  }
 0x48f   : > { %8355 = vmatpush2.bf16.msra.mxu1 %v21420_v43  ;;  %8315 = vmatprep.subr.bf16.mxu0 %v21425_v44  ;;  %v21468_v43 = vld [vmem:[%s22733_s2 + $0xa40] ss:$16 sps:$4 sm:$0xff]   ;;  %v21473_v44 = vld [vmem:[%s22733_s2 + $0x824] ss:$16 sps:$4 sm:$0xff]  }
 0x490   : > { %8356 = vmatprep.subr.bf16.mxu1 %v21428_v45  ;;  %v21476_v45 = vld [vmem:[%s22733_s2 + $0xa24] ss:$16 sps:$4 sm:$0xff]  }
 0x492   : > { %8316 = vmatpush2.bf16.msra.mxu0 %v21423_v31  ;;  %v21471_v31 = vld [vmem:[%s22733_s2 + $0x820] ss:$16 sps:$4 sm:$0xff]  }
 0x493   : > { %8357 = vmatpush2.bf16.msra.mxu1 %v21426_v0  ;;  %8317 = vmatprep.subr.bf16.mxu0 %v21431_v1  ;;  %v21474_v0 = vld [vmem:[%s22733_s2 + $0xa20] ss:$16 sps:$4 sm:$0xff]   ;;  %v21479_v1 = vld [vmem:[%s22733_s2 + $0x804] ss:$16 sps:$4 sm:$0xff]  }
 0x494   : > { %8358 = vmatprep.subr.bf16.mxu1 %v21434_v36  ;;  %v21482_v36 = vld [vmem:[%s22733_s2 + $0xa04] ss:$16 sps:$4 sm:$0xff]  }
 0x496   : > { %8318 = vmatpush2.bf16.msra.mxu0 %v21429_v47  ;;  %v21477_v47 = vld [vmem:[%s22733_s2 + $0x800] ss:$16 sps:$4 sm:$0xff]  }
 0x497   : > { %8359 = vmatpush2.bf16.msra.mxu1 %v21432_v48  ;;  %8369 = vmatprep.subr.bf16.mxu0 %v21437_v51  ;;  %v21480_v48 = vld [vmem:[%s22733_s2 + $0xa00] ss:$16 sps:$4 sm:$0xff]   ;;  %v21485_v51 = vld [vmem:[%s22733_s2 + $0x9e4] ss:$16 sps:$4 sm:$0xff]  }
 0x498   : > { %8410 = vmatprep.subr.bf16.mxu1 %v21440_v55  ;;  %v21488_v55 = vld [vmem:[%s22733_s2 + $0xbe4] ss:$16 sps:$4 sm:$0xff]  }
 0x499   : > { %v5499_v62 = vpop.f32.mrf.mxu0  ;;  %8320 = vmatmul.mubr.bf16.vlgmr.msra.gmra.mxu0 %v22918_v13 }
 0x49a   : > { %v5540_v59 = vpop.f32.mrf.mxu1  ;;  %8361 = vmatmul.mubr.bf16.vlgmr.msra.gmra.mxu1 %v22927_v19  ;;  %v5500_v63 = vadd.f32 %v5499_v62, %v23554_v15  ;;  %8370 = vmatpush1.bf16.msra.mxu0 %v21435_v49  ;;  %v21483_v49 = vld [vmem:[%s22733_s2 + $0x9e0] ss:$16 sps:$4 sm:$0xff]  }
 0x49b   : > { %8411 = vmatpush1.bf16.msra.mxu1 %v21438_v56  ;;  %v5501_v27 = vpop.f32.mrf.mxu0  ;;  %8371 = vmatprep.subr.bf16.mxu0 %v21443_v50  ;;  %v21486_v56 = vld [vmem:[%s22733_s2 + $0xbe0] ss:$16 sps:$4 sm:$0xff]   ;;  %v21491_v50 = vld [vmem:[%s22733_s2 + $0x9c4] ss:$16 sps:$4 sm:$0xff]  }
 0x49c   : > { %v5542_v6 = vpop.f32.mrf.mxu1  ;;  %8412 = vmatprep.subr.bf16.mxu1 %v21446_v58  ;;  %v23628_v52 = vadd.f32 %v5540_v59, %v5500_v63  ;;  %v5502_v2 = vadd.f32 %v5501_v27, %v23559_v30  ;;  %8401 = vmatprep.mubr.bf16.mxu0 %v22993_v20  ;;  %v21455_v30 = vld [vmem:[%s22733_s2 + $0x884] ss:$16 sps:$4 sm:$0xff]   ;;  %v21489_v62 = vld [vmem:[%s22733_s2 + $0x9c0] ss:$16 sps:$4 sm:$0xff]  }
 0x49d   : > { %8442 = vmatprep.mubr.bf16.mxu1 %v23004_v34  ;;  %v5503_v15 = vpop.f32.mrf.mxu0  ;;  %v21494_v58 = vld [vmem:[%s22733_s2 + $0xbc4] ss:$16 sps:$4 sm:$0xff]   ;;  %v21492_v59 = vld [vmem:[%s22733_s2 + $0xbc0] ss:$16 sps:$4 sm:$0xff]  }
 0x49e   : > { %v5544_v57 = vpop.f32.mrf.mxu1  ;;  %v23633_v7 = vadd.f32 %v5542_v6, %v5502_v2  ;;  %8372 = vmatpush1.bf16.msra.mxu0 %v21441_v38  ;;  %v21497_v63 = vld [vmem:[%s22733_s2 + $0x9a4] ss:$16 sps:$4 sm:$0xff]   ;;  %v21498_v27 = vld [vmem:[%s22733_s2 + $0xba0] ss:$16 sps:$4 sm:$0xff]  }
 0x49f   : > { %8413 = vmatpush1.bf16.msra.mxu1 %v21444_v22  ;;  %v5504_v8 = vpop.f32.mrf.mxu0  ;;  %8373 = vmatprep.subr.bf16.mxu0 %v21449_v3  ;;  %v21500_v38 = vld [vmem:[%s22733_s2 + $0xba4] ss:$16 sps:$4 sm:$0xff]   ;;  %v21495_v22 = vld [vmem:[%s22733_s2 + $0x9a0] ss:$16 sps:$4 sm:$0xff]  }
 0x4a0   : > { %v5545_v9 = vpop.f32.mrf.mxu1  ;;  %8414 = vmatprep.subr.bf16.mxu1 %v21452_v4  ;;  %v21503_v6 = vld [vmem:[%s22733_s2 + $0x984] ss:$16 sps:$4 sm:$0xff]   ;;  %v21501_v4 = vld [vmem:[%s22733_s2 + $0x980] ss:$16 sps:$4 sm:$0xff]  }
 0x4a1   : > { %v21506_v3 = vld [vmem:[%s22733_s2 + $0xb84] ss:$16 sps:$4 sm:$0xff]   ;;  %v21504_v2 = vld [vmem:[%s22733_s2 + $0xb80] ss:$16 sps:$4 sm:$0xff]  }
 0x4a2   : > { %8374 = vmatpush1.bf16.msra.mxu0 %v21447_v33  ;;  %v21509_v15 = vld [vmem:[%s22733_s2 + $0x964] ss:$16 sps:$4 sm:$0xff]   ;;  %v21507_v33 = vld [vmem:[%s22733_s2 + $0x960] ss:$16 sps:$4 sm:$0xff]  }
 0x4a3   : > { %8415 = vmatpush1.bf16.msra.mxu1 %v21450_v37  ;;  %8375 = vmatprep.subr.bf16.mxu0 %v21455_v30  ;;  %v21512_v57 = vld [vmem:[%s22733_s2 + $0xb64] ss:$16 sps:$4 sm:$0xff]   ;;  %v21510_v37 = vld [vmem:[%s22733_s2 + $0xb60] ss:$16 sps:$4 sm:$0xff]  }
 0x4a4   : > { %8416 = vmatprep.subr.bf16.mxu1 %v21458_v10  ;;  %v21515_v8 = vld [vmem:[%s22733_s2 + $0x944] ss:$16 sps:$4 sm:$0xff]   ;;  %v21513_v30 = vld [vmem:[%s22733_s2 + $0x940] ss:$16 sps:$4 sm:$0xff]  }
 0x4a5   : > { %v21518_v9 = vld [vmem:[%s22733_s2 + $0xb44] ss:$16 sps:$4 sm:$0xff]   ;;  %v21516_v10 = vld [vmem:[%s22733_s2 + $0xb40] ss:$16 sps:$4 sm:$0xff]  }
 0x4a6   : > { %8376 = vmatpush1.bf16.msra.mxu0 %v21453_v11  ;;  %v21521_v11 = vld [vmem:[%s22733_s2 + $0x924] ss:$16 sps:$4 sm:$0xff]  }
 0x4a7   : > { %8417 = vmatpush1.bf16.msra.mxu1 %v21456_v25  ;;  %8377 = vmatprep.subr.bf16.mxu0 %v21461_v41  ;;  %v21524_v25 = vld [vmem:[%s22733_s2 + $0xb24] ss:$16 sps:$4 sm:$0xff]   ;;  %v21519_v41 = vld [vmem:[%s22733_s2 + $0x920] ss:$16 sps:$4 sm:$0xff]  }
 0x4a8   : > { %8418 = vmatprep.subr.bf16.mxu1 %v21464_v26  ;;  %v21522_v26 = vld [vmem:[%s22733_s2 + $0xb20] ss:$16 sps:$4 sm:$0xff]  }
 0x4aa   : > { %8378 = vmatpush1.bf16.msra.mxu0 %v21459_v35  ;;  %v21527_v35 = vld [vmem:[%s22733_s2 + $0x904] ss:$16 sps:$4 sm:$0xff]  }
 0x4ab   : > { %8419 = vmatpush1.bf16.msra.mxu1 %v21462_v39  ;;  %8379 = vmatprep.subr.bf16.mxu0 %v21467_v40  ;;  %v21530_v39 = vld [vmem:[%s22733_s2 + $0xb04] ss:$16 sps:$4 sm:$0xff]   ;;  %v21525_v40 = vld [vmem:[%s22733_s2 + $0x900] ss:$16 sps:$4 sm:$0xff]  }
 0x4ac   : > { %8420 = vmatprep.subr.bf16.mxu1 %v21470_v42  ;;  %v21528_v42 = vld [vmem:[%s22733_s2 + $0xb00] ss:$16 sps:$4 sm:$0xff]  }
 0x4ae   : > { %8380 = vmatpush1.bf16.msra.mxu0 %v21465_v46  ;;  %v21533_v46 = vld [vmem:[%s22733_s2 + $0xce4] ss:$16 sps:$4 sm:$0xff]  }
 0x4af   : > { %8421 = vmatpush1.bf16.msra.mxu1 %v21468_v43  ;;  %8381 = vmatprep.subr.bf16.mxu0 %v21473_v44  ;;  %v21536_v43 = vld [vmem:[%s22733_s2 + $0xee4] ss:$16 sps:$4 sm:$0xff]   ;;  %v21531_v44 = vld [vmem:[%s22733_s2 + $0xce0] ss:$16 sps:$4 sm:$0xff]  }
 0x4b0   : > { %8422 = vmatprep.subr.bf16.mxu1 %v21476_v45  ;;  %v21534_v45 = vld [vmem:[%s22733_s2 + $0xee0] ss:$16 sps:$4 sm:$0xff]  }
 0x4b2   : > { %8382 = vmatpush1.bf16.msra.mxu0 %v21471_v31  ;;  %v21539_v31 = vld [vmem:[%s22733_s2 + $0xcc4] ss:$16 sps:$4 sm:$0xff]  }
 0x4b3   : > { %8423 = vmatpush1.bf16.msra.mxu1 %v21474_v0  ;;  %8383 = vmatprep.subr.bf16.mxu0 %v21479_v1  ;;  %v21542_v0 = vld [vmem:[%s22733_s2 + $0xec4] ss:$16 sps:$4 sm:$0xff]  }
 0x4b4   : > { %8424 = vmatprep.subr.bf16.mxu1 %v21482_v36 }
 0x4b6   : > { %8384 = vmatpush1.bf16.msra.mxu0 %v21477_v47 }
 0x4b7   : > { %8425 = vmatpush1.bf16.msra.mxu1 %v21480_v48  ;;  %8385 = vmatprep.subr.bf16.mxu0 %v21485_v51  ;;  %v21537_v48 = vld [vmem:[%s22733_s2 + $0xcc0] ss:$16 sps:$4 sm:$0xff]  }
 0x4b8   : > { %8426 = vmatprep.subr.bf16.mxu1 %v21488_v55  ;;  %v21540_v51 = vld [vmem:[%s22733_s2 + $0xec0] ss:$16 sps:$4 sm:$0xff]  }
 0x4ba   : > { %8386 = vmatpush2.bf16.msra.mxu0 %v21483_v49 }
 0x4bb   : > { %8427 = vmatpush2.bf16.msra.mxu1 %v21486_v56  ;;  %8387 = vmatprep.subr.bf16.mxu0 %v21491_v50  ;;  %v21545_v56 = vld [vmem:[%s22733_s2 + $0xca4] ss:$16 sps:$4 sm:$0xff]  }
 0x4bc   : > { %8428 = vmatprep.subr.bf16.mxu1 %v21494_v58  ;;  %v21548_v50 = vld [vmem:[%s22733_s2 + $0xea4] ss:$16 sps:$4 sm:$0xff]  }
 0x4be   : > { %8388 = vmatpush2.bf16.msra.mxu0 %v21489_v62 }
 0x4bf   : > { %8429 = vmatpush2.bf16.msra.mxu1 %v21492_v59  ;;  %8389 = vmatprep.subr.bf16.mxu0 %v21497_v63 }
 0x4c0   : > { %8430 = vmatprep.subr.bf16.mxu1 %v21500_v38  ;;  %v21543_v38 = vld [vmem:[%s22733_s2 + $0xca0] ss:$16 sps:$4 sm:$0xff]  }
 0x4c2   : > { %8390 = vmatpush2.bf16.msra.mxu0 %v21495_v22  ;;  %v21546_v22 = vld [vmem:[%s22733_s2 + $0xea0] ss:$16 sps:$4 sm:$0xff]  }
 0x4c3   : > { %8431 = vmatpush2.bf16.msra.mxu1 %v21498_v27  ;;  %8391 = vmatprep.subr.bf16.mxu0 %v21503_v6 }
 0x4c4   : > { %8432 = vmatprep.subr.bf16.mxu1 %v21506_v3  ;;  %v21554_v3 = vld [vmem:[%s22733_s2 + $0xe84] ss:$16 sps:$4 sm:$0xff]  }
 0x4c6   : > { %8392 = vmatpush2.bf16.msra.mxu0 %v21501_v4  ;;  %v21549_v4 = vld [vmem:[%s22733_s2 + $0xc80] ss:$16 sps:$4 sm:$0xff]  }
 0x4c7   : > { %8433 = vmatpush2.bf16.msra.mxu1 %v21504_v2  ;;  %8393 = vmatprep.subr.bf16.mxu0 %v21509_v15  ;;  %v21552_v2 = vld [vmem:[%s22733_s2 + $0xe80] ss:$16 sps:$4 sm:$0xff]   ;;  %v21557_v15 = vld [vmem:[%s22733_s2 + $0xc64] ss:$16 sps:$4 sm:$0xff]  }
 0x4c8   : > { %8434 = vmatprep.subr.bf16.mxu1 %v21512_v57  ;;  %v21560_v57 = vld [vmem:[%s22733_s2 + $0xe64] ss:$16 sps:$4 sm:$0xff]  }
 0x4ca   : > { %8394 = vmatpush2.bf16.msra.mxu0 %v21507_v33  ;;  %v21555_v33 = vld [vmem:[%s22733_s2 + $0xc60] ss:$16 sps:$4 sm:$0xff]  }
 0x4cb   : > { %8435 = vmatpush2.bf16.msra.mxu1 %v21510_v37  ;;  %8395 = vmatprep.subr.bf16.mxu0 %v21515_v8  ;;  %v21558_v37 = vld [vmem:[%s22733_s2 + $0xe60] ss:$16 sps:$4 sm:$0xff]   ;;  %v21563_v8 = vld [vmem:[%s22733_s2 + $0xc44] ss:$16 sps:$4 sm:$0xff]  }
 0x4cc   : > { %8436 = vmatprep.subr.bf16.mxu1 %v21518_v9  ;;  %v21566_v9 = vld [vmem:[%s22733_s2 + $0xe44] ss:$16 sps:$4 sm:$0xff]  }
 0x4ce   : > { %8396 = vmatpush2.bf16.msra.mxu0 %v21513_v30  ;;  %v21561_v30 = vld [vmem:[%s22733_s2 + $0xc40] ss:$16 sps:$4 sm:$0xff]  }
 0x4cf   : > { %8437 = vmatpush2.bf16.msra.mxu1 %v21516_v10  ;;  %8397 = vmatprep.subr.bf16.mxu0 %v21521_v11  ;;  %v21564_v10 = vld [vmem:[%s22733_s2 + $0xe40] ss:$16 sps:$4 sm:$0xff]   ;;  %v21569_v11 = vld [vmem:[%s22733_s2 + $0xc24] ss:$16 sps:$4 sm:$0xff]  }
 0x4d0   : > { %8438 = vmatprep.subr.bf16.mxu1 %v21524_v25  ;;  %v21572_v25 = vld [vmem:[%s22733_s2 + $0xe24] ss:$16 sps:$4 sm:$0xff]  }
 0x4d2   : > { %8398 = vmatpush2.bf16.msra.mxu0 %v21519_v41  ;;  %v21567_v41 = vld [vmem:[%s22733_s2 + $0xc20] ss:$16 sps:$4 sm:$0xff]  }
 0x4d3   : > { %8439 = vmatpush2.bf16.msra.mxu1 %v21522_v26  ;;  %8399 = vmatprep.subr.bf16.mxu0 %v21527_v35  ;;  %v21570_v26 = vld [vmem:[%s22733_s2 + $0xe20] ss:$16 sps:$4 sm:$0xff]   ;;  %v21575_v35 = vld [vmem:[%s22733_s2 + $0xc04] ss:$16 sps:$4 sm:$0xff]  }
 0x4d4   : > { %8440 = vmatprep.subr.bf16.mxu1 %v21530_v39  ;;  %v21578_v39 = vld [vmem:[%s22733_s2 + $0xe04] ss:$16 sps:$4 sm:$0xff]  }
 0x4d6   : > { %8400 = vmatpush2.bf16.msra.mxu0 %v21525_v40  ;;  %v21573_v40 = vld [vmem:[%s22733_s2 + $0xc00] ss:$16 sps:$4 sm:$0xff]  }
 0x4d7   : > { %8441 = vmatpush2.bf16.msra.mxu1 %v21528_v42  ;;  %8451 = vmatprep.subr.bf16.mxu0 %v21533_v46  ;;  %v21576_v42 = vld [vmem:[%s22733_s2 + $0xe00] ss:$16 sps:$4 sm:$0xff]   ;;  %v21581_v46 = vld [vmem:[%s22733_s2 + $0xde4] ss:$16 sps:$4 sm:$0xff]  }
 0x4d8   : > { %8492 = vmatprep.subr.bf16.mxu1 %v21536_v43  ;;  %v21584_v43 = vld [vmem:[%s22733_s2 + $0xfe4] ss:$16 sps:$4 sm:$0xff]  }
 0x4d9   : > { %v5581_v1 = vpop.f32.mrf.mxu0  ;;  %8402 = vmatmul.mubr.bf16.vlgmr.msra.gmra.mxu0 %v22984_v14 }
 0x4da   : > { %v5622_v36 = vpop.f32.mrf.mxu1  ;;  %8443 = vmatmul.mubr.bf16.vlgmr.msra.gmra.mxu1 %v22996_v21  ;;  %v5582_v47 = vadd.f32 %v5581_v1, %v23628_v52  ;;  %8452 = vmatpush1.bf16.msra.mxu0 %v21531_v44  ;;  %v21579_v44 = vld [vmem:[%s22733_s2 + $0xde0] ss:$16 sps:$4 sm:$0xff]  }
 0x4db   : > { %8493 = vmatpush1.bf16.msra.mxu1 %v21534_v45  ;;  %v5583_v55 = vpop.f32.mrf.mxu0  ;;  %8453 = vmatprep.subr.bf16.mxu0 %v21539_v31  ;;  %v21582_v45 = vld [vmem:[%s22733_s2 + $0xfe0] ss:$16 sps:$4 sm:$0xff]   ;;  %v21587_v31 = vld [vmem:[%s22733_s2 + $0xdc4] ss:$16 sps:$4 sm:$0xff]  }
 0x4dc   : > { %v5624_v49 = vpop.f32.mrf.mxu1  ;;  %8494 = vmatprep.subr.bf16.mxu1 %v21542_v0  ;;  %v23702_v58 = vadd.f32 %v5622_v36, %v5582_v47  ;;  %v5584_v62 = vadd.f32 %v5583_v55, %v23633_v7  ;;  %8483 = vmatprep.mubr.bf16.mxu0 %v23076_v60  ;;  %v21551_v7 = vld [vmem:[%s22733_s2 + $0xc84] ss:$16 sps:$4 sm:$0xff]   ;;  %v21585_v1 = vld [vmem:[%s22733_s2 + $0xdc0] ss:$16 sps:$4 sm:$0xff]  }
 0x4dd   : > { %8524 = vmatprep.mubr.bf16.mxu1 %v23080_v61  ;;  %v5585_v52 = vpop.f32.mrf.mxu0  ;;  %v21590_v0 = vld [vmem:[%s22733_s2 + $0xfc4] ss:$16 sps:$4 sm:$0xff]   ;;  %v21588_v36 = vld [vmem:[%s22733_s2 + $0xfc0] ss:$16 sps:$4 sm:$0xff]  }
 0x4de   : > { %v5626_v59 = vpop.f32.mrf.mxu1  ;;  %v23707_v63 = vadd.f32 %v5624_v49, %v5584_v62  ;;  %8454 = vmatpush1.bf16.msra.mxu0 %v21537_v48  ;;  %v21593_v47 = vld [vmem:[%s22733_s2 + $0xda4] ss:$16 sps:$4 sm:$0xff]   ;;  %v21594_v55 = vld [vmem:[%s22733_s2 + $0xfa0] ss:$16 sps:$4 sm:$0xff]  }
 0x4df   : > { %8495 = vmatpush1.bf16.msra.mxu1 %v21540_v51  ;;  %v5586_v27 = vpop.f32.mrf.mxu0  ;;  %8455 = vmatprep.subr.bf16.mxu0 %v21545_v56  ;;  %v21596_v48 = vld [vmem:[%s22733_s2 + $0xfa4] ss:$16 sps:$4 sm:$0xff]   ;;  %v21591_v51 = vld [vmem:[%s22733_s2 + $0xda0] ss:$16 sps:$4 sm:$0xff]  }
 0x4e0   : > { %v5627_v6 = vpop.f32.mrf.mxu1  ;;  %8496 = vmatprep.subr.bf16.mxu1 %v21548_v50  ;;  %v21599_v49 = vld [vmem:[%s22733_s2 + $0xd84] ss:$16 sps:$4 sm:$0xff]   ;;  %v21597_v50 = vld [vmem:[%s22733_s2 + $0xd80] ss:$16 sps:$4 sm:$0xff]  }
 0x4e1   : > { %v21602_v56 = vld [vmem:[%s22733_s2 + $0xf84] ss:$16 sps:$4 sm:$0xff]   ;;  %v21600_v62 = vld [vmem:[%s22733_s2 + $0xf80] ss:$16 sps:$4 sm:$0xff]  }
 0x4e2   : > { %8456 = vmatpush1.bf16.msra.mxu0 %v21543_v38  ;;  %v21605_v52 = vld [vmem:[%s22733_s2 + $0xd64] ss:$16 sps:$4 sm:$0xff]   ;;  %v21603_v38 = vld [vmem:[%s22733_s2 + $0xd60] ss:$16 sps:$4 sm:$0xff]  }
 0x4e3   : > { %8497 = vmatpush1.bf16.msra.mxu1 %v21546_v22  ;;  %8457 = vmatprep.subr.bf16.mxu0 %v21551_v7  ;;  %v21608_v59 = vld [vmem:[%s22733_s2 + $0xf64] ss:$16 sps:$4 sm:$0xff]   ;;  %v21606_v22 = vld [vmem:[%s22733_s2 + $0xf60] ss:$16 sps:$4 sm:$0xff]  }
 0x4e4   : > { %8498 = vmatprep.subr.bf16.mxu1 %v21554_v3  ;;  %v21611_v27 = vld [vmem:[%s22733_s2 + $0xd44] ss:$16 sps:$4 sm:$0xff]   ;;  %v21609_v7 = vld [vmem:[%s22733_s2 + $0xd40] ss:$16 sps:$4 sm:$0xff]  }
 0x4e5   : > { %v21614_v6 = vld [vmem:[%s22733_s2 + $0xf44] ss:$16 sps:$4 sm:$0xff]   ;;  %v21612_v3 = vld [vmem:[%s22733_s2 + $0xf40] ss:$16 sps:$4 sm:$0xff]  }
 0x4e6   : > { %8458 = vmatpush1.bf16.msra.mxu0 %v21549_v4  ;;  %v21617_v4 = vld [vmem:[%s22733_s2 + $0xd24] ss:$16 sps:$4 sm:$0xff]  }
 0x4e7   : > { %8499 = vmatpush1.bf16.msra.mxu1 %v21552_v2  ;;  %8459 = vmatprep.subr.bf16.mxu0 %v21557_v15  ;;  %v21620_v2 = vld [vmem:[%s22733_s2 + $0xf24] ss:$16 sps:$4 sm:$0xff]   ;;  %v21615_v15 = vld [vmem:[%s22733_s2 + $0xd20] ss:$16 sps:$4 sm:$0xff]  }
 0x4e8   : > { %8500 = vmatprep.subr.bf16.mxu1 %v21560_v57  ;;  %v21618_v57 = vld [vmem:[%s22733_s2 + $0xf20] ss:$16 sps:$4 sm:$0xff]  }
 0x4ea   : > { %8460 = vmatpush1.bf16.msra.mxu0 %v21555_v33  ;;  %v21623_v33 = vld [vmem:[%s22733_s2 + $0xd04] ss:$16 sps:$4 sm:$0xff]  }
 0x4eb   : > { %8501 = vmatpush1.bf16.msra.mxu1 %v21558_v37  ;;  %8461 = vmatprep.subr.bf16.mxu0 %v21563_v8  ;;  %v21626_v37 = vld [vmem:[%s22733_s2 + $0xf04] ss:$16 sps:$4 sm:$0xff]   ;;  %v21621_v8 = vld [vmem:[%s22733_s2 + $0xd00] ss:$16 sps:$4 sm:$0xff]  }
 0x4ec   : > { %8502 = vmatprep.subr.bf16.mxu1 %v21566_v9  ;;  %v21624_v9 = vld [vmem:[%s22733_s2 + $0xf00] ss:$16 sps:$4 sm:$0xff]  }
 0x4ee   : > { %8462 = vmatpush1.bf16.msra.mxu0 %v21561_v30  ;;  %v21629_v30 = vld [vmem:[%s22733_s2 + $0xec] ss:$16 sps:$4 sm:$0xff]  }
 0x4ef   : > { %8503 = vmatpush1.bf16.msra.mxu1 %v21564_v10  ;;  %8463 = vmatprep.subr.bf16.mxu0 %v21569_v11  ;;  %v21632_v10 = vld [vmem:[%s22733_s2 + $0x2ec] ss:$16 sps:$4 sm:$0xff]   ;;  %v21627_v11 = vld [vmem:[%s22733_s2 + $0xe8] ss:$16 sps:$4 sm:$0xff]  }
 0x4f0   : > { %8504 = vmatprep.subr.bf16.mxu1 %v21572_v25  ;;  %v21630_v25 = vld [vmem:[%s22733_s2 + $0x2e8] ss:$16 sps:$4 sm:$0xff]  }
 0x4f2   : > { %8464 = vmatpush1.bf16.msra.mxu0 %v21567_v41  ;;  %v21635_v41 = vld [vmem:[%s22733_s2 + $0xcc] ss:$16 sps:$4 sm:$0xff]  }
 0x4f3   : > { %8505 = vmatpush1.bf16.msra.mxu1 %v21570_v26  ;;  %8465 = vmatprep.subr.bf16.mxu0 %v21575_v35  ;;  %v21638_v26 = vld [vmem:[%s22733_s2 + $0x2cc] ss:$16 sps:$4 sm:$0xff]  }
 0x4f4   : > { %8506 = vmatprep.subr.bf16.mxu1 %v21578_v39 }
 0x4f6   : > { %8466 = vmatpush1.bf16.msra.mxu0 %v21573_v40 }
 0x4f7   : > { %8507 = vmatpush1.bf16.msra.mxu1 %v21576_v42  ;;  %8467 = vmatprep.subr.bf16.mxu0 %v21581_v46  ;;  %v21633_v42 = vld [vmem:[%s22733_s2 + $0xc8] ss:$16 sps:$4 sm:$0xff]  }
 0x4f8   : > { %8508 = vmatprep.subr.bf16.mxu1 %v21584_v43  ;;  %v21636_v46 = vld [vmem:[%s22733_s2 + $0x2c8] ss:$16 sps:$4 sm:$0xff]  }
 0x4fa   : > { %8468 = vmatpush2.bf16.msra.mxu0 %v21579_v44 }
 0x4fb   : > { %8509 = vmatpush2.bf16.msra.mxu1 %v21582_v45  ;;  %8469 = vmatprep.subr.bf16.mxu0 %v21587_v31  ;;  %v21641_v45 = vld [vmem:[%s22733_s2 + $0xac] ss:$16 sps:$4 sm:$0xff]  }
 0x4fc   : > { %8510 = vmatprep.subr.bf16.mxu1 %v21590_v0  ;;  %v21644_v31 = vld [vmem:[%s22733_s2 + $0x2ac] ss:$16 sps:$4 sm:$0xff]  }
 0x4fe   : > { %8470 = vmatpush2.bf16.msra.mxu0 %v21585_v1 }
 0x4ff   : > { %8511 = vmatpush2.bf16.msra.mxu1 %v21588_v36  ;;  %8471 = vmatprep.subr.bf16.mxu0 %v21593_v47 }
 0x500   : > { %8512 = vmatprep.subr.bf16.mxu1 %v21596_v48  ;;  %v21639_v48 = vld [vmem:[%s22733_s2 + $0xa8] ss:$16 sps:$4 sm:$0xff]  }
 0x502   : > { %8472 = vmatpush2.bf16.msra.mxu0 %v21591_v51  ;;  %v21642_v51 = vld [vmem:[%s22733_s2 + $0x2a8] ss:$16 sps:$4 sm:$0xff]  }
 0x503   : > { %8513 = vmatpush2.bf16.msra.mxu1 %v21594_v55  ;;  %8473 = vmatprep.subr.bf16.mxu0 %v21599_v49 }
 0x504   : > { %8514 = vmatprep.subr.bf16.mxu1 %v21602_v56  ;;  %v21648_v56 = vld [vmem:[%s22733_s2 + $0x288] ss:$16 sps:$4 sm:$0xff]  }
 0x506   : > { %8474 = vmatpush2.bf16.msra.mxu0 %v21597_v50  ;;  %v21653_v50 = vld [vmem:[%s22733_s2 + $0x6c] ss:$16 sps:$4 sm:$0xff]  }
 0x507   : > { %8515 = vmatpush2.bf16.msra.mxu1 %v21600_v62  ;;  %8475 = vmatprep.subr.bf16.mxu0 %v21605_v52  ;;  %v21656_v62 = vld [vmem:[%s22733_s2 + $0x26c] ss:$16 sps:$4 sm:$0xff]   ;;  %v21651_v52 = vld [vmem:[%s22733_s2 + $0x68] ss:$16 sps:$4 sm:$0xff]  }
 0x508   : > { %8516 = vmatprep.subr.bf16.mxu1 %v21608_v59  ;;  %v21654_v59 = vld [vmem:[%s22733_s2 + $0x268] ss:$16 sps:$4 sm:$0xff]  }
 0x50a   : > { %8476 = vmatpush2.bf16.msra.mxu0 %v21603_v38  ;;  %v21659_v38 = vld [vmem:[%s22733_s2 + $0x4c] ss:$16 sps:$4 sm:$0xff]  }
 0x50b   : > { %8517 = vmatpush2.bf16.msra.mxu1 %v21606_v22  ;;  %8477 = vmatprep.subr.bf16.mxu0 %v21611_v27  ;;  %v21662_v22 = vld [vmem:[%s22733_s2 + $0x24c] ss:$16 sps:$4 sm:$0xff]   ;;  %v21657_v27 = vld [vmem:[%s22733_s2 + $0x48] ss:$16 sps:$4 sm:$0xff]  }
 0x50c   : > { %8518 = vmatprep.subr.bf16.mxu1 %v21614_v6  ;;  %v21660_v6 = vld [vmem:[%s22733_s2 + $0x248] ss:$16 sps:$4 sm:$0xff]  }
 0x50e   : > { %8478 = vmatpush2.bf16.msra.mxu0 %v21609_v7  ;;  %v21665_v7 = vld [vmem:[%s22733_s2 + $0x2c] ss:$16 sps:$4 sm:$0xff]  }
 0x50f   : > { %8519 = vmatpush2.bf16.msra.mxu1 %v21612_v3  ;;  %8479 = vmatprep.subr.bf16.mxu0 %v21617_v4  ;;  %v21668_v3 = vld [vmem:[%s22733_s2 + $0x22c] ss:$16 sps:$4 sm:$0xff]   ;;  %v21663_v4 = vld [vmem:[%s22733_s2 + $0x28] ss:$16 sps:$4 sm:$0xff]  }
 0x510   : > { %8520 = vmatprep.subr.bf16.mxu1 %v21620_v2  ;;  %v21666_v2 = vld [vmem:[%s22733_s2 + $0x228] ss:$16 sps:$4 sm:$0xff]  }
 0x512   : > { %8480 = vmatpush2.bf16.msra.mxu0 %v21615_v15  ;;  %v21671_v15 = vld [vmem:[%s22733_s2 + $0xc] ss:$16 sps:$4 sm:$0xff]  }
 0x513   : > { %8521 = vmatpush2.bf16.msra.mxu1 %v21618_v57  ;;  %8481 = vmatprep.subr.bf16.mxu0 %v21623_v33  ;;  %v21674_v57 = vld [vmem:[%s22733_s2 + $0x20c] ss:$16 sps:$4 sm:$0xff]   ;;  %v21669_v33 = vld [vmem:[%s22733_s2 + $0x8] ss:$16 sps:$4 sm:$0xff]  }
 0x514   : > { %8522 = vmatprep.subr.bf16.mxu1 %v21626_v37  ;;  %v21672_v37 = vld [vmem:[%s22733_s2 + $0x208] ss:$16 sps:$4 sm:$0xff]  }
 0x516   : > { %8482 = vmatpush2.bf16.msra.mxu0 %v21621_v8  ;;  %v21677_v8 = vld [vmem:[%s22733_s2 + $0x1ec] ss:$16 sps:$4 sm:$0xff]  }
 0x517   : > { %8523 = vmatpush2.bf16.msra.mxu1 %v21624_v9  ;;  %8533 = vmatprep.subr.bf16.mxu0 %v21629_v30  ;;  %v21680_v9 = vld [vmem:[%s22733_s2 + $0x3ec] ss:$16 sps:$4 sm:$0xff]   ;;  %v21675_v30 = vld [vmem:[%s22733_s2 + $0x1e8] ss:$16 sps:$4 sm:$0xff]  }
 0x518   : > { %8574 = vmatprep.subr.bf16.mxu1 %v21632_v10  ;;  %v21678_v10 = vld [vmem:[%s22733_s2 + $0x3e8] ss:$16 sps:$4 sm:$0xff]  }
 0x519   : > { %v8239_v35 = vpop.f32.mrf.mxu0  ;;  %8484 = vmatmul.mubr.bf16.vlgmr.msra.gmra.mxu0 %v23064_v53 }
 0x51a   : > { %v8280_v39 = vpop.f32.mrf.mxu1  ;;  %8525 = vmatmul.mubr.bf16.vlgmr.msra.gmra.mxu1 %v23067_v54  ;;  %v8240_v40 = vadd.f32 %v8239_v35, %v23404_v16  ;;  %8534 = vmatpush1.bf16.msra.mxu0 %v21627_v11  ;;  %v21683_v11 = vld [vmem:[%s22733_s2 + $0x1cc] ss:$16 sps:$4 sm:$0xff]  }
 0x51b   : > { %8575 = vmatpush1.bf16.msra.mxu1 %v21630_v25  ;;  %v8241_v43 = vpop.f32.mrf.mxu0  ;;  %8535 = vmatprep.subr.bf16.mxu0 %v21635_v41  ;;  %v21686_v25 = vld [vmem:[%s22733_s2 + $0x3cc] ss:$16 sps:$4 sm:$0xff]   ;;  %v21681_v41 = vld [vmem:[%s22733_s2 + $0x1c8] ss:$16 sps:$4 sm:$0xff]  }
 0x51c   : > { %v8282_v44 = vpop.f32.mrf.mxu1  ;;  %8576 = vmatprep.subr.bf16.mxu1 %v21638_v26  ;;  %v23776_v0 = vadd.f32 %v8280_v39, %v8240_v40  ;;  %v8242_v1 = vadd.f32 %v8241_v43, %v23413_v5  ;;  %8565 = vmatprep.mubr.bf16.mxu0 %v22856_v28  ;;  %v21647_v28 = vld [vmem:[%s22733_s2 + $0x8c] ss:$16 sps:$4 sm:$0xff]   ;;  %v21645_v5 = vld [vmem:[%s22733_s2 + $0x88] ss:$16 sps:$4 sm:$0xff]  }
 0x51d   : > { %8606 = vmatprep.mubr.bf16.mxu1 %v22865_v32  ;;  %v8243_v16 = vpop.f32.mrf.mxu0  ;;  %v21650_v32 = vld [vmem:[%s22733_s2 + $0x28c] ss:$16 sps:$4 sm:$0xff]   ;;  %v21684_v26 = vld [vmem:[%s22733_s2 + $0x3c8] ss:$16 sps:$4 sm:$0xff]  }
 0x51e   : > { %v8284_v36 = vpop.f32.mrf.mxu1  ;;  %v23781_v47 = vadd.f32 %v8282_v44, %v8242_v1  ;;  %8536 = vmatpush1.bf16.msra.mxu0 %v21633_v42  ;;  %v21689_v35 = vld [vmem:[%s22733_s2 + $0x1ac] ss:$16 sps:$4 sm:$0xff]   ;;  %v21687_v40 = vld [vmem:[%s22733_s2 + $0x1a8] ss:$16 sps:$4 sm:$0xff]  }
 0x51f   : > { %8577 = vmatpush1.bf16.msra.mxu1 %v21636_v46  ;;  %v8244_v55 = vpop.f32.mrf.mxu0  ;;  %8537 = vmatprep.subr.bf16.mxu0 %v21641_v45  ;;  %v21692_v39 = vld [vmem:[%s22733_s2 + $0x3ac] ss:$16 sps:$4 sm:$0xff]   ;;  %v21690_v42 = vld [vmem:[%s22733_s2 + $0x3a8] ss:$16 sps:$4 sm:$0xff]  }
 0x520   : > { %v8285_v49 = vpop.f32.mrf.mxu1  ;;  %8578 = vmatprep.subr.bf16.mxu1 %v21644_v31  ;;  %v21695_v46 = vld [vmem:[%s22733_s2 + $0x18c] ss:$16 sps:$4 sm:$0xff]   ;;  %v21693_v44 = vld [vmem:[%s22733_s2 + $0x188] ss:$16 sps:$4 sm:$0xff]  }
 0x521   : > { %v21698_v43 = vld [vmem:[%s22733_s2 + $0x38c] ss:$16 sps:$4 sm:$0xff]   ;;  %v21696_v45 = vld [vmem:[%s22733_s2 + $0x388] ss:$16 sps:$4 sm:$0xff]  }
 0x522   : > { %8538 = vmatpush1.bf16.msra.mxu0 %v21639_v48  ;;  %v21701_v31 = vld [vmem:[%s22733_s2 + $0x16c] ss:$16 sps:$4 sm:$0xff]   ;;  %v21699_v16 = vld [vmem:[%s22733_s2 + $0x168] ss:$16 sps:$4 sm:$0xff]  }
 0x523   : > { %8579 = vmatpush1.bf16.msra.mxu1 %v21642_v51  ;;  %8539 = vmatprep.subr.bf16.mxu0 %v21647_v28  ;;  %v21704_v1 = vld [vmem:[%s22733_s2 + $0x36c] ss:$16 sps:$4 sm:$0xff]   ;;  %v21702_v36 = vld [vmem:[%s22733_s2 + $0x368] ss:$16 sps:$4 sm:$0xff]  }
 0x524   : > { %8580 = vmatprep.subr.bf16.mxu1 %v21650_v32  ;;  %v21707_v48 = vld [vmem:[%s22733_s2 + $0x14c] ss:$16 sps:$4 sm:$0xff]   ;;  %v21705_v55 = vld [vmem:[%s22733_s2 + $0x148] ss:$16 sps:$4 sm:$0xff]  }
 0x525   : > { %v21710_v51 = vld [vmem:[%s22733_s2 + $0x34c] ss:$16 sps:$4 sm:$0xff]   ;;  %v21708_v49 = vld [vmem:[%s22733_s2 + $0x348] ss:$16 sps:$4 sm:$0xff]  }
 0x526   : > { %8540 = vmatpush1.bf16.msra.mxu0 %v21645_v5  ;;  %v21713_v28 = vld [vmem:[%s22733_s2 + $0x12c] ss:$16 sps:$4 sm:$0xff]   ;;  %v21711_v5 = vld [vmem:[%s22733_s2 + $0x128] ss:$16 sps:$4 sm:$0xff]  }
 0x527   : > { %8581 = vmatpush1.bf16.msra.mxu1 %v21648_v56  ;;  %8541 = vmatprep.subr.bf16.mxu0 %v21653_v50  ;;  %v21716_v32 = vld [vmem:[%s22733_s2 + $0x32c] ss:$16 sps:$4 sm:$0xff]   ;;  %v21714_v56 = vld [vmem:[%s22733_s2 + $0x328] ss:$16 sps:$4 sm:$0xff]  }
 0x528   : > { %8582 = vmatprep.subr.bf16.mxu1 %v21656_v62  ;;  %v21719_v50 = vld [vmem:[%s22733_s2 + $0x10c] ss:$16 sps:$4 sm:$0xff]  }
 0x529   : > { %v21722_v62 = vld [vmem:[%s22733_s2 + $0x30c] ss:$16 sps:$4 sm:$0xff]  }
 0x52a   : > { %8542 = vmatpush1.bf16.msra.mxu0 %v21651_v52  ;;  %v21717_v52 = vld [vmem:[%s22733_s2 + $0x108] ss:$16 sps:$4 sm:$0xff]  }
 0x52b   : > { %8583 = vmatpush1.bf16.msra.mxu1 %v21654_v59  ;;  %8543 = vmatprep.subr.bf16.mxu0 %v21659_v38  ;;  %v21720_v59 = vld [vmem:[%s22733_s2 + $0x308] ss:$16 sps:$4 sm:$0xff]   ;;  %v21725_v38 = vld [vmem:[%s22733_s2 + $0x4ec] ss:$16 sps:$4 sm:$0xff]  }
 0x52c   : > { %8584 = vmatprep.subr.bf16.mxu1 %v21662_v22  ;;  %v21728_v22 = vld [vmem:[%s22733_s2 + $0x6ec] ss:$16 sps:$4 sm:$0xff]  }
 0x52e   : > { %8544 = vmatpush1.bf16.msra.mxu0 %v21657_v27  ;;  %v21723_v27 = vld [vmem:[%s22733_s2 + $0x4e8] ss:$16 sps:$4 sm:$0xff]  }
 0x52f   : > { %8585 = vmatpush1.bf16.msra.mxu1 %v21660_v6  ;;  %8545 = vmatprep.subr.bf16.mxu0 %v21665_v7  ;;  %v21726_v6 = vld [vmem:[%s22733_s2 + $0x6e8] ss:$16 sps:$4 sm:$0xff]   ;;  %v21731_v7 = vld [vmem:[%s22733_s2 + $0x4cc] ss:$16 sps:$4 sm:$0xff]  }
 0x530   : > { %8586 = vmatprep.subr.bf16.mxu1 %v21668_v3  ;;  %v21734_v3 = vld [vmem:[%s22733_s2 + $0x6cc] ss:$16 sps:$4 sm:$0xff]  }
 0x532   : > { %8546 = vmatpush1.bf16.msra.mxu0 %v21663_v4 }
 0x533   : > { %8587 = vmatpush1.bf16.msra.mxu1 %v21666_v2  ;;  %8547 = vmatprep.subr.bf16.mxu0 %v21671_v15 }
 0x534   : > { %8588 = vmatprep.subr.bf16.mxu1 %v21674_v57  ;;  %v21729_v57 = vld [vmem:[%s22733_s2 + $0x4c8] ss:$16 sps:$4 sm:$0xff]  }
 0x536   : > { %8548 = vmatpush1.bf16.msra.mxu0 %v21669_v33  ;;  %v21732_v33 = vld [vmem:[%s22733_s2 + $0x6c8] ss:$16 sps:$4 sm:$0xff]  }
 0x537   : > { %8589 = vmatpush1.bf16.msra.mxu1 %v21672_v37  ;;  %8549 = vmatprep.subr.bf16.mxu0 %v21677_v8 }
 0x538   : > { %8590 = vmatprep.subr.bf16.mxu1 %v21680_v9  ;;  %v21737_v9 = vld [vmem:[%s22733_s2 + $0x4ac] ss:$16 sps:$4 sm:$0xff]  }
 0x53a   : > { %8550 = vmatpush2.bf16.msra.mxu0 %v21675_v30  ;;  %v21740_v30 = vld [vmem:[%s22733_s2 + $0x6ac] ss:$16 sps:$4 sm:$0xff]  }
 0x53b   : > { %8591 = vmatpush2.bf16.msra.mxu1 %v21678_v10  ;;  %8551 = vmatprep.subr.bf16.mxu0 %v21683_v11 }
 0x53c   : > { %8592 = vmatprep.subr.bf16.mxu1 %v21686_v25  ;;  %v21735_v25 = vld [vmem:[%s22733_s2 + $0x4a8] ss:$16 sps:$4 sm:$0xff]  }
 0x53e   : > { %8552 = vmatpush2.bf16.msra.mxu0 %v21681_v41  ;;  %v21738_v41 = vld [vmem:[%s22733_s2 + $0x6a8] ss:$16 sps:$4 sm:$0xff]  }
 0x53f   : > { %8593 = vmatpush2.bf16.msra.mxu1 %v21684_v26  ;;  %8553 = vmatprep.subr.bf16.mxu0 %v21689_v35 }
 0x540   : > { %8594 = vmatprep.subr.bf16.mxu1 %v21692_v39  ;;  %v21744_v39 = vld [vmem:[%s22733_s2 + $0x688] ss:$16 sps:$4 sm:$0xff]  }
 0x542   : > { %8554 = vmatpush2.bf16.msra.mxu0 %v21687_v40  ;;  %v21749_v40 = vld [vmem:[%s22733_s2 + $0x46c] ss:$16 sps:$4 sm:$0xff]  }
 0x543   : > { %8595 = vmatpush2.bf16.msra.mxu1 %v21690_v42  ;;  %8555 = vmatprep.subr.bf16.mxu0 %v21695_v46  ;;  %v21752_v42 = vld [vmem:[%s22733_s2 + $0x66c] ss:$16 sps:$4 sm:$0xff]   ;;  %v21747_v46 = vld [vmem:[%s22733_s2 + $0x468] ss:$16 sps:$4 sm:$0xff]  }
 0x544   : > { %8596 = vmatprep.subr.bf16.mxu1 %v21698_v43  ;;  %v21750_v43 = vld [vmem:[%s22733_s2 + $0x668] ss:$16 sps:$4 sm:$0xff]  }
 0x546   : > { %8556 = vmatpush2.bf16.msra.mxu0 %v21693_v44  ;;  %v21755_v44 = vld [vmem:[%s22733_s2 + $0x44c] ss:$16 sps:$4 sm:$0xff]  }
 0x547   : > { %8597 = vmatpush2.bf16.msra.mxu1 %v21696_v45  ;;  %8557 = vmatprep.subr.bf16.mxu0 %v21701_v31  ;;  %v21758_v45 = vld [vmem:[%s22733_s2 + $0x64c] ss:$16 sps:$4 sm:$0xff]   ;;  %v21753_v31 = vld [vmem:[%s22733_s2 + $0x448] ss:$16 sps:$4 sm:$0xff]  }
 0x548   : > { %8598 = vmatprep.subr.bf16.mxu1 %v21704_v1  ;;  %v21756_v1 = vld [vmem:[%s22733_s2 + $0x648] ss:$16 sps:$4 sm:$0xff]  }
 0x54a   : > { %8558 = vmatpush2.bf16.msra.mxu0 %v21699_v16  ;;  %v21761_v16 = vld [vmem:[%s22733_s2 + $0x42c] ss:$16 sps:$4 sm:$0xff]  }
 0x54b   : > { %8599 = vmatpush2.bf16.msra.mxu1 %v21702_v36  ;;  %8559 = vmatprep.subr.bf16.mxu0 %v21707_v48  ;;  %v21764_v36 = vld [vmem:[%s22733_s2 + $0x62c] ss:$16 sps:$4 sm:$0xff]   ;;  %v21759_v48 = vld [vmem:[%s22733_s2 + $0x428] ss:$16 sps:$4 sm:$0xff]  }
 0x54c   : > { %8600 = vmatprep.subr.bf16.mxu1 %v21710_v51  ;;  %v21762_v51 = vld [vmem:[%s22733_s2 + $0x628] ss:$16 sps:$4 sm:$0xff]  }
 0x54e   : > { %8560 = vmatpush2.bf16.msra.mxu0 %v21705_v55  ;;  %v21767_v55 = vld [vmem:[%s22733_s2 + $0x40c] ss:$16 sps:$4 sm:$0xff]  }
 0x54f   : > { %8601 = vmatpush2.bf16.msra.mxu1 %v21708_v49  ;;  %8561 = vmatprep.subr.bf16.mxu0 %v21713_v28  ;;  %v21770_v49 = vld [vmem:[%s22733_s2 + $0x60c] ss:$16 sps:$4 sm:$0xff]   ;;  %v21765_v28 = vld [vmem:[%s22733_s2 + $0x408] ss:$16 sps:$4 sm:$0xff]  }
 0x550   : > { %8602 = vmatprep.subr.bf16.mxu1 %v21716_v32  ;;  %v21768_v32 = vld [vmem:[%s22733_s2 + $0x608] ss:$16 sps:$4 sm:$0xff]  }
 0x552   : > { %8562 = vmatpush2.bf16.msra.mxu0 %v21711_v5  ;;  %v21773_v5 = vld [vmem:[%s22733_s2 + $0x5ec] ss:$16 sps:$4 sm:$0xff]  }
 0x553   : > { %8603 = vmatpush2.bf16.msra.mxu1 %v21714_v56  ;;  %8563 = vmatprep.subr.bf16.mxu0 %v21719_v50  ;;  %v21776_v56 = vld [vmem:[%s22733_s2 + $0x7ec] ss:$16 sps:$4 sm:$0xff]   ;;  %v21771_v50 = vld [vmem:[%s22733_s2 + $0x5e8] ss:$16 sps:$4 sm:$0xff]  }
 0x554   : > { %8604 = vmatprep.subr.bf16.mxu1 %v21722_v62  ;;  %v21774_v62 = vld [vmem:[%s22733_s2 + $0x7e8] ss:$16 sps:$4 sm:$0xff]  }
 0x556   : > { %8564 = vmatpush2.bf16.msra.mxu0 %v21717_v52  ;;  %v21779_v52 = vld [vmem:[%s22733_s2 + $0x5cc] ss:$16 sps:$4 sm:$0xff]  }
 0x557   : > { %8605 = vmatpush2.bf16.msra.mxu1 %v21720_v59  ;;  %8615 = vmatprep.subr.bf16.mxu0 %v21725_v38  ;;  %v21782_v59 = vld [vmem:[%s22733_s2 + $0x7cc] ss:$16 sps:$4 sm:$0xff]   ;;  %v21777_v38 = vld [vmem:[%s22733_s2 + $0x5c8] ss:$16 sps:$4 sm:$0xff]  }
 0x558   : > { %8656 = vmatprep.subr.bf16.mxu1 %v21728_v22  ;;  %v21780_v22 = vld [vmem:[%s22733_s2 + $0x7c8] ss:$16 sps:$4 sm:$0xff]  }
 0x559   : > { %v8321_v4 = vpop.f32.mrf.mxu0  ;;  %8566 = vmatmul.mubr.bf16.vlgmr.msra.gmra.mxu0 %v22849_v23 }
 0x55a   : > { %v8362_v2 = vpop.f32.mrf.mxu1  ;;  %8607 = vmatmul.mubr.bf16.vlgmr.msra.gmra.mxu1 %v22859_v29  ;;  %v8322_v15 = vadd.f32 %v8321_v4, %v23776_v0  ;;  %8616 = vmatpush1.bf16.msra.mxu0 %v21723_v27  ;;  %v21785_v27 = vld [vmem:[%s22733_s2 + $0x5ac] ss:$16 sps:$4 sm:$0xff]  }
 0x55b   : > { %8657 = vmatpush1.bf16.msra.mxu1 %v21726_v6  ;;  %v8323_v37 = vpop.f32.mrf.mxu0  ;;  %8617 = vmatprep.subr.bf16.mxu0 %v21731_v7  ;;  %v21788_v6 = vld [vmem:[%s22733_s2 + $0x7ac] ss:$16 sps:$4 sm:$0xff]   ;;  %v21783_v7 = vld [vmem:[%s22733_s2 + $0x5a8] ss:$16 sps:$4 sm:$0xff]  }
 0x55c   : > { %v8364_v8 = vpop.f32.mrf.mxu1  ;;  %8658 = vmatprep.subr.bf16.mxu1 %v21734_v3  ;;  %v23850_v10 = vadd.f32 %v8362_v2, %v8322_v15  ;;  %v8324_v23 = vadd.f32 %v8323_v37, %v23781_v47  ;;  %8647 = vmatprep.mubr.bf16.mxu0 %v22924_v17  ;;  %v21743_v17 = vld [vmem:[%s22733_s2 + $0x48c] ss:$16 sps:$4 sm:$0xff]   ;;  %v21741_v47 = vld [vmem:[%s22733_s2 + $0x488] ss:$16 sps:$4 sm:$0xff]  }
 0x55d   : > { %8688 = vmatprep.mubr.bf16.mxu1 %v22934_v24  ;;  %v8325_v29 = vpop.f32.mrf.mxu0  ;;  %v21746_v24 = vld [vmem:[%s22733_s2 + $0x68c] ss:$16 sps:$4 sm:$0xff]   ;;  %v21786_v3 = vld [vmem:[%s22733_s2 + $0x7a8] ss:$16 sps:$4 sm:$0xff]  }
 0x55e   : > { %v8366_v0 = vpop.f32.mrf.mxu1  ;;  %v23855_v11 = vadd.f32 %v8364_v8, %v8324_v23  ;;  %8618 = vmatpush1.bf16.msra.mxu0 %v21729_v57  ;;  %v21791_v4 = vld [vmem:[%s22733_s2 + $0x58c] ss:$16 sps:$4 sm:$0xff]   ;;  %v21789_v15 = vld [vmem:[%s22733_s2 + $0x588] ss:$16 sps:$4 sm:$0xff]  }
 0x55f   : > { %8659 = vmatpush1.bf16.msra.mxu1 %v21732_v33  ;;  %v8326_v26 = vpop.f32.mrf.mxu0  ;;  %8619 = vmatprep.subr.bf16.mxu0 %v21737_v9  ;;  %v21794_v2 = vld [vmem:[%s22733_s2 + $0x78c] ss:$16 sps:$4 sm:$0xff]   ;;  %v21792_v57 = vld [vmem:[%s22733_s2 + $0x788] ss:$16 sps:$4 sm:$0xff]  }
 0x560   : > { %v8367_v35 = vpop.f32.mrf.mxu1  ;;  %8660 = vmatprep.subr.bf16.mxu1 %v21740_v30  ;;  %v21797_v33 = vld [vmem:[%s22733_s2 + $0x56c] ss:$16 sps:$4 sm:$0xff]   ;;  %v21795_v8 = vld [vmem:[%s22733_s2 + $0x568] ss:$16 sps:$4 sm:$0xff]  }
 0x561   : > { %v21800_v37 = vld [vmem:[%s22733_s2 + $0x76c] ss:$16 sps:$4 sm:$0xff]   ;;  %v21798_v9 = vld [vmem:[%s22733_s2 + $0x768] ss:$16 sps:$4 sm:$0xff]  }
 0x562   : > { %8620 = vmatpush1.bf16.msra.mxu0 %v21735_v25  ;;  %v21803_v30 = vld [vmem:[%s22733_s2 + $0x54c] ss:$16 sps:$4 sm:$0xff]   ;;  %v21801_v29 = vld [vmem:[%s22733_s2 + $0x548] ss:$16 sps:$4 sm:$0xff]  }
 0x563   : > { %8661 = vmatpush1.bf16.msra.mxu1 %v21738_v41  ;;  %8621 = vmatprep.subr.bf16.mxu0 %v21743_v17  ;;  %v21806_v23 = vld [vmem:[%s22733_s2 + $0x74c] ss:$16 sps:$4 sm:$0xff]   ;;  %v21804_v0 = vld [vmem:[%s22733_s2 + $0x748] ss:$16 sps:$4 sm:$0xff]  }
 0x564   : > { %8662 = vmatprep.subr.bf16.mxu1 %v21746_v24  ;;  %v21809_v25 = vld [vmem:[%s22733_s2 + $0x52c] ss:$16 sps:$4 sm:$0xff]   ;;  %v21807_v26 = vld [vmem:[%s22733_s2 + $0x528] ss:$16 sps:$4 sm:$0xff]  }
 0x565   : > { %v21812_v41 = vld [vmem:[%s22733_s2 + $0x72c] ss:$16 sps:$4 sm:$0xff]   ;;  %v21810_v35 = vld [vmem:[%s22733_s2 + $0x728] ss:$16 sps:$4 sm:$0xff]  }
 0x566   : > { %8622 = vmatpush1.bf16.msra.mxu0 %v21741_v47  ;;  %v21815_v17 = vld [vmem:[%s22733_s2 + $0x50c] ss:$16 sps:$4 sm:$0xff]   ;;  %v21813_v47 = vld [vmem:[%s22733_s2 + $0x508] ss:$16 sps:$4 sm:$0xff]  }
 0x567   : > { %8663 = vmatpush1.bf16.msra.mxu1 %v21744_v39  ;;  %8623 = vmatprep.subr.bf16.mxu0 %v21749_v40  ;;  %v21818_v24 = vld [vmem:[%s22733_s2 + $0x70c] ss:$16 sps:$4 sm:$0xff]   ;;  %v21816_v39 = vld [vmem:[%s22733_s2 + $0x708] ss:$16 sps:$4 sm:$0xff]  }
 0x568   : > { %8664 = vmatprep.subr.bf16.mxu1 %v21752_v42  ;;  %v21821_v40 = vld [vmem:[%s22733_s2 + $0x8ec] ss:$16 sps:$4 sm:$0xff]  }
 0x569   : > { %v21824_v42 = vld [vmem:[%s22733_s2 + $0xaec] ss:$16 sps:$4 sm:$0xff]  }
 0x56a   : > { %8624 = vmatpush1.bf16.msra.mxu0 %v21747_v46  ;;  %v21819_v46 = vld [vmem:[%s22733_s2 + $0x8e8] ss:$16 sps:$4 sm:$0xff]  }
 0x56b   : > { %8665 = vmatpush1.bf16.msra.mxu1 %v21750_v43  ;;  %8625 = vmatprep.subr.bf16.mxu0 %v21755_v44  ;;  %v21822_v43 = vld [vmem:[%s22733_s2 + $0xae8] ss:$16 sps:$4 sm:$0xff]   ;;  %v21827_v44 = vld [vmem:[%s22733_s2 + $0x8cc] ss:$16 sps:$4 sm:$0xff]  }
 0x56c   : > { %8666 = vmatprep.subr.bf16.mxu1 %v21758_v45  ;;  %v21830_v45 = vld [vmem:[%s22733_s2 + $0xacc] ss:$16 sps:$4 sm:$0xff]  }
 0x56e   : > { %8626 = vmatpush1.bf16.msra.mxu0 %v21753_v31 }
 0x56f   : > { %8667 = vmatpush1.bf16.msra.mxu1 %v21756_v1  ;;  %8627 = vmatprep.subr.bf16.mxu0 %v21761_v16 }
 0x570   : > { %8668 = vmatprep.subr.bf16.mxu1 %v21764_v36  ;;  %v21825_v36 = vld [vmem:[%s22733_s2 + $0x8c8] ss:$16 sps:$4 sm:$0xff]  }
 0x572   : > { %8628 = vmatpush1.bf16.msra.mxu0 %v21759_v48  ;;  %v21828_v48 = vld [vmem:[%s22733_s2 + $0xac8] ss:$16 sps:$4 sm:$0xff]  }
 0x573   : > { %8669 = vmatpush1.bf16.msra.mxu1 %v21762_v51  ;;  %8629 = vmatprep.subr.bf16.mxu0 %v21767_v55 }
 0x574   : > { %8670 = vmatprep.subr.bf16.mxu1 %v21770_v49  ;;  %v21833_v49 = vld [vmem:[%s22733_s2 + $0x8ac] ss:$16 sps:$4 sm:$0xff]  }
 0x576   : > { %8630 = vmatpush1.bf16.msra.mxu0 %v21765_v28  ;;  %v21836_v28 = vld [vmem:[%s22733_s2 + $0xaac] ss:$16 sps:$4 sm:$0xff]  }
 0x577   : > { %8671 = vmatpush1.bf16.msra.mxu1 %v21768_v32  ;;  %8631 = vmatprep.subr.bf16.mxu0 %v21773_v5 }
 0x578   : > { %8672 = vmatprep.subr.bf16.mxu1 %v21776_v56  ;;  %v21831_v56 = vld [vmem:[%s22733_s2 + $0x8a8] ss:$16 sps:$4 sm:$0xff]  }
 0x57a   : > { %8632 = vmatpush2.bf16.msra.mxu0 %v21771_v50  ;;  %v21834_v50 = vld [vmem:[%s22733_s2 + $0xaa8] ss:$16 sps:$4 sm:$0xff]  }
 0x57b   : > { %8673 = vmatpush2.bf16.msra.mxu1 %v21774_v62  ;;  %8633 = vmatprep.subr.bf16.mxu0 %v21779_v52 }
 0x57c   : > { %8674 = vmatprep.subr.bf16.mxu1 %v21782_v59  ;;  %v21840_v59 = vld [vmem:[%s22733_s2 + $0xa88] ss:$16 sps:$4 sm:$0xff]  }
 0x57e   : > { %8634 = vmatpush2.bf16.msra.mxu0 %v21777_v38  ;;  %v21845_v38 = vld [vmem:[%s22733_s2 + $0x86c] ss:$16 sps:$4 sm:$0xff]  }
 0x57f   : > { %8675 = vmatpush2.bf16.msra.mxu1 %v21780_v22  ;;  %8635 = vmatprep.subr.bf16.mxu0 %v21785_v27  ;;  %v21848_v22 = vld [vmem:[%s22733_s2 + $0xa6c] ss:$16 sps:$4 sm:$0xff]   ;;  %v21843_v27 = vld [vmem:[%s22733_s2 + $0x868] ss:$16 sps:$4 sm:$0xff]  }
 0x580   : > { %8676 = vmatprep.subr.bf16.mxu1 %v21788_v6  ;;  %v21846_v6 = vld [vmem:[%s22733_s2 + $0xa68] ss:$16 sps:$4 sm:$0xff]  }
 0x582   : > { %8636 = vmatpush2.bf16.msra.mxu0 %v21783_v7  ;;  %v21851_v7 = vld [vmem:[%s22733_s2 + $0x84c] ss:$16 sps:$4 sm:$0xff]  }
 0x583   : > { %8677 = vmatpush2.bf16.msra.mxu1 %v21786_v3  ;;  %8637 = vmatprep.subr.bf16.mxu0 %v21791_v4  ;;  %v21854_v3 = vld [vmem:[%s22733_s2 + $0xa4c] ss:$16 sps:$4 sm:$0xff]   ;;  %v21849_v4 = vld [vmem:[%s22733_s2 + $0x848] ss:$16 sps:$4 sm:$0xff]  }
 0x584   : > { %8678 = vmatprep.subr.bf16.mxu1 %v21794_v2  ;;  %v21852_v2 = vld [vmem:[%s22733_s2 + $0xa48] ss:$16 sps:$4 sm:$0xff]  }
 0x586   : > { %8638 = vmatpush2.bf16.msra.mxu0 %v21789_v15  ;;  %v21857_v15 = vld [vmem:[%s22733_s2 + $0x82c] ss:$16 sps:$4 sm:$0xff]  }
 0x587   : > { %8679 = vmatpush2.bf16.msra.mxu1 %v21792_v57  ;;  %8639 = vmatprep.subr.bf16.mxu0 %v21797_v33  ;;  %v21860_v57 = vld [vmem:[%s22733_s2 + $0xa2c] ss:$16 sps:$4 sm:$0xff]   ;;  %v21855_v33 = vld [vmem:[%s22733_s2 + $0x828] ss:$16 sps:$4 sm:$0xff]  }
 0x588   : > { %8680 = vmatprep.subr.bf16.mxu1 %v21800_v37  ;;  %v21858_v37 = vld [vmem:[%s22733_s2 + $0xa28] ss:$16 sps:$4 sm:$0xff]  }
 0x58a   : > { %8640 = vmatpush2.bf16.msra.mxu0 %v21795_v8  ;;  %v21863_v8 = vld [vmem:[%s22733_s2 + $0x80c] ss:$16 sps:$4 sm:$0xff]  }
 0x58b   : > { %8681 = vmatpush2.bf16.msra.mxu1 %v21798_v9  ;;  %8641 = vmatprep.subr.bf16.mxu0 %v21803_v30  ;;  %v21866_v9 = vld [vmem:[%s22733_s2 + $0xa0c] ss:$16 sps:$4 sm:$0xff]   ;;  %v21861_v30 = vld [vmem:[%s22733_s2 + $0x808] ss:$16 sps:$4 sm:$0xff]  }
 0x58c   : > { %8682 = vmatprep.subr.bf16.mxu1 %v21806_v23  ;;  %v21864_v23 = vld [vmem:[%s22733_s2 + $0xa08] ss:$16 sps:$4 sm:$0xff]  }
 0x58e   : > { %8642 = vmatpush2.bf16.msra.mxu0 %v21801_v29  ;;  %v21869_v29 = vld [vmem:[%s22733_s2 + $0x9ec] ss:$16 sps:$4 sm:$0xff]  }
 0x58f   : > { %8683 = vmatpush2.bf16.msra.mxu1 %v21804_v0  ;;  %8643 = vmatprep.subr.bf16.mxu0 %v21809_v25  ;;  %v21872_v0 = vld [vmem:[%s22733_s2 + $0xbec] ss:$16 sps:$4 sm:$0xff]   ;;  %v21867_v25 = vld [vmem:[%s22733_s2 + $0x9e8] ss:$16 sps:$4 sm:$0xff]  }
 0x590   : > { %8684 = vmatprep.subr.bf16.mxu1 %v21812_v41  ;;  %v21870_v41 = vld [vmem:[%s22733_s2 + $0xbe8] ss:$16 sps:$4 sm:$0xff]  }
 0x592   : > { %8644 = vmatpush2.bf16.msra.mxu0 %v21807_v26  ;;  %v21875_v26 = vld [vmem:[%s22733_s2 + $0x9cc] ss:$16 sps:$4 sm:$0xff]  }
 0x593   : > { %8685 = vmatpush2.bf16.msra.mxu1 %v21810_v35  ;;  %8645 = vmatprep.subr.bf16.mxu0 %v21815_v17  ;;  %v21878_v35 = vld [vmem:[%s22733_s2 + $0xbcc] ss:$16 sps:$4 sm:$0xff]   ;;  %v21873_v17 = vld [vmem:[%s22733_s2 + $0x9c8] ss:$16 sps:$4 sm:$0xff]  }
 0x594   : > { %8686 = vmatprep.subr.bf16.mxu1 %v21818_v24  ;;  %v21876_v24 = vld [vmem:[%s22733_s2 + $0xbc8] ss:$16 sps:$4 sm:$0xff]  }
 0x596   : > { %8646 = vmatpush2.bf16.msra.mxu0 %v21813_v47  ;;  %v21881_v47 = vld [vmem:[%s22733_s2 + $0x9ac] ss:$16 sps:$4 sm:$0xff]  }
 0x597   : > { %8687 = vmatpush2.bf16.msra.mxu1 %v21816_v39  ;;  %8697 = vmatprep.subr.bf16.mxu0 %v21821_v40  ;;  %v21884_v39 = vld [vmem:[%s22733_s2 + $0xbac] ss:$16 sps:$4 sm:$0xff]   ;;  %v21879_v40 = vld [vmem:[%s22733_s2 + $0x9a8] ss:$16 sps:$4 sm:$0xff]  }
 0x598   : > { %8738 = vmatprep.subr.bf16.mxu1 %v21824_v42  ;;  %v21882_v42 = vld [vmem:[%s22733_s2 + $0xba8] ss:$16 sps:$4 sm:$0xff]  }
 0x599   : > { %v8403_v31 = vpop.f32.mrf.mxu0  ;;  %8648 = vmatmul.mubr.bf16.vlgmr.msra.gmra.mxu0 %v22918_v13 }
 0x59a   : > { %v8444_v1 = vpop.f32.mrf.mxu1  ;;  %8689 = vmatmul.mubr.bf16.vlgmr.msra.gmra.mxu1 %v22927_v19  ;;  %v8404_v16 = vadd.f32 %v8403_v31, %v23850_v10  ;;  %8698 = vmatpush1.bf16.msra.mxu0 %v21819_v46  ;;  %v21887_v46 = vld [vmem:[%s22733_s2 + $0x98c] ss:$16 sps:$4 sm:$0xff]  }
 0x59b   : > { %8739 = vmatpush1.bf16.msra.mxu1 %v21822_v43  ;;  %v8405_v51 = vpop.f32.mrf.mxu0  ;;  %8699 = vmatprep.subr.bf16.mxu0 %v21827_v44  ;;  %v21890_v43 = vld [vmem:[%s22733_s2 + $0xb8c] ss:$16 sps:$4 sm:$0xff]   ;;  %v21885_v44 = vld [vmem:[%s22733_s2 + $0x988] ss:$16 sps:$4 sm:$0xff]  }
 0x59c   : > { %v8446_v55 = vpop.f32.mrf.mxu1  ;;  %8740 = vmatprep.subr.bf16.mxu1 %v21830_v45  ;;  %v23924_v32 = vadd.f32 %v8444_v1, %v8404_v16  ;;  %v8406_v13 = vadd.f32 %v8405_v51, %v23855_v11  ;;  %8729 = vmatprep.mubr.bf16.mxu0 %v22993_v20  ;;  %v21839_v20 = vld [vmem:[%s22733_s2 + $0x88c] ss:$16 sps:$4 sm:$0xff]   ;;  %v21837_v11 = vld [vmem:[%s22733_s2 + $0x888] ss:$16 sps:$4 sm:$0xff]  }
 0x59d   : > { %8770 = vmatprep.mubr.bf16.mxu1 %v23004_v34  ;;  %v8407_v19 = vpop.f32.mrf.mxu0  ;;  %v21842_v34 = vld [vmem:[%s22733_s2 + $0xa8c] ss:$16 sps:$4 sm:$0xff]   ;;  %v21888_v45 = vld [vmem:[%s22733_s2 + $0xb88] ss:$16 sps:$4 sm:$0xff]  }
 0x59e   : > { %v8448_v10 = vpop.f32.mrf.mxu1  ;;  %v23929_v5 = vadd.f32 %v8446_v55, %v8406_v13  ;;  %8700 = vmatpush1.bf16.msra.mxu0 %v21825_v36  ;;  %v21893_v31 = vld [vmem:[%s22733_s2 + $0x96c] ss:$16 sps:$4 sm:$0xff]   ;;  %v21891_v16 = vld [vmem:[%s22733_s2 + $0x968] ss:$16 sps:$4 sm:$0xff]  }
 0x59f   : > { %8741 = vmatpush1.bf16.msra.mxu1 %v21828_v48  ;;  %v8408_v62 = vpop.f32.mrf.mxu0  ;;  %8701 = vmatprep.subr.bf16.mxu0 %v21833_v49  ;;  %v21896_v1 = vld [vmem:[%s22733_s2 + $0xb6c] ss:$16 sps:$4 sm:$0xff]   ;;  %v21894_v36 = vld [vmem:[%s22733_s2 + $0xb68] ss:$16 sps:$4 sm:$0xff]  }
 0x5a0   : > { %v8449_v52 = vpop.f32.mrf.mxu1  ;;  %8742 = vmatprep.subr.bf16.mxu1 %v21836_v28  ;;  %v21899_v48 = vld [vmem:[%s22733_s2 + $0x94c] ss:$16 sps:$4 sm:$0xff]   ;;  %v21897_v55 = vld [vmem:[%s22733_s2 + $0x948] ss:$16 sps:$4 sm:$0xff]  }
 0x5a1   : > { %v21902_v51 = vld [vmem:[%s22733_s2 + $0xb4c] ss:$16 sps:$4 sm:$0xff]   ;;  %v21900_v49 = vld [vmem:[%s22733_s2 + $0xb48] ss:$16 sps:$4 sm:$0xff]  }
 0x5a2   : > { %8702 = vmatpush1.bf16.msra.mxu0 %v21831_v56  ;;  %v21905_v28 = vld [vmem:[%s22733_s2 + $0x92c] ss:$16 sps:$4 sm:$0xff]   ;;  %v21903_v19 = vld [vmem:[%s22733_s2 + $0x928] ss:$16 sps:$4 sm:$0xff]  }
 0x5a3   : > { %8743 = vmatpush1.bf16.msra.mxu1 %v21834_v50  ;;  %8703 = vmatprep.subr.bf16.mxu0 %v21839_v20  ;;  %v21908_v13 = vld [vmem:[%s22733_s2 + $0xb2c] ss:$16 sps:$4 sm:$0xff]   ;;  %v21906_v10 = vld [vmem:[%s22733_s2 + $0xb28] ss:$16 sps:$4 sm:$0xff]  }
 0x5a4   : > { %8744 = vmatprep.subr.bf16.mxu1 %v21842_v34  ;;  %v21911_v56 = vld [vmem:[%s22733_s2 + $0x90c] ss:$16 sps:$4 sm:$0xff]   ;;  %v21909_v62 = vld [vmem:[%s22733_s2 + $0x908] ss:$16 sps:$4 sm:$0xff]  }
 0x5a5   : > { %v21914_v50 = vld [vmem:[%s22733_s2 + $0xb0c] ss:$16 sps:$4 sm:$0xff]   ;;  %v21912_v52 = vld [vmem:[%s22733_s2 + $0xb08] ss:$16 sps:$4 sm:$0xff]  }
 0x5a6   : > { %8704 = vmatpush1.bf16.msra.mxu0 %v21837_v11  ;;  %v21917_v20 = vld [vmem:[%s22733_s2 + $0xcec] ss:$16 sps:$4 sm:$0xff]   ;;  %v23988_v11 = vsub.s32 0, %v22835_v12 }
 0x5a7   : > { %8745 = vmatpush1.bf16.msra.mxu1 %v21840_v59  ;;  %8705 = vmatprep.subr.bf16.mxu0 %v21845_v38  ;;  %v21920_v34 = vld [vmem:[%s22733_s2 + $0xeec] ss:$16 sps:$4 sm:$0xff]   ;;  %v21915_v59 = vld [vmem:[%s22733_s2 + $0xce8] ss:$16 sps:$4 sm:$0xff]  }
 0x5a8   : > { %8746 = vmatprep.subr.bf16.mxu1 %v21848_v22  ;;  %v21918_v38 = vld [vmem:[%s22733_s2 + $0xee8] ss:$16 sps:$4 sm:$0xff]   ;;  %v23994_v22 = vld [vmem:[%s416_s21] sm:$0xf] }
 0x5aa   : > { %8706 = vmatpush1.bf16.msra.mxu0 %v21843_v27  ;;  %v21923_v27 = vld [vmem:[%s22733_s2 + $0xccc] ss:$16 sps:$4 sm:$0xff]  }
 0x5ab   : > { %8747 = vmatpush1.bf16.msra.mxu1 %v21846_v6  ;;  %8707 = vmatprep.subr.bf16.mxu0 %v21851_v7  ;;  %v21926_v6 = vld [vmem:[%s22733_s2 + $0xecc] ss:$16 sps:$4 sm:$0xff]   ;;  %v23999_v7 = vsub.s32 1, %v22835_v12 }
 0x5ac   : > { %8748 = vmatprep.subr.bf16.mxu1 %v21854_v3 }
 0x5ae   : > { %8708 = vmatpush1.bf16.msra.mxu0 %v21849_v4 }
 0x5af   : > { %8749 = vmatpush1.bf16.msra.mxu1 %v21852_v2  ;;  %8709 = vmatprep.subr.bf16.mxu0 %v21857_v15  ;;  %v8866_v15 = vrot.slane %v23994_v22, %v23988_v11 }
 0x5b0   : > { %8750 = vmatprep.subr.bf16.mxu1 %v21860_v57  ;;  %v21921_v57 = vld [vmem:[%s22733_s2 + $0xcc8] ss:$16 sps:$4 sm:$0xff]  }
 0x5b2   : > { %8710 = vmatpush1.bf16.msra.mxu0 %v21855_v33  ;;  %v21924_v33 = vld [vmem:[%s22733_s2 + $0xec8] ss:$16 sps:$4 sm:$0xff]  }
 0x5b3   : > { %8751 = vmatpush1.bf16.msra.mxu1 %v21858_v37  ;;  %8711 = vmatprep.subr.bf16.mxu0 %v21863_v8 }
 0x5b4   : > { %8752 = vmatprep.subr.bf16.mxu1 %v21866_v9  ;;  %v21929_v9 = vld [vmem:[%s22733_s2 + $0xcac] ss:$16 sps:$4 sm:$0xff]  }
 0x5b6   : > { %8712 = vmatpush1.bf16.msra.mxu0 %v21861_v30  ;;  %v21932_v30 = vld [vmem:[%s22733_s2 + $0xeac] ss:$16 sps:$4 sm:$0xff]  }
 0x5b7   : > { %8753 = vmatpush1.bf16.msra.mxu1 %v21864_v23  ;;  %8713 = vmatprep.subr.bf16.mxu0 %v21869_v29 }
 0x5b8   : > { %8754 = vmatprep.subr.bf16.mxu1 %v21872_v0 }
 0x5ba   : > { %8714 = vmatpush2.bf16.msra.mxu0 %v21867_v25 }
 0x5bb   : > { %8755 = vmatpush2.bf16.msra.mxu1 %v21870_v41  ;;  %8715 = vmatprep.subr.bf16.mxu0 %v21875_v26  ;;  %v21927_v41 = vld [vmem:[%s22733_s2 + $0xca8] ss:$16 sps:$4 sm:$0xff]  }
 0x5bc   : > { %8756 = vmatprep.subr.bf16.mxu1 %v21878_v35 }
 0x5be   : > { %8716 = vmatpush2.bf16.msra.mxu0 %v21873_v17  ;;  %v21938_v17 = vld [vmem:[%s22733_s2 + $0xe8c] ss:$16 sps:$4 sm:$0xff]  }
 0x5bf   : > { %8757 = vmatpush2.bf16.msra.mxu1 %v21876_v24  ;;  %8717 = vmatprep.subr.bf16.mxu0 %v21881_v47 }
 0x5c0   : > { %8758 = vmatprep.subr.bf16.mxu1 %v21884_v39 }
 0x5c2   : > { %8718 = vmatpush2.bf16.msra.mxu0 %v21879_v40  ;;  %v21933_v40 = vld [vmem:[%s22733_s2 + $0xc88] ss:$16 sps:$4 sm:$0xff]  }
 0x5c3   : > { %8759 = vmatpush2.bf16.msra.mxu1 %v21882_v42  ;;  %8719 = vmatprep.subr.bf16.mxu0 %v21887_v46  ;;  %v21936_v42 = vld [vmem:[%s22733_s2 + $0xe88] ss:$16 sps:$4 sm:$0xff]  }
 0x5c4   : > { %8760 = vmatprep.subr.bf16.mxu1 %v21890_v43 }
 0x5c6   : > { %8720 = vmatpush2.bf16.msra.mxu0 %v21885_v44  ;;  %v21941_v44 = vld [vmem:[%s22733_s2 + $0xc6c] ss:$16 sps:$4 sm:$0xff]  }
 0x5c7   : > { %8761 = vmatpush2.bf16.msra.mxu1 %v21888_v45  ;;  %8721 = vmatprep.subr.bf16.mxu0 %v21893_v31  ;;  %v21944_v45 = vld [vmem:[%s22733_s2 + $0xe6c] ss:$16 sps:$4 sm:$0xff]  }
 0x5c8   : > { %8762 = vmatprep.subr.bf16.mxu1 %v21896_v1 }
 0x5ca   : > { %8722 = vmatpush2.bf16.msra.mxu0 %v21891_v16  ;;  %v21939_v16 = vld [vmem:[%s22733_s2 + $0xc68] ss:$16 sps:$4 sm:$0xff]  }
 0x5cb   : > { %8763 = vmatpush2.bf16.msra.mxu1 %v21894_v36  ;;  %8723 = vmatprep.subr.bf16.mxu0 %v21899_v48  ;;  %v21942_v36 = vld [vmem:[%s22733_s2 + $0xe68] ss:$16 sps:$4 sm:$0xff]  }
 0x5cc   : > { %8764 = vmatprep.subr.bf16.mxu1 %v21902_v51 }
 0x5ce   : > { %8724 = vmatpush2.bf16.msra.mxu0 %v21897_v55  ;;  %v21947_v55 = vld [vmem:[%s22733_s2 + $0xc4c] ss:$16 sps:$4 sm:$0xff]  }
 0x5cf   : > { %8765 = vmatpush2.bf16.msra.mxu1 %v21900_v49  ;;  %8725 = vmatprep.subr.bf16.mxu0 %v21905_v28  ;;  %v21950_v49 = vld [vmem:[%s22733_s2 + $0xe4c] ss:$16 sps:$4 sm:$0xff]  }
 0x5d0   : > { %8766 = vmatprep.subr.bf16.mxu1 %v21908_v13 }
 0x5d2   : > { %8726 = vmatpush2.bf16.msra.mxu0 %v21903_v19  ;;  %v21945_v19 = vld [vmem:[%s22733_s2 + $0xc48] ss:$16 sps:$4 sm:$0xff]  }
 0x5d3   : > { %8767 = vmatpush2.bf16.msra.mxu1 %v21906_v10  ;;  %8727 = vmatprep.subr.bf16.mxu0 %v21911_v56  ;;  %v21948_v10 = vld [vmem:[%s22733_s2 + $0xe48] ss:$16 sps:$4 sm:$0xff]  }
 0x5d4   : > { %8768 = vmatprep.subr.bf16.mxu1 %v21914_v50 }
 0x5d6   : > { %8728 = vmatpush2.bf16.msra.mxu0 %v21909_v62  ;;  %v21953_v62 = vld [vmem:[%s22733_s2 + $0xc2c] ss:$16 sps:$4 sm:$0xff]  }
 0x5d7   : > { %8769 = vmatpush2.bf16.msra.mxu1 %v21912_v52  ;;  %8779 = vmatprep.subr.bf16.mxu0 %v21917_v20  ;;  %v21956_v52 = vld [vmem:[%s22733_s2 + $0xe2c] ss:$16 sps:$4 sm:$0xff]  }
 0x5d8   : > { %8820 = vmatprep.subr.bf16.mxu1 %v21920_v34 }
 0x5d9   : > { %v8485_v3 = vpop.f32.mrf.mxu0  ;;  %8730 = vmatmul.mubr.bf16.vlgmr.msra.gmra.mxu0 %v22984_v14 }
 0x5da   : > { %v8526_v4 = vpop.f32.mrf.mxu1  ;;  %8771 = vmatmul.mubr.bf16.vlgmr.msra.gmra.mxu1 %v22996_v21  ;;  %v8486_v2 = vadd.f32 %v8485_v3, %v23924_v32  ;;  %8780 = vmatpush1.bf16.msra.mxu0 %v21915_v59  ;;  %v8870_v32 = vrot.slane %v23994_v22, %v23999_v7  ;;  %v21951_v59 = vld [vmem:[%s22733_s2 + $0xc28] ss:$16 sps:$4 sm:$0xff]   ;;  %v21959_v3 = vld [vmem:[%s22733_s2 + $0xc0c] ss:$16 sps:$4 sm:$0xff]  }
 0x5db   : > { %8821 = vmatpush1.bf16.msra.mxu1 %v21918_v38  ;;  %v8487_v37 = vpop.f32.mrf.mxu0  ;;  %8781 = vmatprep.subr.bf16.mxu0 %v21923_v27  ;;  %v21954_v38 = vld [vmem:[%s22733_s2 + $0xe28] ss:$16 sps:$4 sm:$0xff]  }
 0x5dc   : > { %v8528_v8 = vpop.f32.mrf.mxu1  ;;  %8822 = vmatprep.subr.bf16.mxu1 %v21926_v6  ;;  %v8527_v14 = vadd.f32 %v8526_v4, %v8486_v2  ;;  %v8488_v21 = vadd.f32 %v8487_v37, %v23929_v5  ;;  %8811 = vmatprep.mubr.bf16.mxu0 %v23076_v60  ;;  %v21930_v5 = vld [vmem:[%s22733_s2 + $0xea8] ss:$16 sps:$4 sm:$0xff]   ;;  %v21935_v60 = vld [vmem:[%s22733_s2 + $0xc8c] ss:$16 sps:$4 sm:$0xff]  }
 0x5dd   : > { %8852 = vmatprep.mubr.bf16.mxu1 %v23080_v61  ;;  %v8489_v23 = vpop.f32.mrf.mxu0  ;;  %v21962_v4 = vld [vmem:[%s22733_s2 + $0xe0c] ss:$16 sps:$4 sm:$0xff]  }
 0x5de   : > { %v8530_v29 = vpop.f32.mrf.mxu1  ;;  %v8883_v0 = vadd.f32 %v8866_v15, %v8527_v14  ;;  %v8529_v25 = vadd.f32 %v8528_v8, %v8488_v21  ;;  %8782 = vmatpush1.bf16.msra.mxu0 %v21921_v57  ;;  %v21957_v57 = vld [vmem:[%s22733_s2 + $0xc08] ss:$16 sps:$4 sm:$0xff]  }
 0x5df   : > { %8823 = vmatpush1.bf16.msra.mxu1 %v21924_v33  ;;  %v8490_v26 = vpop.f32.mrf.mxu0  ;;  %8783 = vmatprep.subr.bf16.mxu0 %v21929_v9  ;;  %v21960_v33 = vld [vmem:[%s22733_s2 + $0xe08] ss:$16 sps:$4 sm:$0xff]   ;;  %v21965_v9 = vld [vmem:[%s22733_s2 + $0xdec] ss:$16 sps:$4 sm:$0xff]  }
 0x5e0   : > { %v8531_v35 = vpop.f32.mrf.mxu1  ;;  %8824 = vmatprep.subr.bf16.mxu1 %v21932_v30  ;;  %v8889_v61 = vsel %vm8888_vm5, %v8883_v0, 0.0  ;;  %v8884_v24 = vadd.f32 %v8870_v32, %v8529_v25  ;;  %v21968_v30 = vld [vmem:[%s22733_s2 + $0xfec] ss:$16 sps:$4 sm:$0xff]   ;;  %v21963_v29 = vld [vmem:[%s22733_s2 + $0xde8] ss:$16 sps:$4 sm:$0xff]  }
 0x5e1   : > { %v8890_v47 = vrot.slane %v8889_v61, 4  ;;  %v21971_v25 = vld [vmem:[%s22733_s2 + $0xdcc] ss:$16 sps:$4 sm:$0xff]  }
 0x5e2   : > { %v8896_v39 = vsel %vm8888_vm5, %v8884_v24, 0.0  ;;  %8784 = vmatpush1.bf16.msra.mxu0 %v21927_v41  ;;  %v21974_v41 = vld [vmem:[%s22733_s2 + $0xfcc] ss:$16 sps:$4 sm:$0xff]  }
 0x5e3   : > { %8825 = vmatpush1.bf16.msra.mxu1 %v21930_v5  ;;  %v8891_v46 = vadd.f32 %v8890_v47, %v8889_v61  ;;  %v8897_v43 = vrot.slane %v8896_v39, 4  ;;  %8785 = vmatprep.subr.bf16.mxu0 %v21935_v60  ;;  %v21972_v61 = vld [vmem:[%s22733_s2 + $0xfc8] ss:$16 sps:$4 sm:$0xff]   ;;  %v21980_v47 = vld [vmem:[%s22733_s2 + $0xfac] ss:$16 sps:$4 sm:$0xff]  }
 0x5e4   : > { %8826 = vmatprep.subr.bf16.mxu1 %v21938_v17  ;;  %v21969_v17 = vld [vmem:[%s22733_s2 + $0xdc8] ss:$16 sps:$4 sm:$0xff]  }
 0x5e5   : > { %v8892_v31 = vrot.slane %v8891_v46, 2  ;;  %v8898_v1 = vadd.f32 %v8897_v43, %v8896_v39  ;;  %v21975_v43 = vld [vmem:[%s22733_s2 + $0xda8] ss:$16 sps:$4 sm:$0xff]  }
 0x5e6   : > { %8786 = vmatpush1.bf16.msra.mxu0 %v21933_v40 }
 0x5e7   : > { %8827 = vmatpush1.bf16.msra.mxu1 %v21936_v42  ;;  %v8893_v48 = vadd.f32 %v8892_v31, %v8891_v46  ;;  %v8899_v51 = vrot.slane %v8898_v1, 2  ;;  %8787 = vmatprep.subr.bf16.mxu0 %v21941_v44  ;;  %v21978_v44 = vld [vmem:[%s22733_s2 + $0xfa8] ss:$16 sps:$4 sm:$0xff]   ;;  %v21986_v31 = vld [vmem:[%s22733_s2 + $0xf8c] ss:$16 sps:$4 sm:$0xff]  }
 0x5e8   : > { %8828 = vmatprep.subr.bf16.mxu1 %v21944_v45  ;;  %v21983_v45 = vld [vmem:[%s22733_s2 + $0xd8c] ss:$16 sps:$4 sm:$0xff]  }
 0x5e9   : > { %v8894_v28 = vrot.slane %v8893_v48, 1  ;;  %v8900_v13 = vadd.f32 %v8899_v51, %v8898_v1 }
 0x5ea   : > { %8788 = vmatpush1.bf16.msra.mxu0 %v21939_v16 }
 0x5eb   : > { %8829 = vmatpush1.bf16.msra.mxu1 %v21942_v36  ;;  %v8895_v56 = vadd.f32 %v8894_v28, %v8893_v48  ;;  %v8901_v50 = vrot.slane %v8900_v13, 1  ;;  %8789 = vmatprep.subr.bf16.mxu0 %v21947_v55  ;;  %v21981_v36 = vld [vmem:[%s22733_s2 + $0xd88] ss:$16 sps:$4 sm:$0xff]   ;;  %v21992_v28 = vld [vmem:[%s22733_s2 + $0xf6c] ss:$16 sps:$4 sm:$0xff]  }
 0x5ec   : > { %8830 = vmatprep.subr.bf16.mxu1 %v21950_v49  ;;  %v21984_v55 = vld [vmem:[%s22733_s2 + $0xf88] ss:$16 sps:$4 sm:$0xff]   ;;  %v21989_v49 = vld [vmem:[%s22733_s2 + $0xd6c] ss:$16 sps:$4 sm:$0xff]  }
 0x5ed   : > { %v8918_v20 = vmul.f32 0.5, %v8895_v56  ;;  %v8902_v34 = vadd.f32 %v8901_v50, %v8900_v13  ;;  %v21995_v56 = vld [vmem:[%s22733_s2 + $0xd4c] ss:$16 sps:$4 sm:$0xff]  }
 0x5ee   : > { %8790 = vmatpush1.bf16.msra.mxu0 %v21945_v19  ;;  %v21987_v19 = vld [vmem:[%s22733_s2 + $0xd68] ss:$16 sps:$4 sm:$0xff]   ;;  %v21998_v50 = vld [vmem:[%s22733_s2 + $0xf4c] ss:$16 sps:$4 sm:$0xff]  }
 0x5ef   : > { %8831 = vmatpush1.bf16.msra.mxu1 %v21948_v10  ;;  %v24035_v27 = vsub.f32 %v8883_v0, %v8918_v20  ;;  %v8919_v6 = vmul.f32 0.5, %v8902_v34  ;;  %8791 = vmatprep.subr.bf16.mxu0 %v21953_v62  ;;  %v21966_v0 = vld [vmem:[%s22733_s2 + $0xfe8] ss:$16 sps:$4 sm:$0xff]   ;;  %v22001_v20 = vld [vmem:[%s22733_s2 + $0xd2c] ss:$16 sps:$4 sm:$0xff]  }
 0x5f0   : > { %8832 = vmatprep.subr.bf16.mxu1 %v21956_v52  ;;  %v21990_v10 = vld [vmem:[%s22733_s2 + $0xf68] ss:$16 sps:$4 sm:$0xff]   ;;  %v22004_v34 = vld [vmem:[%s22733_s2 + $0xf2c] ss:$16 sps:$4 sm:$0xff]  }
 0x5f1   : > { %v8926_v2 = vmul.f32 %v24035_v27, %v24035_v27  ;;  %v24041_v15 = vsub.f32 %v8884_v24, %v8919_v6  ;;  %v21977_v24 = vld [vmem:[%s22733_s2 + $0xdac] ss:$16 sps:$4 sm:$0xff]   ;;  %v21993_v62 = vld [vmem:[%s22733_s2 + $0xd48] ss:$16 sps:$4 sm:$0xff]  }
 0x5f2   : > { %8792 = vmatpush1.bf16.msra.mxu0 %v21951_v59  ;;  %v21996_v52 = vld [vmem:[%s22733_s2 + $0xf48] ss:$16 sps:$4 sm:$0xff]   ;;  %v22007_v6 = vld [vmem:[%s22733_s2 + $0xd0c] ss:$16 sps:$4 sm:$0xff]  }
 0x5f3   : > { %8833 = vmatpush1.bf16.msra.mxu1 %v21954_v38  ;;  %v8930_v37 = vsel %vm8888_vm5, %v8926_v2, 0.0  ;;  %v8927_v8 = vmul.f32 %v24041_v15, %v24041_v15  ;;  %8793 = vmatprep.subr.bf16.mxu0 %v21959_v3  ;;  %v21999_v59 = vld [vmem:[%s22733_s2 + $0xd28] ss:$16 sps:$4 sm:$0xff]   ;;  %v22010_v3 = vld [vmem:[%s22733_s2 + $0xf0c] ss:$16 sps:$4 sm:$0xff]  }
 0x5f4   : > { %8834 = vmatprep.subr.bf16.mxu1 %v21962_v4  ;;  %v8931_v14 = vrot.slane %v8930_v37, 4  ;;  %v22002_v38 = vld [vmem:[%s22733_s2 + $0xf28] ss:$16 sps:$4 sm:$0xff]  }
 0x5f5   : > { %v8937_v21 = vsel %vm8888_vm5, %v8927_v8, 0.0 }
 0x5f6   : > { %v8932_v32 = vadd.f32 %v8931_v14, %v8930_v37  ;;  %v8938_v23 = vrot.slane %v8937_v21, 4  ;;  %8794 = vmatpush1.bf16.msra.mxu0 %v21957_v57  ;;  %v22005_v57 = vld [vmem:[%s22733_s2 + $0xd08] ss:$16 sps:$4 sm:$0xff]  }
 0x5f7   : > { %8835 = vmatpush1.bf16.msra.mxu1 %v21960_v33  ;;  %8795 = vmatprep.subr.bf16.mxu0 %v21965_v9  ;;  %v22008_v33 = vld [vmem:[%s22733_s2 + $0xf08] ss:$16 sps:$4 sm:$0xff]  }
 0x5f8   : > { %8836 = vmatprep.subr.bf16.mxu1 %v21968_v30  ;;  %v8933_v5 = vrot.slane %v8932_v32, 2  ;;  %v8939_v26 = vadd.f32 %v8938_v23, %v8937_v21 }
 0x5fa   : > { %v8934_v35 = vadd.f32 %v8933_v5, %v8932_v32  ;;  %v8940_v60 = vrot.slane %v8939_v26, 2  ;;  %8796 = vmatpush2.bf16.msra.mxu0 %v21963_v29 }
 0x5fb   : > { %8837 = vmatpush2.bf16.msra.mxu1 %v21966_v0  ;;  %8797 = vmatprep.subr.bf16.mxu0 %v21971_v25 }
 0x5fc   : > { %8838 = vmatprep.subr.bf16.mxu1 %v21974_v41  ;;  %v8935_v39 = vrot.slane %v8934_v35, 1  ;;  %v8941_v40 = vadd.f32 %v8940_v60, %v8939_v26 }
 0x5fe   : > { %v8936_v42 = vadd.f32 %v8935_v39, %v8934_v35  ;;  %v8942_v46 = vrot.slane %v8941_v40, 1  ;;  %8798 = vmatpush2.bf16.msra.mxu0 %v21969_v17 }
 0x5ff   : > { %8839 = vmatpush2.bf16.msra.mxu1 %v21972_v61  ;;  %8799 = vmatprep.subr.bf16.mxu0 %v21977_v24 }
 0x600   : > { %8840 = vmatprep.subr.bf16.mxu1 %v21980_v47  ;;  %v8958_v1 = vmul.f32 0.5, %v8936_v42  ;;  %v8943_v16 = vadd.f32 %v8942_v46, %v8941_v40 }
 0x602   : > { %v8962_v48 = vadd.f32 1e-05, %v8958_v1  ;;  %v8959_v51 = vmul.f32 0.5, %v8943_v16  ;;  %8800 = vmatpush2.bf16.msra.mxu0 %v21975_v43 }
 0x603   : > { %8841 = vmatpush2.bf16.msra.mxu1 %v21978_v44  ;;  %8801 = vmatprep.subr.bf16.mxu0 %v21983_v45 }
 0x604   : > { %8842 = vmatprep.subr.bf16.mxu1 %v21986_v31  ;;  %22011 = vrsqrt.f32 %v8962_v48  ;;  %v8963_v13 = vadd.f32 1e-05, %v8959_v51 }
 0x606   : > { %22013 = vrsqrt.f32 %v8963_v13  ;;  %8802 = vmatpush2.bf16.msra.mxu0 %v21981_v36 }
 0x607   : > { %8843 = vmatpush2.bf16.msra.mxu1 %v21984_v55  ;;  %8803 = vmatprep.subr.bf16.mxu0 %v21989_v49  ;;  %v8873_v49 = vsub.s32 2, %v22835_v12 }
 0x608   : > { %8844 = vmatprep.subr.bf16.mxu1 %v21992_v28  ;;  %v8877_v28 = vsub.s32 3, %v22835_v12 }
 0x60a   : > { %8804 = vmatpush2.bf16.msra.mxu0 %v21987_v19 }
 0x60b   : > { %8845 = vmatpush2.bf16.msra.mxu1 %v21990_v10  ;;  %8805 = vmatprep.subr.bf16.mxu0 %v21995_v56 }
 0x60c   : > { %8846 = vmatprep.subr.bf16.mxu1 %v21998_v50  ;;  %v8874_v50 = vrot.slane %v23994_v22, %v8873_v49 }
 0x60e   : > { %8806 = vmatpush2.bf16.msra.mxu0 %v21993_v62 }
 0x60f   : > { %8847 = vmatpush2.bf16.msra.mxu1 %v21996_v52  ;;  %8807 = vmatprep.subr.bf16.mxu0 %v22001_v20 }
 0x610   : > { %8848 = vmatprep.subr.bf16.mxu1 %v22004_v34 }
 0x611   : > { %v22012_v4 = vpop.eup %22011 }
 0x612   : > { %v8970_v2 = vmul.f32 %v22012_v4, %v24035_v27  ;;  %8808 = vmatpush2.bf16.msra.mxu0 %v21999_v59  ;;  %v8878_v59 = vrot.slane %v23994_v22, %v8877_v28 }
 0x613   : > { %8849 = vmatpush2.bf16.msra.mxu1 %v22002_v38  ;;  %v22014_v37 = vpop.eup %22013  ;;  %8809 = vmatprep.subr.bf16.mxu0 %v22007_v6 }
 0x614   : > { %8850 = vmatprep.subr.bf16.mxu1 %v22010_v3  ;;  %v8971_v8 = vmul.f32 %v22014_v37, %v24041_v15  ;;  %v8974_v9 = vmax.f32 %v8970_v2, 0.0 }
 0x616   : > { %v8975_v30 = vmax.f32 %v8971_v8, 0.0  ;;  %8810 = vmatpush2.bf16.msra.mxu0 %v22005_v57 }
 0x617   : > { %8851 = vmatpush2.bf16.msra.mxu1 %v22008_v33 }
 0x618   : > { %v24083_v14 = vcombine.low %v8974_v9, %v8975_v30 }
 0x619   : > { %v8567_v21 = vpop.f32.mrf.mxu0  ;;  %8812 = vmatmul.mubr.bf16.vlgmr.msra.gmra.mxu0 %v23064_v53 }
 0x61a   : > { %v8608_v32 = vpop.f32.mrf.mxu1  ;;  %8853 = vmatmul.mubr.bf16.vlgmr.msra.gmra.mxu1 %v23067_v54  ;;  %v8568_v27 = vadd.f32 %v8567_v21, %v23702_v58 }
 0x61b   : > { %v8569_v23 = vpop.f32.mrf.mxu0 }
 0x61c   : > { %v8610_v29 = vpop.f32.mrf.mxu1  ;;  %v8609_v0 = vadd.f32 %v8608_v32, %v8568_v27  ;;  %v8570_v25 = vadd.f32 %v8569_v23, %v23707_v63 }
 0x61d   : > { %v8571_v15 = vpop.f32.mrf.mxu0 }
 0x61e   : > { %v8612_v41 = vpop.f32.mrf.mxu1  ;;  %v8611_v5 = vadd.f32 %v8610_v29, %v8570_v25 }
 0x61f   : > { %v8572_v26 = vpop.f32.mrf.mxu0 }
 0x620   : > { %v8613_v35 = vpop.f32.mrf.mxu1 }
 0x659   : > { %v8649_v60 = vpop.f32.mrf.mxu0 }
 0x65a   : > { %v8690_v17 = vpop.f32.mrf.mxu1  ;;  %v8650_v61 = vadd.f32 %v8649_v60, %v8609_v0 }
 0x65b   : > { %v8651_v24 = vpop.f32.mrf.mxu0 }
 0x65c   : > { %v8692_v47 = vpop.f32.mrf.mxu1  ;;  %v8691_v53 = vadd.f32 %v8690_v17, %v8650_v61  ;;  %v8652_v39 = vadd.f32 %v8651_v24, %v8611_v5 }
 0x65d   : > { %v8653_v54 = vpop.f32.mrf.mxu0 }
 0x65e   : > { %v8694_v40 = vpop.f32.mrf.mxu1  ;;  %v8693_v58 = vadd.f32 %v8692_v47, %v8652_v39 }
 0x65f   : > { %v8654_v42 = vpop.f32.mrf.mxu0 }
 0x660   : > { %v8695_v46 = vpop.f32.mrf.mxu1 }
 0x699   : > { %v8731_v43 = vpop.f32.mrf.mxu0 }
 0x69a   : > { %v8772_v44 = vpop.f32.mrf.mxu1  ;;  %v8732_v63 = vadd.f32 %v8731_v43, %v8691_v53 }
 0x69b   : > { %v8733_v45 = vpop.f32.mrf.mxu0 }
 0x69c   : > { %v8774_v31 = vpop.f32.mrf.mxu1  ;;  %v8773_v1 = vadd.f32 %v8772_v44, %v8732_v63  ;;  %v8734_v55 = vadd.f32 %v8733_v45, %v8693_v58 }
 0x69d   : > { %v8735_v16 = vpop.f32.mrf.mxu0 }
 0x69e   : > { %v8776_v36 = vpop.f32.mrf.mxu1  ;;  %v8775_v10 = vadd.f32 %v8774_v31, %v8734_v55 }
 0x69f   : > { %v8736_v48 = vpop.f32.mrf.mxu0 }
 0x6a0   : > { %v8777_v51 = vpop.f32.mrf.mxu1 }
 0x6d9   : > { %v8813_v13 = vpop.f32.mrf.mxu0 }
 0x6da   : > { %v8854_v19 = vpop.f32.mrf.mxu1  ;;  %v8814_v56 = vadd.f32 %v8813_v13, %v8773_v1 }
 0x6db   : > { %v8815_v62 = vpop.f32.mrf.mxu0 }
 0x6dc   : > { %v8856_v52 = vpop.f32.mrf.mxu1  ;;  %v8855_v20 = vadd.f32 %v8854_v19, %v8814_v56  ;;  %v8816_v34 = vadd.f32 %v8815_v62, %v8775_v10  ;;  %v8990_v62 = vrot.slane %v24083_v14, %v22843_v18 }
 0x6dd   : > { %v8817_v38 = vpop.f32.mrf.mxu0 }
 0x6de   : > { %v8858_v6 = vpop.f32.mrf.mxu1  ;;  %v8885_v3 = vadd.f32 %v8874_v50, %v8855_v20  ;;  %v8857_v4 = vadd.f32 %v8856_v52, %v8816_v34 }
 0x6df   : > { %v8818_v2 = vpop.f32.mrf.mxu0 }
 0x6e0   : > { %v8859_v57 = vpop.f32.mrf.mxu1  ;;  %v8903_v33 = vsel %vm8888_vm5, %v8885_v3, 0.0  ;;  %v8886_v37 = vadd.f32 %v8878_v59, %v8857_v4 }
 0x6e1   : > { %v8904_v8 = vrot.slane %v8903_v33, 4 }
 0x6e2   : > { %v8910_v9 = vsel %vm8888_vm5, %v8886_v37, 0.0 }
 0x6e3   : > { %v8905_v30 = vadd.f32 %v8904_v8, %v8903_v33  ;;  %v8911_v21 = vrot.slane %v8910_v9, 4 }
 0x6e5   : > { %v8906_v32 = vrot.slane %v8905_v30, 2  ;;  %v8912_v27 = vadd.f32 %v8911_v21, %v8910_v9 }
 0x6e7   : > { %v8907_v23 = vadd.f32 %v8906_v32, %v8905_v30  ;;  %v8913_v29 = vrot.slane %v8912_v27, 2 }
 0x6e9   : > { %v8908_v0 = vrot.slane %v8907_v23, 1  ;;  %v8914_v22 = vadd.f32 %v8913_v29, %v8912_v27 }
 0x6eb   : > { %v8909_v25 = vadd.f32 %v8908_v0, %v8907_v23  ;;  %v8915_v15 = vrot.slane %v8914_v22, 1 }
 0x6ed   : > { %v8920_v41 = vmul.f32 0.5, %v8909_v25  ;;  %v8916_v5 = vadd.f32 %v8915_v15, %v8914_v22 }
 0x6ef   : > { %v8924_v26 = vsub.f32 %v8885_v3, %v8920_v41  ;;  %v8921_v35 = vmul.f32 0.5, %v8916_v5 }
 0x6f1   : > { %v8928_v60 = vmul.f32 %v8924_v26, %v8924_v26  ;;  %v8925_v17 = vsub.f32 %v8886_v37, %v8921_v35 }
 0x6f3   : > { %v8944_v61 = vsel %vm8888_vm5, %v8928_v60, 0.0  ;;  %v8929_v24 = vmul.f32 %v8925_v17, %v8925_v17 }
 0x6f4   : > { %v8945_v47 = vrot.slane %v8944_v61, 4 }
 0x6f5   : > { %v8951_v53 = vsel %vm8888_vm5, %v8929_v24, 0.0 }
 0x6f6   : > { %v8946_v39 = vadd.f32 %v8945_v47, %v8944_v61  ;;  %v8952_v54 = vrot.slane %v8951_v53, 4 }
 0x6f8   : > { %v8947_v40 = vrot.slane %v8946_v39, 2  ;;  %v8953_v58 = vadd.f32 %v8952_v54, %v8951_v53 }
 0x6fa   : > { %v8948_v42 = vadd.f32 %v8947_v40, %v8946_v39  ;;  %v8954_v46 = vrot.slane %v8953_v58, 2 }
 0x6fc   : > { %v8949_v43 = vrot.slane %v8948_v42, 1  ;;  %v8955_v44 = vadd.f32 %v8954_v46, %v8953_v58 }
 0x6fe   : > { %v8950_v63 = vadd.f32 %v8949_v43, %v8948_v42  ;;  %v8956_v45 = vrot.slane %v8955_v44, 1 }
 0x700   : > { %v8960_v31 = vmul.f32 0.5, %v8950_v63  ;;  %v8957_v1 = vadd.f32 %v8956_v45, %v8955_v44 }
 0x702   : > { %v8964_v16 = vadd.f32 1e-05, %v8960_v31  ;;  %v8961_v36 = vmul.f32 0.5, %v8957_v1 }
 0x704   : > { %22015 = vrsqrt.f32 %v8964_v16  ;;  %v8965_v48 = vadd.f32 1e-05, %v8961_v36 }
 0x706   : > { %22017 = vrsqrt.f32 %v8965_v48 }
 0x711   : > { %v22016_v51 = vpop.eup %22015 }
 0x712   : > { %v8972_v55 = vmul.f32 %v22016_v51, %v8924_v26 }
 0x713   : > { %v22018_v13 = vpop.eup %22017 }
 0x714   : > { %v8973_v19 = vmul.f32 %v22018_v13, %v8925_v17  ;;  %v8976_v10 = vmax.f32 %v8972_v55, 0.0 }
 0x716   : > { %v8977_v56 = vmax.f32 %v8973_v19, 0.0 }
 0x718   : > { %v8983_v50 = vcombine.low %v8976_v10, %v8977_v56 }
 0x71a   : > { %v8997_v52 = vrot.slane %v8983_v50, %v22843_v18  ;;  %9008 = sbr.rel (%p19158_p5) target bundleno = 3563 (0xdeb), region = 96 }
 0x71c   : > { %v8998_v20 = vcombine.low %v8990_v62, %v8997_v52 }
 0x71e   : > { %9004 = vst [vmem:[%s9003_s6] sm:$0xff] %v8998_v20 }
 0x71f   : > { %v9173_v34 = vld [vmem:[#allocation10 + $0x1c0] sm:$0xff]  ;;  %vm17964_vm6 = vcmask 1024  }
 0x720   : > { %v9177_v59 = vld [vmem:[#allocation10 + $0x1e0] sm:$0xff] }
 0x721   : > { %v9301_v38 = vld [vmem:[#allocation10 + $0x5c0] sm:$0xff]  ;;  %v19216_v6 = vcombine.high %v9173_v34, %v9177_v59  ;;  %v19215_v4 = vcombine.low %v9173_v34, %v9177_v59 }
 0x722   : > { %v9305_v3 = vld [vmem:[#allocation10 + $0x5e0] sm:$0xff] }
 0x723   : > { %v9165_v2 = vld [vmem:[#allocation10 + $0x180] sm:$0xff]  ;;  %v19344_v33 = vcombine.high %v9301_v38, %v9305_v3  ;;  %v19343_v37 = vcombine.low %v9301_v38, %v9305_v3  ;;  %15303 = vmatprep.subr.bf16.mxu0 %v19216_v6 }
 0x724   : > { %v9169_v57 = vld [vmem:[#allocation10 + $0x1a0] sm:$0xff]  ;;  %15304 = vmatpush1.bf16.msra.mxu0 %v19215_v4 }
 0x725   : > { %v19208_v8 = vcombine.high %v9165_v2, %v9169_v57  ;;  %v9293_v14 = vld [vmem:[#allocation10 + $0x580] sm:$0xff]  ;;  %15344 = vmatprep.subr.bf16.mxu1 %v19344_v33  ;;  %v19207_v29 = vcombine.low %v9165_v2, %v9169_v57  ;;  %v9009_v56 = vld [vmem:[#allocation3] sm:$0xff] }
 0x726   : > { %v9297_v9 = vld [vmem:[#allocation10 + $0x5a0] sm:$0xff]  ;;  %15345 = vmatpush1.bf16.msra.mxu1 %v19343_v37  ;;  %v24107_v20 = vrot.slane %v9009_v56, %v22843_v18  ;;  %v9017_v34 = vcombine.high %v9009_v56, %v9009_v56 }
 0x727   : > { %v9157_v30 = vld [vmem:[#allocation10 + $0x140] sm:$0xff]  ;;  %v19336_v21 = vcombine.high %v9293_v14, %v9297_v9  ;;  %15305 = vmatprep.subr.bf16.mxu0 %v19208_v8  ;;  %v19335_v0 = vcombine.low %v9293_v14, %v9297_v9 }
 0x728   : > { %v9161_v32 = vld [vmem:[#allocation10 + $0x160] sm:$0xff]  ;;  %15306 = vmatpush1.bf16.msra.mxu0 %v19207_v29  ;;  %v9032_v3 = vcombine.high %v24107_v20, %v24107_v20  ;;  %v24112_v4 = vrot.slane %v9017_v34, %v22843_v18 }
 0x729   : > { %v9285_v27 = vld [vmem:[#allocation10 + $0x540] sm:$0xff]  ;;  %v19200_v22 = vcombine.high %v9157_v30, %v9161_v32  ;;  %15346 = vmatprep.subr.bf16.mxu1 %v19336_v21  ;;  %v19199_v35 = vcombine.low %v9157_v30, %v9161_v32 }
 0x72a   : > { %v9289_v23 = vld [vmem:[#allocation10 + $0x560] sm:$0xff]  ;;  %15347 = vmatpush1.bf16.msra.mxu1 %v19335_v0  ;;  %v24114_v14 = vpack.c.bf16 %v9032_v3, %v9032_v3  ;;  %v9033_v9 = vcombine.high %v24112_v4, %v24112_v4 }
 0x72b   : > { %v19328_v25 = vcombine.high %v9285_v27, %v9289_v23  ;;  %v9149_v15 = vld [vmem:[#allocation10 + $0x100] sm:$0xff]  ;;  %15307 = vmatprep.subr.bf16.mxu0 %v19200_v22  ;;  %v19327_v60 = vcombine.low %v9285_v27, %v9289_v23 }
 0x72c   : > { %v9153_v41 = vld [vmem:[#allocation10 + $0x120] sm:$0xff]  ;;  %15308 = vmatpush1.bf16.msra.mxu0 %v19199_v35  ;;  %15335 = vmatprep.mubr.bf16.mxu0 %v24114_v14  ;;  %v24119_v27 = vpack.c.bf16 %v9033_v9, %v9033_v9 }
 0x72d   : > { %v9277_v5 = vld [vmem:[#allocation10 + $0x500] sm:$0xff]  ;;  %v19192_v17 = vcombine.high %v9149_v15, %v9153_v41  ;;  %15348 = vmatprep.subr.bf16.mxu1 %v19328_v25  ;;  %v19191_v54 = vcombine.low %v9149_v15, %v9153_v41 }
 0x72e   : > { %v9281_v26 = vld [vmem:[#allocation10 + $0x520] sm:$0xff]  ;;  %15349 = vmatpush1.bf16.msra.mxu1 %v19327_v60  ;;  %15376 = vmatprep.mubr.bf16.mxu1 %v24119_v27 }
 0x72f   : > { %v19320_v61 = vcombine.high %v9277_v5, %v9281_v26  ;;  %v9141_v24 = vld [vmem:[#allocation10 + $0xc0] sm:$0xff]  ;;  %15309 = vmatprep.subr.bf16.mxu0 %v19192_v17  ;;  %v19319_v40 = vcombine.low %v9277_v5, %v9281_v26 }
 0x730   : > { %v9145_v47 = vld [vmem:[#allocation10 + $0xe0] sm:$0xff]  ;;  %15310 = vmatpush1.bf16.msra.mxu0 %v19191_v54 }
 0x731   : > { %v9269_v53 = vld [vmem:[#allocation10 + $0x4c0] sm:$0xff]  ;;  %v19184_v58 = vcombine.high %v9141_v24, %v9145_v47  ;;  %15350 = vmatprep.subr.bf16.mxu1 %v19320_v61  ;;  %v19183_v45 = vcombine.low %v9141_v24, %v9145_v47 }
 0x732   : > { %v9273_v39 = vld [vmem:[#allocation10 + $0x4e0] sm:$0xff]  ;;  %15351 = vmatpush1.bf16.msra.mxu1 %v19319_v40 }
 0x733   : > { %v19312_v42 = vcombine.high %v9269_v53, %v9273_v39  ;;  %v9133_v46 = vld [vmem:[#allocation10 + $0x80] sm:$0xff]  ;;  %15311 = vmatprep.subr.bf16.mxu0 %v19184_v58  ;;  %v19311_v31 = vcombine.low %v9269_v53, %v9273_v39 }
 0x734   : > { %v9137_v43 = vld [vmem:[#allocation10 + $0xa0] sm:$0xff]  ;;  %15312 = vmatpush1.bf16.msra.mxu0 %v19183_v45 }
 0x735   : > { %v9261_v44 = vld [vmem:[#allocation10 + $0x480] sm:$0xff]  ;;  %v19176_v1 = vcombine.high %v9133_v46, %v9137_v43  ;;  %15352 = vmatprep.subr.bf16.mxu1 %v19312_v42  ;;  %v19175_v13 = vcombine.low %v9133_v46, %v9137_v43 }
 0x736   : > { %v9265_v63 = vld [vmem:[#allocation10 + $0x4a0] sm:$0xff]  ;;  %15353 = vmatpush1.bf16.msra.mxu1 %v19311_v31 }
 0x737   : > { %v19304_v16 = vcombine.high %v9261_v44, %v9265_v63  ;;  %v9125_v36 = vld [vmem:[#allocation10 + $0x40] sm:$0xff]  ;;  %15313 = vmatprep.subr.bf16.mxu0 %v19176_v1  ;;  %v19303_v19 = vcombine.low %v9261_v44, %v9265_v63 }
 0x738   : > { %v9129_v48 = vld [vmem:[#allocation10 + $0x60] sm:$0xff]  ;;  %15314 = vmatpush1.bf16.msra.mxu0 %v19175_v13 }
 0x739   : > { %v9253_v51 = vld [vmem:[#allocation10 + $0x440] sm:$0xff]  ;;  %v19168_v10 = vcombine.high %v9125_v36, %v9129_v48  ;;  %15354 = vmatprep.subr.bf16.mxu1 %v19304_v16  ;;  %v19167_v6 = vcombine.low %v9125_v36, %v9129_v48 }
 0x73a   : > { %v9257_v55 = vld [vmem:[#allocation10 + $0x460] sm:$0xff]  ;;  %15355 = vmatpush1.bf16.msra.mxu1 %v19303_v19 }
 0x73b   : > { %v19296_v50 = vcombine.high %v9253_v51, %v9257_v55  ;;  %v9117_v62 = vld [vmem:[#allocation10] sm:$0xff]  ;;  %15315 = vmatprep.subr.bf16.mxu0 %v19168_v10  ;;  %v19295_v2 = vcombine.low %v9253_v51, %v9257_v55 }
 0x73c   : > { %v9121_v52 = vld [vmem:[#allocation10 + $0x20] sm:$0xff]  ;;  %15316 = vmatpush1.bf16.msra.mxu0 %v19167_v6 }
 0x73d   : > { %v9245_v59 = vld [vmem:[#allocation10 + $0x400] sm:$0xff]  ;;  %v19160_v57 = vcombine.high %v9117_v62, %v9121_v52  ;;  %15356 = vmatprep.subr.bf16.mxu1 %v19296_v50  ;;  %v19159_v32 = vcombine.low %v9117_v62, %v9121_v52 }
 0x73e   : > { %v9249_v38 = vld [vmem:[#allocation10 + $0x420] sm:$0xff]  ;;  %15357 = vmatpush1.bf16.msra.mxu1 %v19295_v2 }
 0x73f   : > { %v19288_v33 = vcombine.high %v9245_v59, %v9249_v38  ;;  %v9237_v37 = vld [vmem:[#allocation10 + $0x3c0] sm:$0xff]  ;;  %15317 = vmatprep.subr.bf16.mxu0 %v19160_v57  ;;  %v19287_v23 = vcombine.low %v9245_v59, %v9249_v38 }
 0x740   : > { %v9241_v8 = vld [vmem:[#allocation10 + $0x3e0] sm:$0xff]  ;;  %15318 = vmatpush1.bf16.msra.mxu0 %v19159_v32 }
 0x741   : > { %v9365_v30 = vld [vmem:[#allocation10 + $0x7c0] sm:$0xff]  ;;  %v19280_v29 = vcombine.high %v9237_v37, %v9241_v8  ;;  %15358 = vmatprep.subr.bf16.mxu1 %v19288_v33  ;;  %v19279_v5 = vcombine.low %v9237_v37, %v9241_v8 }
 0x742   : > { %v9369_v21 = vld [vmem:[#allocation10 + $0x7e0] sm:$0xff]  ;;  %15359 = vmatpush1.bf16.msra.mxu1 %v19287_v23 }
 0x743   : > { %v19408_v0 = vcombine.high %v9365_v30, %v9369_v21  ;;  %v9229_v22 = vld [vmem:[#allocation10 + $0x380] sm:$0xff]  ;;  %15319 = vmatprep.subr.bf16.mxu0 %v19280_v29  ;;  %v19407_v26 = vcombine.low %v9365_v30, %v9369_v21 }
 0x744   : > { %v9233_v25 = vld [vmem:[#allocation10 + $0x3a0] sm:$0xff]  ;;  %15320 = vmatpush2.bf16.msra.mxu0 %v19279_v5 }
 0x745   : > { %v9357_v15 = vld [vmem:[#allocation10 + $0x780] sm:$0xff]  ;;  %v19272_v35 = vcombine.high %v9229_v22, %v9233_v25  ;;  %15360 = vmatprep.subr.bf16.mxu1 %v19408_v0  ;;  %v19271_v53 = vcombine.low %v9229_v22, %v9233_v25 }
 0x746   : > { %v9361_v41 = vld [vmem:[#allocation10 + $0x7a0] sm:$0xff]  ;;  %15361 = vmatpush2.bf16.msra.mxu1 %v19407_v26 }
 0x747   : > { %v19400_v60 = vcombine.high %v9357_v15, %v9361_v41  ;;  %v9221_v17 = vld [vmem:[#allocation10 + $0x340] sm:$0xff]  ;;  %15321 = vmatprep.subr.bf16.mxu0 %v19272_v35  ;;  %v19399_v39 = vcombine.low %v9357_v15, %v9361_v41 }
 0x748   : > { %v9225_v61 = vld [vmem:[#allocation10 + $0x360] sm:$0xff]  ;;  %15322 = vmatpush2.bf16.msra.mxu0 %v19271_v53 }
 0x749   : > { %v9349_v24 = vld [vmem:[#allocation10 + $0x740] sm:$0xff]  ;;  %v19264_v54 = vcombine.high %v9221_v17, %v9225_v61  ;;  %15362 = vmatprep.subr.bf16.mxu1 %v19400_v60  ;;  %v19263_v44 = vcombine.low %v9221_v17, %v9225_v61 }
 0x74a   : > { %v9353_v47 = vld [vmem:[#allocation10 + $0x760] sm:$0xff]  ;;  %15363 = vmatpush2.bf16.msra.mxu1 %v19399_v39 }
 0x74b   : > { %v19392_v40 = vcombine.high %v9349_v24, %v9353_v47  ;;  %v9213_v58 = vld [vmem:[#allocation10 + $0x300] sm:$0xff]  ;;  %15323 = vmatprep.subr.bf16.mxu0 %v19264_v54  ;;  %v19391_v63 = vcombine.low %v9349_v24, %v9353_v47 }
 0x74c   : > { %v9217_v42 = vld [vmem:[#allocation10 + $0x320] sm:$0xff]  ;;  %15324 = vmatpush2.bf16.msra.mxu0 %v19263_v44 }
 0x74d   : > { %v9341_v46 = vld [vmem:[#allocation10 + $0x700] sm:$0xff]  ;;  %v19256_v45 = vcombine.high %v9213_v58, %v9217_v42  ;;  %15364 = vmatprep.subr.bf16.mxu1 %v19392_v40  ;;  %v19255_v51 = vcombine.low %v9213_v58, %v9217_v42  ;;  %v24132_v42 = vpack.c.bf16 %v24107_v20, %v24107_v20 }
 0x74e   : > { %v9345_v43 = vld [vmem:[#allocation10 + $0x720] sm:$0xff]  ;;  %15365 = vmatpush2.bf16.msra.mxu1 %v19391_v63  ;;  %v24138_v63 = vpack.c.bf16 %v24112_v4, %v24112_v4 }
 0x74f   : > { %v19384_v31 = vcombine.high %v9341_v46, %v9345_v43  ;;  %v9205_v1 = vld [vmem:[#allocation10 + $0x2c0] sm:$0xff]  ;;  %15325 = vmatprep.subr.bf16.mxu0 %v19256_v45  ;;  %v19383_v55 = vcombine.low %v9341_v46, %v9345_v43 }
 0x750   : > { %v9209_v16 = vld [vmem:[#allocation10 + $0x2e0] sm:$0xff]  ;;  %15326 = vmatpush2.bf16.msra.mxu0 %v19255_v51 }
 0x751   : > { %v9333_v36 = vld [vmem:[#allocation10 + $0x6c0] sm:$0xff]  ;;  %v19248_v13 = vcombine.high %v9205_v1, %v9209_v16  ;;  %15366 = vmatprep.subr.bf16.mxu1 %v19384_v31  ;;  %v19247_v52 = vcombine.low %v9205_v1, %v9209_v16 }
 0x752   : > { %v9337_v48 = vld [vmem:[#allocation10 + $0x6e0] sm:$0xff]  ;;  %15367 = vmatpush2.bf16.msra.mxu1 %v19383_v55 }
 0x753   : > { %v19376_v19 = vcombine.high %v9333_v36, %v9337_v48  ;;  %v9197_v10 = vld [vmem:[#allocation10 + $0x280] sm:$0xff]  ;;  %15327 = vmatprep.subr.bf16.mxu0 %v19248_v13  ;;  %v19375_v34 = vcombine.low %v9333_v36, %v9337_v48 }
 0x754   : > { %v9201_v56 = vld [vmem:[#allocation10 + $0x2a0] sm:$0xff]  ;;  %15328 = vmatpush2.bf16.msra.mxu0 %v19247_v52 }
 0x755   : > { %v9325_v50 = vld [vmem:[#allocation10 + $0x680] sm:$0xff]  ;;  %v19240_v59 = vcombine.high %v9197_v10, %v9201_v56  ;;  %15368 = vmatprep.subr.bf16.mxu1 %v19376_v19  ;;  %v19239_v33 = vcombine.low %v9197_v10, %v9201_v56 }
 0x756   : > { %v9329_v62 = vld [vmem:[#allocation10 + $0x6a0] sm:$0xff]  ;;  %15369 = vmatpush2.bf16.msra.mxu1 %v19375_v34 }
 0x757   : > { %v19368_v38 = vcombine.high %v9325_v50, %v9329_v62  ;;  %v9189_v6 = vld [vmem:[#allocation10 + $0x240] sm:$0xff]  ;;  %15329 = vmatprep.subr.bf16.mxu0 %v19240_v59  ;;  %v19367_v8 = vcombine.low %v9325_v50, %v9329_v62 }
 0x758   : > { %v9193_v3 = vld [vmem:[#allocation10 + $0x260] sm:$0xff]  ;;  %15330 = vmatpush2.bf16.msra.mxu0 %v19239_v33 }
 0x759   : > { %v9317_v2 = vld [vmem:[#allocation10 + $0x640] sm:$0xff]  ;;  %v19232_v9 = vcombine.high %v9189_v6, %v9193_v3  ;;  %15370 = vmatprep.subr.bf16.mxu1 %v19368_v38  ;;  %v19231_v22 = vcombine.low %v9189_v6, %v9193_v3 }
 0x75a   : > { %v9321_v57 = vld [vmem:[#allocation10 + $0x660] sm:$0xff]  ;;  %15371 = vmatpush2.bf16.msra.mxu1 %v19367_v8 }
 0x75b   : > { %v9010_v37 = vld [vmem:[#allocation3 + $0x8] sm:$0xff]  ;;  %v19360_v30 = vcombine.high %v9317_v2, %v9321_v57  ;;  %15331 = vmatprep.subr.bf16.mxu0 %v19232_v9  ;;  %v19359_v25 = vcombine.low %v9317_v2, %v9321_v57 }
 0x75c   : > { %v9181_v21 = vld [vmem:[#allocation10 + $0x200] sm:$0xff]  ;;  %v9034_v0 = vcombine.high %v9010_v37, %v9010_v37  ;;  %v24123_v35 = vrot.slane %v9010_v37, %v22843_v18  ;;  %15332 = vmatpush2.bf16.msra.mxu0 %v19231_v22 }
 0x75d   : > { %v9185_v32 = vld [vmem:[#allocation10 + $0x220] sm:$0xff]  ;;  %15372 = vmatprep.subr.bf16.mxu1 %v19360_v30 }
 0x75e   : > { %v9309_v23 = vld [vmem:[#allocation10 + $0x600] sm:$0xff]  ;;  %v19224_v15 = vcombine.high %v9181_v21, %v9185_v32  ;;  %v24126_v61 = vrot.slane %v9034_v0, %v22843_v18  ;;  %v19223_v24 = vcombine.low %v9181_v21, %v9185_v32  ;;  %15373 = vmatpush2.bf16.msra.mxu1 %v19359_v25  ;;  %v9049_v58 = vcombine.high %v24123_v35, %v24123_v35 }
 0x75f   : > { %v9313_v29 = vld [vmem:[#allocation10 + $0x620] sm:$0xff] }
 0x760   : > { %v19352_v41 = vcombine.high %v9309_v23, %v9313_v29  ;;  %v9429_v5 = vld [vmem:[#allocation10 + $0x9c0] sm:$0xff]  ;;  %15333 = vmatprep.subr.bf16.mxu0 %v19224_v15  ;;  %v19351_v47 = vcombine.low %v9309_v23, %v9313_v29  ;;  %v9050_v44 = vcombine.high %v24126_v61, %v24126_v61  ;;  %v24140_v55 = vpack.c.bf16 %v9049_v58, %v9049_v58 }
 0x761   : > { %v9433_v26 = vld [vmem:[#allocation10 + $0x9e0] sm:$0xff]  ;;  %15334 = vmatpush2.bf16.msra.mxu0 %v19223_v24 }
 0x762   : > { %v9557_v60 = vld [vmem:[#allocation10 + $0xdc0] sm:$0xff]  ;;  %v19472_v53 = vcombine.high %v9429_v5, %v9433_v26  ;;  %15374 = vmatprep.subr.bf16.mxu1 %v19352_v41  ;;  %v19471_v45 = vcombine.low %v9429_v5, %v9433_v26  ;;  %v24143_v13 = vpack.c.bf16 %v9050_v44, %v9050_v44 }
 0x763   : > { %v9561_v17 = vld [vmem:[#allocation10 + $0xde0] sm:$0xff]  ;;  %15375 = vmatpush2.bf16.msra.mxu1 %v19351_v47 }
 0x764   : > { %v19600_v39 = vcombine.high %v9557_v60, %v9561_v17  ;;  %v9421_v54 = vld [vmem:[#allocation10 + $0x980] sm:$0xff]  ;;  %15385 = vmatprep.subr.bf16.mxu0 %v19472_v53  ;;  %v19599_v31 = vcombine.low %v9557_v60, %v9561_v17  ;;  %15336 = vmatmul.mubr.bf16.vlgmr.msra.gmra.mxu0 %v24132_v42 }
 0x765   : > { %v9425_v40 = vld [vmem:[#allocation10 + $0x9a0] sm:$0xff]  ;;  %15386 = vmatpush1.bf16.msra.mxu0 %v19471_v45  ;;  %15417 = vmatprep.mubr.bf16.mxu0 %v24140_v55 }
 0x766   : > { %v9549_v46 = vld [vmem:[#allocation10 + $0xd80] sm:$0xff]  ;;  %v19464_v1 = vcombine.high %v9421_v54, %v9425_v40  ;;  %15426 = vmatprep.subr.bf16.mxu1 %v19600_v39  ;;  %15377 = vmatmul.mubr.bf16.vlgmr.msra.gmra.mxu1 %v24138_v63  ;;  %v19463_v4 = vcombine.low %v9421_v54, %v9425_v40 }
 0x767   : > { %v9553_v43 = vld [vmem:[#allocation10 + $0xda0] sm:$0xff]  ;;  %15427 = vmatpush1.bf16.msra.mxu1 %v19599_v31  ;;  %15458 = vmatprep.mubr.bf16.mxu1 %v24143_v13 }
 0x768   : > { %v9413_v16 = vld [vmem:[#allocation10 + $0x940] sm:$0xff]  ;;  %v19592_v20 = vcombine.high %v9549_v46, %v9553_v43  ;;  %15387 = vmatprep.subr.bf16.mxu0 %v19464_v1  ;;  %v19591_v19 = vcombine.low %v9549_v46, %v9553_v43 }
 0x769   : > { %v9417_v36 = vld [vmem:[#allocation10 + $0x960] sm:$0xff]  ;;  %15388 = vmatpush1.bf16.msra.mxu0 %v19463_v4 }
 0x76a   : > { %v9541_v48 = vld [vmem:[#allocation10 + $0xd40] sm:$0xff]  ;;  %v19456_v10 = vcombine.high %v9413_v16, %v9417_v36  ;;  %15428 = vmatprep.subr.bf16.mxu1 %v19592_v20  ;;  %v19455_v59 = vcombine.low %v9413_v16, %v9417_v36 }
 0x76b   : > { %v9545_v51 = vld [vmem:[#allocation10 + $0xd60] sm:$0xff]  ;;  %15429 = vmatpush1.bf16.msra.mxu1 %v19591_v19 }
 0x76c   : > { %v9405_v56 = vld [vmem:[#allocation10 + $0x900] sm:$0xff]  ;;  %v19584_v52 = vcombine.high %v9541_v48, %v9545_v51  ;;  %15389 = vmatprep.subr.bf16.mxu0 %v19456_v10  ;;  %v19583_v38 = vcombine.low %v9541_v48, %v9545_v51 }
 0x76d   : > { %v9409_v50 = vld [vmem:[#allocation10 + $0x920] sm:$0xff]  ;;  %15390 = vmatpush1.bf16.msra.mxu0 %v19455_v59 }
 0x76e   : > { %v9533_v62 = vld [vmem:[#allocation10 + $0xd00] sm:$0xff]  ;;  %v19448_v6 = vcombine.high %v9405_v56, %v9409_v50  ;;  %15430 = vmatprep.subr.bf16.mxu1 %v19584_v52  ;;  %v19447_v8 = vcombine.low %v9405_v56, %v9409_v50 }
 0x76f   : > { %v9537_v34 = vld [vmem:[#allocation10 + $0xd20] sm:$0xff]  ;;  %15431 = vmatpush1.bf16.msra.mxu1 %v19583_v38 }
 0x770   : > { %v9397_v3 = vld [vmem:[#allocation10 + $0x8c0] sm:$0xff]  ;;  %v19576_v33 = vcombine.high %v9533_v62, %v9537_v34  ;;  %15391 = vmatprep.subr.bf16.mxu0 %v19448_v6  ;;  %v19575_v9 = vcombine.low %v9533_v62, %v9537_v34 }
 0x771   : > { %v9401_v2 = vld [vmem:[#allocation10 + $0x8e0] sm:$0xff]  ;;  %15392 = vmatpush1.bf16.msra.mxu0 %v19447_v8 }
 0x772   : > { %v9525_v57 = vld [vmem:[#allocation10 + $0xcc0] sm:$0xff]  ;;  %v19440_v30 = vcombine.high %v9397_v3, %v9401_v2  ;;  %15432 = vmatprep.subr.bf16.mxu1 %v19576_v33  ;;  %v19439_v22 = vcombine.low %v9397_v3, %v9401_v2 }
 0x773   : > { %v9529_v37 = vld [vmem:[#allocation10 + $0xce0] sm:$0xff]  ;;  %15433 = vmatpush1.bf16.msra.mxu1 %v19575_v9 }
 0x774   : > { %v9389_v21 = vld [vmem:[#allocation10 + $0x880] sm:$0xff]  ;;  %v19568_v29 = vcombine.high %v9525_v57, %v9529_v37  ;;  %15393 = vmatprep.subr.bf16.mxu0 %v19440_v30  ;;  %v19567_v25 = vcombine.low %v9525_v57, %v9529_v37 }
 0x775   : > { %v9393_v32 = vld [vmem:[#allocation10 + $0x8a0] sm:$0xff]  ;;  %15394 = vmatpush1.bf16.msra.mxu0 %v19439_v22 }
 0x776   : > { %v9517_v23 = vld [vmem:[#allocation10 + $0xc80] sm:$0xff]  ;;  %v19432_v15 = vcombine.high %v9389_v21, %v9393_v32  ;;  %15434 = vmatprep.subr.bf16.mxu1 %v19568_v29  ;;  %v19431_v24 = vcombine.low %v9389_v21, %v9393_v32 }
 0x777   : > { %v9521_v0 = vld [vmem:[#allocation10 + $0xca0] sm:$0xff]  ;;  %15435 = vmatpush1.bf16.msra.mxu1 %v19567_v25 }
 0x778   : > { %v9381_v41 = vld [vmem:[#allocation10 + $0x840] sm:$0xff]  ;;  %v19560_v60 = vcombine.high %v9517_v23, %v9521_v0  ;;  %15395 = vmatprep.subr.bf16.mxu0 %v19432_v15  ;;  %v19559_v47 = vcombine.low %v9517_v23, %v9521_v0 }
 0x779   : > { %v9385_v5 = vld [vmem:[#allocation10 + $0x860] sm:$0xff]  ;;  %15396 = vmatpush1.bf16.msra.mxu0 %v19431_v24 }
 0x77a   : > { %v9509_v26 = vld [vmem:[#allocation10 + $0xc40] sm:$0xff]  ;;  %v19424_v53 = vcombine.high %v9381_v41, %v9385_v5  ;;  %15436 = vmatprep.subr.bf16.mxu1 %v19560_v60  ;;  %v19423_v43 = vcombine.low %v9381_v41, %v9385_v5 }
 0x77b   : > { %v9513_v17 = vld [vmem:[#allocation10 + $0xc60] sm:$0xff]  ;;  %15437 = vmatpush1.bf16.msra.mxu1 %v19559_v47 }
 0x77c   : > { %v9373_v39 = vld [vmem:[#allocation10 + $0x800] sm:$0xff]  ;;  %v19552_v58 = vcombine.high %v9509_v26, %v9513_v17  ;;  %15397 = vmatprep.subr.bf16.mxu0 %v19424_v53  ;;  %v19551_v44 = vcombine.low %v9509_v26, %v9513_v17 }
 0x77d   : > { %v9377_v54 = vld [vmem:[#allocation10 + $0x820] sm:$0xff]  ;;  %15398 = vmatpush1.bf16.msra.mxu0 %v19423_v43 }
 0x77e   : > { %v9501_v40 = vld [vmem:[#allocation10 + $0xc00] sm:$0xff]  ;;  %v19416_v45 = vcombine.high %v9373_v39, %v9377_v54  ;;  %15438 = vmatprep.subr.bf16.mxu1 %v19552_v58  ;;  %v19415_v20 = vcombine.low %v9373_v39, %v9377_v54 }
 0x77f   : > { %v9505_v46 = vld [vmem:[#allocation10 + $0xc20] sm:$0xff]  ;;  %15439 = vmatpush1.bf16.msra.mxu1 %v19551_v44 }
 0x780   : > { %v9493_v31 = vld [vmem:[#allocation10 + $0xbc0] sm:$0xff]  ;;  %v19544_v36 = vcombine.high %v9501_v40, %v9505_v46  ;;  %15399 = vmatprep.subr.bf16.mxu0 %v19416_v45  ;;  %v19543_v51 = vcombine.low %v9501_v40, %v9505_v46 }
 0x781   : > { %v9497_v1 = vld [vmem:[#allocation10 + $0xbe0] sm:$0xff]  ;;  %15400 = vmatpush1.bf16.msra.mxu0 %v19415_v20 }
 0x782   : > { %v9621_v16 = vld [vmem:[#allocation10 + $0xfc0] sm:$0xff]  ;;  %v19536_v4 = vcombine.high %v9493_v31, %v9497_v1  ;;  %15440 = vmatprep.subr.bf16.mxu1 %v19544_v36  ;;  %v19535_v52 = vcombine.low %v9493_v31, %v9497_v1 }
 0x783   : > { %v9625_v48 = vld [vmem:[#allocation10 + $0xfe0] sm:$0xff]  ;;  %15441 = vmatpush1.bf16.msra.mxu1 %v19543_v51 }
 0x784   : > { %v9485_v19 = vld [vmem:[#allocation10 + $0xb80] sm:$0xff]  ;;  %v19664_v50 = vcombine.high %v9621_v16, %v9625_v48  ;;  %15401 = vmatprep.subr.bf16.mxu0 %v19536_v4  ;;  %v19663_v34 = vcombine.low %v9621_v16, %v9625_v48 }
 0x785   : > { %v9489_v10 = vld [vmem:[#allocation10 + $0xba0] sm:$0xff]  ;;  %15402 = vmatpush2.bf16.msra.mxu0 %v19535_v52 }
 0x786   : > { %v9613_v56 = vld [vmem:[#allocation10 + $0xf80] sm:$0xff]  ;;  %v19528_v59 = vcombine.high %v9485_v19, %v9489_v10  ;;  %15442 = vmatprep.subr.bf16.mxu1 %v19664_v50  ;;  %v19527_v33 = vcombine.low %v9485_v19, %v9489_v10 }
 0x787   : > { %v9617_v62 = vld [vmem:[#allocation10 + $0xfa0] sm:$0xff]  ;;  %15443 = vmatpush2.bf16.msra.mxu1 %v19663_v34 }
 0x788   : > { %v9477_v38 = vld [vmem:[#allocation10 + $0xb40] sm:$0xff]  ;;  %v19656_v2 = vcombine.high %v9613_v56, %v9617_v62  ;;  %15403 = vmatprep.subr.bf16.mxu0 %v19528_v59  ;;  %v19655_v37 = vcombine.low %v9613_v56, %v9617_v62 }
 0x789   : > { %v9481_v6 = vld [vmem:[#allocation10 + $0xb60] sm:$0xff]  ;;  %15404 = vmatpush2.bf16.msra.mxu0 %v19527_v33 }
 0x78a   : > { %v9605_v3 = vld [vmem:[#allocation10 + $0xf40] sm:$0xff]  ;;  %v19520_v8 = vcombine.high %v9477_v38, %v9481_v6  ;;  %15444 = vmatprep.subr.bf16.mxu1 %v19656_v2  ;;  %v19519_v29 = vcombine.low %v9477_v38, %v9481_v6 }
 0x78b   : > { %v9609_v57 = vld [vmem:[#allocation10 + $0xf60] sm:$0xff]  ;;  %15445 = vmatpush2.bf16.msra.mxu1 %v19655_v37 }
 0x78c   : > { %v9469_v9 = vld [vmem:[#allocation10 + $0xb00] sm:$0xff]  ;;  %v19648_v32 = vcombine.high %v9605_v3, %v9609_v57  ;;  %15405 = vmatprep.subr.bf16.mxu0 %v19520_v8  ;;  %v19647_v0 = vcombine.low %v9605_v3, %v9609_v57 }
 0x78d   : > { %v9473_v30 = vld [vmem:[#allocation10 + $0xb20] sm:$0xff]  ;;  %15406 = vmatpush2.bf16.msra.mxu0 %v19519_v29 }
 0x78e   : > { %v9597_v21 = vld [vmem:[#allocation10 + $0xf00] sm:$0xff]  ;;  %v19512_v22 = vcombine.high %v9469_v9, %v9473_v30  ;;  %15446 = vmatprep.subr.bf16.mxu1 %v19648_v32  ;;  %v19511_v60 = vcombine.low %v9469_v9, %v9473_v30 }
 0x78f   : > { %v9601_v23 = vld [vmem:[#allocation10 + $0xf20] sm:$0xff]  ;;  %15447 = vmatpush2.bf16.msra.mxu1 %v19647_v0 }
 0x790   : > { %v9461_v25 = vld [vmem:[#allocation10 + $0xac0] sm:$0xff]  ;;  %v19640_v5 = vcombine.high %v9597_v21, %v9601_v23  ;;  %15407 = vmatprep.subr.bf16.mxu0 %v19512_v22  ;;  %v19639_v17 = vcombine.low %v9597_v21, %v9601_v23 }
 0x791   : > { %v9465_v15 = vld [vmem:[#allocation10 + $0xae0] sm:$0xff]  ;;  %15408 = vmatpush2.bf16.msra.mxu0 %v19511_v60 }
 0x792   : > { %v9589_v41 = vld [vmem:[#allocation10 + $0xec0] sm:$0xff]  ;;  %v19504_v24 = vcombine.high %v9461_v25, %v9465_v15  ;;  %15448 = vmatprep.subr.bf16.mxu1 %v19640_v5  ;;  %v19503_v58 = vcombine.low %v9461_v25, %v9465_v15  ;;  %v24158_v25 = vpack.c.bf16 %v24123_v35, %v24123_v35 }
 0x793   : > { %v9593_v26 = vld [vmem:[#allocation10 + $0xee0] sm:$0xff]  ;;  %15449 = vmatpush2.bf16.msra.mxu1 %v19639_v17 }
 0x794   : > { %v9453_v47 = vld [vmem:[#allocation10 + $0xa80] sm:$0xff]  ;;  %v19632_v54 = vcombine.high %v9589_v41, %v9593_v26  ;;  %15409 = vmatprep.subr.bf16.mxu0 %v19504_v24  ;;  %v19631_v43 = vcombine.low %v9589_v41, %v9593_v26  ;;  %v24164_v41 = vpack.c.bf16 %v24126_v61, %v24126_v61 }
 0x795   : > { %v9457_v53 = vld [vmem:[#allocation10 + $0xaa0] sm:$0xff]  ;;  %15410 = vmatpush2.bf16.msra.mxu0 %v19503_v58 }
 0x796   : > { %v9581_v39 = vld [vmem:[#allocation10 + $0xe80] sm:$0xff]  ;;  %v19496_v44 = vcombine.high %v9453_v47, %v9457_v53  ;;  %15450 = vmatprep.subr.bf16.mxu1 %v19632_v54  ;;  %v19495_v48 = vcombine.low %v9453_v47, %v9457_v53 }
 0x797   : > { %v9585_v40 = vld [vmem:[#allocation10 + $0xea0] sm:$0xff]  ;;  %15451 = vmatpush2.bf16.msra.mxu1 %v19631_v43 }
 0x798   : > { %v9445_v46 = vld [vmem:[#allocation10 + $0xa40] sm:$0xff]  ;;  %v19624_v16 = vcombine.high %v9581_v39, %v9585_v40  ;;  %15411 = vmatprep.subr.bf16.mxu0 %v19496_v44  ;;  %v19623_v20 = vcombine.low %v9581_v39, %v9585_v40 }
 0x799   : > { %v9449_v45 = vld [vmem:[#allocation10 + $0xa60] sm:$0xff]  ;;  %15412 = vmatpush2.bf16.msra.mxu0 %v19495_v48 }
 0x79a   : > { %v9573_v31 = vld [vmem:[#allocation10 + $0xe40] sm:$0xff]  ;;  %v19488_v51 = vcombine.high %v9445_v46, %v9449_v45  ;;  %15452 = vmatprep.subr.bf16.mxu1 %v19624_v16  ;;  %v19487_v52 = vcombine.low %v9445_v46, %v9449_v45 }
 0x79b   : > { %v9577_v1 = vld [vmem:[#allocation10 + $0xe60] sm:$0xff]  ;;  %15453 = vmatpush2.bf16.msra.mxu1 %v19623_v20 }
 0x79c   : > { %v9011_v36 = vld [vmem:[#allocation3 + $0x10] sm:$0xff]  ;;  %v19616_v56 = vcombine.high %v9573_v31, %v9577_v1  ;;  %15413 = vmatprep.subr.bf16.mxu0 %v19488_v51  ;;  %v19615_v34 = vcombine.low %v9573_v31, %v9577_v1 }
 0x79d   : > { %v9437_v4 = vld [vmem:[#allocation10 + $0xa00] sm:$0xff]  ;;  %v9051_v62 = vcombine.high %v9011_v36, %v9011_v36  ;;  %v24149_v33 = vrot.slane %v9011_v36, %v22843_v18  ;;  %15414 = vmatpush2.bf16.msra.mxu0 %v19487_v52 }
 0x79e   : > { %v9441_v19 = vld [vmem:[#allocation10 + $0xa20] sm:$0xff]  ;;  %15454 = vmatprep.subr.bf16.mxu1 %v19616_v56 }
 0x79f   : > { %v9565_v10 = vld [vmem:[#allocation10 + $0xe00] sm:$0xff]  ;;  %v19480_v59 = vcombine.high %v9437_v4, %v9441_v19  ;;  %v24152_v37 = vrot.slane %v9051_v62, %v22843_v18  ;;  %v19479_v8 = vcombine.low %v9437_v4, %v9441_v19  ;;  %15455 = vmatpush2.bf16.msra.mxu1 %v19615_v34  ;;  %v9066_v22 = vcombine.high %v24149_v33, %v24149_v33 }
 0x7a0   : > { %v9569_v50 = vld [vmem:[#allocation10 + $0xe20] sm:$0xff] }
 0x7a1   : > { %v9685_v38 = vld [vmem:[#allocation10 + $0x11c0] sm:$0xff]  ;;  %v19608_v3 = vcombine.high %v9565_v10, %v9569_v50  ;;  %15415 = vmatprep.subr.bf16.mxu0 %v19480_v59  ;;  %v19607_v9 = vcombine.low %v9565_v10, %v9569_v50  ;;  %v9067_v15 = vcombine.high %v24152_v37, %v24152_v37  ;;  %v24166_v39 = vpack.c.bf16 %v9066_v22, %v9066_v22 }
 0x7a2   : > { %v9689_v6 = vld [vmem:[#allocation10 + $0x11e0] sm:$0xff]  ;;  %15416 = vmatpush2.bf16.msra.mxu0 %v19479_v8 }
 0x7a3   : > { %v9813_v2 = vld [vmem:[#allocation10 + $0x15c0] sm:$0xff]  ;;  %v19728_v30 = vcombine.high %v9685_v38, %v9689_v6  ;;  %15456 = vmatprep.subr.bf16.mxu1 %v19608_v3  ;;  %v19727_v5 = vcombine.low %v9685_v38, %v9689_v6  ;;  %v24169_v54 = vpack.c.bf16 %v9067_v15, %v9067_v15 }
 0x7a4   : > { %v9817_v57 = vld [vmem:[#allocation10 + $0x15e0] sm:$0xff]  ;;  %15457 = vmatpush2.bf16.msra.mxu1 %v19607_v9 }
 0x7a5   : > { %v9677_v21 = vld [vmem:[#allocation10 + $0x1180] sm:$0xff]  ;;  %v19856_v29 = vcombine.high %v9813_v2, %v9817_v57  ;;  %15467 = vmatprep.subr.bf16.mxu0 %v19728_v30  ;;  %v19855_v26 = vcombine.low %v9813_v2, %v9817_v57  ;;  %15418 = vmatmul.mubr.bf16.vlgmr.msra.gmra.mxu0 %v24158_v25 }
 0x7a6   : > { %v9681_v32 = vld [vmem:[#allocation10 + $0x11a0] sm:$0xff]  ;;  %15468 = vmatpush1.bf16.msra.mxu0 %v19727_v5  ;;  %15499 = vmatprep.mubr.bf16.mxu0 %v24166_v39 }
 0x7a7   : > { %v9805_v23 = vld [vmem:[#allocation10 + $0x1580] sm:$0xff]  ;;  %v19720_v60 = vcombine.high %v9677_v21, %v9681_v32  ;;  %15508 = vmatprep.subr.bf16.mxu1 %v19856_v29  ;;  %15459 = vmatmul.mubr.bf16.vlgmr.msra.gmra.mxu1 %v24164_v41  ;;  %v19719_v61 = vcombine.low %v9677_v21, %v9681_v32 }
 0x7a8   : > { %v9809_v0 = vld [vmem:[#allocation10 + $0x15a0] sm:$0xff]  ;;  %15509 = vmatpush1.bf16.msra.mxu1 %v19855_v26  ;;  %15540 = vmatprep.mubr.bf16.mxu1 %v24169_v54 }
 0x7a9   : > { %v9669_v17 = vld [vmem:[#allocation10 + $0x1140] sm:$0xff]  ;;  %v19848_v47 = vcombine.high %v9805_v23, %v9809_v0  ;;  %15469 = vmatprep.subr.bf16.mxu0 %v19720_v60  ;;  %v19847_v40 = vcombine.low %v9805_v23, %v9809_v0 }
 0x7aa   : > { %v9673_v24 = vld [vmem:[#allocation10 + $0x1160] sm:$0xff]  ;;  %15470 = vmatpush1.bf16.msra.mxu0 %v19719_v61 }
 0x7ab   : > { %v9797_v53 = vld [vmem:[#allocation10 + $0x1540] sm:$0xff]  ;;  %v19712_v58 = vcombine.high %v9669_v17, %v9673_v24  ;;  %15510 = vmatprep.subr.bf16.mxu1 %v19848_v47  ;;  %v19711_v1 = vcombine.low %v9669_v17, %v9673_v24 }
 0x7ac   : > { %v9801_v35 = vld [vmem:[#allocation10 + $0x1560] sm:$0xff]  ;;  %15511 = vmatpush1.bf16.msra.mxu1 %v19847_v40 }
 0x7ad   : > { %v9661_v46 = vld [vmem:[#allocation10 + $0x1100] sm:$0xff]  ;;  %v19840_v45 = vcombine.high %v9797_v53, %v9801_v35  ;;  %15471 = vmatprep.subr.bf16.mxu0 %v19712_v58  ;;  %v19839_v16 = vcombine.low %v9797_v53, %v9801_v35 }
 0x7ae   : > { %v9665_v43 = vld [vmem:[#allocation10 + $0x1120] sm:$0xff]  ;;  %15472 = vmatpush1.bf16.msra.mxu0 %v19711_v1 }
 0x7af   : > { %v9789_v44 = vld [vmem:[#allocation10 + $0x1500] sm:$0xff]  ;;  %v19704_v36 = vcombine.high %v9661_v46, %v9665_v43  ;;  %15512 = vmatprep.subr.bf16.mxu1 %v19840_v45  ;;  %v19703_v10 = vcombine.low %v9661_v46, %v9665_v43 }
 0x7b0   : > { %v9793_v31 = vld [vmem:[#allocation10 + $0x1520] sm:$0xff]  ;;  %15513 = vmatpush1.bf16.msra.mxu1 %v19839_v16 }
 0x7b1   : > { %v9653_v48 = vld [vmem:[#allocation10 + $0x10c0] sm:$0xff]  ;;  %v19832_v4 = vcombine.high %v9789_v44, %v9793_v31  ;;  %15473 = vmatprep.subr.bf16.mxu0 %v19704_v36  ;;  %v19831_v56 = vcombine.low %v9789_v44, %v9793_v31 }
 0x7b2   : > { %v9657_v20 = vld [vmem:[#allocation10 + $0x10e0] sm:$0xff]  ;;  %15474 = vmatpush1.bf16.msra.mxu0 %v19703_v10 }
 0x7b3   : > { %v9781_v51 = vld [vmem:[#allocation10 + $0x14c0] sm:$0xff]  ;;  %v19696_v50 = vcombine.high %v9653_v48, %v9657_v20  ;;  %15514 = vmatprep.subr.bf16.mxu1 %v19832_v4  ;;  %v19695_v6 = vcombine.low %v9653_v48, %v9657_v20 }
 0x7b4   : > { %v9785_v19 = vld [vmem:[#allocation10 + $0x14e0] sm:$0xff]  ;;  %15515 = vmatpush1.bf16.msra.mxu1 %v19831_v56 }
 0x7b5   : > { %v9645_v62 = vld [vmem:[#allocation10 + $0x1080] sm:$0xff]  ;;  %v19824_v59 = vcombine.high %v9781_v51, %v9785_v19  ;;  %15475 = vmatprep.subr.bf16.mxu0 %v19696_v50  ;;  %v19823_v3 = vcombine.low %v9781_v51, %v9785_v19 }
 0x7b6   : > { %v9649_v52 = vld [vmem:[#allocation10 + $0x10a0] sm:$0xff]  ;;  %15476 = vmatpush1.bf16.msra.mxu0 %v19695_v6 }
 0x7b7   : > { %v9773_v34 = vld [vmem:[#allocation10 + $0x1480] sm:$0xff]  ;;  %v19688_v2 = vcombine.high %v9645_v62, %v9649_v52  ;;  %15516 = vmatprep.subr.bf16.mxu1 %v19824_v59  ;;  %v19687_v32 = vcombine.low %v9645_v62, %v9649_v52 }
 0x7b8   : > { %v9777_v38 = vld [vmem:[#allocation10 + $0x14a0] sm:$0xff]  ;;  %15517 = vmatpush1.bf16.msra.mxu1 %v19823_v3 }
 0x7b9   : > { %v9637_v57 = vld [vmem:[#allocation10 + $0x1040] sm:$0xff]  ;;  %v19816_v8 = vcombine.high %v9773_v34, %v9777_v38  ;;  %15477 = vmatprep.subr.bf16.mxu0 %v19688_v2  ;;  %v19815_v23 = vcombine.low %v9773_v34, %v9777_v38 }
 0x7ba   : > { %v9641_v9 = vld [vmem:[#allocation10 + $0x1060] sm:$0xff]  ;;  %15478 = vmatpush1.bf16.msra.mxu0 %v19687_v32 }
 0x7bb   : > { %v9765_v30 = vld [vmem:[#allocation10 + $0x1440] sm:$0xff]  ;;  %v19680_v29 = vcombine.high %v9637_v57, %v9641_v9  ;;  %15518 = vmatprep.subr.bf16.mxu1 %v19816_v8  ;;  %v19679_v60 = vcombine.low %v9637_v57, %v9641_v9 }
 0x7bc   : > { %v9769_v21 = vld [vmem:[#allocation10 + $0x1460] sm:$0xff]  ;;  %15519 = vmatpush1.bf16.msra.mxu1 %v19815_v23 }
 0x7bd   : > { %v19808_v0 = vcombine.high %v9765_v30, %v9769_v21  ;;  %v9629_v22 = vld [vmem:[#allocation10 + $0x1000] sm:$0xff]  ;;  %15479 = vmatprep.subr.bf16.mxu0 %v19680_v29  ;;  %v19807_v17 = vcombine.low %v9765_v30, %v9769_v21 }
 0x7be   : > { %v9633_v15 = vld [vmem:[#allocation10 + $0x1020] sm:$0xff]  ;;  %15480 = vmatpush1.bf16.msra.mxu0 %v19679_v60 }
 0x7bf   : > { %v9757_v5 = vld [vmem:[#allocation10 + $0x1400] sm:$0xff]  ;;  %v19672_v24 = vcombine.high %v9629_v22, %v9633_v15  ;;  %15520 = vmatprep.subr.bf16.mxu1 %v19808_v0  ;;  %v19671_v58 = vcombine.low %v9629_v22, %v9633_v15 }
 0x7c0   : > { %v9761_v26 = vld [vmem:[#allocation10 + $0x1420] sm:$0xff]  ;;  %15521 = vmatpush1.bf16.msra.mxu1 %v19807_v17 }
 0x7c1   : > { %v19800_v47 = vcombine.high %v9757_v5, %v9761_v26  ;;  %v9749_v53 = vld [vmem:[#allocation10 + $0x13c0] sm:$0xff]  ;;  %15481 = vmatprep.subr.bf16.mxu0 %v19672_v24  ;;  %v19799_v46 = vcombine.low %v9757_v5, %v9761_v26 }
 0x7c2   : > { %v9753_v35 = vld [vmem:[#allocation10 + $0x13e0] sm:$0xff]  ;;  %15482 = vmatpush1.bf16.msra.mxu0 %v19671_v58 }
 0x7c3   : > { %v9877_v61 = vld [vmem:[#allocation10 + $0x17c0] sm:$0xff]  ;;  %v19792_v43 = vcombine.high %v9749_v53, %v9753_v35  ;;  %15522 = vmatprep.subr.bf16.mxu1 %v19800_v47  ;;  %v19791_v36 = vcombine.low %v9749_v53, %v9753_v35 }
 0x7c4   : > { %v9881_v40 = vld [vmem:[#allocation10 + $0x17e0] sm:$0xff]  ;;  %15523 = vmatpush1.bf16.msra.mxu1 %v19799_v46 }
 0x7c5   : > { %v19920_v44 = vcombine.high %v9877_v61, %v9881_v40  ;;  %v9741_v45 = vld [vmem:[#allocation10 + $0x1380] sm:$0xff]  ;;  %15483 = vmatprep.subr.bf16.mxu0 %v19792_v43  ;;  %v19919_v48 = vcombine.low %v9877_v61, %v9881_v40 }
 0x7c6   : > { %v9745_v31 = vld [vmem:[#allocation10 + $0x13a0] sm:$0xff]  ;;  %15484 = vmatpush2.bf16.msra.mxu0 %v19791_v36 }
 0x7c7   : > { %v9869_v1 = vld [vmem:[#allocation10 + $0x1780] sm:$0xff]  ;;  %v19784_v20 = vcombine.high %v9741_v45, %v9745_v31  ;;  %15524 = vmatprep.subr.bf16.mxu1 %v19920_v44  ;;  %v19783_v50 = vcombine.low %v9741_v45, %v9745_v31  ;;  %v9012_v44 = vld [vmem:[#allocation3 + $0x18] sm:$0xff] }
 0x7c8   : > { %v9873_v16 = vld [vmem:[#allocation10 + $0x17a0] sm:$0xff]  ;;  %15525 = vmatpush2.bf16.msra.mxu1 %v19919_v48 }
 0x7c9   : > { %v19912_v51 = vcombine.high %v9869_v1, %v9873_v16  ;;  %v9733_v4 = vld [vmem:[#allocation10 + $0x1340] sm:$0xff]  ;;  %15485 = vmatprep.subr.bf16.mxu0 %v19784_v20  ;;  %v19911_v62 = vcombine.low %v9869_v1, %v9873_v16 }
 0x7ca   : > { %v9737_v19 = vld [vmem:[#allocation10 + $0x1360] sm:$0xff]  ;;  %15486 = vmatpush2.bf16.msra.mxu0 %v19783_v50 }
 0x7cb   : > { %v9861_v10 = vld [vmem:[#allocation10 + $0x1740] sm:$0xff]  ;;  %v19776_v52 = vcombine.high %v9733_v4, %v9737_v19  ;;  %15526 = vmatprep.subr.bf16.mxu1 %v19912_v51  ;;  %v19775_v2 = vcombine.low %v9733_v4, %v9737_v19  ;;  %v9068_v51 = vcombine.high %v9012_v44, %v9012_v44 }
 0x7cc   : > { %v9865_v56 = vld [vmem:[#allocation10 + $0x1760] sm:$0xff]  ;;  %15527 = vmatpush2.bf16.msra.mxu1 %v19911_v62 }
 0x7cd   : > { %v19904_v34 = vcombine.high %v9861_v10, %v9865_v56  ;;  %v9725_v59 = vld [vmem:[#allocation10 + $0x1300] sm:$0xff]  ;;  %15487 = vmatprep.subr.bf16.mxu0 %v19776_v52  ;;  %v19903_v57 = vcombine.low %v9861_v10, %v9865_v56  ;;  %v24175_v52 = vrot.slane %v9012_v44, %v22843_v18 }
 0x7ce   : > { %v9729_v38 = vld [vmem:[#allocation10 + $0x1320] sm:$0xff]  ;;  %15488 = vmatpush2.bf16.msra.mxu0 %v19775_v2 }
 0x7cf   : > { %v9853_v6 = vld [vmem:[#allocation10 + $0x1700] sm:$0xff]  ;;  %v19768_v8 = vcombine.high %v9725_v59, %v9729_v38  ;;  %15528 = vmatprep.subr.bf16.mxu1 %v19904_v34  ;;  %v19767_v29 = vcombine.low %v9725_v59, %v9729_v38  ;;  %v24178_v38 = vrot.slane %v9068_v51, %v22843_v18 }
 0x7d0   : > { %v9857_v3 = vld [vmem:[#allocation10 + $0x1720] sm:$0xff]  ;;  %15529 = vmatpush2.bf16.msra.mxu1 %v19903_v57 }
 0x7d1   : > { %v19896_v9 = vcombine.high %v9853_v6, %v9857_v3  ;;  %v9717_v30 = vld [vmem:[#allocation10 + $0x12c0] sm:$0xff]  ;;  %15489 = vmatprep.subr.bf16.mxu0 %v19768_v8  ;;  %v19895_v0 = vcombine.low %v9853_v6, %v9857_v3 }
 0x7d2   : > { %v9721_v21 = vld [vmem:[#allocation10 + $0x12e0] sm:$0xff]  ;;  %15490 = vmatpush2.bf16.msra.mxu0 %v19767_v29  ;;  %v24190_v29 = vpack.c.bf16 %v24152_v37, %v24152_v37 }
 0x7d3   : > { %v9845_v32 = vld [vmem:[#allocation10 + $0x16c0] sm:$0xff]  ;;  %v19760_v22 = vcombine.high %v9717_v30, %v9721_v21  ;;  %15530 = vmatprep.subr.bf16.mxu1 %v19896_v9  ;;  %v19759_v24 = vcombine.low %v9717_v30, %v9721_v21  ;;  %v9083_v30 = vcombine.high %v24175_v52, %v24175_v52  ;;  %v24184_v21 = vpack.c.bf16 %v24149_v33, %v24149_v33 }
 0x7d4   : > { %v9849_v23 = vld [vmem:[#allocation10 + $0x16e0] sm:$0xff]  ;;  %15531 = vmatpush2.bf16.msra.mxu1 %v19895_v0 }
 0x7d5   : > { %v19888_v15 = vcombine.high %v9845_v32, %v9849_v23  ;;  %v9709_v5 = vld [vmem:[#allocation10 + $0x1280] sm:$0xff]  ;;  %15491 = vmatprep.subr.bf16.mxu0 %v19760_v22  ;;  %v19887_v47 = vcombine.low %v9845_v32, %v9849_v23  ;;  %v9084_v23 = vcombine.high %v24178_v38, %v24178_v38 }
 0x7d6   : > { %v9713_v26 = vld [vmem:[#allocation10 + $0x12a0] sm:$0xff]  ;;  %15492 = vmatpush2.bf16.msra.mxu0 %v19759_v24 }
 0x7d7   : > { %v9837_v60 = vld [vmem:[#allocation10 + $0x1680] sm:$0xff]  ;;  %v19752_v53 = vcombine.high %v9709_v5, %v9713_v26  ;;  %15532 = vmatprep.subr.bf16.mxu1 %v19888_v15  ;;  %v19751_v43 = vcombine.low %v9709_v5, %v9713_v26 }
 0x7d8   : > { %v9841_v17 = vld [vmem:[#allocation10 + $0x16a0] sm:$0xff]  ;;  %15533 = vmatpush2.bf16.msra.mxu1 %v19887_v47  ;;  %v24195_v47 = vpack.c.bf16 %v9084_v23, %v9084_v23 }
 0x7d9   : > { %v19880_v35 = vcombine.high %v9837_v60, %v9841_v17  ;;  %v9701_v61 = vld [vmem:[#allocation10 + $0x1240] sm:$0xff]  ;;  %15493 = vmatprep.subr.bf16.mxu0 %v19752_v53  ;;  %v19879_v45 = vcombine.low %v9837_v60, %v9841_v17  ;;  %v24192_v60 = vpack.c.bf16 %v9083_v30, %v9083_v30 }
 0x7da   : > { %v9705_v40 = vld [vmem:[#allocation10 + $0x1260] sm:$0xff]  ;;  %15494 = vmatpush2.bf16.msra.mxu0 %v19751_v43 }
 0x7db   : > { %v9829_v58 = vld [vmem:[#allocation10 + $0x1640] sm:$0xff]  ;;  %v19744_v31 = vcombine.high %v9701_v61, %v9705_v40  ;;  %15534 = vmatprep.subr.bf16.mxu1 %v19880_v35  ;;  %v19743_v4 = vcombine.low %v9701_v61, %v9705_v40 }
 0x7dc   : > { %v9833_v46 = vld [vmem:[#allocation10 + $0x1660] sm:$0xff]  ;;  %15535 = vmatpush2.bf16.msra.mxu1 %v19879_v45 }
 0x7dd   : > { %v19872_v1 = vcombine.high %v9829_v58, %v9833_v46  ;;  %v9693_v16 = vld [vmem:[#allocation10 + $0x1200] sm:$0xff]  ;;  %15495 = vmatprep.subr.bf16.mxu0 %v19744_v31  ;;  %v19871_v19 = vcombine.low %v9829_v58, %v9833_v46 }
 0x7de   : > { %v9697_v36 = vld [vmem:[#allocation10 + $0x1220] sm:$0xff]  ;;  %15496 = vmatpush2.bf16.msra.mxu0 %v19743_v4 }
 0x7df   : > { %v9821_v48 = vld [vmem:[#allocation10 + $0x1600] sm:$0xff]  ;;  %v19736_v10 = vcombine.high %v9693_v16, %v9697_v36  ;;  %15536 = vmatprep.subr.bf16.mxu1 %v19872_v1  ;;  %v19735_v6 = vcombine.low %v9693_v16, %v9697_v36 }
 0x7e0   : > { %v9825_v20 = vld [vmem:[#allocation10 + $0x1620] sm:$0xff]  ;;  %15537 = vmatpush2.bf16.msra.mxu1 %v19871_v19 }
 0x7e1   : > { %v19864_v56 = vcombine.high %v9821_v48, %v9825_v20  ;;  %v9941_v50 = vld [vmem:[#allocation10 + $0x19c0] sm:$0xff]  ;;  %15497 = vmatprep.subr.bf16.mxu0 %v19736_v10  ;;  %v19863_v3 = vcombine.low %v9821_v48, %v9825_v20 }
 0x7e2   : > { %v9945_v62 = vld [vmem:[#allocation10 + $0x19e0] sm:$0xff]  ;;  %15498 = vmatpush2.bf16.msra.mxu0 %v19735_v6 }
 0x7e3   : > { %v10069_v34 = vld [vmem:[#allocation10 + $0x1dc0] sm:$0xff]  ;;  %v19984_v2 = vcombine.high %v9941_v50, %v9945_v62  ;;  %15538 = vmatprep.subr.bf16.mxu1 %v19864_v56  ;;  %v19983_v0 = vcombine.low %v9941_v50, %v9945_v62 }
 0x7e4   : > { %v10073_v59 = vld [vmem:[#allocation10 + $0x1de0] sm:$0xff]  ;;  %15539 = vmatpush2.bf16.msra.mxu1 %v19863_v3 }
 0x7e5   : > { %v20112_v57 = vcombine.high %v10069_v34, %v10073_v59  ;;  %v9933_v8 = vld [vmem:[#allocation10 + $0x1980] sm:$0xff]  ;;  %15549 = vmatprep.subr.bf16.mxu0 %v19984_v2  ;;  %v20111_v22 = vcombine.low %v10069_v34, %v10073_v59  ;;  %15500 = vmatmul.mubr.bf16.vlgmr.msra.gmra.mxu0 %v24184_v21 }
 0x7e6   : > { %v9937_v9 = vld [vmem:[#allocation10 + $0x19a0] sm:$0xff]  ;;  %15550 = vmatpush1.bf16.msra.mxu0 %v19983_v0  ;;  %15581 = vmatprep.mubr.bf16.mxu0 %v24192_v60 }
 0x7e7   : > { %v10061_v32 = vld [vmem:[#allocation10 + $0x1d80] sm:$0xff]  ;;  %v19976_v15 = vcombine.high %v9933_v8, %v9937_v9  ;;  %15590 = vmatprep.subr.bf16.mxu1 %v20112_v57  ;;  %15541 = vmatmul.mubr.bf16.vlgmr.msra.gmra.mxu1 %v24190_v29  ;;  %v19975_v37 = vcombine.low %v9933_v8, %v9937_v9 }
 0x7e8   : > { %v10065_v18 = vld [vmem:[#allocation10 + $0x1da0] sm:$0xff]  ;;  %15591 = vmatpush1.bf16.msra.mxu1 %v20111_v22  ;;  %15622 = vmatprep.mubr.bf16.mxu1 %v24195_v47 }
 0x7e9   : > { %v20104_v5 = vcombine.high %v10061_v32, %v10065_v18  ;;  %v9925_v26 = vld [vmem:[#allocation10 + $0x1940] sm:$0xff]  ;;  %15551 = vmatprep.subr.bf16.mxu0 %v19976_v15  ;;  %v20103_v53 = vcombine.low %v10061_v32, %v10065_v18 }
 0x7ea   : > { %v9929_v33 = vld [vmem:[#allocation10 + $0x1960] sm:$0xff]  ;;  %15552 = vmatpush1.bf16.msra.mxu0 %v19975_v37 }
 0x7eb   : > { %v10053_v17 = vld [vmem:[#allocation10 + $0x1d40] sm:$0xff]  ;;  %v19968_v35 = vcombine.high %v9925_v26, %v9929_v33  ;;  %15592 = vmatprep.subr.bf16.mxu1 %v20104_v5  ;;  %v19967_v44 = vcombine.low %v9925_v26, %v9929_v33 }
 0x7ec   : > { %v10057_v24 = vld [vmem:[#allocation10 + $0x1d60] sm:$0xff]  ;;  %15593 = vmatpush1.bf16.msra.mxu1 %v20103_v53 }
 0x7ed   : > { %v20096_v61 = vcombine.high %v10053_v17, %v10057_v24  ;;  %v9917_v40 = vld [vmem:[#allocation10 + $0x1900] sm:$0xff]  ;;  %15553 = vmatprep.subr.bf16.mxu0 %v19968_v35  ;;  %v20095_v45 = vcombine.low %v10053_v17, %v10057_v24 }
 0x7ee   : > { %v9921_v58 = vld [vmem:[#allocation10 + $0x1920] sm:$0xff]  ;;  %15554 = vmatpush1.bf16.msra.mxu0 %v19967_v44 }
 0x7ef   : > { %v10045_v46 = vld [vmem:[#allocation10 + $0x1d00] sm:$0xff]  ;;  %v19960_v31 = vcombine.high %v9917_v40, %v9921_v58  ;;  %15594 = vmatprep.subr.bf16.mxu1 %v20096_v61  ;;  %v19959_v51 = vcombine.low %v9917_v40, %v9921_v58 }
 0x7f0   : > { %v10049_v43 = vld [vmem:[#allocation10 + $0x1d20] sm:$0xff]  ;;  %15595 = vmatpush1.bf16.msra.mxu1 %v20095_v45 }
 0x7f1   : > { %v20088_v1 = vcombine.high %v10045_v46, %v10049_v43  ;;  %v9909_v16 = vld [vmem:[#allocation10 + $0x18c0] sm:$0xff]  ;;  %15555 = vmatprep.subr.bf16.mxu0 %v19960_v31  ;;  %v20087_v4 = vcombine.low %v10045_v46, %v10049_v43 }
 0x7f2   : > { %v9913_v36 = vld [vmem:[#allocation10 + $0x18e0] sm:$0xff]  ;;  %15556 = vmatpush1.bf16.msra.mxu0 %v19959_v51 }
 0x7f3   : > { %v10037_v48 = vld [vmem:[#allocation10 + $0x1cc0] sm:$0xff]  ;;  %v19952_v19 = vcombine.high %v9909_v16, %v9913_v36  ;;  %15596 = vmatprep.subr.bf16.mxu1 %v20088_v1  ;;  %v19951_v59 = vcombine.low %v9909_v16, %v9913_v36 }
 0x7f4   : > { %v10041_v20 = vld [vmem:[#allocation10 + $0x1ce0] sm:$0xff]  ;;  %15597 = vmatpush1.bf16.msra.mxu1 %v20087_v4 }
 0x7f5   : > { %v20080_v10 = vcombine.high %v10037_v48, %v10041_v20  ;;  %v9901_v56 = vld [vmem:[#allocation10 + $0x1880] sm:$0xff]  ;;  %15557 = vmatprep.subr.bf16.mxu0 %v19952_v19  ;;  %v20079_v6 = vcombine.low %v10037_v48, %v10041_v20 }
 0x7f6   : > { %v9905_v50 = vld [vmem:[#allocation10 + $0x18a0] sm:$0xff]  ;;  %15558 = vmatpush1.bf16.msra.mxu0 %v19951_v59 }
 0x7f7   : > { %v10029_v62 = vld [vmem:[#allocation10 + $0x1c80] sm:$0xff]  ;;  %v19944_v3 = vcombine.high %v9901_v56, %v9905_v50  ;;  %15598 = vmatprep.subr.bf16.mxu1 %v20080_v10  ;;  %v19943_v32 = vcombine.low %v9901_v56, %v9905_v50 }
 0x7f8   : > { %v10033_v34 = vld [vmem:[#allocation10 + $0x1ca0] sm:$0xff]  ;;  %15599 = vmatpush1.bf16.msra.mxu1 %v20079_v6 }
 0x7f9   : > { %v20072_v2 = vcombine.high %v10029_v62, %v10033_v34  ;;  %v9893_v57 = vld [vmem:[#allocation10 + $0x1840] sm:$0xff]  ;;  %15559 = vmatprep.subr.bf16.mxu0 %v19944_v3  ;;  %v20071_v18 = vcombine.low %v10029_v62, %v10033_v34 }
 0x7fa   : > { %v9897_v8 = vld [vmem:[#allocation10 + $0x1860] sm:$0xff]  ;;  %15560 = vmatpush1.bf16.msra.mxu0 %v19943_v32 }
 0x7fb   : > { %v10021_v9 = vld [vmem:[#allocation10 + $0x1c40] sm:$0xff]  ;;  %v19936_v23 = vcombine.high %v9893_v57, %v9897_v8  ;;  %15600 = vmatprep.subr.bf16.mxu1 %v20072_v2  ;;  %v19935_v33 = vcombine.low %v9893_v57, %v9897_v8 }
 0x7fc   : > { %v10025_v30 = vld [vmem:[#allocation10 + $0x1c60] sm:$0xff]  ;;  %15601 = vmatpush1.bf16.msra.mxu1 %v20071_v18 }
 0x7fd   : > { %v20064_v0 = vcombine.high %v10021_v9, %v10025_v30  ;;  %v9885_v22 = vld [vmem:[#allocation10 + $0x1800] sm:$0xff]  ;;  %15561 = vmatprep.subr.bf16.mxu0 %v19936_v23  ;;  %v20063_v17 = vcombine.low %v10021_v9, %v10025_v30 }
 0x7fe   : > { %v9889_v15 = vld [vmem:[#allocation10 + $0x1820] sm:$0xff]  ;;  %15562 = vmatpush1.bf16.msra.mxu0 %v19935_v33 }
 0x7ff   : > { %v10013_v5 = vld [vmem:[#allocation10 + $0x1c00] sm:$0xff]  ;;  %v19928_v24 = vcombine.high %v9885_v22, %v9889_v15  ;;  %15602 = vmatprep.subr.bf16.mxu1 %v20064_v0  ;;  %v19927_v58 = vcombine.low %v9885_v22, %v9889_v15 }
 0x800   : > { %v10017_v26 = vld [vmem:[#allocation10 + $0x1c20] sm:$0xff]  ;;  %15603 = vmatpush1.bf16.msra.mxu1 %v20063_v17 }
 0x801   : > { %v20056_v37 = vcombine.high %v10013_v5, %v10017_v26  ;;  %v10005_v53 = vld [vmem:[#allocation10 + $0x1bc0] sm:$0xff]  ;;  %15563 = vmatprep.subr.bf16.mxu0 %v19928_v24  ;;  %v20055_v46 = vcombine.low %v10013_v5, %v10017_v26 }
 0x802   : > { %v10009_v35 = vld [vmem:[#allocation10 + $0x1be0] sm:$0xff]  ;;  %15564 = vmatpush1.bf16.msra.mxu0 %v19927_v58 }
 0x803   : > { %v10133_v61 = vld [vmem:[#allocation10 + $0x1fc0] sm:$0xff]  ;;  %v20048_v43 = vcombine.high %v10005_v53, %v10009_v35  ;;  %15604 = vmatprep.subr.bf16.mxu1 %v20056_v37  ;;  %v20047_v36 = vcombine.low %v10005_v53, %v10009_v35 }
 0x804   : > { %v10137_v40 = vld [vmem:[#allocation10 + $0x1fe0] sm:$0xff]  ;;  %15605 = vmatpush1.bf16.msra.mxu1 %v20055_v46 }
 0x805   : > { %v20176_v44 = vcombine.high %v10133_v61, %v10137_v40  ;;  %v9997_v45 = vld [vmem:[#allocation10 + $0x1b80] sm:$0xff]  ;;  %15565 = vmatprep.subr.bf16.mxu0 %v20048_v43  ;;  %v20175_v48 = vcombine.low %v10133_v61, %v10137_v40 }
 0x806   : > { %v10001_v31 = vld [vmem:[#allocation10 + $0x1ba0] sm:$0xff]  ;;  %15566 = vmatpush2.bf16.msra.mxu0 %v20047_v36 }
 0x807   : > { %v10125_v1 = vld [vmem:[#allocation10 + $0x1f80] sm:$0xff]  ;;  %v20040_v20 = vcombine.high %v9997_v45, %v10001_v31  ;;  %15606 = vmatprep.subr.bf16.mxu1 %v20176_v44  ;;  %v20039_v50 = vcombine.low %v9997_v45, %v10001_v31 }
 0x808   : > { %v10129_v16 = vld [vmem:[#allocation10 + $0x1fa0] sm:$0xff]  ;;  %15607 = vmatpush2.bf16.msra.mxu1 %v20175_v48 }
 0x809   : > { %v20168_v51 = vcombine.high %v10125_v1, %v10129_v16  ;;  %v9989_v4 = vld [vmem:[#allocation10 + $0x1b40] sm:$0xff]  ;;  %15567 = vmatprep.subr.bf16.mxu0 %v20040_v20  ;;  %v20167_v62 = vcombine.low %v10125_v1, %v10129_v16 }
 0x80a   : > { %v9993_v19 = vld [vmem:[#allocation10 + $0x1b60] sm:$0xff]  ;;  %15568 = vmatpush2.bf16.msra.mxu0 %v20039_v50 }
 0x80b   : > { %v10117_v10 = vld [vmem:[#allocation10 + $0x1f40] sm:$0xff]  ;;  %v20032_v34 = vcombine.high %v9989_v4, %v9993_v19  ;;  %15608 = vmatprep.subr.bf16.mxu1 %v20168_v51  ;;  %v20031_v8 = vcombine.low %v9989_v4, %v9993_v19 }
 0x80c   : > { %v10121_v56 = vld [vmem:[#allocation10 + $0x1f60] sm:$0xff]  ;;  %15609 = vmatpush2.bf16.msra.mxu1 %v20167_v62  ;;  %v9174_v62 = vld [vmem:[#allocation10 + $0x1c8] sm:$0xff] }
 0x80d   : > { %v20160_v59 = vcombine.high %v10117_v10, %v10121_v56  ;;  %v9981_v6 = vld [vmem:[#allocation10 + $0x1b00] sm:$0xff]  ;;  %15569 = vmatprep.subr.bf16.mxu0 %v20032_v34  ;;  %v20159_v9 = vcombine.low %v10117_v10, %v10121_v56  ;;  %v9178_v34 = vld [vmem:[#allocation10 + $0x1e8] sm:$0xff] }
 0x80e   : > { %v9985_v3 = vld [vmem:[#allocation10 + $0x1b20] sm:$0xff]  ;;  %15570 = vmatpush2.bf16.msra.mxu0 %v20031_v8  ;;  %v19218_v8 = vcombine.high %v9174_v62, %v9178_v34 }
 0x80f   : > { %v10109_v2 = vld [vmem:[#allocation10 + $0x1f00] sm:$0xff]  ;;  %v20024_v30 = vcombine.high %v9981_v6, %v9985_v3  ;;  %15610 = vmatprep.subr.bf16.mxu1 %v20160_v59  ;;  %v20023_v15 = vcombine.low %v9981_v6, %v9985_v3  ;;  %v9302_v59 = vld [vmem:[#allocation10 + $0x5c8] sm:$0xff] }
 0x810   : > { %v10113_v57 = vld [vmem:[#allocation10 + $0x1f20] sm:$0xff]  ;;  %15611 = vmatpush2.bf16.msra.mxu1 %v20159_v9  ;;  %v9306_v6 = vld [vmem:[#allocation10 + $0x5e8] sm:$0xff] }
 0x811   : > { %v20152_v32 = vcombine.high %v10109_v2, %v10113_v57  ;;  %v9973_v18 = vld [vmem:[#allocation10 + $0x1ac0] sm:$0xff]  ;;  %15571 = vmatprep.subr.bf16.mxu0 %v20024_v30  ;;  %v20151_v5 = vcombine.low %v10109_v2, %v10113_v57  ;;  %v19346_v9 = vcombine.high %v9302_v59, %v9306_v6  ;;  %v9166_v30 = vld [vmem:[#allocation10 + $0x188] sm:$0xff] }
 0x812   : > { %v9977_v23 = vld [vmem:[#allocation10 + $0x1ae0] sm:$0xff]  ;;  %15572 = vmatpush2.bf16.msra.mxu0 %v20023_v15  ;;  %v24207_v15 = vpack.c.bf16 %v24178_v38, %v24178_v38 }
 0x813   : > { %v10101_v0 = vld [vmem:[#allocation10 + $0x1ec0] sm:$0xff]  ;;  %v20016_v26 = vcombine.high %v9973_v18, %v9977_v23  ;;  %15612 = vmatprep.subr.bf16.mxu1 %v20152_v32  ;;  %v20015_v35 = vcombine.low %v9973_v18, %v9977_v23  ;;  %v9170_v32 = vld [vmem:[#allocation10 + $0x1a8] sm:$0xff]  ;;  %v24202_v18 = vpack.c.bf16 %v24175_v52, %v24175_v52 }
 0x814   : > { %v10105_v22 = vld [vmem:[#allocation10 + $0x1ee0] sm:$0xff]  ;;  %15613 = vmatpush2.bf16.msra.mxu1 %v20151_v5  ;;  %v9294_v23 = vld [vmem:[#allocation10 + $0x588] sm:$0xff]  ;;  %v19217_v5 = vcombine.low %v9174_v62, %v9178_v34  ;;  %v19209_v38 = vcombine.low %v9166_v30, %v9170_v32 }
 0x815   : > { %v20144_v33 = vcombine.high %v10101_v0, %v10105_v22  ;;  %v9965_v17 = vld [vmem:[#allocation10 + $0x1a80] sm:$0xff]  ;;  %15573 = vmatprep.subr.bf16.mxu0 %v20016_v26  ;;  %v20143_v61 = vcombine.low %v10101_v0, %v10105_v22  ;;  %v9298_v0 = vld [vmem:[#allocation10 + $0x5a8] sm:$0xff]  ;;  %v19345_v26 = vcombine.low %v9302_v59, %v9306_v6 }
 0x816   : > { %v9969_v24 = vld [vmem:[#allocation10 + $0x1aa0] sm:$0xff]  ;;  %15574 = vmatpush2.bf16.msra.mxu0 %v20015_v35  ;;  %v9158_v52 = vld [vmem:[#allocation10 + $0x148] sm:$0xff] }
 0x817   : > { %v10093_v37 = vld [vmem:[#allocation10 + $0x1e80] sm:$0xff]  ;;  %v20008_v40 = vcombine.high %v9965_v17, %v9969_v24  ;;  %15614 = vmatprep.subr.bf16.mxu1 %v20144_v33  ;;  %v20007_v31 = vcombine.low %v9965_v17, %v9969_v24  ;;  %v19210_v33 = vcombine.high %v9166_v30, %v9170_v32  ;;  %v19338_v24 = vcombine.high %v9294_v23, %v9298_v0  ;;  %v9286_v35 = vld [vmem:[#allocation10 + $0x548] sm:$0xff] }
 0x818   : > { %v10097_v53 = vld [vmem:[#allocation10 + $0x1ea0] sm:$0xff]  ;;  %15615 = vmatpush2.bf16.msra.mxu1 %v20143_v61  ;;  %v9290_v61 = vld [vmem:[#allocation10 + $0x568] sm:$0xff] }
 0x819   : > { %v20136_v58 = vcombine.high %v10093_v37, %v10097_v53  ;;  %v9957_v46 = vld [vmem:[#allocation10 + $0x1a40] sm:$0xff]  ;;  %15575 = vmatprep.subr.bf16.mxu0 %v20008_v40  ;;  %v20135_v1 = vcombine.low %v10093_v37, %v10097_v53  ;;  %v9162_v37 = vld [vmem:[#allocation10 + $0x168] sm:$0xff]  ;;  %v19329_v62 = vcombine.low %v9286_v35, %v9290_v61 }
 0x81a   : > { %v9961_v43 = vld [vmem:[#allocation10 + $0x1a60] sm:$0xff]  ;;  %15576 = vmatpush2.bf16.msra.mxu0 %v20007_v31 }
 0x81b   : > { %v10085_v44 = vld [vmem:[#allocation10 + $0x1e40] sm:$0xff]  ;;  %v20000_v16 = vcombine.high %v9957_v46, %v9961_v43  ;;  %15616 = vmatprep.subr.bf16.mxu1 %v20136_v58  ;;  %v19999_v19 = vcombine.low %v9957_v46, %v9961_v43  ;;  %v19337_v43 = vcombine.low %v9294_v23, %v9298_v0  ;;  %v9134_v0 = vld [vmem:[#allocation10 + $0x88] sm:$0xff] }
 0x81c   : > { %v10089_v45 = vld [vmem:[#allocation10 + $0x1e60] sm:$0xff]  ;;  %15617 = vmatpush2.bf16.msra.mxu1 %v20135_v1 }
 0x81d   : > { %v20128_v36 = vcombine.high %v10085_v44, %v10089_v45  ;;  %v9949_v48 = vld [vmem:[#allocation10 + $0x1a00] sm:$0xff]  ;;  %15577 = vmatprep.subr.bf16.mxu0 %v20000_v16  ;;  %v20127_v10 = vcombine.low %v10085_v44, %v10089_v45  ;;  %v19202_v44 = vcombine.high %v9158_v52, %v9162_v37  ;;  %v19330_v16 = vcombine.high %v9286_v35, %v9290_v61  ;;  %v9254_v35 = vld [vmem:[#allocation10 + $0x448] sm:$0xff] }
 0x81e   : > { %v9953_v20 = vld [vmem:[#allocation10 + $0x1a20] sm:$0xff]  ;;  %15578 = vmatpush2.bf16.msra.mxu0 %v19999_v19  ;;  %v9258_v61 = vld [vmem:[#allocation10 + $0x468] sm:$0xff] }
 0x81f   : > { %v10077_v51 = vld [vmem:[#allocation10 + $0x1e00] sm:$0xff]  ;;  %v19992_v56 = vcombine.high %v9949_v48, %v9953_v20  ;;  %15618 = vmatprep.subr.bf16.mxu1 %v20128_v36  ;;  %v19991_v3 = vcombine.low %v9949_v48, %v9953_v20  ;;  %v9150_v36 = vld [vmem:[#allocation10 + $0x108] sm:$0xff] }
 0x820   : > { %v10081_v4 = vld [vmem:[#allocation10 + $0x1e20] sm:$0xff]  ;;  %15619 = vmatpush2.bf16.msra.mxu1 %v20127_v10  ;;  %v9154_v48 = vld [vmem:[#allocation10 + $0x128] sm:$0xff] }
 0x821   : > { %v20120_v50 = vcombine.high %v10077_v51, %v10081_v4  ;;  %15579 = vmatprep.subr.bf16.mxu0 %v19992_v56  ;;  %v20119_v2 = vcombine.low %v10077_v51, %v10081_v4  ;;  %v10141_v57 = vld [vmem:[#allocation12] sm:$0xff]  ;;  %v9278_v51 = vld [vmem:[#allocation10 + $0x508] sm:$0xff]  ;;  %v19201_v56 = vcombine.low %v9158_v52, %v9162_v37  ;;  %v19194_v34 = vcombine.high %v9150_v36, %v9154_v48 }
 0x822   : > { %15580 = vmatpush2.bf16.msra.mxu0 %v19991_v3  ;;  %v10146_v22 = vrot.slane %v10141_v57, %v23988_v11  ;;  %v10150_v17 = vrot.slane %v10141_v57, %v23999_v7  ;;  %v9282_v4 = vld [vmem:[#allocation10 + $0x528] sm:$0xff] }
 0x823   : > { %15620 = vmatprep.subr.bf16.mxu1 %v20120_v50  ;;  %15631 = vmatprep.subr.bf16.mxu0 %v19218_v8  ;;  %v19322_v6 = vcombine.high %v9278_v51, %v9282_v4  ;;  %v9142_v3 = vld [vmem:[#allocation10 + $0xc8] sm:$0xff]  ;;  %v19321_v30 = vcombine.low %v9278_v51, %v9282_v4 }
 0x824   : > { %15621 = vmatpush2.bf16.msra.mxu1 %v20119_v2  ;;  %v15337_v53 = vpop.f32.mrf.mxu0  ;;  %v9146_v2 = vld [vmem:[#allocation10 + $0xe8] sm:$0xff] }
 0x825   : > { %15672 = vmatprep.subr.bf16.mxu1 %v19346_v9  ;;  %15582 = vmatmul.mubr.bf16.vlgmr.msra.gmra.mxu0 %v24202_v18  ;;  %v15338_v40 = vadd.f32 %v15337_v53, %v10146_v22  ;;  %v9270_v57 = vld [vmem:[#allocation10 + $0x4c8] sm:$0xff]  ;;  %v19193_v9 = vcombine.low %v9150_v36, %v9154_v48  ;;  %v19186_v32 = vcombine.high %v9142_v3, %v9146_v2 }
 0x826   : > { %v15378_v58 = vpop.f32.mrf.mxu1  ;;  %15632 = vmatpush1.bf16.msra.mxu0 %v19217_v5  ;;  %v15339_v46 = vpop.f32.mrf.mxu0  ;;  %15663 = vmatprep.mubr.bf16.mxu0 %v24114_v14  ;;  %v9274_v8 = vld [vmem:[#allocation10 + $0x4e8] sm:$0xff]  ;;  %v19297_v36 = vcombine.low %v9254_v35, %v9258_v61 }
 0x827   : > { %15623 = vmatmul.mubr.bf16.vlgmr.msra.gmra.mxu1 %v24207_v15  ;;  %15633 = vmatprep.subr.bf16.mxu0 %v19210_v33  ;;  %v24212_v45 = vadd.f32 %v15378_v58, %v15338_v40  ;;  %v15340_v31 = vadd.f32 %v15339_v46, %v10150_v17  ;;  %v19314_v23 = vcombine.high %v9270_v57, %v9274_v8  ;;  %v9138_v22 = vld [vmem:[#allocation10 + $0xa8] sm:$0xff] }
 0x828   : > { %15673 = vmatpush1.bf16.msra.mxu1 %v19345_v26  ;;  %v15380_v1 = vpop.f32.mrf.mxu1  ;;  %v15341_v20 = vpop.f32.mrf.mxu0  ;;  %15704 = vmatprep.mubr.bf16.mxu1 %v24119_v27  ;;  %v9262_v5 = vld [vmem:[#allocation10 + $0x488] sm:$0xff]  ;;  %v19185_v33 = vcombine.low %v9142_v3, %v9146_v2  ;;  %v19313_v17 = vcombine.low %v9270_v57, %v9274_v8  ;;  %v19177_v40 = vcombine.low %v9134_v0, %v9138_v22 }
 0x829   : > { %15674 = vmatprep.subr.bf16.mxu1 %v19338_v24  ;;  %v24216_v19 = vadd.f32 %v15380_v1, %v15340_v31  ;;  %v9266_v26 = vld [vmem:[#allocation10 + $0x4a8] sm:$0xff]  ;;  %v19178_v24 = vcombine.high %v9134_v0, %v9138_v22  ;;  %v19298_v46 = vcombine.high %v9254_v35, %v9258_v61 }
 0x82a   : > { %v15382_v10 = vpop.f32.mrf.mxu1  ;;  %15634 = vmatpush1.bf16.msra.mxu0 %v19209_v38  ;;  %v15342_v50 = vpop.f32.mrf.mxu0  ;;  %v19306_v52 = vcombine.high %v9262_v5, %v9266_v26  ;;  %v9126_v37 = vld [vmem:[#allocation10 + $0x48] sm:$0xff]  ;;  %v19305_v58 = vcombine.low %v9262_v5, %v9266_v26 }
 0x82b   : > { %15635 = vmatprep.subr.bf16.mxu0 %v19202_v44  ;;  %v9130_v53 = vld [vmem:[#allocation10 + $0x68] sm:$0xff] }
 0x82c   : > { %15675 = vmatpush1.bf16.msra.mxu1 %v19337_v43  ;;  %v15383_v59 = vpop.f32.mrf.mxu1  ;;  %v19170_v38 = vcombine.high %v9126_v37, %v9130_v53  ;;  %v9118_v43 = vld [vmem:[#allocation10 + $0x8] sm:$0xff] }
 0x82d   : > { %15676 = vmatprep.subr.bf16.mxu1 %v19330_v16  ;;  %v9122_v44 = vld [vmem:[#allocation10 + $0x28] sm:$0xff]  ;;  %v19169_v16 = vcombine.low %v9126_v37, %v9130_v53 }
 0x82e   : > { %15636 = vmatpush1.bf16.msra.mxu0 %v19201_v56  ;;  %v9246_v31 = vld [vmem:[#allocation10 + $0x408] sm:$0xff]  ;;  %v19162_v48 = vcombine.high %v9118_v43, %v9122_v44  ;;  %v19161_v50 = vcombine.low %v9118_v43, %v9122_v44 }
 0x82f   : > { %15637 = vmatprep.subr.bf16.mxu0 %v19194_v34  ;;  %v9250_v1 = vld [vmem:[#allocation10 + $0x428] sm:$0xff] }
 0x830   : > { %15677 = vmatpush1.bf16.msra.mxu1 %v19329_v62  ;;  %v19290_v20 = vcombine.high %v9246_v31, %v9250_v1  ;;  %v9238_v51 = vld [vmem:[#allocation10 + $0x3c8] sm:$0xff]  ;;  %v19289_v62 = vcombine.low %v9246_v31, %v9250_v1 }
 0x831   : > { %15678 = vmatprep.subr.bf16.mxu1 %v19322_v6  ;;  %v9242_v4 = vld [vmem:[#allocation10 + $0x3e8] sm:$0xff] }
 0x832   : > { %15638 = vmatpush1.bf16.msra.mxu0 %v19193_v9  ;;  %v9366_v10 = vld [vmem:[#allocation10 + $0x7c8] sm:$0xff]  ;;  %v19282_v34 = vcombine.high %v9238_v51, %v9242_v4  ;;  %v19281_v8 = vcombine.low %v9238_v51, %v9242_v4 }
 0x833   : > { %15639 = vmatprep.subr.bf16.mxu0 %v19186_v32  ;;  %v9370_v56 = vld [vmem:[#allocation10 + $0x7e8] sm:$0xff] }
 0x834   : > { %15679 = vmatpush1.bf16.msra.mxu1 %v19321_v30  ;;  %v19410_v59 = vcombine.high %v9366_v10, %v9370_v56  ;;  %v9230_v6 = vld [vmem:[#allocation10 + $0x388] sm:$0xff]  ;;  %v19409_v9 = vcombine.low %v9366_v10, %v9370_v56 }
 0x835   : > { %15680 = vmatprep.subr.bf16.mxu1 %v19314_v23  ;;  %v9234_v3 = vld [vmem:[#allocation10 + $0x3a8] sm:$0xff] }
 0x836   : > { %15640 = vmatpush1.bf16.msra.mxu0 %v19185_v33  ;;  %v9358_v2 = vld [vmem:[#allocation10 + $0x788] sm:$0xff]  ;;  %v19274_v30 = vcombine.high %v9230_v6, %v9234_v3  ;;  %v19273_v26 = vcombine.low %v9230_v6, %v9234_v3 }
 0x837   : > { %15641 = vmatprep.subr.bf16.mxu0 %v19178_v24  ;;  %v9362_v57 = vld [vmem:[#allocation10 + $0x7a8] sm:$0xff] }
 0x838   : > { %15681 = vmatpush1.bf16.msra.mxu1 %v19313_v17  ;;  %v19402_v32 = vcombine.high %v9358_v2, %v9362_v57  ;;  %v9222_v23 = vld [vmem:[#allocation10 + $0x348] sm:$0xff]  ;;  %v19401_v33 = vcombine.low %v9358_v2, %v9362_v57 }
 0x839   : > { %15682 = vmatprep.subr.bf16.mxu1 %v19306_v52  ;;  %v9226_v0 = vld [vmem:[#allocation10 + $0x368] sm:$0xff] }
 0x83a   : > { %15642 = vmatpush1.bf16.msra.mxu0 %v19177_v40  ;;  %v9350_v22 = vld [vmem:[#allocation10 + $0x748] sm:$0xff]  ;;  %v19266_v17 = vcombine.high %v9222_v23, %v9226_v0  ;;  %v19265_v61 = vcombine.low %v9222_v23, %v9226_v0 }
 0x83b   : > { %15643 = vmatprep.subr.bf16.mxu0 %v19170_v38  ;;  %v9354_v5 = vld [vmem:[#allocation10 + $0x768] sm:$0xff] }
 0x83c   : > { %15683 = vmatpush1.bf16.msra.mxu1 %v19305_v58  ;;  %v19394_v24 = vcombine.high %v9350_v22, %v9354_v5  ;;  %v9214_v52 = vld [vmem:[#allocation10 + $0x308] sm:$0xff]  ;;  %v19393_v40 = vcombine.low %v9350_v22, %v9354_v5 }
 0x83d   : > { %15684 = vmatprep.subr.bf16.mxu1 %v19298_v46  ;;  %v9218_v37 = vld [vmem:[#allocation10 + $0x328] sm:$0xff] }
 0x83e   : > { %15644 = vmatpush1.bf16.msra.mxu0 %v19169_v16  ;;  %v9342_v53 = vld [vmem:[#allocation10 + $0x708] sm:$0xff]  ;;  %v19258_v58 = vcombine.high %v9214_v52, %v9218_v37  ;;  %v19257_v1 = vcombine.low %v9214_v52, %v9218_v37 }
 0x83f   : > { %15645 = vmatprep.subr.bf16.mxu0 %v19162_v48  ;;  %v9346_v35 = vld [vmem:[#allocation10 + $0x728] sm:$0xff] }
 0x840   : > { %15685 = vmatpush1.bf16.msra.mxu1 %v19297_v36  ;;  %v19386_v38 = vcombine.high %v9342_v53, %v9346_v35  ;;  %v9206_v46 = vld [vmem:[#allocation10 + $0x2c8] sm:$0xff]  ;;  %v19385_v16 = vcombine.low %v9342_v53, %v9346_v35 }
 0x841   : > { %15686 = vmatprep.subr.bf16.mxu1 %v19290_v20  ;;  %v9210_v43 = vld [vmem:[#allocation10 + $0x2e8] sm:$0xff] }
 0x842   : > { %15646 = vmatpush1.bf16.msra.mxu0 %v19161_v50  ;;  %v9334_v44 = vld [vmem:[#allocation10 + $0x6c8] sm:$0xff]  ;;  %v19250_v36 = vcombine.high %v9206_v46, %v9210_v43  ;;  %v19249_v56 = vcombine.low %v9206_v46, %v9210_v43 }
 0x843   : > { %15647 = vmatprep.subr.bf16.mxu0 %v19282_v34  ;;  %v9338_v31 = vld [vmem:[#allocation10 + $0x6e8] sm:$0xff] }
 0x844   : > { %15687 = vmatpush1.bf16.msra.mxu1 %v19289_v62  ;;  %v19378_v48 = vcombine.high %v9334_v44, %v9338_v31  ;;  %v9198_v20 = vld [vmem:[#allocation10 + $0x288] sm:$0xff]  ;;  %v19377_v50 = vcombine.low %v9334_v44, %v9338_v31 }
 0x845   : > { %15688 = vmatprep.subr.bf16.mxu1 %v19410_v59  ;;  %v9202_v51 = vld [vmem:[#allocation10 + $0x2a8] sm:$0xff] }
 0x846   : > { %15648 = vmatpush2.bf16.msra.mxu0 %v19281_v8  ;;  %v9326_v4 = vld [vmem:[#allocation10 + $0x688] sm:$0xff]  ;;  %v19242_v62 = vcombine.high %v9198_v20, %v9202_v51  ;;  %v19241_v57 = vcombine.low %v9198_v20, %v9202_v51 }
 0x847   : > { %15649 = vmatprep.subr.bf16.mxu0 %v19274_v30  ;;  %v9330_v10 = vld [vmem:[#allocation10 + $0x6a8] sm:$0xff] }
 0x848   : > { %15689 = vmatpush2.bf16.msra.mxu1 %v19409_v9  ;;  %v19370_v34 = vcombine.high %v9326_v4, %v9330_v10  ;;  %v9190_v59 = vld [vmem:[#allocation10 + $0x248] sm:$0xff]  ;;  %v19369_v8 = vcombine.low %v9326_v4, %v9330_v10 }
 0x849   : > { %15690 = vmatprep.subr.bf16.mxu1 %v19402_v32  ;;  %v9194_v6 = vld [vmem:[#allocation10 + $0x268] sm:$0xff] }
 0x84a   : > { %15650 = vmatpush2.bf16.msra.mxu0 %v19273_v26  ;;  %v9318_v3 = vld [vmem:[#allocation10 + $0x648] sm:$0xff]  ;;  %v19234_v9 = vcombine.high %v9190_v59, %v9194_v6  ;;  %v19233_v5 = vcombine.low %v9190_v59, %v9194_v6 }
 0x84b   : > { %15651 = vmatprep.subr.bf16.mxu0 %v19266_v17  ;;  %v9322_v2 = vld [vmem:[#allocation10 + $0x668] sm:$0xff] }
 0x84c   : > { %15691 = vmatpush2.bf16.msra.mxu1 %v19401_v33  ;;  %v19362_v30 = vcombine.high %v9318_v3, %v9322_v2  ;;  %v9182_v32 = vld [vmem:[#allocation10 + $0x208] sm:$0xff]  ;;  %v19361_v26 = vcombine.low %v9318_v3, %v9322_v2 }
 0x84d   : > { %15692 = vmatprep.subr.bf16.mxu1 %v19394_v24  ;;  %v9186_v23 = vld [vmem:[#allocation10 + $0x228] sm:$0xff] }
 0x84e   : > { %15652 = vmatpush2.bf16.msra.mxu0 %v19265_v61  ;;  %v9310_v0 = vld [vmem:[#allocation10 + $0x608] sm:$0xff]  ;;  %v19226_v33 = vcombine.high %v9182_v32, %v9186_v23  ;;  %v19225_v35 = vcombine.low %v9182_v32, %v9186_v23 }
 0x84f   : > { %15653 = vmatprep.subr.bf16.mxu0 %v19258_v58  ;;  %v9314_v22 = vld [vmem:[#allocation10 + $0x628] sm:$0xff] }
 0x850   : > { %15693 = vmatpush2.bf16.msra.mxu1 %v19393_v40  ;;  %v19354_v17 = vcombine.high %v9310_v0, %v9314_v22  ;;  %v9430_v24 = vld [vmem:[#allocation10 + $0x9c8] sm:$0xff]  ;;  %v19353_v61 = vcombine.low %v9310_v0, %v9314_v22 }
 0x851   : > { %15694 = vmatprep.subr.bf16.mxu1 %v19386_v38  ;;  %v9434_v52 = vld [vmem:[#allocation10 + $0x9e8] sm:$0xff] }
 0x852   : > { %15654 = vmatpush2.bf16.msra.mxu0 %v19257_v1  ;;  %v9558_v37 = vld [vmem:[#allocation10 + $0xdc8] sm:$0xff]  ;;  %v19474_v40 = vcombine.high %v9430_v24, %v9434_v52  ;;  %v19473_v31 = vcombine.low %v9430_v24, %v9434_v52 }
 0x853   : > { %15655 = vmatprep.subr.bf16.mxu0 %v19250_v36  ;;  %v9562_v53 = vld [vmem:[#allocation10 + $0xde8] sm:$0xff] }
 0x854   : > { %15695 = vmatpush2.bf16.msra.mxu1 %v19385_v16  ;;  %v19602_v58 = vcombine.high %v9558_v37, %v9562_v53  ;;  %v9422_v38 = vld [vmem:[#allocation10 + $0x988] sm:$0xff]  ;;  %v19601_v1 = vcombine.low %v9558_v37, %v9562_v53 }
 0x855   : > { %15696 = vmatprep.subr.bf16.mxu1 %v19378_v48  ;;  %v9426_v46 = vld [vmem:[#allocation10 + $0x9a8] sm:$0xff] }
 0x856   : > { %15656 = vmatpush2.bf16.msra.mxu0 %v19249_v56  ;;  %v9550_v43 = vld [vmem:[#allocation10 + $0xd88] sm:$0xff]  ;;  %v19466_v16 = vcombine.high %v9422_v38, %v9426_v46 }
 0x857   : > { %15657 = vmatprep.subr.bf16.mxu0 %v19242_v62  ;;  %v9554_v44 = vld [vmem:[#allocation10 + $0xda8] sm:$0xff]  ;;  %v19465_v62 = vcombine.low %v9422_v38, %v9426_v46 }
 0x858   : > { %15697 = vmatpush2.bf16.msra.mxu1 %v19377_v50  ;;  %v19594_v36 = vcombine.high %v9550_v43, %v9554_v44  ;;  %v9414_v48 = vld [vmem:[#allocation10 + $0x948] sm:$0xff]  ;;  %v19593_v59 = vcombine.low %v9550_v43, %v9554_v44 }
 0x859   : > { %15698 = vmatprep.subr.bf16.mxu1 %v19370_v34  ;;  %v9418_v20 = vld [vmem:[#allocation10 + $0x968] sm:$0xff] }
 0x85a   : > { %15658 = vmatpush2.bf16.msra.mxu0 %v19241_v57  ;;  %v9542_v4 = vld [vmem:[#allocation10 + $0xd48] sm:$0xff]  ;;  %v19458_v6 = vcombine.high %v9414_v48, %v9418_v20 }
 0x85b   : > { %15659 = vmatprep.subr.bf16.mxu0 %v19234_v9  ;;  %v9546_v10 = vld [vmem:[#allocation10 + $0xd68] sm:$0xff] }
 0x85c   : > { %15699 = vmatpush2.bf16.msra.mxu1 %v19369_v8  ;;  %v19586_v8 = vcombine.high %v9542_v4, %v9546_v10  ;;  %v9406_v9 = vld [vmem:[#allocation10 + $0x908] sm:$0xff] }
 0x85d   : > { %15700 = vmatprep.subr.bf16.mxu1 %v19362_v30  ;;  %v9410_v30 = vld [vmem:[#allocation10 + $0x928] sm:$0xff] }
 0x85e   : > { %15660 = vmatpush2.bf16.msra.mxu0 %v19233_v5  ;;  %v9534_v32 = vld [vmem:[#allocation10 + $0xd08] sm:$0xff]  ;;  %v19457_v5 = vcombine.low %v9414_v48, %v9418_v20 }
 0x85f   : > { %15661 = vmatprep.subr.bf16.mxu0 %v19226_v33  ;;  %v9538_v23 = vld [vmem:[#allocation10 + $0xd28] sm:$0xff]  ;;  %v19450_v33 = vcombine.high %v9406_v9, %v9410_v30 }
 0x860   : > { %15701 = vmatpush2.bf16.msra.mxu1 %v19361_v26  ;;  %v19578_v24 = vcombine.high %v9534_v32, %v9538_v23  ;;  %v9398_v52 = vld [vmem:[#allocation10 + $0x8c8] sm:$0xff] }
 0x861   : > { %15702 = vmatprep.subr.bf16.mxu1 %v19354_v17  ;;  %v9402_v37 = vld [vmem:[#allocation10 + $0x8e8] sm:$0xff] }
 0x862   : > { %15662 = vmatpush2.bf16.msra.mxu0 %v19225_v35  ;;  %v9526_v53 = vld [vmem:[#allocation10 + $0xcc8] sm:$0xff] }
 0x863   : > { %15713 = vmatprep.subr.bf16.mxu0 %v19474_v40  ;;  %v9530_v35 = vld [vmem:[#allocation10 + $0xce8] sm:$0xff]  ;;  %v19577_v40 = vcombine.low %v9534_v32, %v9538_v23 }
 0x864   : > { %15703 = vmatpush2.bf16.msra.mxu1 %v19353_v61  ;;  %v19449_v61 = vcombine.low %v9406_v9, %v9410_v30  ;;  %v19570_v38 = vcombine.high %v9526_v53, %v9530_v35  ;;  %v9390_v46 = vld [vmem:[#allocation10 + $0x888] sm:$0xff] }
 0x865   : > { %15754 = vmatprep.subr.bf16.mxu1 %v19602_v58  ;;  %v15419_v51 = vpop.f32.mrf.mxu0  ;;  %15664 = vmatmul.mubr.bf16.vlgmr.msra.gmra.mxu0 %v24132_v42  ;;  %v19442_v58 = vcombine.high %v9398_v52, %v9402_v37  ;;  %v9394_v43 = vld [vmem:[#allocation10 + $0x8a8] sm:$0xff] }
 0x866   : > { %v15420_v56 = vadd.f32 %v15419_v51, %v24212_v45  ;;  %15714 = vmatpush1.bf16.msra.mxu0 %v19473_v31  ;;  %15745 = vmatprep.mubr.bf16.mxu0 %v24140_v55  ;;  %v9518_v44 = vld [vmem:[#allocation10 + $0xc88] sm:$0xff] }
 0x867   : > { %v15460_v50 = vpop.f32.mrf.mxu1  ;;  %15705 = vmatmul.mubr.bf16.vlgmr.msra.gmra.mxu1 %v24138_v63  ;;  %v15421_v34 = vpop.f32.mrf.mxu0  ;;  %15715 = vmatprep.subr.bf16.mxu0 %v19466_v16  ;;  %v9522_v31 = vld [vmem:[#allocation10 + $0xca8] sm:$0xff]  ;;  %v19569_v16 = vcombine.low %v9526_v53, %v9530_v35 }
 0x868   : > { %15755 = vmatpush1.bf16.msra.mxu1 %v19601_v1  ;;  %v24221_v3 = vadd.f32 %v15460_v50, %v15420_v56  ;;  %v15422_v2 = vadd.f32 %v15421_v34, %v24216_v19  ;;  %15786 = vmatprep.mubr.bf16.mxu1 %v24143_v13  ;;  %v19585_v19 = vcombine.low %v9542_v4, %v9546_v10  ;;  %v9382_v20 = vld [vmem:[#allocation10 + $0x848] sm:$0xff] }
 0x869   : > { %v15462_v57 = vpop.f32.mrf.mxu1  ;;  %15756 = vmatprep.subr.bf16.mxu1 %v19594_v36  ;;  %v15423_v45 = vpop.f32.mrf.mxu0  ;;  %v19441_v1 = vcombine.low %v9398_v52, %v9402_v37  ;;  %v19434_v36 = vcombine.high %v9390_v46, %v9394_v43  ;;  %v19562_v48 = vcombine.high %v9518_v44, %v9522_v31  ;;  %v9386_v51 = vld [vmem:[#allocation10 + $0x868] sm:$0xff]  ;;  %v19433_v56 = vcombine.low %v9390_v46, %v9394_v43 }
 0x86a   : > { %v24226_v0 = vadd.f32 %v15462_v57, %v15422_v2  ;;  %15716 = vmatpush1.bf16.msra.mxu0 %v19465_v62  ;;  %v9510_v4 = vld [vmem:[#allocation10 + $0xc48] sm:$0xff]  ;;  %v19561_v50 = vcombine.low %v9518_v44, %v9522_v31  ;;  %v19426_v62 = vcombine.high %v9382_v20, %v9386_v51 }
 0x86b   : > { %v15464_v22 = vpop.f32.mrf.mxu1  ;;  %v15424_v26 = vpop.f32.mrf.mxu0  ;;  %15717 = vmatprep.subr.bf16.mxu0 %v19458_v6  ;;  %v9514_v10 = vld [vmem:[#allocation10 + $0xc68] sm:$0xff] }
 0x86c   : > { %15757 = vmatpush1.bf16.msra.mxu1 %v19593_v59  ;;  %v19554_v34 = vcombine.high %v9510_v4, %v9514_v10  ;;  %v9374_v59 = vld [vmem:[#allocation10 + $0x808] sm:$0xff]  ;;  %v19553_v9 = vcombine.low %v9510_v4, %v9514_v10 }
 0x86d   : > { %v15465_v17 = vpop.f32.mrf.mxu1  ;;  %15758 = vmatprep.subr.bf16.mxu1 %v19586_v8  ;;  %v9378_v6 = vld [vmem:[#allocation10 + $0x828] sm:$0xff]  ;;  %v19425_v8 = vcombine.low %v9382_v20, %v9386_v51 }
 0x86e   : > { %15718 = vmatpush1.bf16.msra.mxu0 %v19457_v5  ;;  %v9502_v2 = vld [vmem:[#allocation10 + $0xc08] sm:$0xff]  ;;  %v19418_v30 = vcombine.high %v9374_v59, %v9378_v6  ;;  %v19417_v26 = vcombine.low %v9374_v59, %v9378_v6 }
 0x86f   : > { %15719 = vmatprep.subr.bf16.mxu0 %v19450_v33  ;;  %v9506_v57 = vld [vmem:[#allocation10 + $0xc28] sm:$0xff] }
 0x870   : > { %15759 = vmatpush1.bf16.msra.mxu1 %v19585_v19  ;;  %v19546_v45 = vcombine.high %v9502_v2, %v9506_v57  ;;  %v9494_v32 = vld [vmem:[#allocation10 + $0xbc8] sm:$0xff]  ;;  %v19545_v19 = vcombine.low %v9502_v2, %v9506_v57 }
 0x871   : > { %15760 = vmatprep.subr.bf16.mxu1 %v19578_v24  ;;  %v9498_v23 = vld [vmem:[#allocation10 + $0xbe8] sm:$0xff] }
 0x872   : > { %15720 = vmatpush1.bf16.msra.mxu0 %v19449_v61  ;;  %v9622_v22 = vld [vmem:[#allocation10 + $0xfc8] sm:$0xff]  ;;  %v19538_v33 = vcombine.high %v9494_v32, %v9498_v23  ;;  %v19537_v35 = vcombine.low %v9494_v32, %v9498_v23 }
 0x873   : > { %15721 = vmatprep.subr.bf16.mxu0 %v19442_v58  ;;  %v9626_v5 = vld [vmem:[#allocation10 + $0xfe8] sm:$0xff] }
 0x874   : > { %15761 = vmatpush1.bf16.msra.mxu1 %v19577_v40  ;;  %v19666_v17 = vcombine.high %v9622_v22, %v9626_v5  ;;  %v9486_v24 = vld [vmem:[#allocation10 + $0xb88] sm:$0xff]  ;;  %v19665_v61 = vcombine.low %v9622_v22, %v9626_v5 }
 0x875   : > { %15762 = vmatprep.subr.bf16.mxu1 %v19570_v38  ;;  %v9490_v52 = vld [vmem:[#allocation10 + $0xba8] sm:$0xff] }
 0x876   : > { %15722 = vmatpush1.bf16.msra.mxu0 %v19441_v1  ;;  %v9614_v37 = vld [vmem:[#allocation10 + $0xf88] sm:$0xff]  ;;  %v19530_v40 = vcombine.high %v9486_v24, %v9490_v52  ;;  %v19529_v31 = vcombine.low %v9486_v24, %v9490_v52 }
 0x877   : > { %15723 = vmatprep.subr.bf16.mxu0 %v19434_v36  ;;  %v9618_v53 = vld [vmem:[#allocation10 + $0xfa8] sm:$0xff] }
 0x878   : > { %15763 = vmatpush1.bf16.msra.mxu1 %v19569_v16  ;;  %v19658_v58 = vcombine.high %v9614_v37, %v9618_v53  ;;  %v9478_v38 = vld [vmem:[#allocation10 + $0xb48] sm:$0xff]  ;;  %v19657_v1 = vcombine.low %v9614_v37, %v9618_v53 }
 0x879   : > { %15764 = vmatprep.subr.bf16.mxu1 %v19562_v48  ;;  %v9482_v46 = vld [vmem:[#allocation10 + $0xb68] sm:$0xff] }
 0x87a   : > { %15724 = vmatpush1.bf16.msra.mxu0 %v19433_v56  ;;  %v9606_v43 = vld [vmem:[#allocation10 + $0xf48] sm:$0xff]  ;;  %v19522_v16 = vcombine.high %v9478_v38, %v9482_v46  ;;  %v19521_v10 = vcombine.low %v9478_v38, %v9482_v46 }
 0x87b   : > { %15725 = vmatprep.subr.bf16.mxu0 %v19426_v62  ;;  %v9610_v44 = vld [vmem:[#allocation10 + $0xf68] sm:$0xff] }
 0x87c   : > { %15765 = vmatpush1.bf16.msra.mxu1 %v19561_v50  ;;  %v19650_v36 = vcombine.high %v9606_v43, %v9610_v44  ;;  %v9470_v48 = vld [vmem:[#allocation10 + $0xb08] sm:$0xff]  ;;  %v19649_v56 = vcombine.low %v9606_v43, %v9610_v44 }
 0x87d   : > { %15766 = vmatprep.subr.bf16.mxu1 %v19554_v34  ;;  %v9474_v20 = vld [vmem:[#allocation10 + $0xb28] sm:$0xff] }
 0x87e   : > { %15726 = vmatpush1.bf16.msra.mxu0 %v19425_v8  ;;  %v9598_v51 = vld [vmem:[#allocation10 + $0xf08] sm:$0xff]  ;;  %v19514_v50 = vcombine.high %v9470_v48, %v9474_v20  ;;  %v19513_v57 = vcombine.low %v9470_v48, %v9474_v20 }
 0x87f   : > { %15727 = vmatprep.subr.bf16.mxu0 %v19418_v30  ;;  %v9602_v4 = vld [vmem:[#allocation10 + $0xf28] sm:$0xff] }
 0x880   : > { %15767 = vmatpush1.bf16.msra.mxu1 %v19553_v9  ;;  %v19642_v62 = vcombine.high %v9598_v51, %v9602_v4  ;;  %v9462_v34 = vld [vmem:[#allocation10 + $0xac8] sm:$0xff]  ;;  %v19641_v8 = vcombine.low %v9598_v51, %v9602_v4 }
 0x881   : > { %15768 = vmatprep.subr.bf16.mxu1 %v19546_v45  ;;  %v9466_v59 = vld [vmem:[#allocation10 + $0xae8] sm:$0xff] }
 0x882   : > { %15728 = vmatpush1.bf16.msra.mxu0 %v19417_v26  ;;  %v9590_v6 = vld [vmem:[#allocation10 + $0xec8] sm:$0xff]  ;;  %v19506_v9 = vcombine.high %v9462_v34, %v9466_v59  ;;  %v19505_v5 = vcombine.low %v9462_v34, %v9466_v59 }
 0x883   : > { %15729 = vmatprep.subr.bf16.mxu0 %v19538_v33  ;;  %v9594_v2 = vld [vmem:[#allocation10 + $0xee8] sm:$0xff] }
 0x884   : > { %15769 = vmatpush1.bf16.msra.mxu1 %v19545_v19  ;;  %v19634_v30 = vcombine.high %v9590_v6, %v9594_v2  ;;  %v9454_v45 = vld [vmem:[#allocation10 + $0xa88] sm:$0xff]  ;;  %v19633_v26 = vcombine.low %v9590_v6, %v9594_v2 }
 0x885   : > { %15770 = vmatprep.subr.bf16.mxu1 %v19666_v17  ;;  %v9458_v32 = vld [vmem:[#allocation10 + $0xaa8] sm:$0xff] }
 0x886   : > { %15730 = vmatpush2.bf16.msra.mxu0 %v19537_v35  ;;  %v9582_v23 = vld [vmem:[#allocation10 + $0xe88] sm:$0xff]  ;;  %v19498_v19 = vcombine.high %v9454_v45, %v9458_v32  ;;  %v19497_v53 = vcombine.low %v9454_v45, %v9458_v32 }
 0x887   : > { %15731 = vmatprep.subr.bf16.mxu0 %v19530_v40  ;;  %v9586_v22 = vld [vmem:[#allocation10 + $0xea8] sm:$0xff] }
 0x888   : > { %15771 = vmatpush2.bf16.msra.mxu1 %v19665_v61  ;;  %v19626_v33 = vcombine.high %v9582_v23, %v9586_v22  ;;  %v9446_v17 = vld [vmem:[#allocation10 + $0xa48] sm:$0xff]  ;;  %v19625_v35 = vcombine.low %v9582_v23, %v9586_v22 }
 0x889   : > { %15772 = vmatprep.subr.bf16.mxu1 %v19658_v58  ;;  %v9450_v24 = vld [vmem:[#allocation10 + $0xa68] sm:$0xff] }
 0x88a   : > { %15732 = vmatpush2.bf16.msra.mxu0 %v19529_v31  ;;  %v9574_v52 = vld [vmem:[#allocation10 + $0xe48] sm:$0xff]  ;;  %v19490_v61 = vcombine.high %v9446_v17, %v9450_v24  ;;  %v19489_v44 = vcombine.low %v9446_v17, %v9450_v24 }
 0x88b   : > { %15733 = vmatprep.subr.bf16.mxu0 %v19522_v16  ;;  %v9578_v37 = vld [vmem:[#allocation10 + $0xe68] sm:$0xff] }
 0x88c   : > { %15773 = vmatpush2.bf16.msra.mxu1 %v19657_v1  ;;  %v19618_v40 = vcombine.high %v9574_v52, %v9578_v37  ;;  %v9438_v58 = vld [vmem:[#allocation10 + $0xa08] sm:$0xff]  ;;  %v19617_v31 = vcombine.low %v9574_v52, %v9578_v37 }
 0x88d   : > { %15774 = vmatprep.subr.bf16.mxu1 %v19650_v36  ;;  %v9442_v38 = vld [vmem:[#allocation10 + $0xa28] sm:$0xff] }
 0x88e   : > { %15734 = vmatpush2.bf16.msra.mxu0 %v19521_v10  ;;  %v9566_v46 = vld [vmem:[#allocation10 + $0xe08] sm:$0xff]  ;;  %v19482_v1 = vcombine.high %v9438_v58, %v9442_v38  ;;  %v19481_v4 = vcombine.low %v9438_v58, %v9442_v38 }
 0x88f   : > { %15735 = vmatprep.subr.bf16.mxu0 %v19514_v50  ;;  %v9570_v43 = vld [vmem:[#allocation10 + $0xe28] sm:$0xff] }
 0x890   : > { %15775 = vmatpush2.bf16.msra.mxu1 %v19649_v56  ;;  %v19610_v16 = vcombine.high %v9566_v46, %v9570_v43  ;;  %v9686_v36 = vld [vmem:[#allocation10 + $0x11c8] sm:$0xff]  ;;  %v19609_v10 = vcombine.low %v9566_v46, %v9570_v43 }
 0x891   : > { %15776 = vmatprep.subr.bf16.mxu1 %v19642_v62  ;;  %v9690_v48 = vld [vmem:[#allocation10 + $0x11e8] sm:$0xff] }
 0x892   : > { %15736 = vmatpush2.bf16.msra.mxu0 %v19513_v57  ;;  %v9814_v20 = vld [vmem:[#allocation10 + $0x15c8] sm:$0xff]  ;;  %v19730_v56 = vcombine.high %v9686_v36, %v9690_v48  ;;  %v19729_v2 = vcombine.low %v9686_v36, %v9690_v48 }
 0x893   : > { %15737 = vmatprep.subr.bf16.mxu0 %v19506_v9  ;;  %v9818_v51 = vld [vmem:[#allocation10 + $0x15e8] sm:$0xff] }
 0x894   : > { %15777 = vmatpush2.bf16.msra.mxu1 %v19641_v8  ;;  %v19858_v50 = vcombine.high %v9814_v20, %v9818_v51  ;;  %v9678_v62 = vld [vmem:[#allocation10 + $0x1188] sm:$0xff]  ;;  %v19857_v57 = vcombine.low %v9814_v20, %v9818_v51 }
 0x895   : > { %15778 = vmatprep.subr.bf16.mxu1 %v19634_v30  ;;  %v9682_v34 = vld [vmem:[#allocation10 + $0x11a8] sm:$0xff] }
 0x896   : > { %15738 = vmatpush2.bf16.msra.mxu0 %v19505_v5  ;;  %v9806_v59 = vld [vmem:[#allocation10 + $0x1588] sm:$0xff]  ;;  %v19722_v8 = vcombine.high %v9678_v62, %v9682_v34 }
 0x897   : > { %15739 = vmatprep.subr.bf16.mxu0 %v19498_v19  ;;  %v9810_v6 = vld [vmem:[#allocation10 + $0x15a8] sm:$0xff]  ;;  %v19721_v19 = vcombine.low %v9678_v62, %v9682_v34 }
 0x898   : > { %15779 = vmatpush2.bf16.msra.mxu1 %v19633_v26  ;;  %v19850_v9 = vcombine.high %v9806_v59, %v9810_v6  ;;  %v9670_v30 = vld [vmem:[#allocation10 + $0x1148] sm:$0xff]  ;;  %v19849_v17 = vcombine.low %v9806_v59, %v9810_v6 }
 0x899   : > { %15780 = vmatprep.subr.bf16.mxu1 %v19626_v33  ;;  %v9674_v45 = vld [vmem:[#allocation10 + $0x1168] sm:$0xff] }
 0x89a   : > { %15740 = vmatpush2.bf16.msra.mxu0 %v19497_v53  ;;  %v9798_v23 = vld [vmem:[#allocation10 + $0x1548] sm:$0xff]  ;;  %v19714_v24 = vcombine.high %v9670_v30, %v9674_v45 }
 0x89b   : > { %15741 = vmatprep.subr.bf16.mxu0 %v19490_v61  ;;  %v9802_v22 = vld [vmem:[#allocation10 + $0x1568] sm:$0xff] }
 0x89c   : > { %15781 = vmatpush2.bf16.msra.mxu1 %v19625_v35  ;;  %v19842_v35 = vcombine.high %v9798_v23, %v9802_v22  ;;  %v9662_v61 = vld [vmem:[#allocation10 + $0x1108] sm:$0xff] }
 0x89d   : > { %15782 = vmatprep.subr.bf16.mxu1 %v19618_v40  ;;  %v9666_v40 = vld [vmem:[#allocation10 + $0x1128] sm:$0xff] }
 0x89e   : > { %15742 = vmatpush2.bf16.msra.mxu0 %v19489_v44  ;;  %v9790_v58 = vld [vmem:[#allocation10 + $0x1508] sm:$0xff]  ;;  %v19713_v44 = vcombine.low %v9670_v30, %v9674_v45 }
 0x89f   : > { %15743 = vmatprep.subr.bf16.mxu0 %v19482_v1  ;;  %v9794_v38 = vld [vmem:[#allocation10 + $0x1528] sm:$0xff]  ;;  %v19706_v1 = vcombine.high %v9662_v61, %v9666_v40 }
 0x8a0   : > { %15783 = vmatpush2.bf16.msra.mxu1 %v19617_v31  ;;  %v19834_v36 = vcombine.high %v9790_v58, %v9794_v38  ;;  %v9654_v48 = vld [vmem:[#allocation10 + $0x10c8] sm:$0xff] }
 0x8a1   : > { %15784 = vmatprep.subr.bf16.mxu1 %v19610_v16  ;;  %v9658_v20 = vld [vmem:[#allocation10 + $0x10e8] sm:$0xff] }
 0x8a2   : > { %15744 = vmatpush2.bf16.msra.mxu0 %v19481_v4  ;;  %v9782_v51 = vld [vmem:[#allocation10 + $0x14c8] sm:$0xff] }
 0x8a3   : > { %15795 = vmatprep.subr.bf16.mxu0 %v19730_v56  ;;  %v9786_v4 = vld [vmem:[#allocation10 + $0x14e8] sm:$0xff]  ;;  %v19833_v56 = vcombine.low %v9790_v58, %v9794_v38 }
 0x8a4   : > { %15785 = vmatpush2.bf16.msra.mxu1 %v19609_v10  ;;  %v19705_v10 = vcombine.low %v9662_v61, %v9666_v40  ;;  %v19826_v62 = vcombine.high %v9782_v51, %v9786_v4  ;;  %v9646_v34 = vld [vmem:[#allocation10 + $0x1088] sm:$0xff] }
 0x8a5   : > { %15836 = vmatprep.subr.bf16.mxu1 %v19858_v50  ;;  %v15501_v32 = vpop.f32.mrf.mxu0  ;;  %15746 = vmatmul.mubr.bf16.vlgmr.msra.gmra.mxu0 %v24158_v25  ;;  %v19698_v50 = vcombine.high %v9654_v48, %v9658_v20  ;;  %v9650_v59 = vld [vmem:[#allocation10 + $0x10a8] sm:$0xff] }
 0x8a6   : > { %v15502_v5 = vadd.f32 %v15501_v32, %v24221_v3  ;;  %15796 = vmatpush1.bf16.msra.mxu0 %v19729_v2  ;;  %15827 = vmatprep.mubr.bf16.mxu0 %v24166_v39  ;;  %v9774_v6 = vld [vmem:[#allocation10 + $0x1488] sm:$0xff] }
 0x8a7   : > { %v15542_v26 = vpop.f32.mrf.mxu1  ;;  %15787 = vmatmul.mubr.bf16.vlgmr.msra.gmra.mxu1 %v24164_v41  ;;  %v15503_v33 = vpop.f32.mrf.mxu0  ;;  %15797 = vmatprep.subr.bf16.mxu0 %v19722_v8  ;;  %v9778_v2 = vld [vmem:[#allocation10 + $0x14a8] sm:$0xff]  ;;  %v19825_v8 = vcombine.low %v9782_v51, %v9786_v4 }
 0x8a8   : > { %15837 = vmatpush1.bf16.msra.mxu1 %v19857_v57  ;;  %v24231_v52 = vadd.f32 %v15542_v26, %v15502_v5  ;;  %v15504_v37 = vadd.f32 %v15503_v33, %v24226_v0  ;;  %15868 = vmatprep.mubr.bf16.mxu1 %v24169_v54  ;;  %v19841_v0 = vcombine.low %v9798_v23, %v9802_v22  ;;  %v9638_v45 = vld [vmem:[#allocation10 + $0x1048] sm:$0xff] }
 0x8a9   : > { %v15544_v53 = vpop.f32.mrf.mxu1  ;;  %15838 = vmatprep.subr.bf16.mxu1 %v19850_v9  ;;  %v15505_v3 = vpop.f32.mrf.mxu0  ;;  %v19697_v57 = vcombine.low %v9654_v48, %v9658_v20  ;;  %v19690_v9 = vcombine.high %v9646_v34, %v9650_v59  ;;  %v19818_v30 = vcombine.high %v9774_v6, %v9778_v2  ;;  %v9642_v32 = vld [vmem:[#allocation10 + $0x1068] sm:$0xff]  ;;  %v19689_v5 = vcombine.low %v9646_v34, %v9650_v59 }
 0x8aa   : > { %v24236_v46 = vadd.f32 %v15544_v53, %v15504_v37  ;;  %15798 = vmatpush1.bf16.msra.mxu0 %v19721_v19  ;;  %v9766_v23 = vld [vmem:[#allocation10 + $0x1448] sm:$0xff]  ;;  %v19817_v26 = vcombine.low %v9774_v6, %v9778_v2  ;;  %v19682_v19 = vcombine.high %v9638_v45, %v9642_v32 }
 0x8ab   : > { %v15546_v43 = vpop.f32.mrf.mxu1  ;;  %v15506_v31 = vpop.f32.mrf.mxu0  ;;  %15799 = vmatprep.subr.bf16.mxu0 %v19714_v24  ;;  %v9770_v22 = vld [vmem:[#allocation10 + $0x1468] sm:$0xff] }
 0x8ac   : > { %15839 = vmatpush1.bf16.msra.mxu1 %v19849_v17  ;;  %v19810_v33 = vcombine.high %v9766_v23, %v9770_v22  ;;  %v9630_v17 = vld [vmem:[#allocation10 + $0x1008] sm:$0xff]  ;;  %v19809_v61 = vcombine.low %v9766_v23, %v9770_v22 }
 0x8ad   : > { %v15547_v16 = vpop.f32.mrf.mxu1  ;;  %15840 = vmatprep.subr.bf16.mxu1 %v19842_v35  ;;  %v9634_v24 = vld [vmem:[#allocation10 + $0x1028] sm:$0xff]  ;;  %v19681_v35 = vcombine.low %v9638_v45, %v9642_v32 }
 0x8ae   : > { %15800 = vmatpush1.bf16.msra.mxu0 %v19713_v44  ;;  %v9758_v37 = vld [vmem:[#allocation10 + $0x1408] sm:$0xff]  ;;  %v19674_v40 = vcombine.high %v9630_v17, %v9634_v24  ;;  %v19673_v31 = vcombine.low %v9630_v17, %v9634_v24 }
 0x8af   : > { %15801 = vmatprep.subr.bf16.mxu0 %v19706_v1  ;;  %v9762_v53 = vld [vmem:[#allocation10 + $0x1428] sm:$0xff] }
 0x8b0   : > { %15841 = vmatpush1.bf16.msra.mxu1 %v19841_v0  ;;  %v19802_v3 = vcombine.high %v9758_v37, %v9762_v53  ;;  %v9750_v58 = vld [vmem:[#allocation10 + $0x13c8] sm:$0xff]  ;;  %v19801_v0 = vcombine.low %v9758_v37, %v9762_v53 }
 0x8b1   : > { %15842 = vmatprep.subr.bf16.mxu1 %v19834_v36  ;;  %v9754_v38 = vld [vmem:[#allocation10 + $0x13e8] sm:$0xff] }
 0x8b2   : > { %15802 = vmatpush1.bf16.msra.mxu0 %v19705_v10  ;;  %v9878_v43 = vld [vmem:[#allocation10 + $0x17c8] sm:$0xff]  ;;  %v19794_v1 = vcombine.high %v9750_v58, %v9754_v38  ;;  %v19793_v4 = vcombine.low %v9750_v58, %v9754_v38 }
 0x8b3   : > { %15803 = vmatprep.subr.bf16.mxu0 %v19698_v50  ;;  %v9882_v44 = vld [vmem:[#allocation10 + $0x17e8] sm:$0xff] }
 0x8b4   : > { %15843 = vmatpush1.bf16.msra.mxu1 %v19833_v56  ;;  %v19922_v16 = vcombine.high %v9878_v43, %v9882_v44  ;;  %v9742_v36 = vld [vmem:[#allocation10 + $0x1388] sm:$0xff]  ;;  %v19921_v10 = vcombine.low %v9878_v43, %v9882_v44 }
 0x8b5   : > { %15844 = vmatprep.subr.bf16.mxu1 %v19826_v62  ;;  %v9746_v48 = vld [vmem:[#allocation10 + $0x13a8] sm:$0xff] }
 0x8b6   : > { %15804 = vmatpush1.bf16.msra.mxu0 %v19697_v57  ;;  %v9870_v20 = vld [vmem:[#allocation10 + $0x1788] sm:$0xff]  ;;  %v19786_v56 = vcombine.high %v9742_v36, %v9746_v48  ;;  %v19785_v2 = vcombine.low %v9742_v36, %v9746_v48 }
 0x8b7   : > { %15805 = vmatprep.subr.bf16.mxu0 %v19690_v9  ;;  %v9874_v51 = vld [vmem:[#allocation10 + $0x17a8] sm:$0xff] }
 0x8b8   : > { %15845 = vmatpush1.bf16.msra.mxu1 %v19825_v8  ;;  %v19914_v50 = vcombine.high %v9870_v20, %v9874_v51  ;;  %v9734_v62 = vld [vmem:[#allocation10 + $0x1348] sm:$0xff]  ;;  %v19913_v57 = vcombine.low %v9870_v20, %v9874_v51 }
 0x8b9   : > { %15846 = vmatprep.subr.bf16.mxu1 %v19818_v30  ;;  %v9738_v34 = vld [vmem:[#allocation10 + $0x1368] sm:$0xff] }
 0x8ba   : > { %15806 = vmatpush1.bf16.msra.mxu0 %v19689_v5  ;;  %v9862_v59 = vld [vmem:[#allocation10 + $0x1748] sm:$0xff]  ;;  %v19778_v8 = vcombine.high %v9734_v62, %v9738_v34  ;;  %v19777_v22 = vcombine.low %v9734_v62, %v9738_v34 }
 0x8bb   : > { %15807 = vmatprep.subr.bf16.mxu0 %v19682_v19  ;;  %v9866_v6 = vld [vmem:[#allocation10 + $0x1768] sm:$0xff] }
 0x8bc   : > { %15847 = vmatpush1.bf16.msra.mxu1 %v19817_v26  ;;  %v19906_v9 = vcombine.high %v9862_v59, %v9866_v6  ;;  %v9726_v30 = vld [vmem:[#allocation10 + $0x1308] sm:$0xff]  ;;  %v19905_v5 = vcombine.low %v9862_v59, %v9866_v6 }
 0x8bd   : > { %15848 = vmatprep.subr.bf16.mxu1 %v19810_v33  ;;  %v9730_v45 = vld [vmem:[#allocation10 + $0x1328] sm:$0xff] }
 0x8be   : > { %15808 = vmatpush1.bf16.msra.mxu0 %v19681_v35  ;;  %v9854_v32 = vld [vmem:[#allocation10 + $0x1708] sm:$0xff]  ;;  %v19770_v26 = vcombine.high %v9726_v30, %v9730_v45  ;;  %v19769_v53 = vcombine.low %v9726_v30, %v9730_v45 }
 0x8bf   : > { %15809 = vmatprep.subr.bf16.mxu0 %v19674_v40  ;;  %v9858_v23 = vld [vmem:[#allocation10 + $0x1728] sm:$0xff] }
 0x8c0   : > { %15849 = vmatpush1.bf16.msra.mxu1 %v19809_v61  ;;  %v19898_v19 = vcombine.high %v9854_v32, %v9858_v23  ;;  %v9718_v33 = vld [vmem:[#allocation10 + $0x12c8] sm:$0xff]  ;;  %v19897_v35 = vcombine.low %v9854_v32, %v9858_v23 }
 0x8c1   : > { %15850 = vmatprep.subr.bf16.mxu1 %v19802_v3  ;;  %v9722_v17 = vld [vmem:[#allocation10 + $0x12e8] sm:$0xff] }
 0x8c2   : > { %15810 = vmatpush1.bf16.msra.mxu0 %v19673_v31  ;;  %v9846_v24 = vld [vmem:[#allocation10 + $0x16c8] sm:$0xff]  ;;  %v19762_v61 = vcombine.high %v9718_v33, %v9722_v17  ;;  %v19761_v44 = vcombine.low %v9718_v33, %v9722_v17 }
 0x8c3   : > { %15811 = vmatprep.subr.bf16.mxu0 %v19794_v1  ;;  %v9850_v37 = vld [vmem:[#allocation10 + $0x16e8] sm:$0xff] }
 0x8c4   : > { %15851 = vmatpush1.bf16.msra.mxu1 %v19801_v0  ;;  %v19890_v40 = vcombine.high %v9846_v24, %v9850_v37  ;;  %v9710_v3 = vld [vmem:[#allocation10 + $0x1288] sm:$0xff]  ;;  %v19889_v31 = vcombine.low %v9846_v24, %v9850_v37 }
 0x8c5   : > { %15852 = vmatprep.subr.bf16.mxu1 %v19922_v16  ;;  %v9714_v58 = vld [vmem:[#allocation10 + $0x12a8] sm:$0xff] }
 0x8c6   : > { %15812 = vmatpush2.bf16.msra.mxu0 %v19793_v4  ;;  %v9838_v38 = vld [vmem:[#allocation10 + $0x1688] sm:$0xff]  ;;  %v19754_v0 = vcombine.high %v9710_v3, %v9714_v58  ;;  %v19753_v51 = vcombine.low %v9710_v3, %v9714_v58 }
 0x8c7   : > { %15813 = vmatprep.subr.bf16.mxu0 %v19786_v56  ;;  %v9842_v43 = vld [vmem:[#allocation10 + $0x16a8] sm:$0xff] }
 0x8c8   : > { %15853 = vmatpush2.bf16.msra.mxu1 %v19921_v10  ;;  %v19882_v1 = vcombine.high %v9838_v38, %v9842_v43  ;;  %v9702_v16 = vld [vmem:[#allocation10 + $0x1248] sm:$0xff]  ;;  %v19881_v4 = vcombine.low %v9838_v38, %v9842_v43 }
 0x8c9   : > { %15854 = vmatprep.subr.bf16.mxu1 %v19914_v50  ;;  %v9706_v36 = vld [vmem:[#allocation10 + $0x1268] sm:$0xff] }
 0x8ca   : > { %15814 = vmatpush2.bf16.msra.mxu0 %v19785_v2  ;;  %v9830_v48 = vld [vmem:[#allocation10 + $0x1648] sm:$0xff]  ;;  %v19746_v10 = vcombine.high %v9702_v16, %v9706_v36  ;;  %v19745_v6 = vcombine.low %v9702_v16, %v9706_v36 }
 0x8cb   : > { %15815 = vmatprep.subr.bf16.mxu0 %v19778_v8  ;;  %v9834_v20 = vld [vmem:[#allocation10 + $0x1668] sm:$0xff] }
 0x8cc   : > { %15855 = vmatpush2.bf16.msra.mxu1 %v19913_v57  ;;  %v19874_v56 = vcombine.high %v9830_v48, %v9834_v20  ;;  %v9694_v50 = vld [vmem:[#allocation10 + $0x1208] sm:$0xff]  ;;  %v19873_v2 = vcombine.low %v9830_v48, %v9834_v20 }
 0x8cd   : > { %15856 = vmatprep.subr.bf16.mxu1 %v19906_v9  ;;  %v9698_v62 = vld [vmem:[#allocation10 + $0x1228] sm:$0xff] }
 0x8ce   : > { %15816 = vmatpush2.bf16.msra.mxu0 %v19777_v22  ;;  %v9822_v34 = vld [vmem:[#allocation10 + $0x1608] sm:$0xff]  ;;  %v19738_v57 = vcombine.high %v9694_v50, %v9698_v62  ;;  %v19737_v23 = vcombine.low %v9694_v50, %v9698_v62 }
 0x8cf   : > { %15817 = vmatprep.subr.bf16.mxu0 %v19770_v26  ;;  %v9826_v59 = vld [vmem:[#allocation10 + $0x1628] sm:$0xff] }
 0x8d0   : > { %15857 = vmatpush2.bf16.msra.mxu1 %v19905_v5  ;;  %v19866_v8 = vcombine.high %v9822_v34, %v9826_v59  ;;  %v9942_v9 = vld [vmem:[#allocation10 + $0x19c8] sm:$0xff]  ;;  %v19865_v22 = vcombine.low %v9822_v34, %v9826_v59 }
 0x8d1   : > { %15858 = vmatprep.subr.bf16.mxu1 %v19898_v19  ;;  %v9946_v30 = vld [vmem:[#allocation10 + $0x19e8] sm:$0xff] }
 0x8d2   : > { %15818 = vmatpush2.bf16.msra.mxu0 %v19769_v53  ;;  %v10070_v45 = vld [vmem:[#allocation10 + $0x1dc8] sm:$0xff]  ;;  %v19986_v5 = vcombine.high %v9942_v9, %v9946_v30  ;;  %v19985_v37 = vcombine.low %v9942_v9, %v9946_v30 }
 0x8d3   : > { %15819 = vmatprep.subr.bf16.mxu0 %v19762_v61  ;;  %v10074_v32 = vld [vmem:[#allocation10 + $0x1de8] sm:$0xff] }
 0x8d4   : > { %15859 = vmatpush2.bf16.msra.mxu1 %v19897_v35  ;;  %v20114_v26 = vcombine.high %v10070_v45, %v10074_v32  ;;  %v9934_v19 = vld [vmem:[#allocation10 + $0x1988] sm:$0xff]  ;;  %v20113_v53 = vcombine.low %v10070_v45, %v10074_v32 }
 0x8d5   : > { %15860 = vmatprep.subr.bf16.mxu1 %v19890_v40  ;;  %v9938_v33 = vld [vmem:[#allocation10 + $0x19a8] sm:$0xff] }
 0x8d6   : > { %15820 = vmatpush2.bf16.msra.mxu0 %v19761_v44  ;;  %v10062_v17 = vld [vmem:[#allocation10 + $0x1d88] sm:$0xff]  ;;  %v19978_v35 = vcombine.high %v9934_v19, %v9938_v33 }
 0x8d7   : > { %15821 = vmatprep.subr.bf16.mxu0 %v19754_v0  ;;  %v10066_v24 = vld [vmem:[#allocation10 + $0x1da8] sm:$0xff]  ;;  %v19977_v0 = vcombine.low %v9934_v19, %v9938_v33 }
 0x8d8   : > { %15861 = vmatpush2.bf16.msra.mxu1 %v19889_v31  ;;  %v20106_v61 = vcombine.high %v10062_v17, %v10066_v24  ;;  %v9926_v40 = vld [vmem:[#allocation10 + $0x1948] sm:$0xff]  ;;  %v20105_v16 = vcombine.low %v10062_v17, %v10066_v24 }
 0x8d9   : > { %15862 = vmatprep.subr.bf16.mxu1 %v19882_v1  ;;  %v9930_v3 = vld [vmem:[#allocation10 + $0x1968] sm:$0xff] }
 0x8da   : > { %15822 = vmatpush2.bf16.msra.mxu0 %v19753_v51  ;;  %v10054_v38 = vld [vmem:[#allocation10 + $0x1d48] sm:$0xff]  ;;  %v19970_v36 = vcombine.high %v9926_v40, %v9930_v3 }
 0x8db   : > { %15823 = vmatprep.subr.bf16.mxu0 %v19746_v10  ;;  %v10058_v43 = vld [vmem:[#allocation10 + $0x1d68] sm:$0xff] }
 0x8dc   : > { %15863 = vmatpush2.bf16.msra.mxu1 %v19881_v4  ;;  %v20098_v4 = vcombine.high %v10054_v38, %v10058_v43  ;;  %v9918_v10 = vld [vmem:[#allocation10 + $0x1908] sm:$0xff] }
 0x8dd   : > { %15864 = vmatprep.subr.bf16.mxu1 %v19874_v56  ;;  %v9922_v56 = vld [vmem:[#allocation10 + $0x1928] sm:$0xff] }
 0x8de   : > { %15824 = vmatpush2.bf16.msra.mxu0 %v19745_v6  ;;  %v10046_v50 = vld [vmem:[#allocation10 + $0x1d08] sm:$0xff]  ;;  %v19969_v6 = vcombine.low %v9926_v40, %v9930_v3 }
 0x8df   : > { %15825 = vmatprep.subr.bf16.mxu0 %v19738_v57  ;;  %v10050_v62 = vld [vmem:[#allocation10 + $0x1d28] sm:$0xff]  ;;  %v19962_v57 = vcombine.high %v9918_v10, %v9922_v56 }
 0x8e0   : > { %15865 = vmatpush2.bf16.msra.mxu1 %v19873_v2  ;;  %v20090_v9 = vcombine.high %v10046_v50, %v10050_v62  ;;  %v9910_v30 = vld [vmem:[#allocation10 + $0x18c8] sm:$0xff] }
 0x8e1   : > { %15866 = vmatprep.subr.bf16.mxu1 %v19866_v8  ;;  %v9914_v45 = vld [vmem:[#allocation10 + $0x18e8] sm:$0xff] }
 0x8e2   : > { %15826 = vmatpush2.bf16.msra.mxu0 %v19737_v23  ;;  %v10038_v32 = vld [vmem:[#allocation10 + $0x1cc8] sm:$0xff] }
 0x8e3   : > { %15877 = vmatprep.subr.bf16.mxu0 %v19986_v5  ;;  %v10042_v23 = vld [vmem:[#allocation10 + $0x1ce8] sm:$0xff]  ;;  %v20089_v5 = vcombine.low %v10046_v50, %v10050_v62 }
 0x8e4   : > { %15867 = vmatpush2.bf16.msra.mxu1 %v19865_v22  ;;  %v19961_v22 = vcombine.low %v9918_v10, %v9922_v56  ;;  %v20082_v19 = vcombine.high %v10038_v32, %v10042_v23  ;;  %v9902_v33 = vld [vmem:[#allocation10 + $0x1888] sm:$0xff] }
 0x8e5   : > { %15918 = vmatprep.subr.bf16.mxu1 %v20114_v26  ;;  %v15583_v58 = vpop.f32.mrf.mxu0  ;;  %15828 = vmatmul.mubr.bf16.vlgmr.msra.gmra.mxu0 %v24184_v21  ;;  %v19954_v26 = vcombine.high %v9910_v30, %v9914_v45  ;;  %v9906_v17 = vld [vmem:[#allocation10 + $0x18a8] sm:$0xff] }
 0x8e6   : > { %v15584_v44 = vadd.f32 %v15583_v58, %v24231_v52  ;;  %15878 = vmatpush1.bf16.msra.mxu0 %v19985_v37  ;;  %15909 = vmatprep.mubr.bf16.mxu0 %v24192_v60  ;;  %v10030_v24 = vld [vmem:[#allocation10 + $0x1c88] sm:$0xff] }
 0x8e7   : > { %v15624_v31 = vpop.f32.mrf.mxu1  ;;  %15869 = vmatmul.mubr.bf16.vlgmr.msra.gmra.mxu1 %v24190_v29  ;;  %v15585_v1 = vpop.f32.mrf.mxu0  ;;  %15879 = vmatprep.subr.bf16.mxu0 %v19978_v35  ;;  %v10034_v37 = vld [vmem:[#allocation10 + $0x1ca8] sm:$0xff]  ;;  %v20081_v35 = vcombine.low %v10038_v32, %v10042_v23 }
 0x8e8   : > { %15919 = vmatpush1.bf16.msra.mxu1 %v20113_v53  ;;  %v24241_v48 = vadd.f32 %v15624_v31, %v15584_v44  ;;  %v15586_v20 = vadd.f32 %v15585_v1, %v24236_v46  ;;  %15950 = vmatprep.mubr.bf16.mxu1 %v24195_v47  ;;  %v20097_v46 = vcombine.low %v10054_v38, %v10058_v43  ;;  %v9894_v3 = vld [vmem:[#allocation10 + $0x1848] sm:$0xff] }
 0x8e9   : > { %v15626_v51 = vpop.f32.mrf.mxu1  ;;  %15920 = vmatprep.subr.bf16.mxu1 %v20106_v61  ;;  %v15587_v52 = vpop.f32.mrf.mxu0  ;;  %v19953_v53 = vcombine.low %v9910_v30, %v9914_v45  ;;  %v19946_v61 = vcombine.high %v9902_v33, %v9906_v17  ;;  %v20074_v40 = vcombine.high %v10030_v24, %v10034_v37  ;;  %v9898_v58 = vld [vmem:[#allocation10 + $0x1868] sm:$0xff]  ;;  %v19945_v44 = vcombine.low %v9902_v33, %v9906_v17 }
 0x8ea   : > { %v24246_v34 = vadd.f32 %v15626_v51, %v15586_v20  ;;  %15880 = vmatpush1.bf16.msra.mxu0 %v19977_v0  ;;  %v10022_v38 = vld [vmem:[#allocation10 + $0x1c48] sm:$0xff]  ;;  %v20073_v31 = vcombine.low %v10030_v24, %v10034_v37  ;;  %v19938_v0 = vcombine.high %v9894_v3, %v9898_v58 }
 0x8eb   : > { %v15628_v59 = vpop.f32.mrf.mxu1  ;;  %v15588_v2 = vpop.f32.mrf.mxu0  ;;  %15881 = vmatprep.subr.bf16.mxu0 %v19970_v36  ;;  %v10026_v43 = vld [vmem:[#allocation10 + $0x1c68] sm:$0xff] }
 0x8ec   : > { %15921 = vmatpush1.bf16.msra.mxu1 %v20105_v16  ;;  %v20066_v1 = vcombine.high %v10022_v38, %v10026_v43  ;;  %v9886_v16 = vld [vmem:[#allocation10 + $0x1808] sm:$0xff]  ;;  %v20065_v10 = vcombine.low %v10022_v38, %v10026_v43 }
 0x8ed   : > { %v15629_v8 = vpop.f32.mrf.mxu1  ;;  %15922 = vmatprep.subr.bf16.mxu1 %v20098_v4  ;;  %v9890_v36 = vld [vmem:[#allocation10 + $0x1828] sm:$0xff]  ;;  %v19937_v4 = vcombine.low %v9894_v3, %v9898_v58 }
 0x8ee   : > { %15882 = vmatpush1.bf16.msra.mxu0 %v19969_v6  ;;  %v10014_v20 = vld [vmem:[#allocation10 + $0x1c08] sm:$0xff]  ;;  %v19930_v56 = vcombine.high %v9886_v16, %v9890_v36  ;;  %v19929_v2 = vcombine.low %v9886_v16, %v9890_v36 }
 0x8ef   : > { %15883 = vmatprep.subr.bf16.mxu0 %v19962_v57  ;;  %v10018_v51 = vld [vmem:[#allocation10 + $0x1c28] sm:$0xff] }
 0x8f0   : > { %15923 = vmatpush1.bf16.msra.mxu1 %v20097_v46  ;;  %v20058_v52 = vcombine.high %v10014_v20, %v10018_v51  ;;  %v10006_v50 = vld [vmem:[#allocation10 + $0x1bc8] sm:$0xff]  ;;  %v20057_v46 = vcombine.low %v10014_v20, %v10018_v51 }
 0x8f1   : > { %15924 = vmatprep.subr.bf16.mxu1 %v20090_v9  ;;  %v10010_v62 = vld [vmem:[#allocation10 + $0x1be8] sm:$0xff] }
 0x8f2   : > { %15884 = vmatpush1.bf16.msra.mxu0 %v19961_v22  ;;  %v10134_v59 = vld [vmem:[#allocation10 + $0x1fc8] sm:$0xff]  ;;  %v20050_v57 = vcombine.high %v10006_v50, %v10010_v62  ;;  %v20049_v23 = vcombine.low %v10006_v50, %v10010_v62 }
 0x8f3   : > { %15885 = vmatprep.subr.bf16.mxu0 %v19954_v26  ;;  %v10138_v6 = vld [vmem:[#allocation10 + $0x1fe8] sm:$0xff] }
 0x8f4   : > { %15925 = vmatpush1.bf16.msra.mxu1 %v20089_v5  ;;  %v20178_v8 = vcombine.high %v10134_v59, %v10138_v6  ;;  %v9998_v9 = vld [vmem:[#allocation10 + $0x1b88] sm:$0xff]  ;;  %v20177_v22 = vcombine.low %v10134_v59, %v10138_v6 }
 0x8f5   : > { %15926 = vmatprep.subr.bf16.mxu1 %v20082_v19  ;;  %v10002_v30 = vld [vmem:[#allocation10 + $0x1ba8] sm:$0xff] }
 0x8f6   : > { %15886 = vmatpush1.bf16.msra.mxu0 %v19953_v53  ;;  %v10126_v45 = vld [vmem:[#allocation10 + $0x1f88] sm:$0xff]  ;;  %v20042_v5 = vcombine.high %v9998_v9, %v10002_v30  ;;  %v20041_v37 = vcombine.low %v9998_v9, %v10002_v30 }
 0x8f7   : > { %15887 = vmatprep.subr.bf16.mxu0 %v19946_v61  ;;  %v10130_v32 = vld [vmem:[#allocation10 + $0x1fa8] sm:$0xff] }
 0x8f8   : > { %15927 = vmatpush1.bf16.msra.mxu1 %v20081_v35  ;;  %v20170_v26 = vcombine.high %v10126_v45, %v10130_v32  ;;  %v9990_v19 = vld [vmem:[#allocation10 + $0x1b48] sm:$0xff]  ;;  %v20169_v53 = vcombine.low %v10126_v45, %v10130_v32 }
 0x8f9   : > { %15928 = vmatprep.subr.bf16.mxu1 %v20074_v40  ;;  %v9994_v33 = vld [vmem:[#allocation10 + $0x1b68] sm:$0xff] }
 0x8fa   : > { %15888 = vmatpush1.bf16.msra.mxu0 %v19945_v44  ;;  %v10118_v17 = vld [vmem:[#allocation10 + $0x1f48] sm:$0xff]  ;;  %v20034_v35 = vcombine.high %v9990_v19, %v9994_v33  ;;  %v20033_v43 = vcombine.low %v9990_v19, %v9994_v33 }
 0x8fb   : > { %15889 = vmatprep.subr.bf16.mxu0 %v19938_v0  ;;  %v10122_v24 = vld [vmem:[#allocation10 + $0x1f68] sm:$0xff] }
 0x8fc   : > { %15929 = vmatpush1.bf16.msra.mxu1 %v20073_v31  ;;  %v20162_v61 = vcombine.high %v10118_v17, %v10122_v24  ;;  %v9982_v40 = vld [vmem:[#allocation10 + $0x1b08] sm:$0xff]  ;;  %v20161_v44 = vcombine.low %v10118_v17, %v10122_v24 }
 0x8fd   : > { %15930 = vmatprep.subr.bf16.mxu1 %v20066_v1  ;;  %v9986_v3 = vld [vmem:[#allocation10 + $0x1b28] sm:$0xff] }
 0x8fe   : > { %15890 = vmatpush1.bf16.msra.mxu0 %v19937_v4  ;;  %v10110_v58 = vld [vmem:[#allocation10 + $0x1f08] sm:$0xff]  ;;  %v20026_v31 = vcombine.high %v9982_v40, %v9986_v3  ;;  %v20025_v51 = vcombine.low %v9982_v40, %v9986_v3  ;;  %v9179_v40 = vld [vmem:[#allocation10 + $0x1f0] sm:$0xff] }
 0x8ff   : > { %15891 = vmatprep.subr.bf16.mxu0 %v19930_v56  ;;  %v10114_v38 = vld [vmem:[#allocation10 + $0x1f28] sm:$0xff]  ;;  %v9303_v3 = vld [vmem:[#allocation10 + $0x5d0] sm:$0xff] }
 0x900   : > { %15931 = vmatpush1.bf16.msra.mxu1 %v20065_v10  ;;  %v20154_v0 = vcombine.high %v10110_v58, %v10114_v38  ;;  %v9974_v1 = vld [vmem:[#allocation10 + $0x1ac8] sm:$0xff]  ;;  %v20153_v4 = vcombine.low %v10110_v58, %v10114_v38  ;;  %v9307_v58 = vld [vmem:[#allocation10 + $0x5f0] sm:$0xff] }
 0x901   : > { %15932 = vmatprep.subr.bf16.mxu1 %v20058_v52  ;;  %v9978_v16 = vld [vmem:[#allocation10 + $0x1ae8] sm:$0xff] }
 0x902   : > { %15892 = vmatpush1.bf16.msra.mxu0 %v19929_v2  ;;  %v10102_v36 = vld [vmem:[#allocation10 + $0x1ec8] sm:$0xff]  ;;  %v20018_v10 = vcombine.high %v9974_v1, %v9978_v16  ;;  %v20017_v6 = vcombine.low %v9974_v1, %v9978_v16  ;;  %v9171_v1 = vld [vmem:[#allocation10 + $0x1b0] sm:$0xff] }
 0x903   : > { %15893 = vmatprep.subr.bf16.mxu0 %v20050_v57  ;;  %v10106_v20 = vld [vmem:[#allocation10 + $0x1ee8] sm:$0xff]  ;;  %v9295_v16 = vld [vmem:[#allocation10 + $0x590] sm:$0xff] }
 0x904   : > { %15933 = vmatpush1.bf16.msra.mxu1 %v20057_v46  ;;  %v20146_v56 = vcombine.high %v10102_v36, %v10106_v20  ;;  %v9966_v52 = vld [vmem:[#allocation10 + $0x1a88] sm:$0xff]  ;;  %v20145_v2 = vcombine.low %v10102_v36, %v10106_v20  ;;  %v9299_v36 = vld [vmem:[#allocation10 + $0x5b0] sm:$0xff]  ;;  %v22251_v20 = vld [vmem:[#allocation12] sm:$0xff] }
 0x905   : > { %15934 = vmatprep.subr.bf16.mxu1 %v20178_v8  ;;  %v9970_v50 = vld [vmem:[#allocation10 + $0x1aa8] sm:$0xff] }
 0x906   : > { %15894 = vmatpush2.bf16.msra.mxu0 %v20049_v23  ;;  %v10094_v62 = vld [vmem:[#allocation10 + $0x1e88] sm:$0xff]  ;;  %v20010_v46 = vcombine.high %v9966_v52, %v9970_v50  ;;  %v20009_v32 = vcombine.low %v9966_v52, %v9970_v50  ;;  %v10158_v52 = vrot.slane %v22251_v20, %v8877_v28  ;;  %v19340_v50 = vcombine.high %v9295_v16, %v9299_v36 }
 0x907   : > { %15895 = vmatprep.subr.bf16.mxu0 %v20042_v5  ;;  %v10098_v59 = vld [vmem:[#allocation10 + $0x1ea8] sm:$0xff] }
 0x908   : > { %15935 = vmatpush2.bf16.msra.mxu1 %v20177_v22  ;;  %v20138_v57 = vcombine.high %v10094_v62, %v10098_v59  ;;  %v9958_v8 = vld [vmem:[#allocation10 + $0x1a48] sm:$0xff]  ;;  %v20137_v23 = vcombine.low %v10094_v62, %v10098_v59  ;;  %v9159_v62 = vld [vmem:[#allocation10 + $0x150] sm:$0xff] }
 0x909   : > { %15936 = vmatprep.subr.bf16.mxu1 %v20170_v26  ;;  %v9962_v9 = vld [vmem:[#allocation10 + $0x1a68] sm:$0xff]  ;;  %v9163_v59 = vld [vmem:[#allocation10 + $0x170] sm:$0xff] }
 0x90a   : > { %15896 = vmatpush2.bf16.msra.mxu0 %v20041_v37  ;;  %v10086_v30 = vld [vmem:[#allocation10 + $0x1e48] sm:$0xff]  ;;  %v20002_v22 = vcombine.high %v9958_v8, %v9962_v9  ;;  %v20001_v24 = vcombine.low %v9958_v8, %v9962_v9 }
 0x90b   : > { %15897 = vmatprep.subr.bf16.mxu0 %v20034_v35  ;;  %v10090_v45 = vld [vmem:[#allocation10 + $0x1e68] sm:$0xff] }
 0x90c   : > { %15937 = vmatpush2.bf16.msra.mxu1 %v20169_v53  ;;  %v20130_v5 = vcombine.high %v10086_v30, %v10090_v45  ;;  %v9950_v26 = vld [vmem:[#allocation10 + $0x1a08] sm:$0xff]  ;;  %v20129_v37 = vcombine.low %v10086_v30, %v10090_v45  ;;  %v19339_v30 = vcombine.low %v9295_v16, %v9299_v36  ;;  %v19204_v45 = vcombine.high %v9159_v62, %v9163_v59 }
 0x90d   : > { %15938 = vmatprep.subr.bf16.mxu1 %v20162_v61  ;;  %v9954_v19 = vld [vmem:[#allocation10 + $0x1a28] sm:$0xff]  ;;  %v9175_v61 = vld [vmem:[#allocation10 + $0x1d0] sm:$0xff] }
 0x90e   : > { %15898 = vmatpush2.bf16.msra.mxu0 %v20033_v43  ;;  %v10078_v33 = vld [vmem:[#allocation10 + $0x1e08] sm:$0xff]  ;;  %v19994_v53 = vcombine.high %v9950_v26, %v9954_v19  ;;  %v19993_v38 = vcombine.low %v9950_v26, %v9954_v19  ;;  %v9155_v26 = vld [vmem:[#allocation10 + $0x130] sm:$0xff] }
 0x90f   : > { %15899 = vmatprep.subr.bf16.mxu0 %v20026_v31  ;;  %v10082_v17 = vld [vmem:[#allocation10 + $0x1e28] sm:$0xff]  ;;  %v19348_v31 = vcombine.high %v9303_v3, %v9307_v58 }
 0x910   : > { %15939 = vmatpush2.bf16.msra.mxu1 %v20161_v44  ;;  %v20122_v35 = vcombine.high %v10078_v33, %v10082_v17  ;;  %v20121_v43 = vcombine.low %v10078_v33, %v10082_v17  ;;  %v19220_v44 = vcombine.high %v9175_v61, %v9179_v40  ;;  %v9279_v33 = vld [vmem:[#allocation10 + $0x510] sm:$0xff] }
 0x911   : > { %15940 = vmatprep.subr.bf16.mxu1 %v20154_v0  ;;  %v9167_v0 = vld [vmem:[#allocation10 + $0x190] sm:$0xff] }
 0x912   : > { %15900 = vmatpush2.bf16.msra.mxu0 %v20025_v51  ;;  %v10154_v51 = vrot.slane %v22251_v20, %v8873_v49  ;;  %v19211_v49 = vcombine.low %v9167_v0, %v9171_v1  ;;  %v9283_v17 = vld [vmem:[#allocation10 + $0x530] sm:$0xff] }
 0x913   : > { %15901 = vmatprep.subr.bf16.mxu0 %v20018_v10  ;;  %v19347_v10 = vcombine.low %v9303_v3, %v9307_v58  ;;  %v19324_v58 = vcombine.high %v9279_v33, %v9283_v17  ;;  %v9135_v20 = vld [vmem:[#allocation10 + $0x90] sm:$0xff] }
 0x914   : > { %15941 = vmatpush2.bf16.msra.mxu1 %v20153_v4  ;;  %v19219_v4 = vcombine.low %v9175_v61, %v9179_v40 }
 0x915   : > { %15942 = vmatprep.subr.bf16.mxu1 %v20146_v56  ;;  %v19212_v56 = vcombine.high %v9167_v0, %v9171_v1  ;;  %v19323_v1 = vcombine.low %v9279_v33, %v9283_v17  ;;  %v9239_v33 = vld [vmem:[#allocation10 + $0x3d0] sm:$0xff] }
 0x916   : > { %15902 = vmatpush2.bf16.msra.mxu0 %v20017_v6  ;;  %v9243_v17 = vld [vmem:[#allocation10 + $0x3f0] sm:$0xff] }
 0x917   : > { %15903 = vmatprep.subr.bf16.mxu0 %v20010_v46  ;;  %v9291_v46 = vld [vmem:[#allocation10 + $0x570] sm:$0xff] }
 0x918   : > { %15943 = vmatpush2.bf16.msra.mxu1 %v20145_v2  ;;  %v9287_v2 = vld [vmem:[#allocation10 + $0x550] sm:$0xff] }
 0x919   : > { %15944 = vmatprep.subr.bf16.mxu1 %v20138_v57  ;;  %v19331_v61 = vcombine.low %v9287_v2, %v9291_v46 }
 0x91a   : > { %15904 = vmatpush2.bf16.msra.mxu0 %v20009_v32 }
 0x91b   : > { %15905 = vmatprep.subr.bf16.mxu0 %v20002_v22  ;;  %v19332_v22 = vcombine.high %v9287_v2, %v9291_v46  ;;  %v9255_v2 = vld [vmem:[#allocation10 + $0x450] sm:$0xff] }
 0x91c   : > { %15945 = vmatpush2.bf16.msra.mxu1 %v20137_v23  ;;  %v9259_v46 = vld [vmem:[#allocation10 + $0x470] sm:$0xff] }
 0x91d   : > { %15946 = vmatprep.subr.bf16.mxu1 %v20130_v5  ;;  %v9151_v5 = vld [vmem:[#allocation10 + $0x110] sm:$0xff] }
 0x91e   : > { %15906 = vmatpush2.bf16.msra.mxu0 %v20001_v24  ;;  %v19196_v40 = vcombine.high %v9151_v5, %v9155_v26  ;;  %v19195_v0 = vcombine.low %v9151_v5, %v9155_v26  ;;  %v19299_v5 = vcombine.low %v9255_v2, %v9259_v46 }
 0x91f   : > { %15907 = vmatprep.subr.bf16.mxu0 %v19994_v53  ;;  %v19203_v53 = vcombine.low %v9159_v62, %v9163_v59  ;;  %v9127_v59 = vld [vmem:[#allocation10 + $0x50] sm:$0xff] }
 0x920   : > { %15947 = vmatpush2.bf16.msra.mxu1 %v20129_v37 }
 0x921   : > { %15948 = vmatprep.subr.bf16.mxu1 %v20122_v35 }
 0x922   : > { %15908 = vmatpush2.bf16.msra.mxu0 %v19993_v38  ;;  %v9143_v38 = vld [vmem:[#allocation10 + $0xd0] sm:$0xff] }
 0x923   : > { %15959 = vmatprep.subr.bf16.mxu0 %v19220_v44  ;;  %v9271_v44 = vld [vmem:[#allocation10 + $0x4d0] sm:$0xff] }
 0x924   : > { %15949 = vmatpush2.bf16.msra.mxu1 %v20121_v43  ;;  %v9147_v43 = vld [vmem:[#allocation10 + $0xf0] sm:$0xff] }
 0x925   : > { %16000 = vmatprep.subr.bf16.mxu1 %v19348_v31  ;;  %v15665_v6 = vpop.f32.mrf.mxu0  ;;  %15910 = vmatmul.mubr.bf16.vlgmr.msra.gmra.mxu0 %v24202_v18  ;;  %v9275_v31 = vld [vmem:[#allocation10 + $0x4f0] sm:$0xff]  ;;  %v19188_v16 = vcombine.high %v9143_v38, %v9147_v43 }
 0x926   : > { %v15666_v57 = vadd.f32 %v15665_v6, %v10154_v51  ;;  %15960 = vmatpush1.bf16.msra.mxu0 %v19219_v4  ;;  %15991 = vmatprep.mubr.bf16.mxu0 %v24114_v14  ;;  %v19316_v36 = vcombine.high %v9271_v44, %v9275_v31  ;;  %v9139_v51 = vld [vmem:[#allocation10 + $0xb0] sm:$0xff] }
 0x927   : > { %v15706_v8 = vpop.f32.mrf.mxu1  ;;  %15951 = vmatmul.mubr.bf16.vlgmr.msra.gmra.mxu1 %v24207_v15  ;;  %v15667_v9 = vpop.f32.mrf.mxu0  ;;  %15961 = vmatprep.subr.bf16.mxu0 %v19212_v56  ;;  %v9263_v4 = vld [vmem:[#allocation10 + $0x490] sm:$0xff]  ;;  %v19187_v56 = vcombine.low %v9143_v38, %v9147_v43 }
 0x928   : > { %16001 = vmatpush1.bf16.msra.mxu1 %v19347_v10  ;;  %v24254_v28 = vadd.f32 %v15706_v8, %v15666_v57  ;;  %v15668_v32 = vadd.f32 %v15667_v9, %v10158_v52  ;;  %16032 = vmatprep.mubr.bf16.mxu1 %v24119_v27  ;;  %v9267_v10 = vld [vmem:[#allocation10 + $0x4b0] sm:$0xff]  ;;  %v19315_v52 = vcombine.low %v9271_v44, %v9275_v31 }
 0x929   : > { %v15708_v23 = vpop.f32.mrf.mxu1  ;;  %16002 = vmatprep.subr.bf16.mxu1 %v19340_v50  ;;  %v15669_v19 = vpop.f32.mrf.mxu0  ;;  %v19180_v50 = vcombine.high %v9135_v20, %v9139_v51  ;;  %v19308_v62 = vcombine.high %v9263_v4, %v9267_v10  ;;  %v9131_v6 = vld [vmem:[#allocation10 + $0x70] sm:$0xff]  ;;  %v19179_v57 = vcombine.low %v9135_v20, %v9139_v51  ;;  %v19307_v8 = vcombine.low %v9263_v4, %v9267_v10 }
 0x92a   : > { %v24258_v24 = vadd.f32 %v15708_v23, %v15668_v32  ;;  %15962 = vmatpush1.bf16.msra.mxu0 %v19211_v49  ;;  %v19172_v49 = vcombine.high %v9127_v59, %v9131_v6  ;;  %v19300_v9 = vcombine.high %v9255_v2, %v9259_v46  ;;  %v9247_v32 = vld [vmem:[#allocation10 + $0x410] sm:$0xff]  ;;  %v19283_v31 = vcombine.low %v9239_v33, %v9243_v17 }
 0x92b   : > { %v15710_v37 = vpop.f32.mrf.mxu1  ;;  %v15670_v35 = vpop.f32.mrf.mxu0  ;;  %15963 = vmatprep.subr.bf16.mxu0 %v19204_v45  ;;  %v9123_v45 = vld [vmem:[#allocation10 + $0x30] sm:$0xff] }
 0x92c   : > { %16003 = vmatpush1.bf16.msra.mxu1 %v19339_v30  ;;  %v9119_v30 = vld [vmem:[#allocation10 + $0x10] sm:$0xff] }
 0x92d   : > { %v15711_v3 = vpop.f32.mrf.mxu1  ;;  %16004 = vmatprep.subr.bf16.mxu1 %v19332_v22  ;;  %v9251_v23 = vld [vmem:[#allocation10 + $0x430] sm:$0xff]  ;;  %v19171_v22 = vcombine.low %v9127_v59, %v9131_v6  ;;  %v19164_v26 = vcombine.high %v9119_v30, %v9123_v45  ;;  %v19163_v35 = vcombine.low %v9119_v30, %v9123_v45 }
 0x92e   : > { %15964 = vmatpush1.bf16.msra.mxu0 %v19203_v53  ;;  %v19292_v19 = vcombine.high %v9247_v32, %v9251_v23  ;;  %v9367_v37 = vld [vmem:[#allocation10 + $0x7d0] sm:$0xff] }
 0x92f   : > { %15965 = vmatprep.subr.bf16.mxu0 %v19196_v40  ;;  %v9371_v53 = vld [vmem:[#allocation10 + $0x7f0] sm:$0xff]  ;;  %v19284_v40 = vcombine.high %v9239_v33, %v9243_v17 }
 0x930   : > { %16005 = vmatpush1.bf16.msra.mxu1 %v19331_v61  ;;  %v19291_v61 = vcombine.low %v9247_v32, %v9251_v23  ;;  %v19412_v3 = vcombine.high %v9367_v37, %v9371_v53  ;;  %v9235_v38 = vld [vmem:[#allocation10 + $0x3b0] sm:$0xff] }
 0x931   : > { %16006 = vmatprep.subr.bf16.mxu1 %v19324_v58  ;;  %v9231_v58 = vld [vmem:[#allocation10 + $0x390] sm:$0xff] }
 0x932   : > { %15966 = vmatpush1.bf16.msra.mxu0 %v19195_v0  ;;  %v9359_v43 = vld [vmem:[#allocation10 + $0x790] sm:$0xff]  ;;  %v19411_v0 = vcombine.low %v9367_v37, %v9371_v53  ;;  %v19275_v10 = vcombine.low %v9231_v58, %v9235_v38 }
 0x933   : > { %15967 = vmatprep.subr.bf16.mxu0 %v19188_v16  ;;  %v9363_v44 = vld [vmem:[#allocation10 + $0x7b0] sm:$0xff] }
 0x934   : > { %16007 = vmatpush1.bf16.msra.mxu1 %v19323_v1  ;;  %v19276_v1 = vcombine.high %v9231_v58, %v9235_v38  ;;  %v19404_v16 = vcombine.high %v9359_v43, %v9363_v44  ;;  %v9227_v20 = vld [vmem:[#allocation10 + $0x370] sm:$0xff] }
 0x935   : > { %16008 = vmatprep.subr.bf16.mxu1 %v19316_v36  ;;  %v9223_v36 = vld [vmem:[#allocation10 + $0x350] sm:$0xff] }
 0x936   : > { %15968 = vmatpush1.bf16.msra.mxu0 %v19187_v56  ;;  %v9351_v51 = vld [vmem:[#allocation10 + $0x750] sm:$0xff]  ;;  %v19403_v56 = vcombine.low %v9359_v43, %v9363_v44  ;;  %v19267_v46 = vcombine.low %v9223_v36, %v9227_v20 }
 0x937   : > { %15969 = vmatprep.subr.bf16.mxu0 %v19180_v50  ;;  %v9355_v4 = vld [vmem:[#allocation10 + $0x770] sm:$0xff] }
 0x938   : > { %16009 = vmatpush1.bf16.msra.mxu1 %v19315_v52  ;;  %v19268_v52 = vcombine.high %v9223_v36, %v9227_v20  ;;  %v19396_v50 = vcombine.high %v9351_v51, %v9355_v4  ;;  %v9219_v59 = vld [vmem:[#allocation10 + $0x330] sm:$0xff] }
 0x939   : > { %16010 = vmatprep.subr.bf16.mxu1 %v19308_v62  ;;  %v9215_v62 = vld [vmem:[#allocation10 + $0x310] sm:$0xff] }
 0x93a   : > { %15970 = vmatpush1.bf16.msra.mxu0 %v19179_v57  ;;  %v9343_v6 = vld [vmem:[#allocation10 + $0x710] sm:$0xff]  ;;  %v19395_v57 = vcombine.low %v9351_v51, %v9355_v4  ;;  %v19259_v23 = vcombine.low %v9215_v62, %v9219_v59 }
 0x93b   : > { %15971 = vmatprep.subr.bf16.mxu0 %v19172_v49  ;;  %v9347_v2 = vld [vmem:[#allocation10 + $0x730] sm:$0xff] }
 0x93c   : > { %16011 = vmatpush1.bf16.msra.mxu1 %v19307_v8  ;;  %v19260_v8 = vcombine.high %v9215_v62, %v9219_v59  ;;  %v19388_v49 = vcombine.high %v9343_v6, %v9347_v2  ;;  %v9211_v30 = vld [vmem:[#allocation10 + $0x2f0] sm:$0xff] }
 0x93d   : > { %16012 = vmatprep.subr.bf16.mxu1 %v19300_v9  ;;  %v9207_v9 = vld [vmem:[#allocation10 + $0x2d0] sm:$0xff] }
 0x93e   : > { %15972 = vmatpush1.bf16.msra.mxu0 %v19171_v22  ;;  %v9335_v45 = vld [vmem:[#allocation10 + $0x6d0] sm:$0xff]  ;;  %v19387_v22 = vcombine.low %v9343_v6, %v9347_v2  ;;  %v19251_v53 = vcombine.low %v9207_v9, %v9211_v30 }
 0x93f   : > { %15973 = vmatprep.subr.bf16.mxu0 %v19164_v26  ;;  %v9339_v32 = vld [vmem:[#allocation10 + $0x6f0] sm:$0xff] }
 0x940   : > { %16013 = vmatpush1.bf16.msra.mxu1 %v19299_v5  ;;  %v19252_v5 = vcombine.high %v9207_v9, %v9211_v30  ;;  %v19380_v26 = vcombine.high %v9335_v45, %v9339_v32  ;;  %v9203_v33 = vld [vmem:[#allocation10 + $0x2b0] sm:$0xff] }
 0x941   : > { %16014 = vmatprep.subr.bf16.mxu1 %v19292_v19  ;;  %v9199_v19 = vld [vmem:[#allocation10 + $0x290] sm:$0xff] }
 0x942   : > { %15974 = vmatpush1.bf16.msra.mxu0 %v19163_v35  ;;  %v9327_v17 = vld [vmem:[#allocation10 + $0x690] sm:$0xff]  ;;  %v19379_v35 = vcombine.low %v9335_v45, %v9339_v32  ;;  %v19243_v44 = vcombine.low %v9199_v19, %v9203_v33 }
 0x943   : > { %15975 = vmatprep.subr.bf16.mxu0 %v19284_v40  ;;  %v9331_v37 = vld [vmem:[#allocation10 + $0x6b0] sm:$0xff] }
 0x944   : > { %16015 = vmatpush1.bf16.msra.mxu1 %v19291_v61  ;;  %v19244_v61 = vcombine.high %v9199_v19, %v9203_v33  ;;  %v19372_v40 = vcombine.high %v9327_v17, %v9331_v37  ;;  %v9195_v58 = vld [vmem:[#allocation10 + $0x270] sm:$0xff] }
 0x945   : > { %16016 = vmatprep.subr.bf16.mxu1 %v19412_v3  ;;  %v9191_v3 = vld [vmem:[#allocation10 + $0x250] sm:$0xff] }
 0x946   : > { %15976 = vmatpush2.bf16.msra.mxu0 %v19283_v31  ;;  %v9319_v38 = vld [vmem:[#allocation10 + $0x650] sm:$0xff]  ;;  %v19371_v31 = vcombine.low %v9327_v17, %v9331_v37  ;;  %v19235_v4 = vcombine.low %v9191_v3, %v9195_v58 }
 0x947   : > { %15977 = vmatprep.subr.bf16.mxu0 %v19276_v1  ;;  %v9323_v43 = vld [vmem:[#allocation10 + $0x670] sm:$0xff] }
 0x948   : > { %16017 = vmatpush2.bf16.msra.mxu1 %v19411_v0  ;;  %v19236_v0 = vcombine.high %v9191_v3, %v9195_v58  ;;  %v19364_v1 = vcombine.high %v9319_v38, %v9323_v43  ;;  %v9187_v36 = vld [vmem:[#allocation10 + $0x230] sm:$0xff] }
 0x949   : > { %16018 = vmatprep.subr.bf16.mxu1 %v19404_v16  ;;  %v9183_v16 = vld [vmem:[#allocation10 + $0x210] sm:$0xff] }
 0x94a   : > { %15978 = vmatpush2.bf16.msra.mxu0 %v19275_v10  ;;  %v9311_v20 = vld [vmem:[#allocation10 + $0x610] sm:$0xff]  ;;  %v19363_v10 = vcombine.low %v9319_v38, %v9323_v43  ;;  %v19227_v2 = vcombine.low %v9183_v16, %v9187_v36 }
 0x94b   : > { %15979 = vmatprep.subr.bf16.mxu0 %v19268_v52  ;;  %v9315_v51 = vld [vmem:[#allocation10 + $0x630] sm:$0xff] }
 0x94c   : > { %16019 = vmatpush2.bf16.msra.mxu1 %v19403_v56  ;;  %v19228_v56 = vcombine.high %v9183_v16, %v9187_v36  ;;  %v19356_v52 = vcombine.high %v9311_v20, %v9315_v51  ;;  %v9435_v62 = vld [vmem:[#allocation10 + $0x9f0] sm:$0xff] }
 0x94d   : > { %16020 = vmatprep.subr.bf16.mxu1 %v19396_v50  ;;  %v9431_v50 = vld [vmem:[#allocation10 + $0x9d0] sm:$0xff] }
 0x94e   : > { %15980 = vmatpush2.bf16.msra.mxu0 %v19267_v46  ;;  %v9559_v59 = vld [vmem:[#allocation10 + $0xdd0] sm:$0xff]  ;;  %v19355_v46 = vcombine.low %v9311_v20, %v9315_v51  ;;  %v19475_v32 = vcombine.low %v9431_v50, %v9435_v62 }
 0x94f   : > { %15981 = vmatprep.subr.bf16.mxu0 %v19260_v8  ;;  %v9563_v6 = vld [vmem:[#allocation10 + $0xdf0] sm:$0xff] }
 0x950   : > { %16021 = vmatpush2.bf16.msra.mxu1 %v19395_v57  ;;  %v19476_v57 = vcombine.high %v9431_v50, %v9435_v62  ;;  %v19604_v8 = vcombine.high %v9559_v59, %v9563_v6  ;;  %v9427_v9 = vld [vmem:[#allocation10 + $0x9b0] sm:$0xff] }
 0x951   : > { %16022 = vmatprep.subr.bf16.mxu1 %v19388_v49  ;;  %v9423_v49 = vld [vmem:[#allocation10 + $0x990] sm:$0xff] }
 0x952   : > { %15982 = vmatpush2.bf16.msra.mxu0 %v19259_v23  ;;  %v9551_v30 = vld [vmem:[#allocation10 + $0xd90] sm:$0xff]  ;;  %v19603_v23 = vcombine.low %v9559_v59, %v9563_v6 }
 0x953   : > { %15983 = vmatprep.subr.bf16.mxu0 %v19252_v5  ;;  %v9555_v45 = vld [vmem:[#allocation10 + $0xdb0] sm:$0xff] }
 0x954   : > { %16023 = vmatpush2.bf16.msra.mxu1 %v19387_v22  ;;  %v19468_v22 = vcombine.high %v9423_v49, %v9427_v9  ;;  %v19596_v5 = vcombine.high %v9551_v30, %v9555_v45  ;;  %v9419_v19 = vld [vmem:[#allocation10 + $0x970] sm:$0xff]  ;;  %v19595_v3 = vcombine.low %v9551_v30, %v9555_v45 }
 0x955   : > { %16024 = vmatprep.subr.bf16.mxu1 %v19380_v26  ;;  %v9415_v26 = vld [vmem:[#allocation10 + $0x950] sm:$0xff] }
 0x956   : > { %15984 = vmatpush2.bf16.msra.mxu0 %v19251_v53  ;;  %v9543_v17 = vld [vmem:[#allocation10 + $0xd50] sm:$0xff]  ;;  %v19460_v58 = vcombine.high %v9415_v26, %v9419_v19 }
 0x957   : > { %15985 = vmatprep.subr.bf16.mxu0 %v19244_v61  ;;  %v9547_v37 = vld [vmem:[#allocation10 + $0xd70] sm:$0xff]  ;;  %v19467_v61 = vcombine.low %v9423_v49, %v9427_v9 }
 0x958   : > { %16025 = vmatpush2.bf16.msra.mxu1 %v19379_v35  ;;  %v9535_v16 = vld [vmem:[#allocation10 + $0xd10] sm:$0xff] }
 0x959   : > { %16026 = vmatprep.subr.bf16.mxu1 %v19372_v40  ;;  %v9539_v36 = vld [vmem:[#allocation10 + $0xd30] sm:$0xff] }
 0x95a   : > { %15986 = vmatpush2.bf16.msra.mxu0 %v19243_v44  ;;  %v19580_v50 = vcombine.high %v9535_v16, %v9539_v36  ;;  %v9399_v62 = vld [vmem:[#allocation10 + $0x8d0] sm:$0xff] }
 0x95b   : > { %15987 = vmatprep.subr.bf16.mxu0 %v19236_v0  ;;  %v9407_v0 = vld [vmem:[#allocation10 + $0x910] sm:$0xff] }
 0x95c   : > { %16027 = vmatpush2.bf16.msra.mxu1 %v19371_v31  ;;  %v19588_v31 = vcombine.high %v9543_v17, %v9547_v37  ;;  %v9403_v59 = vld [vmem:[#allocation10 + $0x8f0] sm:$0xff] }
 0x95d   : > { %16028 = vmatprep.subr.bf16.mxu1 %v19364_v1  ;;  %v9411_v1 = vld [vmem:[#allocation10 + $0x930] sm:$0xff] }
 0x95e   : > { %15988 = vmatpush2.bf16.msra.mxu0 %v19235_v4  ;;  %v19459_v4 = vcombine.low %v9415_v26, %v9419_v19  ;;  %v9527_v6 = vld [vmem:[#allocation10 + $0xcd0] sm:$0xff] }
 0x95f   : > { %15989 = vmatprep.subr.bf16.mxu0 %v19228_v56  ;;  %v19452_v56 = vcombine.high %v9407_v0, %v9411_v1  ;;  %v9391_v9 = vld [vmem:[#allocation10 + $0x890] sm:$0xff] }
 0x960   : > { %16029 = vmatpush2.bf16.msra.mxu1 %v19363_v10  ;;  %v9395_v30 = vld [vmem:[#allocation10 + $0x8b0] sm:$0xff] }
 0x961   : > { %16030 = vmatprep.subr.bf16.mxu1 %v19356_v52  ;;  %v9519_v45 = vld [vmem:[#allocation10 + $0xc90] sm:$0xff] }
 0x962   : > { %15990 = vmatpush2.bf16.msra.mxu0 %v19227_v2  ;;  %v9531_v2 = vld [vmem:[#allocation10 + $0xcf0] sm:$0xff] }
 0x963   : > { %16041 = vmatprep.subr.bf16.mxu0 %v19476_v57  ;;  %v19579_v57 = vcombine.low %v9535_v16, %v9539_v36  ;;  %v19572_v49 = vcombine.high %v9527_v6, %v9531_v2  ;;  %v9383_v19 = vld [vmem:[#allocation10 + $0x850] sm:$0xff] }
 0x964   : > { %16031 = vmatpush2.bf16.msra.mxu1 %v19355_v46  ;;  %v19451_v46 = vcombine.low %v9407_v0, %v9411_v1  ;;  %v9495_v16 = vld [vmem:[#allocation10 + $0xbd0] sm:$0xff] }
 0x965   : > { %16082 = vmatprep.subr.bf16.mxu1 %v19604_v8  ;;  %v15747_v33 = vpop.f32.mrf.mxu0  ;;  %15992 = vmatmul.mubr.bf16.vlgmr.msra.gmra.mxu0 %v24132_v42  ;;  %v19444_v8 = vcombine.high %v9399_v62, %v9403_v59  ;;  %v9499_v36 = vld [vmem:[#allocation10 + $0xbf0] sm:$0xff] }
 0x966   : > { %v15748_v53 = vadd.f32 %v15747_v33, %v24254_v28  ;;  %16042 = vmatpush1.bf16.msra.mxu0 %v19475_v32  ;;  %16073 = vmatprep.mubr.bf16.mxu0 %v24140_v55  ;;  %v9523_v32 = vld [vmem:[#allocation10 + $0xcb0] sm:$0xff] }
 0x967   : > { %v15788_v35 = vpop.f32.mrf.mxu1  ;;  %16033 = vmatmul.mubr.bf16.vlgmr.msra.gmra.mxu1 %v24138_v63  ;;  %v15749_v40 = vpop.f32.mrf.mxu0  ;;  %16043 = vmatprep.subr.bf16.mxu0 %v19468_v22  ;;  %v19571_v22 = vcombine.low %v9527_v6, %v9531_v2  ;;  %v19564_v26 = vcombine.high %v9519_v45, %v9523_v32  ;;  %v9387_v33 = vld [vmem:[#allocation10 + $0x870] sm:$0xff]  ;;  %v19539_v2 = vcombine.low %v9495_v16, %v9499_v36 }
 0x968   : > { %16083 = vmatpush1.bf16.msra.mxu1 %v19603_v23  ;;  %v24263_v38 = vadd.f32 %v15788_v35, %v15748_v53  ;;  %v15750_v43 = vadd.f32 %v15749_v40, %v24258_v24  ;;  %16114 = vmatprep.mubr.bf16.mxu1 %v24143_v13  ;;  %v19587_v24 = vcombine.low %v9543_v17, %v9547_v37  ;;  %v9511_v17 = vld [vmem:[#allocation10 + $0xc50] sm:$0xff] }
 0x969   : > { %v15790_v44 = vpop.f32.mrf.mxu1  ;;  %16084 = vmatprep.subr.bf16.mxu1 %v19596_v5  ;;  %v15751_v28 = vpop.f32.mrf.mxu0  ;;  %v19443_v23 = vcombine.low %v9399_v62, %v9403_v59  ;;  %v19436_v5 = vcombine.high %v9391_v9, %v9395_v30  ;;  %v9515_v37 = vld [vmem:[#allocation10 + $0xc70] sm:$0xff]  ;;  %v19435_v53 = vcombine.low %v9391_v9, %v9395_v30  ;;  %v19563_v35 = vcombine.low %v9519_v45, %v9523_v32 }
 0x96a   : > { %v24268_v20 = vadd.f32 %v15790_v44, %v15750_v43  ;;  %16044 = vmatpush1.bf16.msra.mxu0 %v19467_v61  ;;  %v19428_v61 = vcombine.high %v9383_v19, %v9387_v33  ;;  %v19556_v40 = vcombine.high %v9511_v17, %v9515_v37  ;;  %v9503_v43 = vld [vmem:[#allocation10 + $0xc10] sm:$0xff]  ;;  %v19555_v0 = vcombine.low %v9511_v17, %v9515_v37 }
 0x96b   : > { %v15792_v51 = vpop.f32.mrf.mxu1  ;;  %v15752_v10 = vpop.f32.mrf.mxu0  ;;  %16045 = vmatprep.subr.bf16.mxu0 %v19460_v58  ;;  %v9379_v58 = vld [vmem:[#allocation10 + $0x830] sm:$0xff] }
 0x96c   : > { %16085 = vmatpush1.bf16.msra.mxu1 %v19595_v3  ;;  %v9375_v3 = vld [vmem:[#allocation10 + $0x810] sm:$0xff] }
 0x96d   : > { %v15793_v52 = vpop.f32.mrf.mxu1  ;;  %16086 = vmatprep.subr.bf16.mxu1 %v19588_v31  ;;  %v9507_v44 = vld [vmem:[#allocation10 + $0xc30] sm:$0xff]  ;;  %v19427_v31 = vcombine.low %v9383_v19, %v9387_v33  ;;  %v19420_v1 = vcombine.high %v9375_v3, %v9379_v58  ;;  %v19419_v10 = vcombine.low %v9375_v3, %v9379_v58 }
 0x96e   : > { %16046 = vmatpush1.bf16.msra.mxu0 %v19459_v4  ;;  %v19548_v28 = vcombine.high %v9503_v43, %v9507_v44  ;;  %v9623_v51 = vld [vmem:[#allocation10 + $0xfd0] sm:$0xff] }
 0x96f   : > { %16047 = vmatprep.subr.bf16.mxu0 %v19452_v56  ;;  %v9627_v4 = vld [vmem:[#allocation10 + $0xff0] sm:$0xff]  ;;  %v19540_v56 = vcombine.high %v9495_v16, %v9499_v36 }
 0x970   : > { %16087 = vmatpush1.bf16.msra.mxu1 %v19587_v24  ;;  %v19547_v24 = vcombine.low %v9503_v43, %v9507_v44  ;;  %v19668_v52 = vcombine.high %v9623_v51, %v9627_v4  ;;  %v9491_v62 = vld [vmem:[#allocation10 + $0xbb0] sm:$0xff] }
 0x971   : > { %16088 = vmatprep.subr.bf16.mxu1 %v19580_v50  ;;  %v9487_v50 = vld [vmem:[#allocation10 + $0xb90] sm:$0xff] }
 0x972   : > { %16048 = vmatpush1.bf16.msra.mxu0 %v19451_v46  ;;  %v9615_v59 = vld [vmem:[#allocation10 + $0xf90] sm:$0xff]  ;;  %v19667_v46 = vcombine.low %v9623_v51, %v9627_v4  ;;  %v19531_v32 = vcombine.low %v9487_v50, %v9491_v62 }
 0x973   : > { %16049 = vmatprep.subr.bf16.mxu0 %v19444_v8  ;;  %v9619_v6 = vld [vmem:[#allocation10 + $0xfb0] sm:$0xff] }
 0x974   : > { %16089 = vmatpush1.bf16.msra.mxu1 %v19579_v57  ;;  %v19532_v57 = vcombine.high %v9487_v50, %v9491_v62  ;;  %v19660_v8 = vcombine.high %v9615_v59, %v9619_v6  ;;  %v9483_v9 = vld [vmem:[#allocation10 + $0xb70] sm:$0xff] }
 0x975   : > { %16090 = vmatprep.subr.bf16.mxu1 %v19572_v49  ;;  %v9479_v49 = vld [vmem:[#allocation10 + $0xb50] sm:$0xff] }
 0x976   : > { %16050 = vmatpush1.bf16.msra.mxu0 %v19443_v23  ;;  %v9607_v30 = vld [vmem:[#allocation10 + $0xf50] sm:$0xff]  ;;  %v19659_v23 = vcombine.low %v9615_v59, %v9619_v6  ;;  %v19523_v37 = vcombine.low %v9479_v49, %v9483_v9 }
 0x977   : > { %16051 = vmatprep.subr.bf16.mxu0 %v19436_v5  ;;  %v9611_v45 = vld [vmem:[#allocation10 + $0xf70] sm:$0xff] }
 0x978   : > { %16091 = vmatpush1.bf16.msra.mxu1 %v19571_v22  ;;  %v19524_v22 = vcombine.high %v9479_v49, %v9483_v9  ;;  %v19652_v5 = vcombine.high %v9607_v30, %v9611_v45  ;;  %v9475_v19 = vld [vmem:[#allocation10 + $0xb30] sm:$0xff] }
 0x979   : > { %16092 = vmatprep.subr.bf16.mxu1 %v19564_v26  ;;  %v9471_v26 = vld [vmem:[#allocation10 + $0xb10] sm:$0xff] }
 0x97a   : > { %16052 = vmatpush1.bf16.msra.mxu0 %v19435_v53  ;;  %v9599_v33 = vld [vmem:[#allocation10 + $0xf10] sm:$0xff]  ;;  %v19651_v53 = vcombine.low %v9607_v30, %v9611_v45  ;;  %v19515_v44 = vcombine.low %v9471_v26, %v9475_v19 }
 0x97b   : > { %16053 = vmatprep.subr.bf16.mxu0 %v19428_v61  ;;  %v9603_v17 = vld [vmem:[#allocation10 + $0xf30] sm:$0xff] }
 0x97c   : > { %16093 = vmatpush1.bf16.msra.mxu1 %v19563_v35  ;;  %v19516_v35 = vcombine.high %v9471_v26, %v9475_v19  ;;  %v19644_v61 = vcombine.high %v9599_v33, %v9603_v17  ;;  %v9467_v3 = vld [vmem:[#allocation10 + $0xaf0] sm:$0xff] }
 0x97d   : > { %16094 = vmatprep.subr.bf16.mxu1 %v19556_v40  ;;  %v9463_v40 = vld [vmem:[#allocation10 + $0xad0] sm:$0xff] }
 0x97e   : > { %16054 = vmatpush1.bf16.msra.mxu0 %v19427_v31  ;;  %v9591_v58 = vld [vmem:[#allocation10 + $0xed0] sm:$0xff]  ;;  %v19643_v31 = vcombine.low %v9599_v33, %v9603_v17  ;;  %v19507_v4 = vcombine.low %v9463_v40, %v9467_v3 }
 0x97f   : > { %16055 = vmatprep.subr.bf16.mxu0 %v19420_v1  ;;  %v9595_v43 = vld [vmem:[#allocation10 + $0xef0] sm:$0xff] }
 0x980   : > { %16095 = vmatpush1.bf16.msra.mxu1 %v19555_v0  ;;  %v19508_v0 = vcombine.high %v9463_v40, %v9467_v3  ;;  %v19636_v1 = vcombine.high %v9591_v58, %v9595_v43  ;;  %v9459_v16 = vld [vmem:[#allocation10 + $0xab0] sm:$0xff] }
 0x981   : > { %16096 = vmatprep.subr.bf16.mxu1 %v19548_v28  ;;  %v9455_v28 = vld [vmem:[#allocation10 + $0xa90] sm:$0xff] }
 0x982   : > { %16056 = vmatpush1.bf16.msra.mxu0 %v19419_v10  ;;  %v9583_v36 = vld [vmem:[#allocation10 + $0xe90] sm:$0xff]  ;;  %v19635_v10 = vcombine.low %v9591_v58, %v9595_v43  ;;  %v19499_v6 = vcombine.low %v9455_v28, %v9459_v16 }
 0x983   : > { %16057 = vmatprep.subr.bf16.mxu0 %v19540_v56  ;;  %v9587_v51 = vld [vmem:[#allocation10 + $0xeb0] sm:$0xff] }
 0x984   : > { %16097 = vmatpush1.bf16.msra.mxu1 %v19547_v24  ;;  %v19500_v24 = vcombine.high %v9455_v28, %v9459_v16  ;;  %v19628_v56 = vcombine.high %v9583_v36, %v9587_v51  ;;  %v9451_v50 = vld [vmem:[#allocation10 + $0xa70] sm:$0xff] }
 0x985   : > { %16098 = vmatprep.subr.bf16.mxu1 %v19668_v52  ;;  %v9447_v52 = vld [vmem:[#allocation10 + $0xa50] sm:$0xff] }
 0x986   : > { %16058 = vmatpush2.bf16.msra.mxu0 %v19539_v2  ;;  %v9575_v62 = vld [vmem:[#allocation10 + $0xe50] sm:$0xff]  ;;  %v19627_v2 = vcombine.low %v9583_v36, %v9587_v51  ;;  %v19491_v45 = vcombine.low %v9447_v52, %v9451_v50 }
 0x987   : > { %16059 = vmatprep.subr.bf16.mxu0 %v19532_v57  ;;  %v9579_v59 = vld [vmem:[#allocation10 + $0xe70] sm:$0xff] }
 0x988   : > { %16099 = vmatpush2.bf16.msra.mxu1 %v19667_v46  ;;  %v19492_v46 = vcombine.high %v9447_v52, %v9451_v50  ;;  %v19620_v57 = vcombine.high %v9575_v62, %v9579_v59  ;;  %v9443_v49 = vld [vmem:[#allocation10 + $0xa30] sm:$0xff] }
 0x989   : > { %16100 = vmatprep.subr.bf16.mxu1 %v19660_v8  ;;  %v9439_v8 = vld [vmem:[#allocation10 + $0xa10] sm:$0xff] }
 0x98a   : > { %16060 = vmatpush2.bf16.msra.mxu0 %v19531_v32  ;;  %v9567_v9 = vld [vmem:[#allocation10 + $0xe10] sm:$0xff]  ;;  %v19619_v32 = vcombine.low %v9575_v62, %v9579_v59  ;;  %v19483_v17 = vcombine.low %v9439_v8, %v9443_v49 }
 0x98b   : > { %16061 = vmatprep.subr.bf16.mxu0 %v19524_v22  ;;  %v9571_v30 = vld [vmem:[#allocation10 + $0xe30] sm:$0xff] }
 0x98c   : > { %16101 = vmatpush2.bf16.msra.mxu1 %v19659_v23  ;;  %v19484_v23 = vcombine.high %v9439_v8, %v9443_v49  ;;  %v19612_v22 = vcombine.high %v9567_v9, %v9571_v30  ;;  %v9691_v26 = vld [vmem:[#allocation10 + $0x11f0] sm:$0xff] }
 0x98d   : > { %16102 = vmatprep.subr.bf16.mxu1 %v19652_v5  ;;  %v9687_v5 = vld [vmem:[#allocation10 + $0x11d0] sm:$0xff] }
 0x98e   : > { %16062 = vmatpush2.bf16.msra.mxu0 %v19523_v37  ;;  %v9815_v19 = vld [vmem:[#allocation10 + $0x15d0] sm:$0xff]  ;;  %v19611_v37 = vcombine.low %v9567_v9, %v9571_v30  ;;  %v19731_v43 = vcombine.low %v9687_v5, %v9691_v26 }
 0x98f   : > { %16063 = vmatprep.subr.bf16.mxu0 %v19516_v35  ;;  %v9819_v33 = vld [vmem:[#allocation10 + $0x15f0] sm:$0xff] }
 0x990   : > { %16103 = vmatpush2.bf16.msra.mxu1 %v19651_v53  ;;  %v19732_v53 = vcombine.high %v9687_v5, %v9691_v26  ;;  %v19860_v35 = vcombine.high %v9815_v19, %v9819_v33  ;;  %v9683_v40 = vld [vmem:[#allocation10 + $0x11b0] sm:$0xff] }
 0x991   : > { %16104 = vmatprep.subr.bf16.mxu1 %v19644_v61  ;;  %v9679_v61 = vld [vmem:[#allocation10 + $0x1190] sm:$0xff] }
 0x992   : > { %16064 = vmatpush2.bf16.msra.mxu0 %v19515_v44  ;;  %v9807_v3 = vld [vmem:[#allocation10 + $0x1590] sm:$0xff]  ;;  %v19859_v44 = vcombine.low %v9815_v19, %v9819_v33 }
 0x993   : > { %16065 = vmatprep.subr.bf16.mxu0 %v19508_v0  ;;  %v9811_v58 = vld [vmem:[#allocation10 + $0x15b0] sm:$0xff] }
 0x994   : > { %16105 = vmatpush2.bf16.msra.mxu1 %v19643_v31  ;;  %v19724_v31 = vcombine.high %v9679_v61, %v9683_v40  ;;  %v19852_v0 = vcombine.high %v9807_v3, %v9811_v58  ;;  %v9675_v28 = vld [vmem:[#allocation10 + $0x1170] sm:$0xff]  ;;  %v19851_v52 = vcombine.low %v9807_v3, %v9811_v58 }
 0x995   : > { %16106 = vmatprep.subr.bf16.mxu1 %v19636_v1  ;;  %v9671_v1 = vld [vmem:[#allocation10 + $0x1150] sm:$0xff] }
 0x996   : > { %16066 = vmatpush2.bf16.msra.mxu0 %v19507_v4  ;;  %v9799_v36 = vld [vmem:[#allocation10 + $0x1550] sm:$0xff]  ;;  %v19716_v50 = vcombine.high %v9671_v1, %v9675_v28 }
 0x997   : > { %16067 = vmatprep.subr.bf16.mxu0 %v19500_v24  ;;  %v9803_v51 = vld [vmem:[#allocation10 + $0x1570] sm:$0xff]  ;;  %v19723_v24 = vcombine.low %v9679_v61, %v9683_v40 }
 0x998   : > { %16107 = vmatpush2.bf16.msra.mxu1 %v19635_v10  ;;  %v9791_v8 = vld [vmem:[#allocation10 + $0x1510] sm:$0xff] }
 0x999   : > { %16108 = vmatprep.subr.bf16.mxu1 %v19628_v56  ;;  %v9795_v49 = vld [vmem:[#allocation10 + $0x1530] sm:$0xff] }
 0x99a   : > { %16068 = vmatpush2.bf16.msra.mxu0 %v19499_v6  ;;  %v19836_v5 = vcombine.high %v9791_v8, %v9795_v49  ;;  %v9655_v26 = vld [vmem:[#allocation10 + $0x10d0] sm:$0xff] }
 0x99b   : > { %16069 = vmatprep.subr.bf16.mxu0 %v19492_v46  ;;  %v9663_v46 = vld [vmem:[#allocation10 + $0x1110] sm:$0xff] }
 0x99c   : > { %16109 = vmatpush2.bf16.msra.mxu1 %v19627_v2  ;;  %v19844_v2 = vcombine.high %v9799_v36, %v9803_v51  ;;  %v9659_v19 = vld [vmem:[#allocation10 + $0x10f0] sm:$0xff] }
 0x99d   : > { %16110 = vmatprep.subr.bf16.mxu1 %v19620_v57  ;;  %v9667_v57 = vld [vmem:[#allocation10 + $0x1130] sm:$0xff] }
 0x99e   : > { %16070 = vmatpush2.bf16.msra.mxu0 %v19491_v45  ;;  %v19715_v45 = vcombine.low %v9671_v1, %v9675_v28  ;;  %v9783_v33 = vld [vmem:[#allocation10 + $0x14d0] sm:$0xff] }
 0x99f   : > { %16071 = vmatprep.subr.bf16.mxu0 %v19484_v23  ;;  %v19708_v23 = vcombine.high %v9663_v46, %v9667_v57  ;;  %v9647_v40 = vld [vmem:[#allocation10 + $0x1090] sm:$0xff] }
 0x9a0   : > { %16111 = vmatpush2.bf16.msra.mxu1 %v19619_v32  ;;  %v9651_v3 = vld [vmem:[#allocation10 + $0x10b0] sm:$0xff] }
 0x9a1   : > { %16112 = vmatprep.subr.bf16.mxu1 %v19612_v22  ;;  %v9775_v58 = vld [vmem:[#allocation10 + $0x1490] sm:$0xff] }
 0x9a2   : > { %16072 = vmatpush2.bf16.msra.mxu0 %v19483_v17  ;;  %v9787_v17 = vld [vmem:[#allocation10 + $0x14f0] sm:$0xff] }
 0x9a3   : > { %16123 = vmatprep.subr.bf16.mxu0 %v19732_v53  ;;  %v19835_v53 = vcombine.low %v9791_v8, %v9795_v49  ;;  %v19828_v61 = vcombine.high %v9783_v33, %v9787_v17  ;;  %v9639_v28 = vld [vmem:[#allocation10 + $0x1050] sm:$0xff] }
 0x9a4   : > { %16113 = vmatpush2.bf16.msra.mxu1 %v19611_v37  ;;  %v19707_v37 = vcombine.low %v9663_v46, %v9667_v57  ;;  %v9751_v8 = vld [vmem:[#allocation10 + $0x13d0] sm:$0xff] }
 0x9a5   : > { %16164 = vmatprep.subr.bf16.mxu1 %v19860_v35  ;;  %v15829_v16 = vpop.f32.mrf.mxu0  ;;  %16074 = vmatmul.mubr.bf16.vlgmr.msra.gmra.mxu0 %v24158_v25  ;;  %v19700_v35 = vcombine.high %v9655_v26, %v9659_v19  ;;  %v9755_v49 = vld [vmem:[#allocation10 + $0x13f0] sm:$0xff] }
 0x9a6   : > { %v15830_v4 = vadd.f32 %v15829_v16, %v24263_v38  ;;  %16124 = vmatpush1.bf16.msra.mxu0 %v19731_v43  ;;  %16155 = vmatprep.mubr.bf16.mxu0 %v24166_v39  ;;  %v9779_v43 = vld [vmem:[#allocation10 + $0x14b0] sm:$0xff] }
 0x9a7   : > { %v15870_v10 = vpop.f32.mrf.mxu1  ;;  %16115 = vmatmul.mubr.bf16.vlgmr.msra.gmra.mxu1 %v24164_v41  ;;  %v15831_v56 = vpop.f32.mrf.mxu0  ;;  %16125 = vmatprep.subr.bf16.mxu0 %v19724_v31  ;;  %v19827_v31 = vcombine.low %v9783_v33, %v9787_v17  ;;  %v19820_v1 = vcombine.high %v9775_v58, %v9779_v43  ;;  %v9643_v16 = vld [vmem:[#allocation10 + $0x1070] sm:$0xff]  ;;  %v19795_v17 = vcombine.low %v9751_v8, %v9755_v49 }
 0x9a8   : > { %16165 = vmatpush1.bf16.msra.mxu1 %v19859_v44  ;;  %v24273_v62 = vadd.f32 %v15870_v10, %v15830_v4  ;;  %v15832_v59 = vadd.f32 %v15831_v56, %v24268_v20  ;;  %16196 = vmatprep.mubr.bf16.mxu1 %v24169_v54  ;;  %v19843_v20 = vcombine.low %v9799_v36, %v9803_v51  ;;  %v9767_v36 = vld [vmem:[#allocation10 + $0x1450] sm:$0xff] }
 0x9a9   : > { %v15872_v6 = vpop.f32.mrf.mxu1  ;;  %16166 = vmatprep.subr.bf16.mxu1 %v19852_v0  ;;  %v15833_v38 = vpop.f32.mrf.mxu0  ;;  %v19699_v44 = vcombine.low %v9655_v26, %v9659_v19  ;;  %v19692_v0 = vcombine.high %v9647_v40, %v9651_v3  ;;  %v9771_v51 = vld [vmem:[#allocation10 + $0x1470] sm:$0xff]  ;;  %v19691_v4 = vcombine.low %v9647_v40, %v9651_v3  ;;  %v19819_v10 = vcombine.low %v9775_v58, %v9779_v43 }
 0x9aa   : > { %v24278_v9 = vadd.f32 %v15872_v6, %v15832_v59  ;;  %16126 = vmatpush1.bf16.msra.mxu0 %v19723_v24  ;;  %v19684_v24 = vcombine.high %v9639_v28, %v9643_v16  ;;  %v19812_v56 = vcombine.high %v9767_v36, %v9771_v51  ;;  %v9759_v59 = vld [vmem:[#allocation10 + $0x1410] sm:$0xff]  ;;  %v19811_v46 = vcombine.low %v9767_v36, %v9771_v51 }
 0x9ab   : > { %v15874_v30 = vpop.f32.mrf.mxu1  ;;  %v15834_v32 = vpop.f32.mrf.mxu0  ;;  %16127 = vmatprep.subr.bf16.mxu0 %v19716_v50  ;;  %v9635_v50 = vld [vmem:[#allocation10 + $0x1030] sm:$0xff] }
 0x9ac   : > { %16167 = vmatpush1.bf16.msra.mxu1 %v19851_v52  ;;  %v9631_v52 = vld [vmem:[#allocation10 + $0x1010] sm:$0xff] }
 0x9ad   : > { %v15875_v22 = vpop.f32.mrf.mxu1  ;;  %16168 = vmatprep.subr.bf16.mxu1 %v19844_v2  ;;  %v9763_v6 = vld [vmem:[#allocation10 + $0x1430] sm:$0xff]  ;;  %v19683_v2 = vcombine.low %v9639_v28, %v9643_v16  ;;  %v19676_v57 = vcombine.high %v9631_v52, %v9635_v50  ;;  %v19675_v32 = vcombine.low %v9631_v52, %v9635_v50 }
 0x9ae   : > { %16128 = vmatpush1.bf16.msra.mxu0 %v19715_v45  ;;  %v19804_v38 = vcombine.high %v9759_v59, %v9763_v6  ;;  %v9879_v30 = vld [vmem:[#allocation10 + $0x17d0] sm:$0xff] }
 0x9af   : > { %16129 = vmatprep.subr.bf16.mxu0 %v19708_v23  ;;  %v9883_v45 = vld [vmem:[#allocation10 + $0x17f0] sm:$0xff]  ;;  %v19796_v23 = vcombine.high %v9751_v8, %v9755_v49 }
 0x9b0   : > { %16169 = vmatpush1.bf16.msra.mxu1 %v19843_v20  ;;  %v19803_v20 = vcombine.low %v9759_v59, %v9763_v6  ;;  %v19924_v22 = vcombine.high %v9879_v30, %v9883_v45  ;;  %v9747_v26 = vld [vmem:[#allocation10 + $0x13b0] sm:$0xff] }
 0x9b1   : > { %16170 = vmatprep.subr.bf16.mxu1 %v19836_v5  ;;  %v9743_v5 = vld [vmem:[#allocation10 + $0x1390] sm:$0xff] }
 0x9b2   : > { %16130 = vmatpush1.bf16.msra.mxu0 %v19707_v37  ;;  %v9871_v19 = vld [vmem:[#allocation10 + $0x1790] sm:$0xff]  ;;  %v19923_v37 = vcombine.low %v9879_v30, %v9883_v45  ;;  %v19787_v43 = vcombine.low %v9743_v5, %v9747_v26 }
 0x9b3   : > { %16131 = vmatprep.subr.bf16.mxu0 %v19700_v35  ;;  %v9875_v33 = vld [vmem:[#allocation10 + $0x17b0] sm:$0xff] }
 0x9b4   : > { %16171 = vmatpush1.bf16.msra.mxu1 %v19835_v53  ;;  %v19788_v53 = vcombine.high %v9743_v5, %v9747_v26  ;;  %v19916_v35 = vcombine.high %v9871_v19, %v9875_v33  ;;  %v9739_v40 = vld [vmem:[#allocation10 + $0x1370] sm:$0xff] }
 0x9b5   : > { %16172 = vmatprep.subr.bf16.mxu1 %v19828_v61  ;;  %v9735_v61 = vld [vmem:[#allocation10 + $0x1350] sm:$0xff] }
 0x9b6   : > { %16132 = vmatpush1.bf16.msra.mxu0 %v19699_v44  ;;  %v9863_v3 = vld [vmem:[#allocation10 + $0x1750] sm:$0xff]  ;;  %v19915_v44 = vcombine.low %v9871_v19, %v9875_v33  ;;  %v19779_v51 = vcombine.low %v9735_v61, %v9739_v40 }
 0x9b7   : > { %16133 = vmatprep.subr.bf16.mxu0 %v19692_v0  ;;  %v9867_v58 = vld [vmem:[#allocation10 + $0x1770] sm:$0xff] }
 0x9b8   : > { %16173 = vmatpush1.bf16.msra.mxu1 %v19827_v31  ;;  %v19780_v31 = vcombine.high %v9735_v61, %v9739_v40  ;;  %v19908_v0 = vcombine.high %v9863_v3, %v9867_v58  ;;  %v9731_v28 = vld [vmem:[#allocation10 + $0x1330] sm:$0xff] }
 0x9b9   : > { %16174 = vmatprep.subr.bf16.mxu1 %v19820_v1  ;;  %v9727_v1 = vld [vmem:[#allocation10 + $0x1310] sm:$0xff] }
 0x9ba   : > { %16134 = vmatpush1.bf16.msra.mxu0 %v19691_v4  ;;  %v9855_v16 = vld [vmem:[#allocation10 + $0x1710] sm:$0xff]  ;;  %v19907_v4 = vcombine.low %v9863_v3, %v9867_v58  ;;  %v19771_v6 = vcombine.low %v9727_v1, %v9731_v28 }
 0x9bb   : > { %16135 = vmatprep.subr.bf16.mxu0 %v19684_v24  ;;  %v9859_v36 = vld [vmem:[#allocation10 + $0x1730] sm:$0xff] }
 0x9bc   : > { %16175 = vmatpush1.bf16.msra.mxu1 %v19819_v10  ;;  %v19772_v10 = vcombine.high %v9727_v1, %v9731_v28  ;;  %v19900_v24 = vcombine.high %v9855_v16, %v9859_v36  ;;  %v9723_v52 = vld [vmem:[#allocation10 + $0x12f0] sm:$0xff] }
 0x9bd   : > { %16176 = vmatprep.subr.bf16.mxu1 %v19812_v56  ;;  %v9719_v56 = vld [vmem:[#allocation10 + $0x12d0] sm:$0xff] }
 0x9be   : > { %16136 = vmatpush1.bf16.msra.mxu0 %v19683_v2  ;;  %v9847_v50 = vld [vmem:[#allocation10 + $0x16d0] sm:$0xff]  ;;  %v19899_v2 = vcombine.low %v9855_v16, %v9859_v36  ;;  %v19763_v45 = vcombine.low %v9719_v56, %v9723_v52 }
 0x9bf   : > { %16137 = vmatprep.subr.bf16.mxu0 %v19676_v57  ;;  %v9851_v59 = vld [vmem:[#allocation10 + $0x16f0] sm:$0xff] }
 0x9c0   : > { %16177 = vmatpush1.bf16.msra.mxu1 %v19811_v46  ;;  %v19764_v46 = vcombine.high %v9719_v56, %v9723_v52  ;;  %v19892_v57 = vcombine.high %v9847_v50, %v9851_v59  ;;  %v9715_v8 = vld [vmem:[#allocation10 + $0x12b0] sm:$0xff] }
 0x9c1   : > { %16178 = vmatprep.subr.bf16.mxu1 %v19804_v38  ;;  %v9711_v38 = vld [vmem:[#allocation10 + $0x1290] sm:$0xff] }
 0x9c2   : > { %16138 = vmatpush1.bf16.msra.mxu0 %v19675_v32  ;;  %v9839_v49 = vld [vmem:[#allocation10 + $0x1690] sm:$0xff]  ;;  %v19891_v32 = vcombine.low %v9847_v50, %v9851_v59  ;;  %v19755_v33 = vcombine.low %v9711_v38, %v9715_v8 }
 0x9c3   : > { %16139 = vmatprep.subr.bf16.mxu0 %v19796_v23  ;;  %v9843_v30 = vld [vmem:[#allocation10 + $0x16b0] sm:$0xff] }
 0x9c4   : > { %16179 = vmatpush1.bf16.msra.mxu1 %v19803_v20  ;;  %v19756_v20 = vcombine.high %v9711_v38, %v9715_v8  ;;  %v19884_v23 = vcombine.high %v9839_v49, %v9843_v30  ;;  %v9707_v5 = vld [vmem:[#allocation10 + $0x1270] sm:$0xff] }
 0x9c5   : > { %16180 = vmatprep.subr.bf16.mxu1 %v19924_v22  ;;  %v9703_v22 = vld [vmem:[#allocation10 + $0x1250] sm:$0xff] }
 0x9c6   : > { %16140 = vmatpush2.bf16.msra.mxu0 %v19795_v17  ;;  %v9831_v26 = vld [vmem:[#allocation10 + $0x1650] sm:$0xff]  ;;  %v19883_v17 = vcombine.low %v9839_v49, %v9843_v30  ;;  %v19747_v58 = vcombine.low %v9703_v22, %v9707_v5 }
 0x9c7   : > { %16141 = vmatprep.subr.bf16.mxu0 %v19788_v53  ;;  %v9835_v19 = vld [vmem:[#allocation10 + $0x1670] sm:$0xff] }
 0x9c8   : > { %16181 = vmatpush2.bf16.msra.mxu1 %v19923_v37  ;;  %v19748_v37 = vcombine.high %v9703_v22, %v9707_v5  ;;  %v19876_v53 = vcombine.high %v9831_v26, %v9835_v19  ;;  %v9699_v61 = vld [vmem:[#allocation10 + $0x1230] sm:$0xff] }
 0x9c9   : > { %16182 = vmatprep.subr.bf16.mxu1 %v19916_v35  ;;  %v9695_v35 = vld [vmem:[#allocation10 + $0x1210] sm:$0xff] }
 0x9ca   : > { %16142 = vmatpush2.bf16.msra.mxu0 %v19787_v43  ;;  %v9823_v40 = vld [vmem:[#allocation10 + $0x1610] sm:$0xff]  ;;  %v19875_v43 = vcombine.low %v9831_v26, %v9835_v19  ;;  %v19739_v36 = vcombine.low %v9695_v35, %v9699_v61 }
 0x9cb   : > { %16143 = vmatprep.subr.bf16.mxu0 %v19780_v31  ;;  %v9827_v3 = vld [vmem:[#allocation10 + $0x1630] sm:$0xff] }
 0x9cc   : > { %16183 = vmatpush2.bf16.msra.mxu1 %v19915_v44  ;;  %v19740_v44 = vcombine.high %v9695_v35, %v9699_v61  ;;  %v19868_v31 = vcombine.high %v9823_v40, %v9827_v3  ;;  %v9947_v1 = vld [vmem:[#allocation10 + $0x19f0] sm:$0xff] }
 0x9cd   : > { %16184 = vmatprep.subr.bf16.mxu1 %v19908_v0  ;;  %v9943_v0 = vld [vmem:[#allocation10 + $0x19d0] sm:$0xff] }
 0x9ce   : > { %16144 = vmatpush2.bf16.msra.mxu0 %v19779_v51  ;;  %v10071_v28 = vld [vmem:[#allocation10 + $0x1dd0] sm:$0xff]  ;;  %v19867_v51 = vcombine.low %v9823_v40, %v9827_v3  ;;  %v19987_v59 = vcombine.low %v9943_v0, %v9947_v1 }
 0x9cf   : > { %16145 = vmatprep.subr.bf16.mxu0 %v19772_v10  ;;  %v10075_v16 = vld [vmem:[#allocation10 + $0x1df0] sm:$0xff] }
 0x9d0   : > { %16185 = vmatpush2.bf16.msra.mxu1 %v19907_v4  ;;  %v19988_v4 = vcombine.high %v9943_v0, %v9947_v1  ;;  %v20116_v10 = vcombine.high %v10071_v28, %v10075_v16  ;;  %v9939_v56 = vld [vmem:[#allocation10 + $0x19b0] sm:$0xff] }
 0x9d1   : > { %16186 = vmatprep.subr.bf16.mxu1 %v19900_v24  ;;  %v9935_v24 = vld [vmem:[#allocation10 + $0x1990] sm:$0xff] }
 0x9d2   : > { %16146 = vmatpush2.bf16.msra.mxu0 %v19771_v6  ;;  %v10063_v52 = vld [vmem:[#allocation10 + $0x1d90] sm:$0xff]  ;;  %v20115_v6 = vcombine.low %v10071_v28, %v10075_v16 }
 0x9d3   : > { %16147 = vmatprep.subr.bf16.mxu0 %v19764_v46  ;;  %v10067_v50 = vld [vmem:[#allocation10 + $0x1db0] sm:$0xff] }
 0x9d4   : > { %16187 = vmatpush2.bf16.msra.mxu1 %v19899_v2  ;;  %v19980_v2 = vcombine.high %v9935_v24, %v9939_v56  ;;  %v20108_v46 = vcombine.high %v10063_v52, %v10067_v50  ;;  %v9931_v38 = vld [vmem:[#allocation10 + $0x1970] sm:$0xff]  ;;  %v20107_v22 = vcombine.low %v10063_v52, %v10067_v50 }
 0x9d5   : > { %16188 = vmatprep.subr.bf16.mxu1 %v19892_v57  ;;  %v9927_v57 = vld [vmem:[#allocation10 + $0x1950] sm:$0xff] }
 0x9d6   : > { %16148 = vmatpush2.bf16.msra.mxu0 %v19763_v45  ;;  %v10055_v49 = vld [vmem:[#allocation10 + $0x1d50] sm:$0xff]  ;;  %v19972_v5 = vcombine.high %v9927_v57, %v9931_v38 }
 0x9d7   : > { %16149 = vmatprep.subr.bf16.mxu0 %v19756_v20  ;;  %v10059_v30 = vld [vmem:[#allocation10 + $0x1d70] sm:$0xff]  ;;  %v19979_v20 = vcombine.low %v9935_v24, %v9939_v56 }
 0x9d8   : > { %16189 = vmatpush2.bf16.msra.mxu1 %v19891_v32  ;;  %v10047_v35 = vld [vmem:[#allocation10 + $0x1d10] sm:$0xff] }
 0x9d9   : > { %16190 = vmatprep.subr.bf16.mxu1 %v19884_v23  ;;  %v10051_v61 = vld [vmem:[#allocation10 + $0x1d30] sm:$0xff] }
 0x9da   : > { %16150 = vmatpush2.bf16.msra.mxu0 %v19755_v33  ;;  %v20092_v0 = vcombine.high %v10047_v35, %v10051_v61  ;;  %v9911_v1 = vld [vmem:[#allocation10 + $0x18d0] sm:$0xff] }
 0x9db   : > { %16151 = vmatprep.subr.bf16.mxu0 %v19748_v37  ;;  %v9919_v37 = vld [vmem:[#allocation10 + $0x1910] sm:$0xff] }
 0x9dc   : > { %16191 = vmatpush2.bf16.msra.mxu1 %v19883_v17  ;;  %v20100_v17 = vcombine.high %v10055_v49, %v10059_v30  ;;  %v9915_v28 = vld [vmem:[#allocation10 + $0x18f0] sm:$0xff] }
 0x9dd   : > { %16192 = vmatprep.subr.bf16.mxu1 %v19876_v53  ;;  %v9923_v53 = vld [vmem:[#allocation10 + $0x1930] sm:$0xff] }
 0x9de   : > { %16152 = vmatpush2.bf16.msra.mxu0 %v19747_v58  ;;  %v19971_v58 = vcombine.low %v9927_v57, %v9931_v38  ;;  %v10039_v16 = vld [vmem:[#allocation10 + $0x1cd0] sm:$0xff] }
 0x9df   : > { %16153 = vmatprep.subr.bf16.mxu0 %v19740_v44  ;;  %v19964_v44 = vcombine.high %v9919_v37, %v9923_v53  ;;  %v9903_v56 = vld [vmem:[#allocation10 + $0x1890] sm:$0xff] }
 0x9e0   : > { %16193 = vmatpush2.bf16.msra.mxu1 %v19875_v43  ;;  %v9907_v52 = vld [vmem:[#allocation10 + $0x18b0] sm:$0xff] }
 0x9e1   : > { %16194 = vmatprep.subr.bf16.mxu1 %v19868_v31  ;;  %v10031_v50 = vld [vmem:[#allocation10 + $0x1c90] sm:$0xff] }
 0x9e2   : > { %16154 = vmatpush2.bf16.msra.mxu0 %v19739_v36  ;;  %v10043_v36 = vld [vmem:[#allocation10 + $0x1cf0] sm:$0xff] }
 0x9e3   : > { %16205 = vmatprep.subr.bf16.mxu0 %v19988_v4  ;;  %v20091_v4 = vcombine.low %v10047_v35, %v10051_v61  ;;  %v20084_v24 = vcombine.high %v10039_v16, %v10043_v36  ;;  %v9895_v38 = vld [vmem:[#allocation10 + $0x1850] sm:$0xff] }
 0x9e4   : > { %16195 = vmatpush2.bf16.msra.mxu1 %v19867_v51  ;;  %v19963_v51 = vcombine.low %v9919_v37, %v9923_v53  ;;  %v10007_v35 = vld [vmem:[#allocation10 + $0x1bd0] sm:$0xff] }
 0x9e5   : > { %16246 = vmatprep.subr.bf16.mxu1 %v20116_v10  ;;  %v15911_v8 = vpop.f32.mrf.mxu0  ;;  %16156 = vmatmul.mubr.bf16.vlgmr.msra.gmra.mxu0 %v24184_v21  ;;  %v19956_v10 = vcombine.high %v9911_v1, %v9915_v28  ;;  %v10011_v61 = vld [vmem:[#allocation10 + $0x1bf0] sm:$0xff] }
 0x9e6   : > { %v15912_v45 = vadd.f32 %v15911_v8, %v24273_v62  ;;  %16206 = vmatpush1.bf16.msra.mxu0 %v19987_v59  ;;  %16237 = vmatprep.mubr.bf16.mxu0 %v24192_v60  ;;  %v10035_v59 = vld [vmem:[#allocation10 + $0x1cb0] sm:$0xff] }
 0x9e7   : > { %v15952_v32 = vpop.f32.mrf.mxu1  ;;  %16197 = vmatmul.mubr.bf16.vlgmr.msra.gmra.mxu1 %v24190_v29  ;;  %v15913_v23 = vpop.f32.mrf.mxu0  ;;  %16207 = vmatprep.subr.bf16.mxu0 %v19980_v2  ;;  %v20083_v2 = vcombine.low %v10039_v16, %v10043_v36  ;;  %v20076_v57 = vcombine.high %v10031_v50, %v10035_v59  ;;  %v9899_v8 = vld [vmem:[#allocation10 + $0x1870] sm:$0xff]  ;;  %v20051_v36 = vcombine.low %v10007_v35, %v10011_v61 }
 0x9e8   : > { %16247 = vmatpush1.bf16.msra.mxu1 %v20115_v6  ;;  %v24283_v26 = vadd.f32 %v15952_v32, %v15912_v45  ;;  %v15914_v19 = vadd.f32 %v15913_v23, %v24278_v9  ;;  %16278 = vmatprep.mubr.bf16.mxu1 %v24195_v47  ;;  %v20099_v9 = vcombine.low %v10055_v49, %v10059_v30  ;;  %v10023_v49 = vld [vmem:[#allocation10 + $0x1c50] sm:$0xff] }
 0x9e9   : > { %v15954_v33 = vpop.f32.mrf.mxu1  ;;  %16248 = vmatprep.subr.bf16.mxu1 %v20108_v46  ;;  %v15915_v62 = vpop.f32.mrf.mxu0  ;;  %v19955_v6 = vcombine.low %v9911_v1, %v9915_v28  ;;  %v19948_v46 = vcombine.high %v9903_v56, %v9907_v52  ;;  %v10027_v30 = vld [vmem:[#allocation10 + $0x1c70] sm:$0xff]  ;;  %v19947_v45 = vcombine.low %v9903_v56, %v9907_v52  ;;  %v20075_v32 = vcombine.low %v10031_v50, %v10035_v59 }
 0x9ea   : > { %v24288_v40 = vadd.f32 %v15954_v33, %v15914_v19  ;;  %16208 = vmatpush1.bf16.msra.mxu0 %v19979_v20  ;;  %v19940_v20 = vcombine.high %v9895_v38, %v9899_v8  ;;  %v20068_v23 = vcombine.high %v10023_v49, %v10027_v30  ;;  %v10015_v19 = vld [vmem:[#allocation10 + $0x1c10] sm:$0xff]  ;;  %v20067_v37 = vcombine.low %v10023_v49, %v10027_v30 }
 0x9eb   : > { %v15956_v3 = vpop.f32.mrf.mxu1  ;;  %v15916_v43 = vpop.f32.mrf.mxu0  ;;  %16209 = vmatprep.subr.bf16.mxu0 %v19972_v5  ;;  %v9891_v5 = vld [vmem:[#allocation10 + $0x1830] sm:$0xff] }
 0x9ec   : > { %16249 = vmatpush1.bf16.msra.mxu1 %v20107_v22  ;;  %v9887_v22 = vld [vmem:[#allocation10 + $0x1810] sm:$0xff] }
 0x9ed   : > { %v15957_v31 = vpop.f32.mrf.mxu1  ;;  %16250 = vmatprep.subr.bf16.mxu1 %v20100_v17  ;;  %v10019_v33 = vld [vmem:[#allocation10 + $0x1c30] sm:$0xff]  ;;  %v19939_v17 = vcombine.low %v9895_v38, %v9899_v8  ;;  %v19932_v53 = vcombine.high %v9887_v22, %v9891_v5  ;;  %v19931_v43 = vcombine.low %v9887_v22, %v9891_v5 }
 0x9ee   : > { %16210 = vmatpush1.bf16.msra.mxu0 %v19971_v58  ;;  %v20060_v62 = vcombine.high %v10015_v19, %v10019_v33  ;;  %v10135_v3 = vld [vmem:[#allocation10 + $0x1fd0] sm:$0xff] }
 0x9ef   : > { %16211 = vmatprep.subr.bf16.mxu0 %v19964_v44  ;;  %v10139_v58 = vld [vmem:[#allocation10 + $0x1ff0] sm:$0xff]  ;;  %v20052_v44 = vcombine.high %v10007_v35, %v10011_v61 }
 0x9f0   : > { %16251 = vmatpush1.bf16.msra.mxu1 %v20099_v9  ;;  %v20059_v9 = vcombine.low %v10015_v19, %v10019_v33  ;;  %v20180_v31 = vcombine.high %v10135_v3, %v10139_v58  ;;  %v10003_v1 = vld [vmem:[#allocation10 + $0x1bb0] sm:$0xff] }
 0x9f1   : > { %16252 = vmatprep.subr.bf16.mxu1 %v20092_v0  ;;  %v9999_v0 = vld [vmem:[#allocation10 + $0x1b90] sm:$0xff] }
 0x9f2   : > { %16212 = vmatpush1.bf16.msra.mxu0 %v19963_v51  ;;  %v10127_v28 = vld [vmem:[#allocation10 + $0x1f90] sm:$0xff]  ;;  %v20179_v51 = vcombine.low %v10135_v3, %v10139_v58  ;;  %v20043_v59 = vcombine.low %v9999_v0, %v10003_v1 }
 0x9f3   : > { %16213 = vmatprep.subr.bf16.mxu0 %v19956_v10  ;;  %v10131_v16 = vld [vmem:[#allocation10 + $0x1fb0] sm:$0xff] }
 0x9f4   : > { %16253 = vmatpush1.bf16.msra.mxu1 %v20091_v4  ;;  %v20044_v4 = vcombine.high %v9999_v0, %v10003_v1  ;;  %v20172_v10 = vcombine.high %v10127_v28, %v10131_v16  ;;  %v9995_v56 = vld [vmem:[#allocation10 + $0x1b70] sm:$0xff] }
 0x9f5   : > { %16254 = vmatprep.subr.bf16.mxu1 %v20084_v24  ;;  %v9991_v24 = vld [vmem:[#allocation10 + $0x1b50] sm:$0xff] }
 0x9f6   : > { %16214 = vmatpush1.bf16.msra.mxu0 %v19955_v6  ;;  %v10119_v52 = vld [vmem:[#allocation10 + $0x1f50] sm:$0xff]  ;;  %v20171_v6 = vcombine.low %v10127_v28, %v10131_v16  ;;  %v20035_v30 = vcombine.low %v9991_v24, %v9995_v56 }
 0x9f7   : > { %16215 = vmatprep.subr.bf16.mxu0 %v19948_v46  ;;  %v10123_v50 = vld [vmem:[#allocation10 + $0x1f70] sm:$0xff] }
 0x9f8   : > { %16255 = vmatpush1.bf16.msra.mxu1 %v20083_v2  ;;  %v20036_v2 = vcombine.high %v9991_v24, %v9995_v56  ;;  %v20164_v46 = vcombine.high %v10119_v52, %v10123_v50  ;;  %v9987_v38 = vld [vmem:[#allocation10 + $0x1b30] sm:$0xff] }
 0x9f9   : > { %16256 = vmatprep.subr.bf16.mxu1 %v20076_v57  ;;  %v9983_v57 = vld [vmem:[#allocation10 + $0x1b10] sm:$0xff] }
 0x9fa   : > { %16216 = vmatpush1.bf16.msra.mxu0 %v19947_v45  ;;  %v10111_v8 = vld [vmem:[#allocation10 + $0x1f10] sm:$0xff]  ;;  %v20163_v45 = vcombine.low %v10119_v52, %v10123_v50  ;;  %v20027_v33 = vcombine.low %v9983_v57, %v9987_v38 }
 0x9fb   : > { %16217 = vmatprep.subr.bf16.mxu0 %v19940_v20  ;;  %v10115_v49 = vld [vmem:[#allocation10 + $0x1f30] sm:$0xff] }
 0x9fc   : > { %16257 = vmatpush1.bf16.msra.mxu1 %v20075_v32  ;;  %v20028_v32 = vcombine.high %v9983_v57, %v9987_v38  ;;  %v20156_v20 = vcombine.high %v10111_v8, %v10115_v49  ;;  %v9979_v22 = vld [vmem:[#allocation10 + $0x1af0] sm:$0xff]  ;;  %v9180_v57 = vld [vmem:[#allocation10 + $0x1f8] sm:$0xff] }
 0x9fd   : > { %16258 = vmatprep.subr.bf16.mxu1 %v20068_v23  ;;  %v9975_v23 = vld [vmem:[#allocation10 + $0x1ad0] sm:$0xff]  ;;  %v9304_v38 = vld [vmem:[#allocation10 + $0x5d8] sm:$0xff] }
 0x9fe   : > { %16218 = vmatpush1.bf16.msra.mxu0 %v19939_v17  ;;  %v10103_v5 = vld [vmem:[#allocation10 + $0x1ed0] sm:$0xff]  ;;  %v20155_v17 = vcombine.low %v10111_v8, %v10115_v49  ;;  %v20019_v58 = vcombine.low %v9975_v23, %v9979_v22  ;;  %v9308_v8 = vld [vmem:[#allocation10 + $0x5f8] sm:$0xff] }
 0x9ff   : > { %16219 = vmatprep.subr.bf16.mxu0 %v19932_v53  ;;  %v10107_v19 = vld [vmem:[#allocation10 + $0x1ef0] sm:$0xff] }
 0xa00   : > { %16259 = vmatpush1.bf16.msra.mxu1 %v20067_v37  ;;  %v20020_v37 = vcombine.high %v9975_v23, %v9979_v22  ;;  %v20148_v53 = vcombine.high %v10103_v5, %v10107_v19  ;;  %v9971_v35 = vld [vmem:[#allocation10 + $0x1ab0] sm:$0xff]  ;;  %v10165_v23 = vsub.s32 5, %v22835_v12  ;;  %v9168_v22 = vld [vmem:[#allocation10 + $0x198] sm:$0xff] }
 0xa01   : > { %16260 = vmatprep.subr.bf16.mxu1 %v20060_v62  ;;  %v9967_v62 = vld [vmem:[#allocation10 + $0x1a90] sm:$0xff] }
 0xa02   : > { %16220 = vmatpush1.bf16.msra.mxu0 %v19931_v43  ;;  %v10095_v61 = vld [vmem:[#allocation10 + $0x1e90] sm:$0xff]  ;;  %v20147_v43 = vcombine.low %v10103_v5, %v10107_v19  ;;  %v20011_v16 = vcombine.low %v9967_v62, %v9971_v35  ;;  %v9172_v5 = vld [vmem:[#allocation10 + $0x1b8] sm:$0xff] }
 0xa03   : > { %16221 = vmatprep.subr.bf16.mxu0 %v20052_v44  ;;  %v10099_v3 = vld [vmem:[#allocation10 + $0x1eb0] sm:$0xff]  ;;  %v9296_v19 = vld [vmem:[#allocation10 + $0x598] sm:$0xff] }
 0xa04   : > { %16261 = vmatpush1.bf16.msra.mxu1 %v20059_v9  ;;  %v20012_v9 = vcombine.high %v9967_v62, %v9971_v35  ;;  %v20140_v44 = vcombine.high %v10095_v61, %v10099_v3  ;;  %v9963_v0 = vld [vmem:[#allocation10 + $0x1a70] sm:$0xff]  ;;  %v19349_v62 = vcombine.low %v9304_v38, %v9308_v8  ;;  %v19214_v35 = vcombine.high %v9168_v22, %v9172_v5 }
 0xa05   : > { %16262 = vmatprep.subr.bf16.mxu1 %v20180_v31  ;;  %v9959_v31 = vld [vmem:[#allocation10 + $0x1a50] sm:$0xff] }
 0xa06   : > { %16222 = vmatpush2.bf16.msra.mxu0 %v20051_v36  ;;  %v10087_v1 = vld [vmem:[#allocation10 + $0x1e50] sm:$0xff]  ;;  %v20139_v36 = vcombine.low %v10095_v61, %v10099_v3  ;;  %v20003_v50 = vcombine.low %v9959_v31, %v9963_v0 }
 0xa07   : > { %16223 = vmatprep.subr.bf16.mxu0 %v20044_v4  ;;  %v10091_v28 = vld [vmem:[#allocation10 + $0x1e70] sm:$0xff] }
 0xa08   : > { %16263 = vmatpush2.bf16.msra.mxu1 %v20179_v51  ;;  %v20004_v51 = vcombine.high %v9959_v31, %v9963_v0  ;;  %v20132_v4 = vcombine.high %v10087_v1, %v10091_v28  ;;  %v9955_v24 = vld [vmem:[#allocation10 + $0x1a30] sm:$0xff]  ;;  %v9292_v31 = vld [vmem:[#allocation10 + $0x578] sm:$0xff] }
 0xa09   : > { %16264 = vmatprep.subr.bf16.mxu1 %v20172_v10  ;;  %v9951_v10 = vld [vmem:[#allocation10 + $0x1a10] sm:$0xff] }
 0xa0a   : > { %16224 = vmatpush2.bf16.msra.mxu0 %v20043_v59  ;;  %v10079_v56 = vld [vmem:[#allocation10 + $0x1e10] sm:$0xff]  ;;  %v20131_v59 = vcombine.low %v10087_v1, %v10091_v28  ;;  %v19995_v49 = vcombine.low %v9951_v10, %v9955_v24  ;;  %v19213_v28 = vcombine.low %v9168_v22, %v9172_v5  ;;  %v9276_v22 = vld [vmem:[#allocation10 + $0x4f8] sm:$0xff] }
 0xa0b   : > { %16225 = vmatprep.subr.bf16.mxu0 %v20036_v2  ;;  %v10083_v52 = vld [vmem:[#allocation10 + $0x1e30] sm:$0xff] }
 0xa0c   : > { %16265 = vmatpush2.bf16.msra.mxu1 %v20171_v6  ;;  %v19996_v6 = vcombine.high %v9951_v10, %v9955_v24  ;;  %v20124_v2 = vcombine.high %v10079_v56, %v10083_v52 }
 0xa0d   : > { %16266 = vmatprep.subr.bf16.mxu1 %v20164_v46  ;;  %v9176_v46 = vld [vmem:[#allocation10 + $0x1d8] sm:$0xff] }
 0xa0e   : > { %16226 = vmatpush2.bf16.msra.mxu0 %v20035_v30  ;;  %v10161_v30 = vsub.s32 4, %v22835_v12 }
 0xa0f   : > { %16227 = vmatprep.subr.bf16.mxu0 %v20028_v32  ;;  %v19222_v32 = vcombine.high %v9176_v46, %v9180_v57 }
 0xa10   : > { %16267 = vmatpush2.bf16.msra.mxu1 %v20163_v45  ;;  %v20123_v45 = vcombine.low %v10079_v56, %v10083_v52  ;;  %v9152_v52 = vld [vmem:[#allocation10 + $0x118] sm:$0xff] }
 0xa11   : > { %16268 = vmatprep.subr.bf16.mxu1 %v20156_v20  ;;  %v19350_v20 = vcombine.high %v9304_v38, %v9308_v8 }
 0xa12   : > { %16228 = vmatpush2.bf16.msra.mxu0 %v20027_v33  ;;  %v9300_v33 = vld [vmem:[#allocation10 + $0x5b8] sm:$0xff] }
 0xa13   : > { %16229 = vmatprep.subr.bf16.mxu0 %v20020_v37  ;;  %v19342_v3 = vcombine.high %v9296_v19, %v9300_v33 }
 0xa14   : > { %16269 = vmatpush2.bf16.msra.mxu1 %v20155_v17  ;;  %v22252_v17 = vld [vmem:[#allocation12] sm:$0xff] }
 0xa15   : > { %16270 = vmatprep.subr.bf16.mxu1 %v20148_v53  ;;  %v10162_v37 = vrot.slane %v22252_v17, %v10161_v30  ;;  %v19221_v53 = vcombine.low %v9176_v46, %v9180_v57  ;;  %v10166_v61 = vrot.slane %v22252_v17, %v10165_v23  ;;  %v9272_v23 = vld [vmem:[#allocation10 + $0x4d8] sm:$0xff] }
 0xa16   : > { %16230 = vmatpush2.bf16.msra.mxu0 %v20019_v58  ;;  %v9160_v58 = vld [vmem:[#allocation10 + $0x158] sm:$0xff] }
 0xa17   : > { %16231 = vmatprep.subr.bf16.mxu0 %v20012_v9  ;;  %v9136_v17 = vld [vmem:[#allocation10 + $0x98] sm:$0xff] }
 0xa18   : > { %16271 = vmatpush2.bf16.msra.mxu1 %v20147_v43  ;;  %v9164_v43 = vld [vmem:[#allocation10 + $0x178] sm:$0xff] }
 0xa19   : > { %16272 = vmatprep.subr.bf16.mxu1 %v20140_v44  ;;  %v9288_v44 = vld [vmem:[#allocation10 + $0x558] sm:$0xff]  ;;  %v19205_v38 = vcombine.low %v9160_v58, %v9164_v43 }
 0xa1a   : > { %16232 = vmatpush2.bf16.msra.mxu0 %v20011_v16  ;;  %v19334_v56 = vcombine.high %v9288_v44, %v9292_v31 }
 0xa1b   : > { %16233 = vmatprep.subr.bf16.mxu0 %v20004_v51  ;;  %v19206_v51 = vcombine.high %v9160_v58, %v9164_v43  ;;  %v9128_v43 = vld [vmem:[#allocation10 + $0x58] sm:$0xff] }
 0xa1c   : > { %16273 = vmatpush2.bf16.msra.mxu1 %v20139_v36  ;;  %v19341_v36 = vcombine.low %v9296_v19, %v9300_v33  ;;  %v19318_v33 = vcombine.high %v9272_v23, %v9276_v22 }
 0xa1d   : > { %16274 = vmatprep.subr.bf16.mxu1 %v20132_v4 }
 0xa1e   : > { %16234 = vmatpush2.bf16.msra.mxu0 %v20003_v50  ;;  %v9156_v50 = vld [vmem:[#allocation10 + $0x138] sm:$0xff] }
 0xa1f   : > { %16235 = vmatprep.subr.bf16.mxu0 %v19996_v6  ;;  %v9280_v6 = vld [vmem:[#allocation10 + $0x518] sm:$0xff]  ;;  %v19198_v30 = vcombine.high %v9152_v52, %v9156_v50  ;;  %v19197_v5 = vcombine.low %v9152_v52, %v9156_v50 }
 0xa20   : > { %16275 = vmatpush2.bf16.msra.mxu1 %v20131_v59 }
 0xa21   : > { %16276 = vmatprep.subr.bf16.mxu1 %v20124_v2  ;;  %v9284_v2 = vld [vmem:[#allocation10 + $0x538] sm:$0xff] }
 0xa22   : > { %16236 = vmatpush2.bf16.msra.mxu0 %v19995_v49  ;;  %v19333_v49 = vcombine.low %v9288_v44, %v9292_v31  ;;  %v9256_v44 = vld [vmem:[#allocation10 + $0x458] sm:$0xff] }
 0xa23   : > { %16287 = vmatprep.subr.bf16.mxu0 %v19222_v32  ;;  %v19326_v32 = vcombine.high %v9280_v6, %v9284_v2  ;;  %v9260_v31 = vld [vmem:[#allocation10 + $0x478] sm:$0xff] }
 0xa24   : > { %16277 = vmatpush2.bf16.msra.mxu1 %v20123_v45  ;;  %v19301_v52 = vcombine.low %v9256_v44, %v9260_v31 }
 0xa25   : > { %16328 = vmatprep.subr.bf16.mxu1 %v19350_v20  ;;  %v15993_v9 = vpop.f32.mrf.mxu0  ;;  %16238 = vmatmul.mubr.bf16.vlgmr.msra.gmra.mxu0 %v24202_v18  ;;  %v9144_v20 = vld [vmem:[#allocation10 + $0xd8] sm:$0xff] }
 0xa26   : > { %v15994_v0 = vadd.f32 %v15993_v9, %v10162_v37  ;;  %16288 = vmatpush1.bf16.msra.mxu0 %v19221_v53  ;;  %16319 = vmatprep.mubr.bf16.mxu0 %v24114_v14  ;;  %v9148_v14 = vld [vmem:[#allocation10 + $0xf8] sm:$0xff] }
 0xa27   : > { %v16034_v1 = vpop.f32.mrf.mxu1  ;;  %16279 = vmatmul.mubr.bf16.vlgmr.msra.gmra.mxu1 %v24207_v15  ;;  %v15995_v16 = vpop.f32.mrf.mxu0  ;;  %16289 = vmatprep.subr.bf16.mxu0 %v19214_v35  ;;  %v19190_v19 = vcombine.high %v9144_v20, %v9148_v14  ;;  %v9140_v37 = vld [vmem:[#allocation10 + $0xb8] sm:$0xff]  ;;  %v19189_v35 = vcombine.low %v9144_v20, %v9148_v14 }
 0xa28   : > { %16329 = vmatpush1.bf16.msra.mxu1 %v19349_v62  ;;  %v24294_v4 = vadd.f32 %v16034_v1, %v15994_v0  ;;  %v15996_v10 = vadd.f32 %v15995_v16, %v10166_v61  ;;  %16360 = vmatprep.mubr.bf16.mxu1 %v24119_v27  ;;  %v19325_v27 = vcombine.low %v9280_v6, %v9284_v2  ;;  %v9264_v53 = vld [vmem:[#allocation10 + $0x498] sm:$0xff] }
 0xa29   : > { %v16036_v24 = vpop.f32.mrf.mxu1  ;;  %16330 = vmatprep.subr.bf16.mxu1 %v19342_v3  ;;  %v15997_v59 = vpop.f32.mrf.mxu0  ;;  %v9268_v62 = vld [vmem:[#allocation10 + $0x4b8] sm:$0xff]  ;;  %v19317_v61 = vcombine.low %v9272_v23, %v9276_v22  ;;  %v19182_v3 = vcombine.high %v9136_v17, %v9140_v37  ;;  %v19181_v0 = vcombine.low %v9136_v17, %v9140_v37  ;;  %v19302_v16 = vcombine.high %v9256_v44, %v9260_v31 }
 0xa2a   : > { %v24298_v46 = vadd.f32 %v16036_v24, %v15996_v10  ;;  %16290 = vmatpush1.bf16.msra.mxu0 %v19213_v28  ;;  %v19310_v58 = vcombine.high %v9264_v53, %v9268_v62  ;;  %v9132_v9 = vld [vmem:[#allocation10 + $0x78] sm:$0xff]  ;;  %v19309_v1 = vcombine.low %v9264_v53, %v9268_v62 }
 0xa2b   : > { %v16038_v57 = vpop.f32.mrf.mxu1  ;;  %v15998_v8 = vpop.f32.mrf.mxu0  ;;  %16291 = vmatprep.subr.bf16.mxu0 %v19206_v51  ;;  %v19174_v28 = vcombine.high %v9128_v43, %v9132_v9  ;;  %v9124_v51 = vld [vmem:[#allocation10 + $0x38] sm:$0xff] }
 0xa2c   : > { %16331 = vmatpush1.bf16.msra.mxu1 %v19341_v36  ;;  %v9120_v36 = vld [vmem:[#allocation10 + $0x18] sm:$0xff] }
 0xa2d   : > { %v16039_v45 = vpop.f32.mrf.mxu1  ;;  %16332 = vmatprep.subr.bf16.mxu1 %v19334_v56  ;;  %v9248_v10 = vld [vmem:[#allocation10 + $0x418] sm:$0xff]  ;;  %v19173_v56 = vcombine.low %v9128_v43, %v9132_v9  ;;  %v19166_v50 = vcombine.high %v9120_v36, %v9124_v51  ;;  %v19165_v8 = vcombine.low %v9120_v36, %v9124_v51 }
 0xa2e   : > { %16292 = vmatpush1.bf16.msra.mxu0 %v19205_v38  ;;  %v9252_v24 = vld [vmem:[#allocation10 + $0x438] sm:$0xff] }
 0xa2f   : > { %16293 = vmatprep.subr.bf16.mxu0 %v19198_v30  ;;  %v19294_v59 = vcombine.high %v9248_v10, %v9252_v24  ;;  %v9240_v6 = vld [vmem:[#allocation10 + $0x3d8] sm:$0xff] }
 0xa30   : > { %16333 = vmatpush1.bf16.msra.mxu1 %v19333_v49  ;;  %v9244_v2 = vld [vmem:[#allocation10 + $0x3f8] sm:$0xff]  ;;  %v19293_v49 = vcombine.low %v9248_v10, %v9252_v24 }
 0xa31   : > { %16334 = vmatprep.subr.bf16.mxu1 %v19326_v32  ;;  %v9368_v57 = vld [vmem:[#allocation10 + $0x7d8] sm:$0xff]  ;;  %v19286_v30 = vcombine.high %v9240_v6, %v9244_v2  ;;  %v19285_v22 = vcombine.low %v9240_v6, %v9244_v2 }
 0xa32   : > { %16294 = vmatpush1.bf16.msra.mxu0 %v19197_v5  ;;  %v9372_v38 = vld [vmem:[#allocation10 + $0x7f8] sm:$0xff] }
 0xa33   : > { %16295 = vmatprep.subr.bf16.mxu0 %v19190_v19  ;;  %v19414_v45 = vcombine.high %v9368_v57, %v9372_v38  ;;  %v9232_v32 = vld [vmem:[#allocation10 + $0x398] sm:$0xff]  ;;  %v19413_v5 = vcombine.low %v9368_v57, %v9372_v38 }
 0xa34   : > { %16335 = vmatpush1.bf16.msra.mxu1 %v19325_v27  ;;  %v9236_v20 = vld [vmem:[#allocation10 + $0x3b8] sm:$0xff] }
 0xa35   : > { %16336 = vmatprep.subr.bf16.mxu1 %v19318_v33  ;;  %v9360_v14 = vld [vmem:[#allocation10 + $0x798] sm:$0xff]  ;;  %v19278_v27 = vcombine.high %v9232_v32, %v9236_v20  ;;  %v19277_v62 = vcombine.low %v9232_v32, %v9236_v20 }
 0xa36   : > { %16296 = vmatpush1.bf16.msra.mxu0 %v19189_v35  ;;  %v9364_v23 = vld [vmem:[#allocation10 + $0x7b8] sm:$0xff] }
 0xa37   : > { %16297 = vmatprep.subr.bf16.mxu0 %v19182_v3  ;;  %v19406_v19 = vcombine.high %v9360_v14, %v9364_v23  ;;  %v9224_v33 = vld [vmem:[#allocation10 + $0x358] sm:$0xff]  ;;  %v19405_v35 = vcombine.low %v9360_v14, %v9364_v23 }
 0xa38   : > { %16337 = vmatpush1.bf16.msra.mxu1 %v19317_v61  ;;  %v9228_v17 = vld [vmem:[#allocation10 + $0x378] sm:$0xff] }
 0xa39   : > { %16338 = vmatprep.subr.bf16.mxu1 %v19310_v58  ;;  %v9352_v37 = vld [vmem:[#allocation10 + $0x758] sm:$0xff]  ;;  %v19270_v61 = vcombine.high %v9224_v33, %v9228_v17  ;;  %v19269_v31 = vcombine.low %v9224_v33, %v9228_v17 }
 0xa3a   : > { %16298 = vmatpush1.bf16.msra.mxu0 %v19181_v0  ;;  %v9356_v53 = vld [vmem:[#allocation10 + $0x778] sm:$0xff] }
 0xa3b   : > { %16299 = vmatprep.subr.bf16.mxu0 %v19174_v28  ;;  %v19398_v3 = vcombine.high %v9352_v37, %v9356_v53  ;;  %v9216_v58 = vld [vmem:[#allocation10 + $0x318] sm:$0xff]  ;;  %v19397_v0 = vcombine.low %v9352_v37, %v9356_v53 }
 0xa3c   : > { %16339 = vmatpush1.bf16.msra.mxu1 %v19309_v1  ;;  %v9220_v43 = vld [vmem:[#allocation10 + $0x338] sm:$0xff] }
 0xa3d   : > { %16340 = vmatprep.subr.bf16.mxu1 %v19302_v16  ;;  %v9344_v9 = vld [vmem:[#allocation10 + $0x718] sm:$0xff]  ;;  %v19262_v1 = vcombine.high %v9216_v58, %v9220_v43  ;;  %v19261_v24 = vcombine.low %v9216_v58, %v9220_v43 }
 0xa3e   : > { %16300 = vmatpush1.bf16.msra.mxu0 %v19173_v56  ;;  %v9348_v44 = vld [vmem:[#allocation10 + $0x738] sm:$0xff] }
 0xa3f   : > { %16301 = vmatprep.subr.bf16.mxu0 %v19166_v50  ;;  %v19390_v28 = vcombine.high %v9344_v9, %v9348_v44  ;;  %v9208_v16 = vld [vmem:[#allocation10 + $0x2d8] sm:$0xff]  ;;  %v19389_v56 = vcombine.low %v9344_v9, %v9348_v44 }
 0xa40   : > { %16341 = vmatpush1.bf16.msra.mxu1 %v19301_v52  ;;  %v9212_v36 = vld [vmem:[#allocation10 + $0x2f8] sm:$0xff] }
 0xa41   : > { %16342 = vmatprep.subr.bf16.mxu1 %v19294_v59  ;;  %v9336_v51 = vld [vmem:[#allocation10 + $0x6d8] sm:$0xff]  ;;  %v19254_v52 = vcombine.high %v9208_v16, %v9212_v36  ;;  %v19253_v38 = vcombine.low %v9208_v16, %v9212_v36 }
 0xa42   : > { %16302 = vmatpush1.bf16.msra.mxu0 %v19165_v8  ;;  %v9340_v10 = vld [vmem:[#allocation10 + $0x6f8] sm:$0xff] }
 0xa43   : > { %16303 = vmatprep.subr.bf16.mxu0 %v19286_v30  ;;  %v19382_v50 = vcombine.high %v9336_v51, %v9340_v10  ;;  %v9200_v59 = vld [vmem:[#allocation10 + $0x298] sm:$0xff]  ;;  %v19381_v8 = vcombine.low %v9336_v51, %v9340_v10 }
 0xa44   : > { %16343 = vmatpush1.bf16.msra.mxu1 %v19293_v49  ;;  %v9204_v6 = vld [vmem:[#allocation10 + $0x2b8] sm:$0xff] }
 0xa45   : > { %16344 = vmatprep.subr.bf16.mxu1 %v19414_v45  ;;  %v9328_v2 = vld [vmem:[#allocation10 + $0x698] sm:$0xff]  ;;  %v19246_v49 = vcombine.high %v9200_v59, %v9204_v6  ;;  %v19245_v23 = vcombine.low %v9200_v59, %v9204_v6 }
 0xa46   : > { %16304 = vmatpush2.bf16.msra.mxu0 %v19285_v22  ;;  %v9332_v57 = vld [vmem:[#allocation10 + $0x6b8] sm:$0xff] }
 0xa47   : > { %16305 = vmatprep.subr.bf16.mxu0 %v19278_v27  ;;  %v19374_v30 = vcombine.high %v9328_v2, %v9332_v57  ;;  %v9192_v45 = vld [vmem:[#allocation10 + $0x258] sm:$0xff]  ;;  %v19373_v22 = vcombine.low %v9328_v2, %v9332_v57 }
 0xa48   : > { %16345 = vmatpush2.bf16.msra.mxu1 %v19413_v5  ;;  %v9196_v32 = vld [vmem:[#allocation10 + $0x278] sm:$0xff] }
 0xa49   : > { %16346 = vmatprep.subr.bf16.mxu1 %v19406_v19  ;;  %v9320_v20 = vld [vmem:[#allocation10 + $0x658] sm:$0xff]  ;;  %v19238_v5 = vcombine.high %v9192_v45, %v9196_v32  ;;  %v19237_v53 = vcombine.low %v9192_v45, %v9196_v32 }
 0xa4a   : > { %16306 = vmatpush2.bf16.msra.mxu0 %v19277_v62  ;;  %v9324_v14 = vld [vmem:[#allocation10 + $0x678] sm:$0xff] }
 0xa4b   : > { %16307 = vmatprep.subr.bf16.mxu0 %v19270_v61  ;;  %v19366_v27 = vcombine.high %v9320_v20, %v9324_v14  ;;  %v9184_v19 = vld [vmem:[#allocation10 + $0x218] sm:$0xff]  ;;  %v19365_v62 = vcombine.low %v9320_v20, %v9324_v14 }
 0xa4c   : > { %16347 = vmatpush2.bf16.msra.mxu1 %v19405_v35  ;;  %v9188_v33 = vld [vmem:[#allocation10 + $0x238] sm:$0xff] }
 0xa4d   : > { %16348 = vmatprep.subr.bf16.mxu1 %v19398_v3  ;;  %v9312_v17 = vld [vmem:[#allocation10 + $0x618] sm:$0xff]  ;;  %v19230_v35 = vcombine.high %v9184_v19, %v9188_v33  ;;  %v19229_v44 = vcombine.low %v9184_v19, %v9188_v33 }
 0xa4e   : > { %16308 = vmatpush2.bf16.msra.mxu0 %v19269_v31  ;;  %v9316_v37 = vld [vmem:[#allocation10 + $0x638] sm:$0xff] }
 0xa4f   : > { %16309 = vmatprep.subr.bf16.mxu0 %v19262_v1  ;;  %v19358_v61 = vcombine.high %v9312_v17, %v9316_v37  ;;  %v9432_v3 = vld [vmem:[#allocation10 + $0x9d8] sm:$0xff]  ;;  %v19357_v31 = vcombine.low %v9312_v17, %v9316_v37 }
 0xa50   : > { %16349 = vmatpush2.bf16.msra.mxu1 %v19397_v0  ;;  %v9436_v58 = vld [vmem:[#allocation10 + $0x9f8] sm:$0xff] }
 0xa51   : > { %16350 = vmatprep.subr.bf16.mxu1 %v19390_v28  ;;  %v9560_v43 = vld [vmem:[#allocation10 + $0xdd8] sm:$0xff]  ;;  %v19478_v0 = vcombine.high %v9432_v3, %v9436_v58  ;;  %v19477_v10 = vcombine.low %v9432_v3, %v9436_v58 }
 0xa52   : > { %16310 = vmatpush2.bf16.msra.mxu0 %v19261_v24  ;;  %v9564_v9 = vld [vmem:[#allocation10 + $0xdf8] sm:$0xff] }
 0xa53   : > { %16311 = vmatprep.subr.bf16.mxu0 %v19254_v52  ;;  %v19606_v1 = vcombine.high %v9560_v43, %v9564_v9  ;;  %v9424_v28 = vld [vmem:[#allocation10 + $0x998] sm:$0xff]  ;;  %v19605_v24 = vcombine.low %v9560_v43, %v9564_v9 }
 0xa54   : > { %16351 = vmatpush2.bf16.msra.mxu1 %v19389_v56  ;;  %v9428_v16 = vld [vmem:[#allocation10 + $0x9b8] sm:$0xff] }
 0xa55   : > { %16352 = vmatprep.subr.bf16.mxu1 %v19382_v50  ;;  %v9552_v36 = vld [vmem:[#allocation10 + $0xd98] sm:$0xff]  ;;  %v19470_v56 = vcombine.high %v9424_v28, %v9428_v16 }
 0xa56   : > { %16312 = vmatpush2.bf16.msra.mxu0 %v19253_v38  ;;  %v9556_v51 = vld [vmem:[#allocation10 + $0xdb8] sm:$0xff] }
 0xa57   : > { %16313 = vmatprep.subr.bf16.mxu0 %v19246_v49  ;;  %v19598_v52 = vcombine.high %v9552_v36, %v9556_v51  ;;  %v9416_v50 = vld [vmem:[#allocation10 + $0x958] sm:$0xff]  ;;  %v19469_v49 = vcombine.low %v9424_v28, %v9428_v16  ;;  %v19597_v45 = vcombine.low %v9552_v36, %v9556_v51 }
 0xa58   : > { %16353 = vmatpush2.bf16.msra.mxu1 %v19381_v8  ;;  %v9420_v59 = vld [vmem:[#allocation10 + $0x978] sm:$0xff] }
 0xa59   : > { %16354 = vmatprep.subr.bf16.mxu1 %v19374_v30  ;;  %v9544_v2 = vld [vmem:[#allocation10 + $0xd58] sm:$0xff]  ;;  %v19462_v32 = vcombine.high %v9416_v50, %v9420_v59  ;;  %v19461_v17 = vcombine.low %v9416_v50, %v9420_v59 }
 0xa5a   : > { %16314 = vmatpush2.bf16.msra.mxu0 %v19245_v23  ;;  %v9548_v57 = vld [vmem:[#allocation10 + $0xd78] sm:$0xff] }
 0xa5b   : > { %16315 = vmatprep.subr.bf16.mxu0 %v19238_v5  ;;  %v9412_v5 = vld [vmem:[#allocation10 + $0x938] sm:$0xff] }
 0xa5c   : > { %16355 = vmatpush2.bf16.msra.mxu1 %v19373_v22  ;;  %v9408_v22 = vld [vmem:[#allocation10 + $0x918] sm:$0xff] }
 0xa5d   : > { %16356 = vmatprep.subr.bf16.mxu1 %v19366_v27  ;;  %v9540_v27 = vld [vmem:[#allocation10 + $0xd38] sm:$0xff]  ;;  %v19453_v43 = vcombine.low %v9408_v22, %v9412_v5 }
 0xa5e   : > { %16316 = vmatpush2.bf16.msra.mxu0 %v19237_v53  ;;  %v19454_v53 = vcombine.high %v9408_v22, %v9412_v5  ;;  %v9528_v3 = vld [vmem:[#allocation10 + $0xcd8] sm:$0xff] }
 0xa5f   : > { %16317 = vmatprep.subr.bf16.mxu0 %v19230_v35  ;;  %v9532_v58 = vld [vmem:[#allocation10 + $0xcf8] sm:$0xff] }
 0xa60   : > { %16357 = vmatpush2.bf16.msra.mxu1 %v19365_v62  ;;  %v9524_v28 = vld [vmem:[#allocation10 + $0xcb8] sm:$0xff]  ;;  %v19573_v36 = vcombine.low %v9528_v3, %v9532_v58 }
 0xa61   : > { %16358 = vmatprep.subr.bf16.mxu1 %v19358_v61  ;;  %v9400_v61 = vld [vmem:[#allocation10 + $0x8d8] sm:$0xff] }
 0xa62   : > { %16318 = vmatpush2.bf16.msra.mxu0 %v19229_v44  ;;  %v19574_v44 = vcombine.high %v9528_v3, %v9532_v58  ;;  %v9516_v50 = vld [vmem:[#allocation10 + $0xc78] sm:$0xff] }
 0xa63   : > { %16369 = vmatprep.subr.bf16.mxu0 %v19478_v0  ;;  %v9396_v0 = vld [vmem:[#allocation10 + $0x8b8] sm:$0xff] }
 0xa64   : > { %16359 = vmatpush2.bf16.msra.mxu1 %v19357_v31  ;;  %v9392_v31 = vld [vmem:[#allocation10 + $0x898] sm:$0xff] }
 0xa65   : > { %16410 = vmatprep.subr.bf16.mxu1 %v19606_v1  ;;  %v16075_v6 = vpop.f32.mrf.mxu0  ;;  %16320 = vmatmul.mubr.bf16.vlgmr.msra.gmra.mxu0 %v24132_v42  ;;  %v19590_v42 = vcombine.high %v9544_v2, %v9548_v57  ;;  %v9520_v1 = vld [vmem:[#allocation10 + $0xc98] sm:$0xff]  ;;  %v19438_v51 = vcombine.high %v9392_v31, %v9396_v0  ;;  %v19437_v59 = vcombine.low %v9392_v31, %v9396_v0 }
 0xa66   : > { %v16076_v38 = vadd.f32 %v16075_v6, %v24294_v4  ;;  %16370 = vmatpush1.bf16.msra.mxu0 %v19477_v10  ;;  %16401 = vmatprep.mubr.bf16.mxu0 %v24140_v55  ;;  %v9404_v55 = vld [vmem:[#allocation10 + $0x8f8] sm:$0xff]  ;;  %v19566_v10 = vcombine.high %v9520_v1, %v9524_v28  ;;  %v19565_v6 = vcombine.low %v9520_v1, %v9524_v28 }
 0xa67   : > { %v16116_v8 = vpop.f32.mrf.mxu1  ;;  %16361 = vmatmul.mubr.bf16.vlgmr.msra.gmra.mxu1 %v24138_v63  ;;  %v16077_v30 = vpop.f32.mrf.mxu0  ;;  %16371 = vmatprep.subr.bf16.mxu0 %v19470_v56  ;;  %v9536_v63 = vld [vmem:[#allocation10 + $0xd18] sm:$0xff]  ;;  %v19446_v9 = vcombine.high %v9400_v61, %v9404_v55  ;;  %v19445_v16 = vcombine.low %v9400_v61, %v9404_v55 }
 0xa68   : > { %16411 = vmatpush1.bf16.msra.mxu1 %v19605_v24  ;;  %v24303_v20 = vadd.f32 %v16116_v8, %v16076_v38  ;;  %v16078_v14 = vadd.f32 %v16077_v30, %v24298_v46  ;;  %16442 = vmatprep.mubr.bf16.mxu1 %v24143_v13  ;;  %v19589_v46 = vcombine.low %v9544_v2, %v9548_v57  ;;  %v9384_v24 = vld [vmem:[#allocation10 + $0x858] sm:$0xff] }
 0xa69   : > { %v16118_v23 = vpop.f32.mrf.mxu1  ;;  %16412 = vmatprep.subr.bf16.mxu1 %v19598_v52  ;;  %v16079_v4 = vpop.f32.mrf.mxu0  ;;  %v19582_v35 = vcombine.high %v9536_v63, %v9540_v27  ;;  %v19581_v13 = vcombine.low %v9536_v63, %v9540_v27  ;;  %v9388_v56 = vld [vmem:[#allocation10 + $0x878] sm:$0xff] }
 0xa6a   : > { %v24308_v19 = vadd.f32 %v16118_v23, %v16078_v14  ;;  %16372 = vmatpush1.bf16.msra.mxu0 %v19469_v49  ;;  %v9512_v52 = vld [vmem:[#allocation10 + $0xc58] sm:$0xff]  ;;  %v19430_v2 = vcombine.high %v9384_v24, %v9388_v56 }
 0xa6b   : > { %v16120_v33 = vpop.f32.mrf.mxu1  ;;  %v16080_v37 = vpop.f32.mrf.mxu0  ;;  %16373 = vmatprep.subr.bf16.mxu0 %v19462_v32  ;;  %v19558_v57 = vcombine.high %v9512_v52, %v9516_v50  ;;  %v9376_v38 = vld [vmem:[#allocation10 + $0x818] sm:$0xff]  ;;  %v19557_v32 = vcombine.low %v9512_v52, %v9516_v50 }
 0xa6c   : > { %16413 = vmatpush1.bf16.msra.mxu1 %v19597_v45  ;;  %v9380_v8 = vld [vmem:[#allocation10 + $0x838] sm:$0xff]  ;;  %v19429_v45 = vcombine.low %v9384_v24, %v9388_v56 }
 0xa6d   : > { %v16121_v62 = vpop.f32.mrf.mxu1  ;;  %16414 = vmatprep.subr.bf16.mxu1 %v19590_v42  ;;  %v9504_v49 = vld [vmem:[#allocation10 + $0xc18] sm:$0xff]  ;;  %v19422_v14 = vcombine.high %v9376_v38, %v9380_v8  ;;  %v19421_v63 = vcombine.low %v9376_v38, %v9380_v8 }
 0xa6e   : > { %16374 = vmatpush1.bf16.msra.mxu0 %v19461_v17  ;;  %v9508_v30 = vld [vmem:[#allocation10 + $0xc38] sm:$0xff] }
 0xa6f   : > { %16375 = vmatprep.subr.bf16.mxu0 %v19454_v53  ;;  %v19550_v23 = vcombine.high %v9504_v49, %v9508_v30  ;;  %v9496_v42 = vld [vmem:[#allocation10 + $0xbd8] sm:$0xff]  ;;  %v19549_v27 = vcombine.low %v9504_v49, %v9508_v30 }
 0xa70   : > { %16415 = vmatpush1.bf16.msra.mxu1 %v19589_v46  ;;  %v9500_v22 = vld [vmem:[#allocation10 + $0xbf8] sm:$0xff] }
 0xa71   : > { %16416 = vmatprep.subr.bf16.mxu1 %v19582_v35  ;;  %v9624_v5 = vld [vmem:[#allocation10 + $0xfd8] sm:$0xff]  ;;  %v19542_v33 = vcombine.high %v9496_v42, %v9500_v22  ;;  %v19541_v35 = vcombine.low %v9496_v42, %v9500_v22 }
 0xa72   : > { %16376 = vmatpush1.bf16.msra.mxu0 %v19453_v43  ;;  %v9628_v4 = vld [vmem:[#allocation10 + $0xff8] sm:$0xff] }
 0xa73   : > { %16377 = vmatprep.subr.bf16.mxu0 %v19446_v9  ;;  %v19670_v17 = vcombine.high %v9624_v5, %v9628_v4  ;;  %v9488_v37 = vld [vmem:[#allocation10 + $0xb98] sm:$0xff]  ;;  %v19669_v61 = vcombine.low %v9624_v5, %v9628_v4 }
 0xa74   : > { %16417 = vmatpush1.bf16.msra.mxu1 %v19581_v13  ;;  %v9492_v46 = vld [vmem:[#allocation10 + $0xbb8] sm:$0xff] }
 0xa75   : > { %16418 = vmatprep.subr.bf16.mxu1 %v19574_v44  ;;  %v9616_v53 = vld [vmem:[#allocation10 + $0xf98] sm:$0xff]  ;;  %v19534_v55 = vcombine.high %v9488_v37, %v9492_v46  ;;  %v19533_v44 = vcombine.low %v9488_v37, %v9492_v46 }
 0xa76   : > { %16378 = vmatpush1.bf16.msra.mxu0 %v19445_v16  ;;  %v9620_v62 = vld [vmem:[#allocation10 + $0xfb8] sm:$0xff] }
 0xa77   : > { %16379 = vmatprep.subr.bf16.mxu0 %v19438_v51  ;;  %v19662_v3 = vcombine.high %v9616_v53, %v9620_v62  ;;  %v9480_v58 = vld [vmem:[#allocation10 + $0xb58] sm:$0xff]  ;;  %v19661_v31 = vcombine.low %v9616_v53, %v9620_v62 }
 0xa78   : > { %16419 = vmatpush1.bf16.msra.mxu1 %v19573_v36  ;;  %v9484_v43 = vld [vmem:[#allocation10 + $0xb78] sm:$0xff] }
 0xa79   : > { %16420 = vmatprep.subr.bf16.mxu1 %v19566_v10  ;;  %v9608_v13 = vld [vmem:[#allocation10 + $0xf58] sm:$0xff]  ;;  %v19526_v0 = vcombine.high %v9480_v58, %v9484_v43  ;;  %v19525_v10 = vcombine.low %v9480_v58, %v9484_v43 }
 0xa7a   : > { %16380 = vmatpush1.bf16.msra.mxu0 %v19437_v59  ;;  %v9612_v9 = vld [vmem:[#allocation10 + $0xf78] sm:$0xff] }
 0xa7b   : > { %16381 = vmatprep.subr.bf16.mxu0 %v19430_v2  ;;  %v19654_v1 = vcombine.high %v9608_v13, %v9612_v9  ;;  %v9472_v28 = vld [vmem:[#allocation10 + $0xb18] sm:$0xff]  ;;  %v19653_v24 = vcombine.low %v9608_v13, %v9612_v9 }
 0xa7c   : > { %16421 = vmatpush1.bf16.msra.mxu1 %v19565_v6  ;;  %v9476_v16 = vld [vmem:[#allocation10 + $0xb38] sm:$0xff] }
 0xa7d   : > { %16422 = vmatprep.subr.bf16.mxu1 %v19558_v57  ;;  %v9600_v36 = vld [vmem:[#allocation10 + $0xf18] sm:$0xff]  ;;  %v19518_v56 = vcombine.high %v9472_v28, %v9476_v16  ;;  %v19517_v57 = vcombine.low %v9472_v28, %v9476_v16 }
 0xa7e   : > { %16382 = vmatpush1.bf16.msra.mxu0 %v19429_v45  ;;  %v9604_v51 = vld [vmem:[#allocation10 + $0xf38] sm:$0xff] }
 0xa7f   : > { %16383 = vmatprep.subr.bf16.mxu0 %v19422_v14  ;;  %v19646_v52 = vcombine.high %v9600_v36, %v9604_v51  ;;  %v9464_v50 = vld [vmem:[#allocation10 + $0xad8] sm:$0xff]  ;;  %v19645_v38 = vcombine.low %v9600_v36, %v9604_v51 }
 0xa80   : > { %16423 = vmatpush1.bf16.msra.mxu1 %v19557_v32  ;;  %v9468_v59 = vld [vmem:[#allocation10 + $0xaf8] sm:$0xff] }
 0xa81   : > { %16424 = vmatprep.subr.bf16.mxu1 %v19550_v23  ;;  %v9592_v6 = vld [vmem:[#allocation10 + $0xed8] sm:$0xff]  ;;  %v19510_v8 = vcombine.high %v9464_v50, %v9468_v59  ;;  %v19509_v23 = vcombine.low %v9464_v50, %v9468_v59 }
 0xa82   : > { %16384 = vmatpush1.bf16.msra.mxu0 %v19421_v63  ;;  %v9596_v2 = vld [vmem:[#allocation10 + $0xef8] sm:$0xff] }
 0xa83   : > { %16385 = vmatprep.subr.bf16.mxu0 %v19542_v33  ;;  %v19638_v49 = vcombine.high %v9592_v6, %v9596_v2  ;;  %v9456_v30 = vld [vmem:[#allocation10 + $0xa98] sm:$0xff]  ;;  %v19637_v42 = vcombine.low %v9592_v6, %v9596_v2 }
 0xa84   : > { %16425 = vmatpush1.bf16.msra.mxu1 %v19549_v27  ;;  %v9460_v45 = vld [vmem:[#allocation10 + $0xab8] sm:$0xff] }
 0xa85   : > { %16426 = vmatprep.subr.bf16.mxu1 %v19670_v17  ;;  %v9584_v32 = vld [vmem:[#allocation10 + $0xe98] sm:$0xff]  ;;  %v19502_v22 = vcombine.high %v9456_v30, %v9460_v45  ;;  %v19501_v17 = vcombine.low %v9456_v30, %v9460_v45 }
 0xa86   : > { %16386 = vmatpush2.bf16.msra.mxu0 %v19541_v35  ;;  %v9588_v14 = vld [vmem:[#allocation10 + $0xeb8] sm:$0xff] }
 0xa87   : > { %16387 = vmatprep.subr.bf16.mxu0 %v19534_v55  ;;  %v19630_v5 = vcombine.high %v9584_v32, %v9588_v14  ;;  %v9448_v4 = vld [vmem:[#allocation10 + $0xa58] sm:$0xff]  ;;  %v19629_v37 = vcombine.low %v9584_v32, %v9588_v14 }
 0xa88   : > { %16427 = vmatpush2.bf16.msra.mxu1 %v19669_v61  ;;  %v9452_v63 = vld [vmem:[#allocation10 + $0xa78] sm:$0xff] }
 0xa89   : > { %16428 = vmatprep.subr.bf16.mxu1 %v19662_v3  ;;  %v9576_v27 = vld [vmem:[#allocation10 + $0xe58] sm:$0xff]  ;;  %v19494_v46 = vcombine.high %v9448_v4, %v9452_v63  ;;  %v19493_v3 = vcombine.low %v9448_v4, %v9452_v63 }
 0xa8a   : > { %16388 = vmatpush2.bf16.msra.mxu0 %v19533_v44  ;;  %v9580_v33 = vld [vmem:[#allocation10 + $0xe78] sm:$0xff] }
 0xa8b   : > { %16389 = vmatprep.subr.bf16.mxu0 %v19526_v0  ;;  %v19622_v53 = vcombine.high %v9576_v27, %v9580_v33  ;;  %v9440_v62 = vld [vmem:[#allocation10 + $0xa18] sm:$0xff]  ;;  %v19621_v58 = vcombine.low %v9576_v27, %v9580_v33 }
 0xa8c   : > { %16429 = vmatpush2.bf16.msra.mxu1 %v19661_v31  ;;  %v9444_v35 = vld [vmem:[#allocation10 + $0xa38] sm:$0xff] }
 0xa8d   : > { %16430 = vmatprep.subr.bf16.mxu1 %v19654_v1  ;;  %v9568_v61 = vld [vmem:[#allocation10 + $0xe18] sm:$0xff]  ;;  %v19486_v43 = vcombine.high %v9440_v62, %v9444_v35  ;;  %v19485_v1 = vcombine.low %v9440_v62, %v9444_v35 }
 0xa8e   : > { %16390 = vmatpush2.bf16.msra.mxu0 %v19525_v10  ;;  %v9572_v55 = vld [vmem:[#allocation10 + $0xe38] sm:$0xff] }
 0xa8f   : > { %16391 = vmatprep.subr.bf16.mxu0 %v19518_v56  ;;  %v19614_v13 = vcombine.high %v9568_v61, %v9572_v55  ;;  %v9688_v9 = vld [vmem:[#allocation10 + $0x11d8] sm:$0xff]  ;;  %v19613_v28 = vcombine.low %v9568_v61, %v9572_v55 }
 0xa90   : > { %16431 = vmatpush2.bf16.msra.mxu1 %v19653_v24  ;;  %v9692_v44 = vld [vmem:[#allocation10 + $0x11f8] sm:$0xff] }
 0xa91   : > { %16432 = vmatprep.subr.bf16.mxu1 %v19646_v52  ;;  %v9816_v31 = vld [vmem:[#allocation10 + $0x15d8] sm:$0xff]  ;;  %v19734_v16 = vcombine.high %v9688_v9, %v9692_v44  ;;  %v19733_v52 = vcombine.low %v9688_v9, %v9692_v44 }
 0xa92   : > { %16392 = vmatpush2.bf16.msra.mxu0 %v19517_v57  ;;  %v9820_v0 = vld [vmem:[#allocation10 + $0x15f8] sm:$0xff] }
 0xa93   : > { %16393 = vmatprep.subr.bf16.mxu0 %v19510_v8  ;;  %v19862_v36 = vcombine.high %v9816_v31, %v9820_v0  ;;  %v9680_v51 = vld [vmem:[#allocation10 + $0x1198] sm:$0xff]  ;;  %v19861_v50 = vcombine.low %v9816_v31, %v9820_v0 }
 0xa94   : > { %16433 = vmatpush2.bf16.msra.mxu1 %v19645_v38  ;;  %v9684_v10 = vld [vmem:[#allocation10 + $0x11b8] sm:$0xff] }
 0xa95   : > { %16434 = vmatprep.subr.bf16.mxu1 %v19638_v49  ;;  %v9808_v24 = vld [vmem:[#allocation10 + $0x1598] sm:$0xff]  ;;  %v19726_v59 = vcombine.high %v9680_v51, %v9684_v10  ;;  %v19725_v32 = vcombine.low %v9680_v51, %v9684_v10 }
 0xa96   : > { %16394 = vmatpush2.bf16.msra.mxu0 %v19509_v23  ;;  %v9812_v56 = vld [vmem:[#allocation10 + $0x15b8] sm:$0xff] }
 0xa97   : > { %16395 = vmatprep.subr.bf16.mxu0 %v19502_v22  ;;  %v19854_v6 = vcombine.high %v9808_v24, %v9812_v56  ;;  %v9672_v2 = vld [vmem:[#allocation10 + $0x1158] sm:$0xff]  ;;  %v19853_v23 = vcombine.low %v9808_v24, %v9812_v56 }
 0xa98   : > { %16435 = vmatpush2.bf16.msra.mxu1 %v19637_v42  ;;  %v9676_v57 = vld [vmem:[#allocation10 + $0x1178] sm:$0xff] }
 0xa99   : > { %16436 = vmatprep.subr.bf16.mxu1 %v19630_v5  ;;  %v9800_v8 = vld [vmem:[#allocation10 + $0x1558] sm:$0xff]  ;;  %v19718_v42 = vcombine.high %v9672_v2, %v9676_v57 }
 0xa9a   : > { %16396 = vmatpush2.bf16.msra.mxu0 %v19501_v17  ;;  %v9804_v49 = vld [vmem:[#allocation10 + $0x1578] sm:$0xff] }
 0xa9b   : > { %16397 = vmatprep.subr.bf16.mxu0 %v19494_v46  ;;  %v9664_v63 = vld [vmem:[#allocation10 + $0x1118] sm:$0xff]  ;;  %v19717_v46 = vcombine.low %v9672_v2, %v9676_v57 }
 0xa9c   : > { %16437 = vmatpush2.bf16.msra.mxu1 %v19629_v37  ;;  %v9668_v27 = vld [vmem:[#allocation10 + $0x1138] sm:$0xff] }
 0xa9d   : > { %16438 = vmatprep.subr.bf16.mxu1 %v19622_v53  ;;  %v9796_v33 = vld [vmem:[#allocation10 + $0x1538] sm:$0xff]  ;;  %v19710_v62 = vcombine.high %v9664_v63, %v9668_v27 }
 0xa9e   : > { %16398 = vmatpush2.bf16.msra.mxu0 %v19493_v3  ;;  %v9656_v55 = vld [vmem:[#allocation10 + $0x10d8] sm:$0xff] }
 0xa9f   : > { %16399 = vmatprep.subr.bf16.mxu0 %v19486_v43  ;;  %v9784_v3 = vld [vmem:[#allocation10 + $0x14d8] sm:$0xff]  ;;  %v19709_v43 = vcombine.low %v9664_v63, %v9668_v27 }
 0xaa0   : > { %16439 = vmatpush2.bf16.msra.mxu1 %v19621_v58  ;;  %v9788_v58 = vld [vmem:[#allocation10 + $0x14f8] sm:$0xff] }
 0xaa1   : > { %16440 = vmatprep.subr.bf16.mxu1 %v19614_v13  ;;  %v19830_v9 = vcombine.high %v9784_v3, %v9788_v58  ;;  %v9648_v44 = vld [vmem:[#allocation10 + $0x1098] sm:$0xff] }
 0xaa2   : > { %16400 = vmatpush2.bf16.msra.mxu0 %v19485_v1  ;;  %v9652_v31 = vld [vmem:[#allocation10 + $0x10b8] sm:$0xff] }
 0xaa3   : > { %16451 = vmatprep.subr.bf16.mxu0 %v19734_v16  ;;  %v9776_v0 = vld [vmem:[#allocation10 + $0x1498] sm:$0xff]  ;;  %v19829_v16 = vcombine.low %v9784_v3, %v9788_v58 }
 0xaa4   : > { %16441 = vmatpush2.bf16.msra.mxu1 %v19613_v28  ;;  %v9780_v1 = vld [vmem:[#allocation10 + $0x14b8] sm:$0xff] }
 0xaa5   : > { %16492 = vmatprep.subr.bf16.mxu1 %v19862_v36  ;;  %v16157_v38 = vpop.f32.mrf.mxu0  ;;  %16402 = vmatmul.mubr.bf16.vlgmr.msra.gmra.mxu0 %v24158_v25  ;;  %v19846_v25 = vcombine.high %v9800_v8, %v9804_v49  ;;  %v19694_v36 = vcombine.high %v9648_v44, %v9652_v31  ;;  %v19822_v51 = vcombine.high %v9776_v0, %v9780_v1  ;;  %v9640_v10 = vld [vmem:[#allocation10 + $0x1058] sm:$0xff] }
 0xaa6   : > { %v16158_v30 = vadd.f32 %v16157_v38, %v24303_v20  ;;  %16452 = vmatpush1.bf16.msra.mxu0 %v19733_v52  ;;  %16483 = vmatprep.mubr.bf16.mxu0 %v24166_v39  ;;  %v9660_v39 = vld [vmem:[#allocation10 + $0x10f8] sm:$0xff] }
 0xaa7   : > { %v16198_v45 = vpop.f32.mrf.mxu1  ;;  %16443 = vmatmul.mubr.bf16.vlgmr.msra.gmra.mxu1 %v24164_v41  ;;  %v16159_v14 = vpop.f32.mrf.mxu0  ;;  %16453 = vmatprep.subr.bf16.mxu0 %v19726_v59  ;;  %v9792_v41 = vld [vmem:[#allocation10 + $0x1518] sm:$0xff]  ;;  %v19702_v13 = vcombine.high %v9656_v55, %v9660_v39  ;;  %v19701_v28 = vcombine.low %v9656_v55, %v9660_v39  ;;  %v19821_v59 = vcombine.low %v9776_v0, %v9780_v1 }
 0xaa8   : > { %16493 = vmatpush1.bf16.msra.mxu1 %v19861_v50  ;;  %v24313_v22 = vadd.f32 %v16198_v45, %v16158_v30  ;;  %v16160_v5 = vadd.f32 %v16159_v14, %v24308_v19  ;;  %16524 = vmatprep.mubr.bf16.mxu1 %v24169_v54  ;;  %v19845_v19 = vcombine.low %v9800_v8, %v9804_v49  ;;  %v9644_v24 = vld [vmem:[#allocation10 + $0x1078] sm:$0xff] }
 0xaa9   : > { %v16200_v4 = vpop.f32.mrf.mxu1  ;;  %16494 = vmatprep.subr.bf16.mxu1 %v19854_v6  ;;  %v16161_v20 = vpop.f32.mrf.mxu0  ;;  %v19838_v61 = vcombine.high %v9792_v41, %v9796_v33  ;;  %v19837_v54 = vcombine.low %v9792_v41, %v9796_v33  ;;  %v9768_v56 = vld [vmem:[#allocation10 + $0x1458] sm:$0xff]  ;;  %v19693_v50 = vcombine.low %v9648_v44, %v9652_v31  ;;  %v19686_v6 = vcombine.high %v9640_v10, %v9644_v24 }
 0xaaa   : > { %v24318_v17 = vadd.f32 %v16200_v4, %v16160_v5  ;;  %16454 = vmatpush1.bf16.msra.mxu0 %v19725_v32  ;;  %v9772_v52 = vld [vmem:[#allocation10 + $0x1478] sm:$0xff]  ;;  %v19685_v30 = vcombine.low %v9640_v10, %v9644_v24 }
 0xaab   : > { %v16202_v37 = vpop.f32.mrf.mxu1  ;;  %v16162_v53 = vpop.f32.mrf.mxu0  ;;  %16455 = vmatprep.subr.bf16.mxu0 %v19718_v42  ;;  %v19814_v2 = vcombine.high %v9768_v56, %v9772_v52  ;;  %v9632_v57 = vld [vmem:[#allocation10 + $0x1018] sm:$0xff]  ;;  %v19813_v45 = vcombine.low %v9768_v56, %v9772_v52 }
 0xaac   : > { %16495 = vmatpush1.bf16.msra.mxu1 %v19853_v23  ;;  %v9636_v38 = vld [vmem:[#allocation10 + $0x1038] sm:$0xff] }
 0xaad   : > { %v16203_v35 = vpop.f32.mrf.mxu1  ;;  %16496 = vmatprep.subr.bf16.mxu1 %v19846_v25  ;;  %v9760_v8 = vld [vmem:[#allocation10 + $0x1418] sm:$0xff]  ;;  %v19678_v32 = vcombine.high %v9632_v57, %v9636_v38  ;;  %v19677_v25 = vcombine.low %v9632_v57, %v9636_v38 }
 0xaae   : > { %16456 = vmatpush1.bf16.msra.mxu0 %v19717_v46  ;;  %v9764_v49 = vld [vmem:[#allocation10 + $0x1438] sm:$0xff] }
 0xaaf   : > { %16457 = vmatprep.subr.bf16.mxu0 %v19710_v62  ;;  %v19806_v14 = vcombine.high %v9760_v8, %v9764_v49  ;;  %v9752_v23 = vld [vmem:[#allocation10 + $0x13d8] sm:$0xff]  ;;  %v19805_v63 = vcombine.low %v9760_v8, %v9764_v49 }
 0xab0   : > { %16497 = vmatpush1.bf16.msra.mxu1 %v19845_v19  ;;  %v9756_v42 = vld [vmem:[#allocation10 + $0x13f8] sm:$0xff]  ;;  %v16622_v19 = vsel %vm8888_vm5, %v24246_v34, 0.0 }
 0xab1   : > { %16498 = vmatprep.subr.bf16.mxu1 %v19838_v61  ;;  %v9880_v5 = vld [vmem:[#allocation10 + $0x17d8] sm:$0xff]  ;;  %v19798_v27 = vcombine.high %v9752_v23, %v9756_v42  ;;  %v19797_v53 = vcombine.low %v9752_v23, %v9756_v42  ;;  %v16636_v61 = vsel %vm8888_vm5, %v24288_v40, 0.0 }
 0xab2   : > { %16458 = vmatpush1.bf16.msra.mxu0 %v19709_v43  ;;  %v9884_v4 = vld [vmem:[#allocation10 + $0x17f8] sm:$0xff] }
 0xab3   : > { %16459 = vmatprep.subr.bf16.mxu0 %v19702_v13  ;;  %v19926_v20 = vcombine.high %v9880_v5, %v9884_v4  ;;  %v9744_v41 = vld [vmem:[#allocation10 + $0x1398] sm:$0xff]  ;;  %v19925_v62 = vcombine.low %v9880_v5, %v9884_v4 }
 0xab4   : > { %16499 = vmatpush1.bf16.msra.mxu1 %v19837_v54  ;;  %v9748_v33 = vld [vmem:[#allocation10 + $0x13b8] sm:$0xff]  ;;  %v16623_v54 = vrot.slane %v16622_v19, 4 }
 0xab5   : > { %16500 = vmatprep.subr.bf16.mxu1 %v19830_v9  ;;  %v9872_v37 = vld [vmem:[#allocation10 + $0x1798] sm:$0xff]  ;;  %v19790_v35 = vcombine.high %v9744_v41, %v9748_v33  ;;  %v19789_v13 = vcombine.low %v9744_v41, %v9748_v33  ;;  %v16637_v9 = vrot.slane %v16636_v61, 4 }
 0xab6   : > { %16460 = vmatpush1.bf16.msra.mxu0 %v19701_v28  ;;  %v9876_v46 = vld [vmem:[#allocation10 + $0x17b8] sm:$0xff] }
 0xab7   : > { %16461 = vmatprep.subr.bf16.mxu0 %v19694_v36  ;;  %v19918_v55 = vcombine.high %v9872_v37, %v9876_v46  ;;  %v9736_v39 = vld [vmem:[#allocation10 + $0x1358] sm:$0xff]  ;;  %v19917_v44 = vcombine.low %v9872_v37, %v9876_v46  ;;  %v16638_v24 = vadd.f32 %v16637_v9, %v16636_v61 }
 0xab8   : > { %16501 = vmatpush1.bf16.msra.mxu1 %v19829_v16  ;;  %v9740_v3 = vld [vmem:[#allocation10 + $0x1378] sm:$0xff] }
 0xab9   : > { %16502 = vmatprep.subr.bf16.mxu1 %v19822_v51  ;;  %v9864_v58 = vld [vmem:[#allocation10 + $0x1758] sm:$0xff]  ;;  %v19782_v31 = vcombine.high %v9736_v39, %v9740_v3  ;;  %v16624_v51 = vadd.f32 %v16623_v54, %v16622_v19  ;;  %v19781_v10 = vcombine.low %v9736_v39, %v9740_v3  ;;  %v16639_v49 = vrot.slane %v16638_v24, 2 }
 0xaba   : > { %16462 = vmatpush1.bf16.msra.mxu0 %v19693_v50  ;;  %v9868_v43 = vld [vmem:[#allocation10 + $0x1778] sm:$0xff] }
 0xabb   : > { %16463 = vmatprep.subr.bf16.mxu0 %v19686_v6  ;;  %v19910_v0 = vcombine.high %v9864_v58, %v9868_v43  ;;  %v9728_v1 = vld [vmem:[#allocation10 + $0x1318] sm:$0xff]  ;;  %v19909_v56 = vcombine.low %v9864_v58, %v9868_v43  ;;  %v16625_v38 = vrot.slane %v16624_v51, 2 }
 0xabc   : > { %16503 = vmatpush1.bf16.msra.mxu1 %v19821_v59  ;;  %v9732_v28 = vld [vmem:[#allocation10 + $0x1338] sm:$0xff] }
 0xabd   : > { %16504 = vmatprep.subr.bf16.mxu1 %v19814_v2  ;;  %v9856_v16 = vld [vmem:[#allocation10 + $0x1718] sm:$0xff]  ;;  %v19774_v52 = vcombine.high %v9728_v1, %v9732_v28  ;;  %v19773_v8 = vcombine.low %v9728_v1, %v9732_v28  ;;  %v16626_v4 = vadd.f32 %v16625_v38, %v16624_v51 }
 0xabe   : > { %16464 = vmatpush1.bf16.msra.mxu0 %v19685_v30  ;;  %v9860_v36 = vld [vmem:[#allocation10 + $0x1738] sm:$0xff] }
 0xabf   : > { %16465 = vmatprep.subr.bf16.mxu0 %v19678_v32  ;;  %v19902_v50 = vcombine.high %v9856_v16, %v9860_v36  ;;  %v9720_v59 = vld [vmem:[#allocation10 + $0x12d8] sm:$0xff]  ;;  %v19901_v30 = vcombine.low %v9856_v16, %v9860_v36  ;;  %v16627_v19 = vrot.slane %v16626_v4, 1 }
 0xac0   : > { %16505 = vmatpush1.bf16.msra.mxu1 %v19813_v45  ;;  %v9724_v6 = vld [vmem:[#allocation10 + $0x12f8] sm:$0xff] }
 0xac1   : > { %16506 = vmatprep.subr.bf16.mxu1 %v19806_v14  ;;  %v9848_v2 = vld [vmem:[#allocation10 + $0x16d8] sm:$0xff]  ;;  %v19766_v45 = vcombine.high %v9720_v59, %v9724_v6 }
 0xac2   : > { %16466 = vmatpush1.bf16.msra.mxu0 %v19677_v25  ;;  %v9852_v57 = vld [vmem:[#allocation10 + $0x16f8] sm:$0xff]  ;;  %v19765_v25 = vcombine.low %v9720_v59, %v9724_v6 }
 0xac3   : > { %16467 = vmatprep.subr.bf16.mxu0 %v19798_v27  ;;  %v19894_v32 = vcombine.high %v9848_v2, %v9852_v57  ;;  %v9712_v14 = vld [vmem:[#allocation10 + $0x1298] sm:$0xff]  ;;  %v19893_v27 = vcombine.low %v9848_v2, %v9852_v57 }
 0xac4   : > { %16507 = vmatpush1.bf16.msra.mxu1 %v19805_v63  ;;  %v9716_v23 = vld [vmem:[#allocation10 + $0x12b8] sm:$0xff]  ;;  %v16640_v63 = vadd.f32 %v16639_v49, %v16638_v24 }
 0xac5   : > { %16508 = vmatprep.subr.bf16.mxu1 %v19926_v20  ;;  %v9840_v42 = vld [vmem:[#allocation10 + $0x1698] sm:$0xff]  ;;  %v19758_v20 = vcombine.high %v9712_v14, %v9716_v23 }
 0xac6   : > { %16468 = vmatpush2.bf16.msra.mxu0 %v19797_v53  ;;  %v9844_v5 = vld [vmem:[#allocation10 + $0x16b8] sm:$0xff] }
 0xac7   : > { %16469 = vmatprep.subr.bf16.mxu0 %v19790_v35  ;;  %v19886_v41 = vcombine.high %v9840_v42, %v9844_v5  ;;  %v9704_v33 = vld [vmem:[#allocation10 + $0x1258] sm:$0xff]  ;;  %v16641_v35 = vrot.slane %v16640_v63, 1  ;;  %v19885_v61 = vcombine.low %v9840_v42, %v9844_v5 }
 0xac8   : > { %16509 = vmatpush2.bf16.msra.mxu1 %v19925_v62  ;;  %v9708_v37 = vld [vmem:[#allocation10 + $0x1278] sm:$0xff]  ;;  %v19757_v62 = vcombine.low %v9712_v14, %v9716_v23 }
 0xac9   : > { %16510 = vmatprep.subr.bf16.mxu1 %v19918_v55  ;;  %v9832_v46 = vld [vmem:[#allocation10 + $0x1658] sm:$0xff]  ;;  %v19750_v55 = vcombine.high %v9704_v33, %v9708_v37  ;;  %v19749_v9 = vcombine.low %v9704_v33, %v9708_v37 }
 0xaca   : > { %16470 = vmatpush2.bf16.msra.mxu0 %v19789_v13  ;;  %v9836_v53 = vld [vmem:[#allocation10 + $0x1678] sm:$0xff]  ;;  %v16628_v13 = vadd.f32 %v16627_v19, %v16626_v4 }
 0xacb   : > { %16471 = vmatprep.subr.bf16.mxu0 %v19782_v31  ;;  %v19878_v39 = vcombine.high %v9832_v46, %v9836_v53  ;;  %v9696_v3 = vld [vmem:[#allocation10 + $0x1218] sm:$0xff]  ;;  %v19877_v31 = vcombine.low %v9832_v46, %v9836_v53 }
 0xacc   : > { %16511 = vmatpush2.bf16.msra.mxu1 %v19917_v44  ;;  %v9700_v58 = vld [vmem:[#allocation10 + $0x1238] sm:$0xff]  ;;  %v16642_v44 = vadd.f32 %v16641_v35, %v16640_v63 }
 0xacd   : > { %16512 = vmatprep.subr.bf16.mxu1 %v19910_v0  ;;  %v9824_v43 = vld [vmem:[#allocation10 + $0x1618] sm:$0xff]  ;;  %v19742_v0 = vcombine.high %v9696_v3, %v9700_v58  ;;  %v19741_v24 = vcombine.low %v9696_v3, %v9700_v58 }
 0xace   : > { %16472 = vmatpush2.bf16.msra.mxu0 %v19781_v10  ;;  %v9828_v54 = vld [vmem:[#allocation10 + $0x1638] sm:$0xff]  ;;  %v16672_v10 = vmul.f32 0.5, %v16628_v13 }
 0xacf   : > { %16473 = vmatprep.subr.bf16.mxu0 %v19774_v52  ;;  %v19870_v1 = vcombine.high %v9824_v43, %v9828_v54  ;;  %v9944_v28 = vld [vmem:[#allocation10 + $0x19d8] sm:$0xff]  ;;  %v19869_v52 = vcombine.low %v9824_v43, %v9828_v54 }
 0xad0   : > { %16513 = vmatpush2.bf16.msra.mxu1 %v19909_v56  ;;  %v9948_v16 = vld [vmem:[#allocation10 + $0x19f8] sm:$0xff]  ;;  %v16674_v56 = vmul.f32 0.5, %v16642_v44 }
 0xad1   : > { %16514 = vmatprep.subr.bf16.mxu1 %v19902_v50  ;;  %v10072_v36 = vld [vmem:[#allocation10 + $0x1dd8] sm:$0xff]  ;;  %v19990_v50 = vcombine.high %v9944_v28, %v9948_v16  ;;  %v19989_v49 = vcombine.low %v9944_v28, %v9948_v16 }
 0xad2   : > { %16474 = vmatpush2.bf16.msra.mxu0 %v19773_v8  ;;  %v10076_v51 = vld [vmem:[#allocation10 + $0x1df8] sm:$0xff]  ;;  %v24325_v8 = vsub.f32 %v24246_v34, %v16672_v10 }
 0xad3   : > { %16475 = vmatprep.subr.bf16.mxu0 %v19766_v45  ;;  %v20118_v59 = vcombine.high %v10072_v36, %v10076_v51  ;;  %v9936_v6 = vld [vmem:[#allocation10 + $0x1998] sm:$0xff]  ;;  %v20117_v45 = vcombine.low %v10072_v36, %v10076_v51 }
 0xad4   : > { %16515 = vmatpush2.bf16.msra.mxu1 %v19901_v30  ;;  %v9940_v2 = vld [vmem:[#allocation10 + $0x19b8] sm:$0xff]  ;;  %v24328_v30 = vsub.f32 %v24288_v40, %v16674_v56  ;;  %v16688_v34 = vmul.f32 %v24325_v8, %v24325_v8 }
 0xad5   : > { %16516 = vmatprep.subr.bf16.mxu1 %v19894_v32  ;;  %v10064_v57 = vld [vmem:[#allocation10 + $0x1d98] sm:$0xff]  ;;  %v19982_v32 = vcombine.high %v9936_v6, %v9940_v2 }
 0xad6   : > { %16476 = vmatpush2.bf16.msra.mxu0 %v19765_v25  ;;  %v10068_v38 = vld [vmem:[#allocation10 + $0x1db8] sm:$0xff] }
 0xad7   : > { %16477 = vmatprep.subr.bf16.mxu0 %v19758_v20  ;;  %v20110_v14 = vcombine.high %v10064_v57, %v10068_v38  ;;  %v9928_v23 = vld [vmem:[#allocation10 + $0x1958] sm:$0xff]  ;;  %v16690_v20 = vmul.f32 %v24328_v30, %v24328_v30  ;;  %v20109_v33 = vcombine.low %v10064_v57, %v10068_v38 }
 0xad8   : > { %16517 = vmatpush2.bf16.msra.mxu1 %v19893_v27  ;;  %v9932_v42 = vld [vmem:[#allocation10 + $0x1978] sm:$0xff]  ;;  %v19981_v27 = vcombine.low %v9936_v6, %v9940_v2 }
 0xad9   : > { %16518 = vmatprep.subr.bf16.mxu1 %v19886_v41  ;;  %v10056_v4 = vld [vmem:[#allocation10 + $0x1d58] sm:$0xff]  ;;  %v19973_v58 = vcombine.low %v9928_v23, %v9932_v42 }
 0xada   : > { %16478 = vmatpush2.bf16.msra.mxu0 %v19757_v62  ;;  %v10060_v25 = vld [vmem:[#allocation10 + $0x1d78] sm:$0xff] }
 0xadb   : > { %16479 = vmatprep.subr.bf16.mxu0 %v19750_v55  ;;  %v9920_v19 = vld [vmem:[#allocation10 + $0x1918] sm:$0xff]  ;;  %v16702_v55 = vsel %vm8888_vm5, %v16688_v34, 0.0  ;;  %v20101_v54 = vcombine.low %v10056_v4, %v10060_v25 }
 0xadc   : > { %16519 = vmatpush2.bf16.msra.mxu1 %v19885_v61  ;;  %v9924_v62 = vld [vmem:[#allocation10 + $0x1938] sm:$0xff] }
 0xadd   : > { %16520 = vmatprep.subr.bf16.mxu1 %v19878_v39  ;;  %v10048_v35 = vld [vmem:[#allocation10 + $0x1d18] sm:$0xff]  ;;  %v19966_v13 = vcombine.high %v9920_v19, %v9924_v62  ;;  %v19965_v16 = vcombine.low %v9920_v19, %v9924_v62 }
 0xade   : > { %16480 = vmatpush2.bf16.msra.mxu0 %v19749_v9  ;;  %v10052_v61 = vld [vmem:[#allocation10 + $0x1d38] sm:$0xff] }
 0xadf   : > { %16481 = vmatprep.subr.bf16.mxu0 %v19742_v0  ;;  %v20094_v9 = vcombine.high %v10048_v35, %v10052_v61  ;;  %v9912_v44 = vld [vmem:[#allocation10 + $0x18d8] sm:$0xff]  ;;  %v20093_v36 = vcombine.low %v10048_v35, %v10052_v61 }
 0xae0   : > { %16521 = vmatpush2.bf16.msra.mxu1 %v19877_v31  ;;  %v9916_v31 = vld [vmem:[#allocation10 + $0x18f8] sm:$0xff] }
 0xae1   : > { %16522 = vmatprep.subr.bf16.mxu1 %v19870_v1  ;;  %v10040_v0 = vld [vmem:[#allocation10 + $0x1cd8] sm:$0xff]  ;;  %v19958_v51 = vcombine.high %v9912_v44, %v9916_v31  ;;  %v19957_v2 = vcombine.low %v9912_v44, %v9916_v31 }
 0xae2   : > { %16482 = vmatpush2.bf16.msra.mxu0 %v19741_v24  ;;  %v10044_v1 = vld [vmem:[#allocation10 + $0x1cf8] sm:$0xff] }
 0xae3   : > { %16533 = vmatprep.subr.bf16.mxu0 %v19990_v50  ;;  %v20086_v10 = vcombine.high %v10040_v0, %v10044_v1  ;;  %v9904_v24 = vld [vmem:[#allocation10 + $0x1898] sm:$0xff]  ;;  %v20085_v57 = vcombine.low %v10040_v0, %v10044_v1  ;;  %v16629_v0 = vsel %vm8888_vm5, %v24283_v26, 0.0 }
 0xae4   : > { %16523 = vmatpush2.bf16.msra.mxu1 %v19869_v52  ;;  %v9908_v56 = vld [vmem:[#allocation10 + $0x18b8] sm:$0xff] }
 0xae5   : > { %16574 = vmatprep.subr.bf16.mxu1 %v20118_v59  ;;  %v16239_v5 = vpop.f32.mrf.mxu0  ;;  %16484 = vmatmul.mubr.bf16.vlgmr.msra.gmra.mxu0 %v24184_v21  ;;  %v19974_v21 = vcombine.high %v9928_v23, %v9932_v42  ;;  %v10032_v50 = vld [vmem:[#allocation10 + $0x1c98] sm:$0xff]  ;;  %v19950_v38 = vcombine.high %v9904_v24, %v9908_v56 }
 0xae6   : > { %v16240_v63 = vadd.f32 %v16239_v5, %v24313_v22  ;;  %16534 = vmatpush1.bf16.msra.mxu0 %v19989_v49  ;;  %v20102_v22 = vcombine.high %v10056_v4, %v10060_v25  ;;  %16565 = vmatprep.mubr.bf16.mxu0 %v24192_v60  ;;  %v10036_v59 = vld [vmem:[#allocation10 + $0x1cb8] sm:$0xff]  ;;  %v19949_v4 = vcombine.low %v9904_v24, %v9908_v56 }
 0xae7   : > { %v16280_v40 = vpop.f32.mrf.mxu1  ;;  %16525 = vmatmul.mubr.bf16.vlgmr.msra.gmra.mxu1 %v24190_v29  ;;  %v16241_v41 = vpop.f32.mrf.mxu0  ;;  %16535 = vmatprep.subr.bf16.mxu0 %v19982_v32  ;;  %v20078_v49 = vcombine.high %v10032_v50, %v10036_v59  ;;  %v9900_v32 = vld [vmem:[#allocation10 + $0x1878] sm:$0xff]  ;;  %v20077_v25 = vcombine.low %v10032_v50, %v10036_v59  ;;  %v16630_v59 = vrot.slane %v16629_v0, 4 }
 0xae8   : > { %16575 = vmatpush1.bf16.msra.mxu1 %v20117_v45  ;;  %v24337_v37 = vadd.f32 %v16280_v40, %v16240_v63  ;;  %v16242_v46 = vadd.f32 %v16241_v41, %v24318_v17  ;;  %16606 = vmatprep.mubr.bf16.mxu1 %v24195_v47  ;;  %v16716_v17 = vsel %vm8888_vm5, %v16690_v20, 0.0  ;;  %v16703_v47 = vrot.slane %v16702_v55, 4  ;;  %v9896_v45 = vld [vmem:[#allocation10 + $0x1858] sm:$0xff] }
 0xae9   : > { %v16282_v53 = vpop.f32.mrf.mxu1  ;;  %16576 = vmatprep.subr.bf16.mxu1 %v20110_v14  ;;  %v16243_v29 = vpop.f32.mrf.mxu0  ;;  %v16717_v28 = vrot.slane %v16716_v17, 4  ;;  %v10024_v23 = vld [vmem:[#allocation10 + $0x1c58] sm:$0xff]  ;;  %v19942_v34 = vcombine.high %v9896_v45, %v9900_v32 }
 0xaea   : > { %v24343_v39 = vadd.f32 %v16282_v53, %v16242_v46  ;;  %16536 = vmatpush1.bf16.msra.mxu0 %v19981_v27  ;;  %v16704_v52 = vadd.f32 %v16703_v47, %v16702_v55  ;;  %v10028_v42 = vld [vmem:[#allocation10 + $0x1c78] sm:$0xff]  ;;  %v19941_v46 = vcombine.low %v9896_v45, %v9900_v32 }
 0xaeb   : > { %v16284_v3 = vpop.f32.mrf.mxu1  ;;  %v16244_v43 = vpop.f32.mrf.mxu0  ;;  %16537 = vmatprep.subr.bf16.mxu0 %v19974_v21  ;;  %v16718_v6 = vadd.f32 %v16717_v28, %v16716_v17  ;;  %v20070_v63 = vcombine.high %v10024_v23, %v10028_v42  ;;  %v9888_v40 = vld [vmem:[#allocation10 + $0x1818] sm:$0xff]  ;;  %v20069_v53 = vcombine.low %v10024_v23, %v10028_v42 }
 0xaec   : > { %16577 = vmatpush1.bf16.msra.mxu1 %v20109_v33  ;;  %v16705_v14 = vrot.slane %v16704_v52, 2  ;;  %v9892_v27 = vld [vmem:[#allocation10 + $0x1838] sm:$0xff] }
 0xaed   : > { %v16285_v60 = vpop.f32.mrf.mxu1  ;;  %16578 = vmatprep.subr.bf16.mxu1 %v20102_v22  ;;  %v16719_v5 = vrot.slane %v16718_v6, 2  ;;  %v10016_v41 = vld [vmem:[#allocation10 + $0x1c18] sm:$0xff]  ;;  %v19934_v22 = vcombine.high %v9888_v40, %v9892_v27 }
 0xaee   : > { %16538 = vmatpush1.bf16.msra.mxu0 %v19973_v58  ;;  %v16706_v20 = vadd.f32 %v16705_v14, %v16704_v52  ;;  %v10020_v33 = vld [vmem:[#allocation10 + $0x1c38] sm:$0xff]  ;;  %v19933_v58 = vcombine.low %v9888_v40, %v9892_v27 }
 0xaef   : > { %16539 = vmatprep.subr.bf16.mxu0 %v19966_v13  ;;  %v16720_v21 = vadd.f32 %v16719_v5, %v16718_v6  ;;  %v20062_v19 = vcombine.high %v10016_v41, %v10020_v33  ;;  %v10008_v62 = vld [vmem:[#allocation10 + $0x1bd8] sm:$0xff]  ;;  %v20061_v17 = vcombine.low %v10016_v41, %v10020_v33 }
 0xaf0   : > { %16579 = vmatpush1.bf16.msra.mxu1 %v20101_v54  ;;  %v10012_v29 = vld [vmem:[#allocation10 + $0x1bf8] sm:$0xff]  ;;  %v16707_v35 = vrot.slane %v16706_v20, 1 }
 0xaf1   : > { %16580 = vmatprep.subr.bf16.mxu1 %v20094_v9  ;;  %v10136_v61 = vld [vmem:[#allocation10 + $0x1fd8] sm:$0xff]  ;;  %v16721_v3 = vrot.slane %v16720_v21, 1  ;;  %v20054_v43 = vcombine.high %v10008_v62, %v10012_v29  ;;  %v16615_v9 = vsel %vm8888_vm5, %v24241_v48, 0.0  ;;  %v20053_v28 = vcombine.low %v10008_v62, %v10012_v29 }
 0xaf2   : > { %16540 = vmatpush1.bf16.msra.mxu0 %v19965_v16  ;;  %v10140_v55 = vld [vmem:[#allocation10 + $0x1ff8] sm:$0xff]  ;;  %v16708_v44 = vadd.f32 %v16707_v35, %v16706_v20  ;;  %v16650_v16 = vsel %vm8888_vm5, %v24343_v39, 0.0 }
 0xaf3   : > { %16541 = vmatprep.subr.bf16.mxu0 %v19958_v51  ;;  %v20182_v54 = vcombine.high %v10136_v61, %v10140_v55  ;;  %v10000_v13 = vld [vmem:[#allocation10 + $0x1b98] sm:$0xff]  ;;  %v16722_v1 = vadd.f32 %v16721_v3, %v16720_v21 }
 0xaf4   : > { %16581 = vmatpush1.bf16.msra.mxu1 %v20093_v36  ;;  %v10004_v60 = vld [vmem:[#allocation10 + $0x1bb8] sm:$0xff]  ;;  %v20181_v36 = vcombine.low %v10136_v61, %v10140_v55  ;;  %v16752_v50 = vmul.f32 0.5, %v16708_v44 }
 0xaf5   : > { %16582 = vmatprep.subr.bf16.mxu1 %v20086_v10  ;;  %v10128_v31 = vld [vmem:[#allocation10 + $0x1f98] sm:$0xff]  ;;  %v20046_v51 = vcombine.high %v10000_v13, %v10004_v60  ;;  %v16616_v10 = vrot.slane %v16615_v9, 4 }
 0xaf6   : > { %16542 = vmatpush1.bf16.msra.mxu0 %v19957_v2  ;;  %v10132_v47 = vld [vmem:[#allocation10 + $0x1fb8] sm:$0xff] }
 0xaf7   : > { %16543 = vmatprep.subr.bf16.mxu0 %v19950_v38  ;;  %v20174_v24 = vcombine.high %v10128_v31, %v10132_v47  ;;  %v9992_v56 = vld [vmem:[#allocation10 + $0x1b58] sm:$0xff]  ;;  %v16651_v38 = vrot.slane %v16650_v16, 4  ;;  %v20173_v45 = vcombine.low %v10128_v31, %v10132_v47  ;;  %v16617_v14 = vadd.f32 %v16616_v10, %v16615_v9 }
 0xaf8   : > { %16583 = vmatpush1.bf16.msra.mxu1 %v20085_v57  ;;  %v9996_v52 = vld [vmem:[#allocation10 + $0x1b78] sm:$0xff]  ;;  %v16754_v57 = vmul.f32 0.5, %v16722_v1 }
 0xaf9   : > { %16584 = vmatprep.subr.bf16.mxu1 %v20078_v49  ;;  %v10120_v6 = vld [vmem:[#allocation10 + $0x1f58] sm:$0xff]  ;;  %v20045_v49 = vcombine.low %v10000_v13, %v10004_v60  ;;  %v20038_v32 = vcombine.high %v9992_v56, %v9996_v52  ;;  %v16652_v27 = vadd.f32 %v16651_v38, %v16650_v16  ;;  %v20037_v20 = vcombine.low %v9992_v56, %v9996_v52 }
 0xafa   : > { %16544 = vmatpush1.bf16.msra.mxu0 %v19949_v4  ;;  %v10124_v2 = vld [vmem:[#allocation10 + $0x1f78] sm:$0xff]  ;;  %v16760_v4 = vadd.f32 1e-05, %v16752_v50  ;;  %v16762_v40 = vadd.f32 1e-05, %v16754_v57  ;;  %v16618_v21 = vrot.slane %v16617_v14, 2 }
 0xafb   : > { %16545 = vmatprep.subr.bf16.mxu0 %v19942_v34  ;;  %v20166_v23 = vcombine.high %v10120_v6, %v10124_v2  ;;  %v9984_v42 = vld [vmem:[#allocation10 + $0x1b18] sm:$0xff]  ;;  %v20165_v41 = vcombine.low %v10120_v6, %v10124_v2  ;;  %v16653_v35 = vrot.slane %v16652_v27, 2 }
 0xafc   : > { %16585 = vmatpush1.bf16.msra.mxu1 %v20077_v25  ;;  %v9988_v5 = vld [vmem:[#allocation10 + $0x1b38] sm:$0xff]  ;;  %v16631_v25 = vadd.f32 %v16630_v59, %v16629_v0  ;;  %22231 = vrsqrt.f32 %v16760_v4 }
 0xafd   : > { %16586 = vmatprep.subr.bf16.mxu1 %v20070_v63  ;;  %v10112_v34 = vld [vmem:[#allocation10 + $0x1f18] sm:$0xff]  ;;  %v20030_v33 = vcombine.high %v9984_v42, %v9988_v5  ;;  %22233 = vrsqrt.f32 %v16762_v40  ;;  %v20029_v61 = vcombine.low %v9984_v42, %v9988_v5  ;;  %v16654_v44 = vadd.f32 %v16653_v35, %v16652_v27  ;;  %v22253_v35 = vld [vmem:[#allocation12] sm:$0xff] }
 0xafe   : > { %16546 = vmatpush1.bf16.msra.mxu0 %v19941_v46  ;;  %v10116_v63 = vld [vmem:[#allocation10 + $0x1f38] sm:$0xff] }
 0xaff   : > { %16547 = vmatprep.subr.bf16.mxu0 %v19934_v22  ;;  %v20158_v46 = vcombine.high %v10112_v34, %v10116_v63  ;;  %v9980_v22 = vld [vmem:[#allocation10 + $0x1af8] sm:$0xff]  ;;  %v20157_v55 = vcombine.low %v10112_v34, %v10116_v63  ;;  %v16655_v56 = vrot.slane %v16654_v44, 1 }
 0xb00   : > { %16587 = vmatpush1.bf16.msra.mxu1 %v20069_v53  ;;  %v9976_v53 = vld [vmem:[#allocation10 + $0x1ad8] sm:$0xff] }
 0xb01   : > { %16588 = vmatprep.subr.bf16.mxu1 %v20062_v19  ;;  %v16632_v19 = vrot.slane %v16631_v25, 2  ;;  %v10104_v62 = vld [vmem:[#allocation10 + $0x1ed8] sm:$0xff]  ;;  %v20022_v3 = vcombine.high %v9976_v53, %v9980_v22  ;;  %v20021_v31 = vcombine.low %v9976_v53, %v9980_v22 }
 0xb02   : > { %16548 = vmatpush1.bf16.msra.mxu0 %v19933_v58  ;;  %v10108_v29 = vld [vmem:[#allocation10 + $0x1ef8] sm:$0xff]  ;;  %v16619_v58 = vadd.f32 %v16618_v21, %v16617_v14  ;;  %v10169_v21 = vsub.s32 6, %v22835_v12 }
 0xb03   : > { %16549 = vmatprep.subr.bf16.mxu0 %v20054_v43  ;;  %v9968_v43 = vld [vmem:[#allocation10 + $0x1a98] sm:$0xff]  ;;  %v16633_v13 = vadd.f32 %v16632_v19, %v16631_v25  ;;  %v20149_v47 = vcombine.low %v10104_v62, %v10108_v29 }
 0xb04   : > { %16589 = vmatpush1.bf16.msra.mxu1 %v20061_v17  ;;  %v20150_v17 = vcombine.high %v10104_v62, %v10108_v29  ;;  %v10096_v60 = vld [vmem:[#allocation10 + $0x1e98] sm:$0xff]  ;;  %v16620_v1 = vrot.slane %v16619_v58, 1  ;;  %v10173_v62 = vsub.s32 7, %v22835_v12 }
 0xb05   : > { %16590 = vmatprep.subr.bf16.mxu1 %v20182_v54  ;;  %v9972_v54 = vld [vmem:[#allocation10 + $0x1ab8] sm:$0xff] }
 0xb06   : > { %16550 = vmatpush2.bf16.msra.mxu0 %v20053_v28  ;;  %v10100_v9 = vld [vmem:[#allocation10 + $0x1eb8] sm:$0xff]  ;;  %v20014_v0 = vcombine.high %v9968_v43, %v9972_v54  ;;  %v20013_v52 = vcombine.low %v9968_v43, %v9972_v54  ;;  %v16621_v6 = vadd.f32 %v16620_v1, %v16619_v58  ;;  %v10174_v12 = vrot.slane %v22253_v35, %v10173_v62  ;;  %v22034_v54 = vld [vmem:[#allocation13 + $0x164] ss:$8 sps:$4 sm:$0xff]  }
 0xb07   : > { %16551 = vmatprep.subr.bf16.mxu0 %v20046_v51  ;;  %v20142_v28 = vcombine.high %v10096_v60, %v10100_v9  ;;  %v9960_v16 = vld [vmem:[#allocation10 + $0x1a58] sm:$0xff]  ;;  %v16634_v51 = vrot.slane %v16633_v13, 1  ;;  %v20141_v50 = vcombine.low %v10096_v60, %v10100_v9 }
 0xb08   : > { %16591 = vmatpush2.bf16.msra.mxu1 %v20181_v36  ;;  %v9964_v36 = vld [vmem:[#allocation10 + $0x1a78] sm:$0xff]  ;;  %v16671_v34 = vmul.f32 0.5, %v16621_v6 }
 0xb09   : > { %16592 = vmatprep.subr.bf16.mxu1 %v20174_v24  ;;  %v10088_v10 = vld [vmem:[#allocation10 + $0x1e58] sm:$0xff]  ;;  %v20006_v59 = vcombine.high %v9960_v16, %v9964_v36  ;;  %v22232_v14 = vpop.eup %22231  ;;  %v20005_v42 = vcombine.low %v9960_v16, %v9964_v36 }
 0xb0a   : > { %16552 = vmatpush2.bf16.msra.mxu0 %v20045_v49  ;;  %v10092_v24 = vld [vmem:[#allocation10 + $0x1e78] sm:$0xff]  ;;  %v16635_v49 = vadd.f32 %v16634_v51, %v16633_v13  ;;  %v22234_v5 = vpop.eup %22233  ;;  %v16776_v40 = vmul.f32 %v22232_v14, %v24325_v8  ;;  %v24356_v22 = vsub.f32 %v24241_v48, %v16671_v34  ;;  %v22041_v14 = vld [vmem:[#allocation13 + $0x40] ss:$8 sps:$4 sm:$0xff]  }
 0xb0b   : > { %16553 = vmatprep.subr.bf16.mxu0 %v20038_v32  ;;  %v20134_v2 = vcombine.high %v10088_v10, %v10092_v24  ;;  %v9952_v57 = vld [vmem:[#allocation10 + $0x1a18] sm:$0xff]  ;;  %v20133_v4 = vcombine.low %v10088_v10, %v10092_v24 }
 0xb0c   : > { %16593 = vmatpush2.bf16.msra.mxu1 %v20173_v45  ;;  %v9956_v38 = vld [vmem:[#allocation10 + $0x1a38] sm:$0xff]  ;;  %v16673_v27 = vmul.f32 0.5, %v16635_v49  ;;  %v16687_v58 = vmul.f32 %v24356_v22, %v24356_v22 }
 0xb0d   : > { %16594 = vmatprep.subr.bf16.mxu1 %v20166_v23  ;;  %v10080_v45 = vld [vmem:[#allocation10 + $0x1e18] sm:$0xff]  ;;  %v16656_v23 = vadd.f32 %v16655_v56, %v16654_v44  ;;  %v19998_v25 = vcombine.high %v9952_v57, %v9956_v38 }
 0xb0e   : > { %16554 = vmatpush2.bf16.msra.mxu0 %v20037_v20  ;;  %v10084_v32 = vld [vmem:[#allocation10 + $0x1e38] sm:$0xff]  ;;  %v16778_v20 = vmul.f32 %v22234_v5, %v24328_v30  ;;  %v24360_v8 = vsub.f32 %v24283_v26, %v16673_v27  ;;  %v16784_v30 = vmax.f32 %v16776_v40, 0.0 }
 0xb0f   : > { %16555 = vmatprep.subr.bf16.mxu0 %v20030_v33  ;;  %v20126_v63 = vcombine.high %v10080_v45, %v10084_v32  ;;  %v19997_v33 = vcombine.low %v9952_v57, %v9956_v38  ;;  %v22025_v53 = vld [vmem:[#allocation13 + $0x74] ss:$8 sps:$4 sm:$0xff]   ;;  %v22026_v48 = vld [vmem:[#allocation13 + $0x170] ss:$8 sps:$4 sm:$0xff]   ;;  %v22043_v57 = vld [vmem:[#allocation13 + $0x44] ss:$8 sps:$4 sm:$0xff]  }
 0xb10   : > { %16595 = vmatpush2.bf16.msra.mxu1 %v20165_v41  ;;  %v16676_v41 = vmul.f32 0.5, %v16656_v23  ;;  %v22028_v19 = vld [vmem:[#allocation13 + $0x174] ss:$8 sps:$4 sm:$0xff]   ;;  %v16689_v26 = vmul.f32 %v24360_v8, %v24360_v8  ;;  %v22050_v27 = vld [vmem:[#allocation13 + $0x130] ss:$8 sps:$4 sm:$0xff]  }
 0xb11   : > { %16596 = vmatprep.subr.bf16.mxu1 %v20158_v46  ;;  %v20125_v46 = vcombine.low %v10080_v45, %v10084_v32  ;;  %v22037_v1 = vld [vmem:[#allocation13 + $0x54] ss:$8 sps:$4 sm:$0xff]   ;;  %v22046_v45 = vld [vmem:[#allocation13 + $0x144] ss:$8 sps:$4 sm:$0xff]  }
 0xb12   : > { %16556 = vmatpush2.bf16.msra.mxu0 %v20029_v61  ;;  %v24363_v29 = vsub.f32 %v24343_v39, %v16676_v41  ;;  %v10170_v61 = vrot.slane %v22253_v35, %v10169_v21  ;;  %v16792_v39 = vpack.c.bf16 %v16784_v30, %v16784_v30  ;;  %v22040_v51 = vld [vmem:[#allocation13 + $0x154] ss:$8 sps:$4 sm:$0xff]   ;;  %v16709_v10 = vsel %vm8888_vm5, %v16689_v26, 0.0 }
 0xb13   : > { %16557 = vmatprep.subr.bf16.mxu0 %v20022_v3  ;;  %v16786_v3 = vmax.f32 %v16778_v20, 0.0  ;;  %v16710_v38 = vrot.slane %v16709_v10, 4  ;;  %v22049_v5 = vld [vmem:[#allocation13 + $0x34] ss:$8 sps:$4 sm:$0xff]   ;;  %v22055_v20 = vld [vmem:[#allocation13 + $0x24] ss:$8 sps:$4 sm:$0xff]  }
 0xb14   : > { %16597 = vmatpush2.bf16.msra.mxu1 %v20157_v55  ;;  %v22023_v55 = vld [vmem:[#allocation13 + $0x70] ss:$8 sps:$4 sm:$0xff]   ;;  %v16692_v13 = vmul.f32 %v24363_v29, %v24363_v29  ;;  %v22061_v62 = vld [vmem:[#allocation13 + $0x14] ss:$8 sps:$4 sm:$0xff]  }
 0xb15   : > { %16598 = vmatprep.subr.bf16.mxu1 %v20150_v17  ;;  %v22031_v17 = vld [vmem:[#allocation13 + $0x64] ss:$8 sps:$4 sm:$0xff]   ;;  %v16794_v44 = vpack.c.bf16 %v16786_v3, %v16786_v3  ;;  %v22064_v35 = vld [vmem:[#allocation13 + $0x114] ss:$8 sps:$4 sm:$0xff]  }
 0xb16   : > { %16558 = vmatpush2.bf16.msra.mxu0 %v20021_v31  ;;  %v22029_v31 = vld [vmem:[#allocation13 + $0x60] ss:$8 sps:$4 sm:$0xff]   ;;  %v16730_v24 = vsel %vm8888_vm5, %v16692_v13, 0.0  ;;  %v22073_v13 = vld [vmem:[#allocation13 + $0xf4] ss:$8 sps:$4 sm:$0xff]  }
 0xb17   : > { %16559 = vmatprep.subr.bf16.mxu0 %v20014_v0  ;;  %v22032_v0 = vld [vmem:[#allocation13 + $0x160] ss:$8 sps:$4 sm:$0xff]   ;;  %v16731_v32 = vrot.slane %v16730_v24, 4 }
 0xb18   : > { %16599 = vmatpush2.bf16.msra.mxu1 %v20149_v47 }
 0xb19   : > { %16600 = vmatprep.subr.bf16.mxu1 %v20142_v28  ;;  %v16695_v28 = vsel %vm8888_vm5, %v16687_v58, 0.0  ;;  %v16732_v34 = vadd.f32 %v16731_v32, %v16730_v24  ;;  %v22067_v58 = vld [vmem:[#allocation13 + $0x4] ss:$8 sps:$4 sm:$0xff]  }
 0xb1a   : > { %16560 = vmatpush2.bf16.msra.mxu0 %v20013_v52 }
 0xb1b   : > { %16561 = vmatprep.subr.bf16.mxu0 %v20006_v59  ;;  %v16696_v59 = vrot.slane %v16695_v28, 4  ;;  %v16733_v21 = vrot.slane %v16732_v34, 2 }
 0xb1c   : > { %16601 = vmatpush2.bf16.msra.mxu1 %v20141_v50  ;;  %v22035_v50 = vld [vmem:[#allocation13 + $0x50] ss:$8 sps:$4 sm:$0xff]  }
 0xb1d   : > { %16602 = vmatprep.subr.bf16.mxu1 %v20134_v2  ;;  %v22038_v2 = vld [vmem:[#allocation13 + $0x150] ss:$8 sps:$4 sm:$0xff]   ;;  %v16697_v23 = vadd.f32 %v16696_v59, %v16695_v28  ;;  %v22079_v28 = vld [vmem:[#allocation13 + $0xe4] ss:$8 sps:$4 sm:$0xff]  }
 0xb1e   : > { %16562 = vmatpush2.bf16.msra.mxu0 %v20005_v42  ;;  %v22044_v42 = vld [vmem:[#allocation13 + $0x140] ss:$8 sps:$4 sm:$0xff]  }
 0xb1f   : > { %16563 = vmatprep.subr.bf16.mxu0 %v19998_v25  ;;  %v22052_v25 = vld [vmem:[#allocation13 + $0x134] ss:$8 sps:$4 sm:$0xff]   ;;  %v16698_v40 = vrot.slane %v16697_v23, 2 }
 0xb20   : > { %16603 = vmatpush2.bf16.msra.mxu1 %v20133_v4  ;;  %v16711_v4 = vadd.f32 %v16710_v38, %v16709_v10  ;;  %v22083_v38 = vld [vmem:[#allocation13 + $0xd0] ss:$8 sps:$4 sm:$0xff]  }
 0xb21   : > { %16604 = vmatprep.subr.bf16.mxu1 %v20126_v63  ;;  %v22047_v63 = vld [vmem:[#allocation13 + $0x30] ss:$8 sps:$4 sm:$0xff]  }
 0xb22   : > { %16564 = vmatpush2.bf16.msra.mxu0 %v19997_v33  ;;  %v16712_v41 = vrot.slane %v16711_v4, 2  ;;  %v22058_v33 = vld [vmem:[#allocation13 + $0x124] ss:$8 sps:$4 sm:$0xff]  }
 0xb23   : > { %17579 = vmatprep.subr.bf16.mxu0 %v22025_v53  ;;  %v16699_v53 = vadd.f32 %v16698_v40, %v16697_v23  ;;  %v22089_v23 = vld [vmem:[#allocation13 + $0xc0] ss:$8 sps:$4 sm:$0xff]   ;;  %v22103_v40 = vld [vmem:[#allocation13 + $0xa4] ss:$8 sps:$4 sm:$0xff]  }
 0xb24   : > { %16605 = vmatpush2.bf16.msra.mxu1 %v20125_v46  ;;  %v22053_v46 = vld [vmem:[#allocation13 + $0x20] ss:$8 sps:$4 sm:$0xff]   ;;  %v16713_v30 = vadd.f32 %v16712_v41, %v16711_v4 }
 0xb25   : > { %17620 = vmatprep.subr.bf16.mxu1 %v22028_v19  ;;  %v16321_v43 = vpop.f32.mrf.mxu0  ;;  %16566 = vmatmul.mubr.bf16.vlgmr.msra.gmra.mxu0 %v24202_v18  ;;  %v22056_v19 = vld [vmem:[#allocation13 + $0x120] ss:$8 sps:$4 sm:$0xff]   ;;  %v16700_v3 = vrot.slane %v16699_v53, 1 }
 0xb26   : > { %v16322_v60 = vadd.f32 %v16321_v43, %v10170_v61  ;;  %17580 = vmatpush1.bf16.msra.mxu0 %v22023_v55  ;;  %17611 = vmatprep.mubr.bf16.mxu0 %v16792_v39  ;;  %v16734_v61 = vadd.f32 %v16733_v21, %v16732_v34  ;;  %v22059_v55 = vld [vmem:[#allocation13 + $0x10] ss:$8 sps:$4 sm:$0xff]   ;;  %v22065_v43 = vld [vmem:[#allocation13] ss:$8 sps:$4 sm:$0xff]   ;;  %v22109_v21 = vld [vmem:[#allocation13 + $0x94] ss:$8 sps:$4 sm:$0xff]  }
 0xb27   : > { %v16362_v9 = vpop.f32.mrf.mxu1  ;;  %16607 = vmatmul.mubr.bf16.vlgmr.msra.gmra.mxu1 %v24207_v15  ;;  %v16323_v47 = vpop.f32.mrf.mxu0  ;;  %17581 = vmatprep.subr.bf16.mxu0 %v22031_v17  ;;  %v22070_v17 = vld [vmem:[#allocation13 + $0x104] ss:$8 sps:$4 sm:$0xff]   ;;  %v16701_v39 = vadd.f32 %v16700_v3, %v16699_v53  ;;  %v22095_v34 = vld [vmem:[#allocation13 + $0xb0] ss:$8 sps:$4 sm:$0xff]   ;;  %v22101_v41 = vld [vmem:[#allocation13 + $0xa0] ss:$8 sps:$4 sm:$0xff]  }
 0xb28   : > { %17621 = vmatpush1.bf16.msra.mxu1 %v22026_v48  ;;  %v24374_v18 = vadd.f32 %v16362_v9, %v16322_v60  ;;  %17652 = vmatprep.mubr.bf16.mxu1 %v16794_v44  ;;  %v16324_v16 = vadd.f32 %v16323_v47, %v10174_v12  ;;  %v22062_v48 = vld [vmem:[#allocation13 + $0x110] ss:$8 sps:$4 sm:$0xff]   ;;  %v16714_v12 = vrot.slane %v16713_v30, 1  ;;  %v16735_v26 = vrot.slane %v16734_v61, 1  ;;  %v22076_v9 = vld [vmem:[#allocation13 + $0x1f4] ss:$8 sps:$4 sm:$0xff]  }
 0xb29   : > { %v16364_v36 = vpop.f32.mrf.mxu1  ;;  %v16325_v15 = vpop.f32.mrf.mxu0  ;;  %17622 = vmatprep.subr.bf16.mxu1 %v22034_v54  ;;  %v22068_v54 = vld [vmem:[#allocation13 + $0x100] ss:$8 sps:$4 sm:$0xff]   ;;  %v16643_v44 = vsel %vm8888_vm5, %v24337_v37, 0.0  ;;  %v22071_v47 = vld [vmem:[#allocation13 + $0xf0] ss:$8 sps:$4 sm:$0xff]  }
 0xb2a   : > { %v24378_v56 = vadd.f32 %v16364_v36, %v16324_v16  ;;  %17582 = vmatpush1.bf16.msra.mxu0 %v22029_v31  ;;  %v16715_v60 = vadd.f32 %v16714_v12, %v16713_v30  ;;  %v16736_v31 = vadd.f32 %v16735_v26, %v16734_v61  ;;  %v16644_v36 = vrot.slane %v16643_v44, 4  ;;  %v22077_v15 = vld [vmem:[#allocation13 + $0xe0] ss:$8 sps:$4 sm:$0xff]   ;;  %v22115_v3 = vld [vmem:[#allocation13 + $0x84] ss:$8 sps:$4 sm:$0xff]  }
 0xb2b   : > { %v16366_v52 = vpop.f32.mrf.mxu1  ;;  %v16326_v6 = vpop.f32.mrf.mxu0  ;;  %17583 = vmatprep.subr.bf16.mxu0 %v22037_v1  ;;  %v22074_v1 = vld [vmem:[#allocation13 + $0x1f0] ss:$8 sps:$4 sm:$0xff]   ;;  %v22118_v12 = vld [vmem:[#allocation13 + $0x184] ss:$8 sps:$4 sm:$0xff]   ;;  %v22113_v26 = vld [vmem:[#allocation13 + $0x80] ss:$8 sps:$4 sm:$0xff]  }
 0xb2c   : > { %17623 = vmatpush1.bf16.msra.mxu1 %v22032_v0  ;;  %v16751_v0 = vmul.f32 0.5, %v16701_v39  ;;  %v16753_v16 = vmul.f32 0.5, %v16715_v60  ;;  %v16756_v10 = vmul.f32 0.5, %v16736_v31  ;;  %v22080_v52 = vld [vmem:[#allocation13 + $0x1e0] ss:$8 sps:$4 sm:$0xff]   ;;  %v16645_v6 = vadd.f32 %v16644_v36, %v16643_v44 }
 0xb2d   : > { %v16367_v49 = vpop.f32.mrf.mxu1  ;;  %17624 = vmatprep.subr.bf16.mxu1 %v22040_v51  ;;  %v22082_v51 = vld [vmem:[#allocation13 + $0x1e4] ss:$8 sps:$4 sm:$0xff]   ;;  %v22116_v39 = vld [vmem:[#allocation13 + $0x180] ss:$8 sps:$4 sm:$0xff]   ;;  %v22167_v36 = vld [vmem:[#allocation13 + $0x370] ss:$8 sps:$4 sm:$0xff]  }
 0xb2e   : > { %17584 = vmatpush1.bf16.msra.mxu0 %v22035_v50  ;;  %v16759_v24 = vadd.f32 1e-05, %v16751_v0  ;;  %v22085_v50 = vld [vmem:[#allocation13 + $0xd4] ss:$8 sps:$4 sm:$0xff]   ;;  %v16761_v59 = vadd.f32 1e-05, %v16753_v16 }
 0xb2f   : > { %17585 = vmatprep.subr.bf16.mxu0 %v22043_v57  ;;  %v16764_v57 = vadd.f32 1e-05, %v16756_v10  ;;  %v22086_v49 = vld [vmem:[#allocation13 + $0x1d0] ss:$8 sps:$4 sm:$0xff]   ;;  %v16646_v32 = vrot.slane %v16645_v6, 2 }
 0xb30   : > { %17625 = vmatpush1.bf16.msra.mxu1 %v22038_v2  ;;  %v22088_v2 = vld [vmem:[#allocation13 + $0x1d4] ss:$8 sps:$4 sm:$0xff]   ;;  %22235 = vrsqrt.f32 %v16759_v24  ;;  %v22124_v44 = vld [vmem:[#allocation13 + $0x264] ss:$8 sps:$4 sm:$0xff]   ;;  %v22122_v16 = vld [vmem:[#allocation13 + $0x260] ss:$8 sps:$4 sm:$0xff]  }
 0xb31   : > { %17626 = vmatprep.subr.bf16.mxu1 %v22046_v45  ;;  %v22091_v45 = vld [vmem:[#allocation13 + $0xc4] ss:$8 sps:$4 sm:$0xff]   ;;  %22237 = vrsqrt.f32 %v16761_v59  ;;  %v16647_v4 = vadd.f32 %v16646_v32, %v16645_v6  ;;  %v22127_v10 = vld [vmem:[#allocation13 + $0x254] ss:$8 sps:$4 sm:$0xff]  }
 0xb32   : > { %17586 = vmatpush1.bf16.msra.mxu0 %v22041_v14  ;;  %v22094_v14 = vld [vmem:[#allocation13 + $0x1c4] ss:$8 sps:$4 sm:$0xff]   ;;  %22239 = vrsqrt.f32 %v16764_v57  ;;  %v22125_v57 = vld [vmem:[#allocation13 + $0x250] ss:$8 sps:$4 sm:$0xff]  }
 0xb33   : > { %17587 = vmatprep.subr.bf16.mxu0 %v22049_v5  ;;  %v22097_v5 = vld [vmem:[#allocation13 + $0xb4] ss:$8 sps:$4 sm:$0xff]   ;;  %v22130_v32 = vld [vmem:[#allocation13 + $0x244] ss:$8 sps:$4 sm:$0xff]  }
 0xb34   : > { %17627 = vmatpush1.bf16.msra.mxu1 %v22044_v42  ;;  %v22092_v42 = vld [vmem:[#allocation13 + $0x1c0] ss:$8 sps:$4 sm:$0xff]  }
 0xb35   : > { %17628 = vmatprep.subr.bf16.mxu1 %v22052_v25  ;;  %v22100_v25 = vld [vmem:[#allocation13 + $0x1b4] ss:$8 sps:$4 sm:$0xff]  }
 0xb36   : > { %17588 = vmatpush1.bf16.msra.mxu0 %v22047_v63  ;;  %v22098_v63 = vld [vmem:[#allocation13 + $0x1b0] ss:$8 sps:$4 sm:$0xff]  }
 0xb37   : > { %17589 = vmatprep.subr.bf16.mxu0 %v22055_v20  ;;  %v22106_v20 = vld [vmem:[#allocation13 + $0x1a4] ss:$8 sps:$4 sm:$0xff]  }
 0xb38   : > { %17629 = vmatpush1.bf16.msra.mxu1 %v22050_v27  ;;  %v16648_v27 = vrot.slane %v16647_v4, 1 }
 0xb39   : > { %17630 = vmatprep.subr.bf16.mxu1 %v22058_v33  ;;  %v22104_v33 = vld [vmem:[#allocation13 + $0x1a0] ss:$8 sps:$4 sm:$0xff]  }
 0xb3a   : > { %17590 = vmatpush1.bf16.msra.mxu0 %v22053_v46  ;;  %v16649_v53 = vadd.f32 %v16648_v27, %v16647_v4  ;;  %v22133_v4 = vld [vmem:[#allocation13 + $0x234] ss:$8 sps:$4 sm:$0xff]   ;;  %v22136_v27 = vld [vmem:[#allocation13 + $0x224] ss:$8 sps:$4 sm:$0xff]  }
 0xb3b   : > { %17591 = vmatprep.subr.bf16.mxu0 %v22061_v62 }
 0xb3c   : > { %17631 = vmatpush1.bf16.msra.mxu1 %v22056_v19  ;;  %v22112_v19 = vld [vmem:[#allocation13 + $0x194] ss:$8 sps:$4 sm:$0xff]  }
 0xb3d   : > { %17632 = vmatprep.subr.bf16.mxu1 %v22064_v35  ;;  %v22236_v46 = vpop.eup %22235  ;;  %v22107_v35 = vld [vmem:[#allocation13 + $0x90] ss:$8 sps:$4 sm:$0xff]  }
 0xb3e   : > { %17592 = vmatpush1.bf16.msra.mxu0 %v22059_v55  ;;  %v22238_v62 = vpop.eup %22237  ;;  %v16775_v61 = vmul.f32 %v22236_v46, %v24356_v22  ;;  %v22110_v55 = vld [vmem:[#allocation13 + $0x190] ss:$8 sps:$4 sm:$0xff]   ;;  %v22139_v46 = vld [vmem:[#allocation13 + $0x214] ss:$8 sps:$4 sm:$0xff]  }
 0xb3f   : > { %17593 = vmatprep.subr.bf16.mxu0 %v22067_v58  ;;  %v22240_v30 = vpop.eup %22239  ;;  %v16675_v58 = vmul.f32 0.5, %v16649_v53  ;;  %v22184_v53 = vld [vmem:[#allocation13 + $0x324] ss:$8 sps:$4 sm:$0xff]  }
 0xb40   : > { %17633 = vmatpush1.bf16.msra.mxu1 %v22062_v48  ;;  %v16777_v48 = vmul.f32 %v22238_v62, %v24360_v8  ;;  %v22119_v8 = vld [vmem:[#allocation13 + $0x270] ss:$8 sps:$4 sm:$0xff]   ;;  %v22182_v62 = vld [vmem:[#allocation13 + $0x320] ss:$8 sps:$4 sm:$0xff]  }
 0xb41   : > { %17634 = vmatprep.subr.bf16.mxu1 %v22070_v17  ;;  %v16780_v17 = vmul.f32 %v22240_v30, %v24363_v29  ;;  %v24386_v22 = vsub.f32 %v24337_v37, %v16675_v58  ;;  %v22145_v58 = vld [vmem:[#allocation13 + $0x2f4] ss:$8 sps:$4 sm:$0xff]  }
 0xb42   : > { %17594 = vmatpush1.bf16.msra.mxu0 %v22065_v43  ;;  %v16783_v43 = vmax.f32 %v16775_v61, 0.0  ;;  %v22187_v61 = vld [vmem:[#allocation13 + $0x314] ss:$8 sps:$4 sm:$0xff]  }
 0xb43   : > { %17595 = vmatprep.subr.bf16.mxu0 %v22073_v13  ;;  %v16785_v13 = vmax.f32 %v16777_v48, 0.0  ;;  %v16788_v60 = vmax.f32 %v16780_v17, 0.0  ;;  %v16691_v31 = vmul.f32 %v24386_v22, %v24386_v22  ;;  %v22143_v17 = vld [vmem:[#allocation13 + $0x2f0] ss:$8 sps:$4 sm:$0xff]  }
 0xb44   : > { %17635 = vmatpush1.bf16.msra.mxu1 %v22068_v54  ;;  %v22121_v54 = vld [vmem:[#allocation13 + $0x274] ss:$8 sps:$4 sm:$0xff]  }
 0xb45   : > { %17636 = vmatprep.subr.bf16.mxu1 %v22076_v9  ;;  %v16791_v9 = vpack.c.bf16 %v16783_v43, %v16783_v43  ;;  %v16793_v29 = vpack.c.bf16 %v16785_v13, %v16785_v13  ;;  %v16796_v0 = vpack.c.bf16 %v16788_v60, %v16788_v60  ;;  %v22146_v13 = vld [vmem:[#allocation13 + $0x2e0] ss:$8 sps:$4 sm:$0xff]   ;;  %v22191_v60 = vld [vmem:[#allocation13 + $0x3f0] ss:$8 sps:$4 sm:$0xff]  }
 0xb46   : > { %17596 = vmatpush2.bf16.msra.mxu0 %v22071_v47 }
 0xb47   : > { %17597 = vmatprep.subr.bf16.mxu0 %v22079_v28 }
 0xb48   : > { %17637 = vmatpush2.bf16.msra.mxu1 %v22074_v1  ;;  %v22169_v1 = vld [vmem:[#allocation13 + $0x374] ss:$8 sps:$4 sm:$0xff]  }
 0xb49   : > { %17638 = vmatprep.subr.bf16.mxu1 %v22082_v51 }
 0xb4a   : > { %17598 = vmatpush2.bf16.msra.mxu0 %v22077_v15  ;;  %v16723_v15 = vsel %vm8888_vm5, %v16691_v31, 0.0  ;;  %v22194_v31 = vld [vmem:[#allocation13 + $0x3e0] ss:$8 sps:$4 sm:$0xff]  }
 0xb4b   : > { %17599 = vmatprep.subr.bf16.mxu0 %v22085_v50 }
 0xb4c   : > { %17639 = vmatpush2.bf16.msra.mxu1 %v22080_v52 }
 0xb4d   : > { %17640 = vmatprep.subr.bf16.mxu1 %v22088_v2 }
 0xb4e   : > { %17600 = vmatpush2.bf16.msra.mxu0 %v22083_v38  ;;  %v22170_v38 = vld [vmem:[#allocation13 + $0x360] ss:$8 sps:$4 sm:$0xff]  }
 0xb4f   : > { %17601 = vmatprep.subr.bf16.mxu0 %v22091_v45 }
 0xb50   : > { %17641 = vmatpush2.bf16.msra.mxu1 %v22086_v49  ;;  %v16724_v49 = vrot.slane %v16723_v15, 4 }
 0xb51   : > { %17642 = vmatprep.subr.bf16.mxu1 %v22094_v14 }
 0xb52   : > { %17602 = vmatpush2.bf16.msra.mxu0 %v22089_v23  ;;  %v22175_v23 = vld [vmem:[#allocation13 + $0x354] ss:$8 sps:$4 sm:$0xff]  }
 0xb53   : > { %17603 = vmatprep.subr.bf16.mxu0 %v22097_v5  ;;  %v16725_v5 = vadd.f32 %v16724_v49, %v16723_v15  ;;  %v22205_v15 = vld [vmem:[#allocation13 + $0x3b4] ss:$8 sps:$4 sm:$0xff]  }
 0xb54   : > { %17643 = vmatpush2.bf16.msra.mxu1 %v22092_v42  ;;  %v22173_v42 = vld [vmem:[#allocation13 + $0x350] ss:$8 sps:$4 sm:$0xff]  }
 0xb55   : > { %17644 = vmatprep.subr.bf16.mxu1 %v22100_v25  ;;  %v22178_v25 = vld [vmem:[#allocation13 + $0x344] ss:$8 sps:$4 sm:$0xff]  }
 0xb56   : > { %17604 = vmatpush2.bf16.msra.mxu0 %v22095_v34  ;;  %v22131_v34 = vld [vmem:[#allocation13 + $0x230] ss:$8 sps:$4 sm:$0xff]  }
 0xb57   : > { %17605 = vmatprep.subr.bf16.mxu0 %v22103_v40  ;;  %v16726_v40 = vrot.slane %v16725_v5, 2 }
 0xb58   : > { %17645 = vmatpush2.bf16.msra.mxu1 %v22098_v63  ;;  %v22176_v63 = vld [vmem:[#allocation13 + $0x340] ss:$8 sps:$4 sm:$0xff]  }
 0xb59   : > { %17646 = vmatprep.subr.bf16.mxu1 %v22106_v20  ;;  %v22181_v20 = vld [vmem:[#allocation13 + $0x334] ss:$8 sps:$4 sm:$0xff]  }
 0xb5a   : > { %17606 = vmatpush2.bf16.msra.mxu0 %v22101_v41  ;;  %v22134_v41 = vld [vmem:[#allocation13 + $0x220] ss:$8 sps:$4 sm:$0xff]  }
 0xb5b   : > { %17607 = vmatprep.subr.bf16.mxu0 %v22109_v21  ;;  %v16727_v21 = vadd.f32 %v16726_v40, %v16725_v5  ;;  %v22212_v5 = vld [vmem:[#allocation13 + $0x380] ss:$8 sps:$4 sm:$0xff]  }
 0xb5c   : > { %17647 = vmatpush2.bf16.msra.mxu1 %v22104_v33  ;;  %v22179_v33 = vld [vmem:[#allocation13 + $0x330] ss:$8 sps:$4 sm:$0xff]  }
 0xb5d   : > { %17648 = vmatprep.subr.bf16.mxu1 %v22112_v19  ;;  %v22137_v19 = vld [vmem:[#allocation13 + $0x210] ss:$8 sps:$4 sm:$0xff]   ;;  %v16728_v30 = vrot.slane %v16727_v21, 1 }
 0xb5e   : > { %17608 = vmatpush2.bf16.msra.mxu0 %v22107_v35  ;;  %v22142_v35 = vld [vmem:[#allocation13 + $0x204] ss:$8 sps:$4 sm:$0xff]  }
 0xb5f   : > { %17609 = vmatprep.subr.bf16.mxu0 %v22115_v3  ;;  %v22185_v3 = vld [vmem:[#allocation13 + $0x310] ss:$8 sps:$4 sm:$0xff]   ;;  %v16729_v48 = vadd.f32 %v16728_v30, %v16727_v21 }
 0xb60   : > { %17649 = vmatpush2.bf16.msra.mxu1 %v22110_v55  ;;  %v22140_v55 = vld [vmem:[#allocation13 + $0x200] ss:$8 sps:$4 sm:$0xff]  }
 0xb61   : > { %17650 = vmatprep.subr.bf16.mxu1 %v22118_v12  ;;  %v22190_v12 = vld [vmem:[#allocation13 + $0x304] ss:$8 sps:$4 sm:$0xff]   ;;  %v16755_v43 = vmul.f32 0.5, %v16729_v48 }
 0xb62   : > { %17610 = vmatpush2.bf16.msra.mxu0 %v22113_v26  ;;  %v22188_v26 = vld [vmem:[#allocation13 + $0x300] ss:$8 sps:$4 sm:$0xff]  }
 0xb63   : > { %17661 = vmatprep.subr.bf16.mxu0 %v22121_v54  ;;  %v22193_v54 = vld [vmem:[#allocation13 + $0x3f4] ss:$8 sps:$4 sm:$0xff]  }
 0xb64   : > { %17651 = vmatpush2.bf16.msra.mxu1 %v22116_v39  ;;  %v22148_v39 = vld [vmem:[#allocation13 + $0x2e4] ss:$8 sps:$4 sm:$0xff]  }
 0xb65   : > { %v16403_v47 = vpop.f32.mrf.mxu0  ;;  %17612 = vmatmul.mubr.bf16.vlgmr.msra.gmra.mxu0 %v16791_v9  ;;  %17702 = vmatprep.subr.bf16.mxu1 %v22169_v1  ;;  %v22151_v9 = vld [vmem:[#allocation13 + $0x2d4] ss:$8 sps:$4 sm:$0xff]   ;;  %v22152_v1 = vld [vmem:[#allocation13 + $0x2c0] ss:$8 sps:$4 sm:$0xff]  }
 0xb66   : > { %v16404_v28 = vadd.f32 %v16403_v47, %v24374_v18  ;;  %17662 = vmatpush1.bf16.msra.mxu0 %v22119_v8  ;;  %17693 = vmatprep.mubr.bf16.mxu0 %v16796_v0  ;;  %v22172_v18 = vld [vmem:[#allocation13 + $0x364] ss:$8 sps:$4 sm:$0xff]   ;;  %v16763_v8 = vadd.f32 1e-05, %v16755_v43  ;;  %v22199_v0 = vld [vmem:[#allocation13 + $0x3d4] ss:$8 sps:$4 sm:$0xff]  }
 0xb67   : > { %v16444_v37 = vpop.f32.mrf.mxu1  ;;  %17653 = vmatmul.mubr.bf16.vlgmr.msra.gmra.mxu1 %v16793_v29  ;;  %v16405_v51 = vpop.f32.mrf.mxu0  ;;  %17663 = vmatprep.subr.bf16.mxu0 %v22124_v44  ;;  %v22196_v44 = vld [vmem:[#allocation13 + $0x3e4] ss:$8 sps:$4 sm:$0xff]   ;;  %v22149_v29 = vld [vmem:[#allocation13 + $0x2d0] ss:$8 sps:$4 sm:$0xff]  }
 0xb68   : > { %v24392_v24 = vadd.f32 %v16444_v37, %v16404_v28  ;;  %v16406_v52 = vadd.f32 %v16405_v51, %v24378_v56  ;;  %17703 = vmatpush1.bf16.msra.mxu1 %v22167_v36  ;;  %v22128_v56 = vld [vmem:[#allocation13 + $0x240] ss:$8 sps:$4 sm:$0xff]   ;;  %22241 = vrsqrt.f32 %v16763_v8  ;;  %v22154_v47 = vld [vmem:[#allocation13 + $0x2c4] ss:$8 sps:$4 sm:$0xff]   ;;  %v22197_v28 = vld [vmem:[#allocation13 + $0x3d0] ss:$8 sps:$4 sm:$0xff]  }
 0xb69   : > { %v16446_v50 = vpop.f32.mrf.mxu1  ;;  %v16407_v59 = vpop.f32.mrf.mxu0  ;;  %17704 = vmatprep.subr.bf16.mxu1 %v22172_v18  ;;  %v22157_v37 = vld [vmem:[#allocation13 + $0x2b4] ss:$8 sps:$4 sm:$0xff]   ;;  %v22155_v36 = vld [vmem:[#allocation13 + $0x2b0] ss:$8 sps:$4 sm:$0xff]   ;;  %v22200_v51 = vld [vmem:[#allocation13 + $0x3c0] ss:$8 sps:$4 sm:$0xff]  }
 0xb6a   : > { %v24395_v6 = vadd.f32 %v16446_v50, %v16406_v52  ;;  %17664 = vmatpush1.bf16.msra.mxu0 %v22122_v16  ;;  %v22202_v16 = vld [vmem:[#allocation13 + $0x3c4] ss:$8 sps:$4 sm:$0xff]   ;;  %v22158_v52 = vld [vmem:[#allocation13 + $0x2a0] ss:$8 sps:$4 sm:$0xff]   ;;  %v22203_v50 = vld [vmem:[#allocation13 + $0x3b0] ss:$8 sps:$4 sm:$0xff]  }
 0xb6b   : > { %v16448_v2 = vpop.f32.mrf.mxu1  ;;  %v16408_v45 = vpop.f32.mrf.mxu0  ;;  %17665 = vmatprep.subr.bf16.mxu0 %v22127_v10  ;;  %v22160_v10 = vld [vmem:[#allocation13 + $0x2a4] ss:$8 sps:$4 sm:$0xff]   ;;  %v22163_v59 = vld [vmem:[#allocation13 + $0x294] ss:$8 sps:$4 sm:$0xff]  }
 0xb6c   : > { %17705 = vmatpush1.bf16.msra.mxu1 %v22170_v38  ;;  %v22208_v2 = vld [vmem:[#allocation13 + $0x3a4] ss:$8 sps:$4 sm:$0xff]   ;;  %v22206_v38 = vld [vmem:[#allocation13 + $0x3a0] ss:$8 sps:$4 sm:$0xff]  }
 0xb6d   : > { %v16449_v14 = vpop.f32.mrf.mxu1  ;;  %17706 = vmatprep.subr.bf16.mxu1 %v22175_v23  ;;  %v22166_v45 = vld [vmem:[#allocation13 + $0x284] ss:$8 sps:$4 sm:$0xff]   ;;  %v22209_v23 = vld [vmem:[#allocation13 + $0x390] ss:$8 sps:$4 sm:$0xff]  }
 0xb6e   : > { %17666 = vmatpush1.bf16.msra.mxu0 %v22125_v57  ;;  %v22161_v57 = vld [vmem:[#allocation13 + $0x290] ss:$8 sps:$4 sm:$0xff]   ;;  %v22164_v14 = vld [vmem:[#allocation13 + $0x280] ss:$8 sps:$4 sm:$0xff]  }
 0xb6f   : > { %17667 = vmatprep.subr.bf16.mxu0 %v22130_v32  ;;  %v22211_v32 = vld [vmem:[#allocation13 + $0x394] ss:$8 sps:$4 sm:$0xff]  }
 0xb70   : > { %17707 = vmatpush1.bf16.msra.mxu1 %v22173_v42  ;;  %v22214_v42 = vld [vmem:[#allocation13 + $0x384] ss:$8 sps:$4 sm:$0xff]  }
 0xb71   : > { %17708 = vmatprep.subr.bf16.mxu1 %v22178_v25 }
 0xb72   : > { %17668 = vmatpush1.bf16.msra.mxu0 %v22128_v56 }
 0xb73   : > { %17669 = vmatprep.subr.bf16.mxu0 %v22133_v4 }
 0xb74   : > { %17709 = vmatpush1.bf16.msra.mxu1 %v22176_v63 }
 0xb75   : > { %17710 = vmatprep.subr.bf16.mxu1 %v22181_v20  ;;  %v22242_v18 = vpop.eup %22241 }
 0xb76   : > { %17670 = vmatpush1.bf16.msra.mxu0 %v22131_v34  ;;  %v16779_v49 = vmul.f32 %v22242_v18, %v24386_v22 }
 0xb77   : > { %17671 = vmatprep.subr.bf16.mxu0 %v22136_v27 }
 0xb78   : > { %17711 = vmatpush1.bf16.msra.mxu1 %v22179_v33  ;;  %v16787_v56 = vmax.f32 %v16779_v49, 0.0 }
 0xb79   : > { %17712 = vmatprep.subr.bf16.mxu1 %v22184_v53 }
 0xb7a   : > { %17672 = vmatpush1.bf16.msra.mxu0 %v22134_v41  ;;  %v16795_v4 = vpack.c.bf16 %v16787_v56, %v16787_v56 }
 0xb7b   : > { %17673 = vmatprep.subr.bf16.mxu0 %v22139_v46 }
 0xb7c   : > { %17713 = vmatpush1.bf16.msra.mxu1 %v22182_v62 }
 0xb7d   : > { %17714 = vmatprep.subr.bf16.mxu1 %v22187_v61 }
 0xb7e   : > { %17674 = vmatpush1.bf16.msra.mxu0 %v22137_v19 }
 0xb7f   : > { %17675 = vmatprep.subr.bf16.mxu0 %v22142_v35 }
 0xb80   : > { %17715 = vmatpush1.bf16.msra.mxu1 %v22185_v3 }
 0xb81   : > { %17716 = vmatprep.subr.bf16.mxu1 %v22190_v12 }
 0xb82   : > { %17676 = vmatpush1.bf16.msra.mxu0 %v22140_v55 }
 0xb83   : > { %17677 = vmatprep.subr.bf16.mxu0 %v22145_v58 }
 0xb84   : > { %17717 = vmatpush1.bf16.msra.mxu1 %v22188_v26 }
 0xb85   : > { %17718 = vmatprep.subr.bf16.mxu1 %v22193_v54 }
 0xb86   : > { %17678 = vmatpush2.bf16.msra.mxu0 %v22143_v17 }
 0xb87   : > { %17679 = vmatprep.subr.bf16.mxu0 %v22148_v39 }
 0xb88   : > { %17719 = vmatpush2.bf16.msra.mxu1 %v22191_v60 }
 0xb89   : > { %17720 = vmatprep.subr.bf16.mxu1 %v22196_v44 }
 0xb8a   : > { %17680 = vmatpush2.bf16.msra.mxu0 %v22146_v13 }
 0xb8b   : > { %17681 = vmatprep.subr.bf16.mxu0 %v22151_v9 }
 0xb8c   : > { %17721 = vmatpush2.bf16.msra.mxu1 %v22194_v31 }
 0xb8d   : > { %17722 = vmatprep.subr.bf16.mxu1 %v22199_v0 }
 0xb8e   : > { %17682 = vmatpush2.bf16.msra.mxu0 %v22149_v29 }
 0xb8f   : > { %17683 = vmatprep.subr.bf16.mxu0 %v22154_v47 }
 0xb90   : > { %17723 = vmatpush2.bf16.msra.mxu1 %v22197_v28 }
 0xb91   : > { %17724 = vmatprep.subr.bf16.mxu1 %v22202_v16 }
 0xb92   : > { %17684 = vmatpush2.bf16.msra.mxu0 %v22152_v1 }
 0xb93   : > { %17685 = vmatprep.subr.bf16.mxu0 %v22157_v37 }
 0xb94   : > { %17725 = vmatpush2.bf16.msra.mxu1 %v22200_v51 }
 0xb95   : > { %17726 = vmatprep.subr.bf16.mxu1 %v22205_v15 }
 0xb96   : > { %17686 = vmatpush2.bf16.msra.mxu0 %v22155_v36 }
 0xb97   : > { %17687 = vmatprep.subr.bf16.mxu0 %v22160_v10 }
 0xb98   : > { %17727 = vmatpush2.bf16.msra.mxu1 %v22203_v50 }
 0xb99   : > { %17728 = vmatprep.subr.bf16.mxu1 %v22208_v2 }
 0xb9a   : > { %17688 = vmatpush2.bf16.msra.mxu0 %v22158_v52 }
 0xb9b   : > { %17689 = vmatprep.subr.bf16.mxu0 %v22163_v59 }
 0xb9c   : > { %17729 = vmatpush2.bf16.msra.mxu1 %v22206_v38 }
 0xb9d   : > { %17730 = vmatprep.subr.bf16.mxu1 %v22211_v32 }
 0xb9e   : > { %17690 = vmatpush2.bf16.msra.mxu0 %v22161_v57 }
 0xb9f   : > { %17691 = vmatprep.subr.bf16.mxu0 %v22166_v45 }
 0xba0   : > { %17731 = vmatpush2.bf16.msra.mxu1 %v22209_v23 }
 0xba1   : > { %17732 = vmatprep.subr.bf16.mxu1 %v22214_v42 }
 0xba2   : > { %17692 = vmatpush2.bf16.msra.mxu0 %v22164_v14 }
 0xba4   : > { %17733 = vmatpush2.bf16.msra.mxu1 %v22212_v5 }
 0xba5   : > { %v16485_v25 = vpop.f32.mrf.mxu0  ;;  %17694 = vmatmul.mubr.bf16.vlgmr.msra.gmra.mxu0 %v16795_v4 }
 0xba6   : > { %v16486_v22 = vadd.f32 %v16485_v25, %v24392_v24 }
 0xba7   : > { %v16526_v34 = vpop.f32.mrf.mxu1  ;;  %v16487_v63 = vpop.f32.mrf.mxu0 }
 0xba8   : > { %v16527_v40 = vadd.f32 %v16526_v34, %v16486_v22  ;;  %v16488_v46 = vadd.f32 %v16487_v63, %v24395_v6 }
 0xba9   : > { %v16528_v27 = vpop.f32.mrf.mxu1  ;;  %v16489_v20 = vpop.f32.mrf.mxu0 }
 0xbaa   : > { %v16529_v19 = vadd.f32 %v16528_v27, %v16488_v46  ;;  %v16927_v27 = vld [vmem:[#allocation15] sm:$0x3] }
 0xbab   : > { %v16530_v41 = vpop.f32.mrf.mxu1  ;;  %v16490_v33 = vpop.f32.mrf.mxu0  ;;  %v16936_v46 = vrot.slane %v16927_v27, %v23999_v7  ;;  %v22215_v7 = vld [vmem:[%s24482_s8 + $0x78] sm:$0xff]  }
 0xbac   : > { %v16932_v33 = vrot.slane %v16927_v27, %v23988_v11  ;;  %20332 = vmatprep.subr.bf16.mxu0 %v22215_v7 }
 0xbad   : > { %v16531_v21 = vpop.f32.mrf.mxu1 }
 0xbe5   : > { %v16567_v53 = vpop.f32.mrf.mxu0 }
 0xbe6   : > { %v16568_v62 = vadd.f32 %v16567_v53, %v16527_v40 }
 0xbe7   : > { %v16608_v30 = vpop.f32.mrf.mxu1  ;;  %v16569_v35 = vpop.f32.mrf.mxu0 }
 0xbe8   : > { %v16609_v61 = vadd.f32 %v16608_v30, %v16568_v62  ;;  %v16570_v55 = vadd.f32 %v16569_v35, %v16529_v19 }
 0xbe9   : > { %v16610_v3 = vpop.f32.mrf.mxu1  ;;  %v16571_v48 = vpop.f32.mrf.mxu0 }
 0xbea   : > { %v16657_v24 = vsel %vm8888_vm5, %v16609_v61, 0.0  ;;  %v16611_v58 = vadd.f32 %v16610_v3, %v16570_v55 }
 0xbeb   : > { %v16612_v12 = vpop.f32.mrf.mxu1  ;;  %v16658_v17 = vrot.slane %v16657_v24, 4  ;;  %v16572_v26 = vpop.f32.mrf.mxu0 }
 0xbec   : > { %v16664_v43 = vsel %vm8888_vm5, %v16611_v58, 0.0 }
 0xbed   : > { %v16613_v39 = vpop.f32.mrf.mxu1  ;;  %v16659_v54 = vadd.f32 %v16658_v17, %v16657_v24  ;;  %v16665_v6 = vrot.slane %v16664_v43, 4 }
 0xbef   : > { %v16660_v13 = vrot.slane %v16659_v54, 2  ;;  %v16666_v60 = vadd.f32 %v16665_v6, %v16664_v43  ;;  %v22216_v6 = vld [vmem:[%s24482_s8 + $0x38] sm:$0xff]  }
 0xbf0   : > { %20333 = vmatpush3.bf16.msra.mxu0 %v22216_v6 }
 0xbf1   : > { %v16661_v8 = vadd.f32 %v16660_v13, %v16659_v54  ;;  %v16667_v9 = vrot.slane %v16666_v60, 2  ;;  %v22217_v13 = vld [vmem:[%s24482_s8 + $0x70] sm:$0xff]  }
 0xbf2   : > { %20334 = vmatprep.subr.bf16.mxu0 %v22217_v13 }
 0xbf3   : > { %v16662_v44 = vrot.slane %v16661_v8, 1  ;;  %v16668_v29 = vadd.f32 %v16667_v9, %v16666_v60  ;;  %v22218_v60 = vld [vmem:[%s24482_s8 + $0x30] sm:$0xff]   ;;  %v22220_v9 = vld [vmem:[%s24482_s8 + $0x28] sm:$0xff]  }
 0xbf4   : > { %20335 = vmatpush3.bf16.msra.mxu0 %v22218_v60 }
 0xbf5   : > { %v16663_v31 = vadd.f32 %v16662_v44, %v16661_v8  ;;  %v16669_v47 = vrot.slane %v16668_v29, 1  ;;  %v22219_v8 = vld [vmem:[%s24482_s8 + $0x68] sm:$0xff]   ;;  %v22221_v44 = vld [vmem:[%s24482_s8 + $0x60] sm:$0xff]  }
 0xbf6   : > { %20336 = vmatprep.subr.bf16.mxu0 %v22219_v8 }
 0xbf7   : > { %v16677_v0 = vmul.f32 0.5, %v16663_v31  ;;  %v16670_v1 = vadd.f32 %v16669_v47, %v16668_v29  ;;  %v22222_v29 = vld [vmem:[%s24482_s8 + $0x20] sm:$0xff]   ;;  %v22223_v31 = vld [vmem:[%s24482_s8 + $0x58] sm:$0xff]  }
 0xbf8   : > { %20337 = vmatpush3.bf16.msra.mxu0 %v22220_v9  ;;  %v22224_v47 = vld [vmem:[%s24482_s8 + $0x18] sm:$0xff]   ;;  %v20311_v9 = vld [vmem:[#allocation4] ss:$0 sm:$0xff] }
 0xbf9   : > { %v16685_v28 = vsub.f32 %v16609_v61, %v16677_v0  ;;  %v16678_v37 = vmul.f32 0.5, %v16670_v1  ;;  %20338 = vmatprep.subr.bf16.mxu0 %v22221_v44  ;;  %v22225_v0 = vld [vmem:[%s24482_s8 + $0x50] sm:$0xff]  }
 0xbfa   : > { %v22226_v1 = vld [vmem:[%s24482_s8 + $0x10] sm:$0xff]  }
 0xbfb   : > { %v16693_v16 = vmul.f32 %v16685_v28, %v16685_v28  ;;  %v16686_v36 = vsub.f32 %v16611_v58, %v16678_v37  ;;  %v22228_v37 = vld [vmem:[%s24482_s8 + $0x8] sm:$0xff]  }
 0xbfc   : > { %20339 = vmatpush3.bf16.msra.mxu0 %v22222_v29 }
 0xbfd   : > { %v16737_v51 = vsel %vm8888_vm5, %v16693_v16, 0.0  ;;  %v16694_v10 = vmul.f32 %v16686_v36, %v16686_v36  ;;  %20340 = vmatprep.subr.bf16.mxu0 %v22223_v31  ;;  %v22229_v16 = vld [vmem:[%s24482_s8 + $0x40] sm:$0xff]  }
 0xbfe   : > { %v16738_v15 = vrot.slane %v16737_v51, 4 }
 0xbff   : > { %v16744_v52 = vsel %vm8888_vm5, %v16694_v10, 0.0 }
 0xc00   : > { %v16739_v50 = vadd.f32 %v16738_v15, %v16737_v51  ;;  %v16745_v59 = vrot.slane %v16744_v52, 4  ;;  %20341 = vmatpush3.bf16.msra.mxu0 %v22224_v47 }
 0xc01   : > { %20342 = vmatprep.subr.bf16.mxu0 %v22225_v0 }
 0xc02   : > { %v16740_v18 = vrot.slane %v16739_v50, 2  ;;  %v16746_v2 = vadd.f32 %v16745_v59, %v16744_v52 }
 0xc04   : > { %v16741_v57 = vadd.f32 %v16740_v18, %v16739_v50  ;;  %v16747_v38 = vrot.slane %v16746_v2, 2  ;;  %20343 = vmatpush3.bf16.msra.mxu0 %v22226_v1 }
 0xc06   : > { %v16742_v49 = vrot.slane %v16741_v57, 1  ;;  %v16748_v45 = vadd.f32 %v16747_v38, %v16746_v2 }
 0xc08   : > { %v16743_v32 = vadd.f32 %v16742_v49, %v16741_v57  ;;  %v16749_v14 = vrot.slane %v16748_v45, 1 }
 0xc0a   : > { %v16757_v23 = vmul.f32 0.5, %v16743_v32  ;;  %v16750_v56 = vadd.f32 %v16749_v14, %v16748_v45 }
 0xc0c   : > { %v16765_v42 = vadd.f32 1e-05, %v16757_v23  ;;  %v16758_v5 = vmul.f32 0.5, %v16750_v56 }
 0xc0e   : > { %22243 = vrsqrt.f32 %v16765_v42  ;;  %v16766_v4 = vadd.f32 1e-05, %v16758_v5 }
 0xc10   : > { %22245 = vrsqrt.f32 %v16766_v4 }
 0xc1b   : > { %v22244_v25 = vpop.eup %22243 }
 0xc1c   : > { %v16781_v22 = vmul.f32 %v22244_v25, %v16685_v28  ;;  %v22227_v28 = vld [vmem:[%s24482_s8 + $0x48] sm:$0xff]  }
 0xc1d   : > { %v22246_v34 = vpop.eup %22245  ;;  %20344 = vmatprep.subr.bf16.mxu0 %v22227_v28 }
 0xc1e   : > { %v16782_v63 = vmul.f32 %v22246_v34, %v16686_v36  ;;  %v16789_v40 = vmax.f32 %v16781_v22, 0.0  ;;  %20345 = vmatpush3.bf16.msra.mxu0 %v22228_v37  ;;  %v22230_v36 = vld [vmem:[%s24482_s8] sm:$0xff]  }
 0xc1f   : > { %20346 = vmatprep.subr.bf16.mxu0 %v22229_v16 }
 0xc20   : > { %v16790_v20 = vmax.f32 %v16782_v63, 0.0  ;;  %v16797_v21 = vpack.c.bf16 %v16789_v40, %v16789_v40 }
 0xc22   : > { %v16798_v41 = vpack.c.bf16 %v16790_v20, %v16790_v20  ;;  %20347 = vmatpush3.bf16.msra.mxu0 %v22230_v36 }
 0xc24   : > { %17734 = vmatprep.mubr.bf16.mxu1 %v16798_v41 }
 0xc25   : > { %v17613_v53 = vpop.f32.mrf.mxu0  ;;  %17735 = vmatmul.mubr.bf16.vlgmr.msra.gmra.mxu1 %v16797_v21 }
 0xc26   : > { %v17614_v19 = vadd.f32 %v17613_v53, %v16932_v33 }
 0xc27   : > { %v17654_v62 = vpop.f32.mrf.mxu1  ;;  %v17615_v30 = vpop.f32.mrf.mxu0 }
 0xc28   : > { %v17655_v35 = vadd.f32 %v17654_v62, %v17614_v19  ;;  %v17616_v61 = vadd.f32 %v17615_v30, %v16936_v46 }
 0xc29   : > { %v17656_v55 = vpop.f32.mrf.mxu1  ;;  %v17617_v3 = vpop.f32.mrf.mxu0 }
 0xc2a   : > { %v17657_v48 = vadd.f32 %v17656_v55, %v17616_v61 }
 0xc2b   : > { %v17658_v24 = vpop.f32.mrf.mxu1  ;;  %v17618_v58 = vpop.f32.mrf.mxu0 }
 0xc2d   : > { %v17659_v12 = vpop.f32.mrf.mxu1 }
 0xc65   : > { %v17695_v17 = vpop.f32.mrf.mxu0 }
 0xc66   : > { %v17696_v26 = vadd.f32 %v17695_v17, %v17655_v35 }
 0xc67   : > { %v17697_v11 = vpop.f32.mrf.mxu0 }
 0xc68   : > { %v17698_v43 = vadd.f32 %v17697_v11, %v17657_v48 }
 0xc69   : > { %v17699_v39 = vpop.f32.mrf.mxu0 }
 0xc6b   : > { %v17700_v54 = vpop.f32.mrf.mxu0 }
 0xce5   : > { %v17736_v51 = vpop.f32.mrf.mxu1 }
 0xce6   : > { %v17737_v10 = vadd.f32 %v17736_v51, %v17696_v26 }
 0xce7   : > { %v17738_v15 = vpop.f32.mrf.mxu1 }
 0xce8   : > { %v17743_v52 = vsel %vm8888_vm5, %v17737_v10, 0.0  ;;  %v17739_v50 = vadd.f32 %v17738_v15, %v17698_v43 }
 0xce9   : > { %v17744_v59 = vrot.slane %v17743_v52, 4  ;;  %v17740_v18 = vpop.f32.mrf.mxu1 }
 0xcea   : > { %v17750_v2 = vsel %vm8888_vm5, %v17739_v50, 0.0 }
 0xceb   : > { %v17745_v57 = vadd.f32 %v17744_v59, %v17743_v52  ;;  %v17751_v38 = vrot.slane %v17750_v2, 4  ;;  %v17741_v49 = vpop.f32.mrf.mxu1 }
 0xced   : > { %v17746_v45 = vrot.slane %v17745_v57, 2  ;;  %v17752_v32 = vadd.f32 %v17751_v38, %v17750_v2 }
 0xcef   : > { %v17747_v14 = vadd.f32 %v17746_v45, %v17745_v57  ;;  %v17753_v23 = vrot.slane %v17752_v32, 2 }
 0xcf1   : > { %v17748_v56 = vrot.slane %v17747_v14, 1  ;;  %v17754_v42 = vadd.f32 %v17753_v23, %v17752_v32 }
 0xcf3   : > { %v17749_v5 = vadd.f32 %v17748_v56, %v17747_v14  ;;  %v17755_v4 = vrot.slane %v17754_v42, 1 }
 0xcf5   : > { %v17757_v25 = vmul.f32 0.5, %v17749_v5  ;;  %v17756_v22 = vadd.f32 %v17755_v4, %v17754_v42 }
 0xcf7   : > { %v17759_v34 = vsub.f32 %v17737_v10, %v17757_v25  ;;  %v17758_v63 = vmul.f32 0.5, %v17756_v22 }
 0xcf9   : > { %v17761_v40 = vmul.f32 %v17759_v34, %v17759_v34  ;;  %v17760_v27 = vsub.f32 %v17739_v50, %v17758_v63 }
 0xcfb   : > { %v17763_v20 = vsel %vm8888_vm5, %v17761_v40, 0.0  ;;  %v17762_v41 = vmul.f32 %v17760_v27, %v17760_v27 }
 0xcfc   : > { %v17764_v33 = vrot.slane %v17763_v20, 4 }
 0xcfd   : > { %v17770_v21 = vsel %vm8888_vm5, %v17762_v41, 0.0 }
 0xcfe   : > { %v17765_v46 = vadd.f32 %v17764_v33, %v17763_v20  ;;  %v17771_v53 = vrot.slane %v17770_v21, 4 }
 0xd00   : > { %v17766_v19 = vrot.slane %v17765_v46, 2  ;;  %v17772_v62 = vadd.f32 %v17771_v53, %v17770_v21 }
 0xd02   : > { %v17767_v30 = vadd.f32 %v17766_v19, %v17765_v46  ;;  %v17773_v35 = vrot.slane %v17772_v62, 2 }
 0xd04   : > { %v17768_v61 = vrot.slane %v17767_v30, 1  ;;  %v17774_v55 = vadd.f32 %v17773_v35, %v17772_v62 }
 0xd06   : > { %v17769_v3 = vadd.f32 %v17768_v61, %v17767_v30  ;;  %v17775_v48 = vrot.slane %v17774_v55, 1 }
 0xd08   : > { %v17777_v24 = vmul.f32 0.5, %v17769_v3  ;;  %v17776_v58 = vadd.f32 %v17775_v48, %v17774_v55 }
 0xd0a   : > { %v17779_v12 = vadd.f32 1e-05, %v17777_v24  ;;  %v17778_v17 = vmul.f32 0.5, %v17776_v58 }
 0xd0c   : > { %22247 = vrsqrt.f32 %v17779_v12  ;;  %v17780_v26 = vadd.f32 1e-05, %v17778_v17 }
 0xd0e   : > { %22249 = vrsqrt.f32 %v17780_v26 }
 0xd19   : > { %v22248_v11 = vpop.eup %22247 }
 0xd1a   : > { %v17783_v43 = vmul.f32 %v22248_v11, %v17759_v34 }
 0xd1b   : > { %v22250_v39 = vpop.eup %22249 }
 0xd1c   : > { %v17784_v54 = vmul.f32 %v22250_v39, %v17760_v27  ;;  %v17785_v7 = vmax.f32 %v17783_v43, 0.0 }
 0xd1e   : > { %v17786_v6 = vmax.f32 %v17784_v54, 0.0  ;;  %v17787_v60 = vpack.c.bf16 %v17785_v7, %v17785_v7 }
 0xd20   : > { %v17788_v13 = vpack.c.bf16 %v17786_v6, %v17786_v6 }
 0xd22   : > { %17956 = vmatprep.mubr.bf16.mxu0 %v17788_v13 }
 0xd23   : > { %17957 = vmatmul.mubr.bf16.vlgmr.msra.gmra.mxu0 %v17787_v60 }
 0xde3   : > { %v20348_v8 = vpop.f32.mrf.mxu0 }
 0xde5   : > { %v20349_v44 = vpop.f32.mrf.mxu0 }
 0xde6   : > { %v20350_v29 = vadd.f32 %v20349_v44, %v20348_v8 }
 0xde7   : > { %v20351_v31 = vpop.f32.mrf.mxu0 }
 0xde8   : > { %v17959_v47 = vadd.f32 %v20350_v29, %v20311_v9 }
 0xde9   : > { %v20352_v0 = vpop.f32.mrf.mxu0 }
 0xdea   : > { %17965 = vst.msk [vmem:[%s24484_s10] sm:$0x3] %vm17964_vm6, %v17959_v47 }
 0xdeb PF: > { %p25_p12 = scmp.ge.s32.totalorder %s22628_s22, 6   ;;  %s24519_s15 = smov %s22478_s16 }
 0xdec   : > { %s24520_s16 = smov %s22482_s17  ;;  %s24521_s17 = smov %s22637_s28 }
 0xded   : > { %s24522_s18 = smov %s22628_s22  ;;  %27 = sbr.rel (!%p25_p12) target bundleno = 10 (0xa), region = 137 }
 0xdf2   :  { %17977 = vsyncpa [#allocation6], 1 }
 0xdf3   :  { %17979 = vsyncpa [#allocation6 + $0x1], 1 }
 0xdf4   :  { %17980 = vsyncpa [#allocation8], 1 }
 0xdf5   :  { %17982 = vsyncpa [#allocation8 + $0x1], 1 }
 0xdf6   :  { %17983 = vsyncpa [#allocation11], 1 }
 0xdf7   :  { %17984 = vsyncpa [#allocation14], 1 }

</bundles_post_ra>
